<compile_context>
chip_gen: v7x
topology: tpu7x:2x2x1
jax: 0.10.0
libtpu: 0.0.40
codegen_flags: <defaults>
</compile_context>

<pallas_src>
import functools

import jax
import jax.numpy as jnp
from jax import lax
from jax.experimental import pallas as pl
from jax.experimental.pallas import tpu as pltpu


_SQRT_HALF = 0.7071067811865476


def _erf(z):
    # Abramowitz & Stegun 7.1.26 rational approximation (|err| ~ 1.5e-7): matches
    # PyTorch's exact (erf-based) nn.GELU() far below the bf16-MXU error floor.
    # The 1/(1 + p|z|) goes through the EUP approx-reciprocal (frees a VALU divide).
    a1, a2, a3, a4, a5 = (0.254829592, -0.284496736, 1.421413741,
                          -1.453152027, 1.061405429)
    p = 0.3275911
    s = jnp.where(z >= 0.0, 1.0, -1.0)
    za = jnp.abs(z)
    t = pl.reciprocal(1.0 + p * za, approx=True)
    poly = ((((a5 * t + a4) * t + a3) * t + a2) * t + a1) * t
    return s * (1.0 - poly * jnp.exp(-za * za))


def _gelu_exact(x):
    # PyTorch nn.GELU() default (erf form).
    return 0.5 * x * (1.0 + _erf(x * _SQRT_HALF))


def _instance_norm(y, eps=1e-5):
    # y: (HW, C). nn.InstanceNorm2d defaults: affine=False, biased var, eps=1e-5.
    # One-pass: sum and sum-of-squares together (f32 accumulation is ample at
    # these conv-output magnitudes).
    inv_hw = 1.0 / y.shape[0]
    mean = jnp.sum(y, axis=0, keepdims=True) * inv_hw
    mean_sq = jnp.sum(y * y, axis=0, keepdims=True) * inv_hw
    var = mean_sq - mean * mean
    return (y - mean) * lax.rsqrt(var + eps)


def _resnet_block_kernel(xp_ref, xres_ref, w1_ref, b1_ref, w2_ref, b2_ref,
                         o_ref, patch_ref, h1p_ref, *, H, W, C):
    HW = H * W

    def build_patches(tap):
        # im2col: 9 shifted (H, W, C) bf16 windows packed side-by-side along lanes.
        for t in range(9):
            kh, kw = divmod(t, 3)
            patch_ref[:, t * C:(t + 1) * C] = tap(kh, kw).reshape(HW, C)

    def conv3x3(w_ref, b_ref):
        # Single big-K MXU dot: (HW, 9C) x (9C, C), f32 accumulation inside the MXU.
        return jnp.dot(patch_ref[...], w_ref[...],
                       preferred_element_type=jnp.float32) + b_ref[...]

    # ---- conv1: input already reflection-padded and bf16-cast in the wrapper ----
    build_patches(lambda kh, kw: xp_ref[0, kh:kh + H, kw:kw + W, :])
    y1 = conv3x3(w1_ref, b1_ref)

    # ---- fused InstanceNorm + GELU epilogue (f32 on VPU/EUP) ----
    h1 = _gelu_exact(_instance_norm(y1)).astype(jnp.bfloat16).reshape(H, W, C)

    # ---- reflection-pad the intermediate straight into the bf16 VMEM scratch ----
    h1p_ref[1:H + 1, 1:W + 1, :] = h1                        # body
    h1p_ref[0:1, 1:W + 1, :] = h1[1:2]                       # top row    = row 1
    h1p_ref[H + 1:H + 2, 1:W + 1, :] = h1[H - 2:H - 1]       # bottom row = row H-2
    h1p_ref[:, 0:1, :] = h1p_ref[:, 2:3, :]                  # left col   = col 1   (incl. corners)
    h1p_ref[:, W + 1:W + 2, :] = h1p_ref[:, W - 1:W, :]      # right col  = col W-2 (incl. corners)

    # ---- conv2 over the bf16 padded intermediate (never leaves VMEM) ----
    build_patches(lambda kh, kw: h1p_ref[kh:kh + H, kw:kw + W, :])
    y2 = conv3x3(w2_ref, b2_ref)

    # ---- fused InstanceNorm + residual add (aligned f32 residual input) ----
    o_ref[0, :, :] = (_instance_norm(y2) + xres_ref[0]).astype(o_ref.dtype)


def pack_resnet_block_params(params):
    """One-time repack (hoisted off the per-call critical path): OIHW f32 weights
    -> (9C, C) bf16 with rows ordered [kh, kw, ic]; biases -> (1, C) f32."""
    (w1, b1), (w2, b2) = params
    C = w1.shape[0]
    for w in (w1, w2):
        assert w.shape == (C, C, 3, 3), "only kernel_size=3 with in==out channels is supported"
    assert C % 128 == 0, "lane-dense layout requires num_filter to be a multiple of 128"

    def pack(w):
        return jnp.transpose(w, (2, 3, 1, 0)).reshape(9 * C, C).astype(jnp.bfloat16)

    return (pack(w1), b1.reshape(1, C).astype(jnp.float32),
            pack(w2), b2.reshape(1, C).astype(jnp.float32))


def resnet_block_forward(x_nchw, packed_params):
    """ResnetBlock forward (kernel_size=3, stride=1, padding=0 config). NCHW in/out."""
    # TODO(synk): only the default (kernel_size=3, stride=1, padding=0) configuration
    # is implemented; other configs break the residual add in the original module too.
    w1p, b1r, w2p, b2r = packed_params
    C = w1p.shape[1]

    x = jnp.transpose(x_nchw, (0, 2, 3, 1))                   # NCHW -> NHWC (C on lanes)
    N, H, W, Cx = x.shape
    assert Cx == C and C % 128 == 0
    HW = H * W

    # Reflection pad + single bf16 cast in the wrapper (halves the input DMA and
    # removes all in-kernel activation casts).  The residual stays f32 via a
    # separate lane-dense (N, HW, C) input.
    xp = jnp.pad(x, ((0, 0), (1, 1), (1, 1), (0, 0)), mode="reflect").astype(jnp.bfloat16)
    x_res = x.reshape(N, HW, C)

    cost = pl.CostEstimate(
        flops=2 * 2 * N * HW * 9 * C * C,                     # two 3x3 convs
        transcendentals=2 * N * HW * C,                       # exp + approx-recip in GELU
        bytes_accessed=(xp.size * 2 + x_res.size * 4
                        + 2 * (9 * C * C) * 2 + N * HW * C * 4),
    )

    kernel = functools.partial(_resnet_block_kernel, H=H, W=W, C=C)
    out = pl.pallas_call(
        kernel,
        out_shape=jax.ShapeDtypeStruct((N, HW, C), jnp.float32),
        grid=(N,),
        in_specs=[
            pl.BlockSpec((1, H + 2, W + 2, C), lambda n: (n, 0, 0, 0)),  # padded x (bf16)
            pl.BlockSpec((1, HW, C), lambda n: (n, 0, 0)),               # residual (f32)
            pl.BlockSpec((9 * C, C), lambda n: (0, 0)),                  # w1 (bf16)
            pl.BlockSpec((1, C), lambda n: (0, 0)),                      # b1 (f32)
            pl.BlockSpec((9 * C, C), lambda n: (0, 0)),                  # w2 (bf16)
            pl.BlockSpec((1, C), lambda n: (0, 0)),                      # b2 (f32)
        ],
        out_specs=pl.BlockSpec((1, HW, C), lambda n: (n, 0, 0)),
        scratch_shapes=[
            pltpu.VMEM((HW, 9 * C), jnp.bfloat16),        # shared im2col buffer (~576 KiB)
            pltpu.VMEM((H + 2, W + 2, C), jnp.bfloat16),  # padded intermediate  (~81 KiB)
        ],
        compiler_params=pltpu.CompilerParams(dimension_semantics=("parallel",)),
        cost_estimate=cost,
    )(xp, x_res, w1p, b1r, w2p, b2r)

    out = out.reshape(N, H, W, C)
    return jnp.transpose(out, (0, 3, 1, 2))                   # back to NCHW


# ----------------------------------------------------------------------------
# Pure-JAX reference (exact PyTorch semantics, HIGHEST-precision convs)
# ----------------------------------------------------------------------------
def reference_forward(x_nchw, params):
    (w1, b1), (w2, b2) = params

    def conv(h, w, b):
        hp = jnp.pad(h, ((0, 0), (0, 0), (1, 1), (1, 1)), mode="reflect")
        y = lax.conv_general_dilated(
            hp, w, (1, 1), "VALID",
            dimension_numbers=("NCHW", "OIHW", "NCHW"),
            precision=lax.Precision.HIGHEST)
        return y + b[None, :, None, None]

    def inorm(h):
        m = jnp.mean(h, axis=(2, 3), keepdims=True)
        v = jnp.mean((h - m) ** 2, axis=(2, 3), keepdims=True)
        return (h - m) / jnp.sqrt(v + 1e-5)

    h = conv(x_nchw, w1, b1)
    h = inorm(h)
    h = jax.nn.gelu(h, approximate=False)
    h = conv(h, w2, b2)
    h = inorm(h)
    return h + x_nchw


# ----------------------------------------------------------------------------
if __name__ == "__main__":
    key = jax.random.PRNGKey(0)
    num_filter, N, H, W = 128, 2, 16, 16

    kx, k1w, k1b, k2w, k2b = jax.random.split(key, 5)
    x = jax.random.normal(kx, (N, num_filter, H, W), jnp.float32)
    params = [
        (0.02 * jax.random.normal(k1w, (num_filter, num_filter, 3, 3), jnp.float32),
         0.02 * jax.random.normal(k1b, (num_filter,), jnp.float32)),
        (0.02 * jax.random.normal(k2w, (num_filter, num_filter, 3, 3), jnp.float32),
         0.02 * jax.random.normal(k2b, (num_filter,), jnp.float32)),
    ]

    # One-time weight repack (not on the per-call critical path).
    packed = jax.block_until_ready(pack_resnet_block_params(params))

    fwd = jax.jit(resnet_block_forward)
    out = jax.block_until_ready(fwd(x, packed))
    assert out.shape == x.shape, out.shape

    ref = jax.block_until_ready(reference_forward(x, params))
    max_err = float(jnp.max(jnp.abs(out - ref)))
    # bf16 MXU inputs (f32 accumulation) vs HIGHEST-precision f32 reference is the
    # dominant error source; 5e-2 is the documented tolerance for that gap.
    assert max_err < 5e-2, f"mismatch vs reference: {max_err}"

    print("KERNEL_OK")
</pallas_src>

<mosaic_0001>
module attributes {stable_mosaic.version = 11 : i64} {
  func.func @_resnet_block_kernel(%arg0: i32, %arg1: memref<1x18x18x128xbf16, #tpu.memory_space<vmem>>, %arg2: memref<1x256x128xf32, #tpu.memory_space<vmem>>, %arg3: memref<1152x128xbf16, #tpu.memory_space<vmem>>, %arg4: memref<1x128xf32, #tpu.memory_space<vmem>>, %arg5: memref<1152x128xbf16, #tpu.memory_space<vmem>>, %arg6: memref<1x128xf32, #tpu.memory_space<vmem>>, %arg7: memref<1x256x128xf32, #tpu.memory_space<vmem>>, %arg8: memref<256x1152xbf16, #tpu.memory_space<vmem>>, %arg9: memref<18x18x128xbf16, #tpu.memory_space<vmem>>) attributes {dimension_semantics = [#tpu.dimension_semantics<parallel>], iteration_bounds = array<i64: 2>, scalar_prefetch = 0 : i64, scratch_operands = 2 : i64, tpu.core_type = #tpu.core_type<tc>, window_params = [{transform_indices = @transform_0, window_bounds = array<i64: 1, 18, 18, 128>}, {transform_indices = @transform_1, window_bounds = array<i64: 1, 256, 128>}, {pipeline_mode = #tpu.pipeline_mode<synchronous>, transform_indices = @transform_2, window_bounds = array<i64: 1152, 128>}, {pipeline_mode = #tpu.pipeline_mode<synchronous>, transform_indices = @transform_3, window_bounds = array<i64: 1, 128>}, {pipeline_mode = #tpu.pipeline_mode<synchronous>, transform_indices = @transform_4, window_bounds = array<i64: 1152, 128>}, {pipeline_mode = #tpu.pipeline_mode<synchronous>, transform_indices = @transform_5, window_bounds = array<i64: 1, 128>}, {transform_indices = @transform_6, window_bounds = array<i64: 1, 256, 128>}]} {
    %c0 = arith.constant 0 : index
    %c0_0 = arith.constant 0 : index
    %c0_1 = arith.constant 0 : index
    %c0_2 = arith.constant 0 : index
    %0 = vector.load %arg1[%c0, %c0_0, %c0_1, %c0_2] : memref<1x18x18x128xbf16, #tpu.memory_space<vmem>>, vector<1x16x16x128xbf16>
    %1 = vector.shape_cast %0 : vector<1x16x16x128xbf16> to vector<16x16x128xbf16>
    %2 = vector.shape_cast %1 : vector<16x16x128xbf16> to vector<256x128xbf16>
    %c0_3 = arith.constant 0 : index
    %c0_4 = arith.constant 0 : index
    %3 = vector.load %arg8[%c0_3, %c0_4] : memref<256x1152xbf16, #tpu.memory_space<vmem>>, vector<256x128xbf16>
    tpu.vector_store %arg8[%c0_3, %c0_4], %2 {strides = array<i32>} : memref<256x1152xbf16, #tpu.memory_space<vmem>>, vector<256x128xbf16>,
    %c0_5 = arith.constant 0 : index
    %c0_6 = arith.constant 0 : index
    %c1 = arith.constant 1 : index
    %c0_7 = arith.constant 0 : index
    %4 = vector.load %arg1[%c0_5, %c0_6, %c1, %c0_7] : memref<1x18x18x128xbf16, #tpu.memory_space<vmem>>, vector<1x16x16x128xbf16>
    %5 = vector.shape_cast %4 : vector<1x16x16x128xbf16> to vector<16x16x128xbf16>
    %6 = vector.shape_cast %5 : vector<16x16x128xbf16> to vector<256x128xbf16>
    %c0_8 = arith.constant 0 : index
    %c128 = arith.constant 128 : index
    %7 = vector.load %arg8[%c0_8, %c128] : memref<256x1152xbf16, #tpu.memory_space<vmem>>, vector<256x128xbf16>
    tpu.vector_store %arg8[%c0_8, %c128], %6 {strides = array<i32>} : memref<256x1152xbf16, #tpu.memory_space<vmem>>, vector<256x128xbf16>,
    %c0_9 = arith.constant 0 : index
    %c0_10 = arith.constant 0 : index
    %c2 = arith.constant 2 : index
    %c0_11 = arith.constant 0 : index
    %8 = vector.load %arg1[%c0_9, %c0_10, %c2, %c0_11] : memref<1x18x18x128xbf16, #tpu.memory_space<vmem>>, vector<1x16x16x128xbf16>
    %9 = vector.shape_cast %8 : vector<1x16x16x128xbf16> to vector<16x16x128xbf16>
    %10 = vector.shape_cast %9 : vector<16x16x128xbf16> to vector<256x128xbf16>
    %c0_12 = arith.constant 0 : index
    %c256 = arith.constant 256 : index
    %11 = vector.load %arg8[%c0_12, %c256] : memref<256x1152xbf16, #tpu.memory_space<vmem>>, vector<256x128xbf16>
    tpu.vector_store %arg8[%c0_12, %c256], %10 {strides = array<i32>} : memref<256x1152xbf16, #tpu.memory_space<vmem>>, vector<256x128xbf16>,
    %c0_13 = arith.constant 0 : index
    %c1_14 = arith.constant 1 : index
    %c0_15 = arith.constant 0 : index
    %c0_16 = arith.constant 0 : index
    %12 = vector.load %arg1[%c0_13, %c1_14, %c0_15, %c0_16] : memref<1x18x18x128xbf16, #tpu.memory_space<vmem>>, vector<1x16x16x128xbf16>
    %13 = vector.shape_cast %12 : vector<1x16x16x128xbf16> to vector<16x16x128xbf16>
    %14 = vector.shape_cast %13 : vector<16x16x128xbf16> to vector<256x128xbf16>
    %c0_17 = arith.constant 0 : index
    %c384 = arith.constant 384 : index
    %15 = vector.load %arg8[%c0_17, %c384] : memref<256x1152xbf16, #tpu.memory_space<vmem>>, vector<256x128xbf16>
    tpu.vector_store %arg8[%c0_17, %c384], %14 {strides = array<i32>} : memref<256x1152xbf16, #tpu.memory_space<vmem>>, vector<256x128xbf16>,
    %c0_18 = arith.constant 0 : index
    %c1_19 = arith.constant 1 : index
    %c1_20 = arith.constant 1 : index
    %c0_21 = arith.constant 0 : index
    %16 = vector.load %arg1[%c0_18, %c1_19, %c1_20, %c0_21] : memref<1x18x18x128xbf16, #tpu.memory_space<vmem>>, vector<1x16x16x128xbf16>
    %17 = vector.shape_cast %16 : vector<1x16x16x128xbf16> to vector<16x16x128xbf16>
    %18 = vector.shape_cast %17 : vector<16x16x128xbf16> to vector<256x128xbf16>
    %c0_22 = arith.constant 0 : index
    %c512 = arith.constant 512 : index
    %19 = vector.load %arg8[%c0_22, %c512] : memref<256x1152xbf16, #tpu.memory_space<vmem>>, vector<256x128xbf16>
    tpu.vector_store %arg8[%c0_22, %c512], %18 {strides = array<i32>} : memref<256x1152xbf16, #tpu.memory_space<vmem>>, vector<256x128xbf16>,
    %c0_23 = arith.constant 0 : index
    %c1_24 = arith.constant 1 : index
    %c2_25 = arith.constant 2 : index
    %c0_26 = arith.constant 0 : index
    %20 = vector.load %arg1[%c0_23, %c1_24, %c2_25, %c0_26] : memref<1x18x18x128xbf16, #tpu.memory_space<vmem>>, vector<1x16x16x128xbf16>
    %21 = vector.shape_cast %20 : vector<1x16x16x128xbf16> to vector<16x16x128xbf16>
    %22 = vector.shape_cast %21 : vector<16x16x128xbf16> to vector<256x128xbf16>
    %c0_27 = arith.constant 0 : index
    %c640 = arith.constant 640 : index
    %23 = vector.load %arg8[%c0_27, %c640] : memref<256x1152xbf16, #tpu.memory_space<vmem>>, vector<256x128xbf16>
    tpu.vector_store %arg8[%c0_27, %c640], %22 {strides = array<i32>} : memref<256x1152xbf16, #tpu.memory_space<vmem>>, vector<256x128xbf16>,
    %c0_28 = arith.constant 0 : index
    %c2_29 = arith.constant 2 : index
    %c0_30 = arith.constant 0 : index
    %c0_31 = arith.constant 0 : index
    %24 = vector.load %arg1[%c0_28, %c2_29, %c0_30, %c0_31] : memref<1x18x18x128xbf16, #tpu.memory_space<vmem>>, vector<1x16x16x128xbf16>
    %25 = vector.shape_cast %24 : vector<1x16x16x128xbf16> to vector<16x16x128xbf16>
    %26 = vector.shape_cast %25 : vector<16x16x128xbf16> to vector<256x128xbf16>
    %c0_32 = arith.constant 0 : index
    %c768 = arith.constant 768 : index
    %27 = vector.load %arg8[%c0_32, %c768] : memref<256x1152xbf16, #tpu.memory_space<vmem>>, vector<256x128xbf16>
    tpu.vector_store %arg8[%c0_32, %c768], %26 {strides = array<i32>} : memref<256x1152xbf16, #tpu.memory_space<vmem>>, vector<256x128xbf16>,
    %c0_33 = arith.constant 0 : index
    %c2_34 = arith.constant 2 : index
    %c1_35 = arith.constant 1 : index
    %c0_36 = arith.constant 0 : index
    %28 = vector.load %arg1[%c0_33, %c2_34, %c1_35, %c0_36] : memref<1x18x18x128xbf16, #tpu.memory_space<vmem>>, vector<1x16x16x128xbf16>
    %29 = vector.shape_cast %28 : vector<1x16x16x128xbf16> to vector<16x16x128xbf16>
    %30 = vector.shape_cast %29 : vector<16x16x128xbf16> to vector<256x128xbf16>
    %c0_37 = arith.constant 0 : index
    %c896 = arith.constant 896 : index
    %31 = vector.load %arg8[%c0_37, %c896] : memref<256x1152xbf16, #tpu.memory_space<vmem>>, vector<256x128xbf16>
    tpu.vector_store %arg8[%c0_37, %c896], %30 {strides = array<i32>} : memref<256x1152xbf16, #tpu.memory_space<vmem>>, vector<256x128xbf16>,
    %c0_38 = arith.constant 0 : index
    %c2_39 = arith.constant 2 : index
    %c2_40 = arith.constant 2 : index
    %c0_41 = arith.constant 0 : index
    %32 = vector.load %arg1[%c0_38, %c2_39, %c2_40, %c0_41] : memref<1x18x18x128xbf16, #tpu.memory_space<vmem>>, vector<1x16x16x128xbf16>
    %33 = vector.shape_cast %32 : vector<1x16x16x128xbf16> to vector<16x16x128xbf16>
    %34 = vector.shape_cast %33 : vector<16x16x128xbf16> to vector<256x128xbf16>
    %c0_42 = arith.constant 0 : index
    %c1024 = arith.constant 1024 : index
    %35 = vector.load %arg8[%c0_42, %c1024] : memref<256x1152xbf16, #tpu.memory_space<vmem>>, vector<256x128xbf16>
    tpu.vector_store %arg8[%c0_42, %c1024], %34 {strides = array<i32>} : memref<256x1152xbf16, #tpu.memory_space<vmem>>, vector<256x128xbf16>,
    %c0_43 = arith.constant 0 : index
    %c0_44 = arith.constant 0 : index
    %36 = vector.load %arg8[%c0_43, %c0_44] : memref<256x1152xbf16, #tpu.memory_space<vmem>>, vector<256x1152xbf16>
    %c0_45 = arith.constant 0 : index
    %c0_46 = arith.constant 0 : index
    %37 = vector.load %arg3[%c0_45, %c0_46] : memref<1152x128xbf16, #tpu.memory_space<vmem>>, vector<1152x128xbf16>
    %cst = arith.constant dense<0.000000e+00> : vector<256x128xf32>
    %38 = tpu.matmul %36, %37, %cst {dimension_numbers = #tpu.dot_dimension_numbers<[1], [0], [0], [1], [0, 0, 1, 1], [], []>} : vector<256x1152xbf16>, vector<1152x128xbf16>, vector<256x128xf32> -> vector<256x128xf32>
    %c0_47 = arith.constant 0 : index
    %c0_48 = arith.constant 0 : index
    %39 = vector.load %arg4[%c0_47, %c0_48] : memref<1x128xf32, #tpu.memory_space<vmem>>, vector<1x128xf32>
    %40 = vector.broadcast %39 : vector<1x128xf32> to vector<256x128xf32>
    %41 = arith.addf %38, %40 : vector<256x128xf32>
    %cst_49 = arith.constant dense<0.000000e+00> : vector<128xf32>
    %42 = vector.multi_reduction <add>, %41, %cst_49 [0] : vector<256x128xf32> to vector<128xf32>
    %43 = vector.shape_cast %42 : vector<128xf32> to vector<1x128xf32>
    %cst_50 = arith.constant 3.906250e-03 : f32
    %44 = vector.broadcast %cst_50 : f32 to vector<1x128xf32>
    %45 = arith.mulf %43, %44 : vector<1x128xf32>
    %46 = arith.mulf %41, %41 : vector<256x128xf32>
    %cst_51 = arith.constant dense<0.000000e+00> : vector<128xf32>
    %47 = vector.multi_reduction <add>, %46, %cst_51 [0] : vector<256x128xf32> to vector<128xf32>
    %48 = vector.shape_cast %47 : vector<128xf32> to vector<1x128xf32>
    %cst_52 = arith.constant 3.906250e-03 : f32
    %49 = vector.broadcast %cst_52 : f32 to vector<1x128xf32>
    %50 = arith.mulf %48, %49 : vector<1x128xf32>
    %51 = arith.mulf %45, %45 : vector<1x128xf32>
    %52 = arith.subf %50, %51 : vector<1x128xf32>
    %53 = vector.broadcast %45 : vector<1x128xf32> to vector<256x128xf32>
    %54 = arith.subf %41, %53 : vector<256x128xf32>
    %cst_53 = arith.constant 9.99999974E-6 : f32
    %55 = vector.broadcast %cst_53 : f32 to vector<1x128xf32>
    %56 = arith.addf %52, %55 : vector<1x128xf32>
    %57 = math.rsqrt %56 : vector<1x128xf32>
    %58 = vector.broadcast %57 : vector<1x128xf32> to vector<256x128xf32>
    %59 = arith.mulf %54, %58 : vector<256x128xf32>
    %cst_54 = arith.constant 5.000000e-01 : f32
    %60 = vector.broadcast %cst_54 : f32 to vector<256x128xf32>
    %61 = arith.mulf %60, %59 : vector<256x128xf32>
    %cst_55 = arith.constant 0.707106769 : f32
    %62 = vector.broadcast %cst_55 : f32 to vector<256x128xf32>
    %63 = arith.mulf %59, %62 : vector<256x128xf32>
    %cst_56 = arith.constant 0.000000e+00 : f32
    %64 = vector.broadcast %cst_56 : f32 to vector<256x128xf32>
    %65 = arith.cmpf oge, %63, %64 : vector<256x128xf32>
    %cst_57 = arith.constant 1.000000e+00 : f32
    %cst_58 = arith.constant -1.000000e+00 : f32
    %66 = vector.broadcast %cst_57 : f32 to vector<256x128xf32>
    %67 = vector.broadcast %cst_58 : f32 to vector<256x128xf32>
    %68 = arith.select %65, %66, %67 : vector<256x128xi1>, vector<256x128xf32>
    %69 = math.absf %63 : vector<256x128xf32>
    %cst_59 = arith.constant 0.327591091 : f32
    %70 = vector.broadcast %cst_59 : f32 to vector<256x128xf32>
    %71 = arith.mulf %70, %69 : vector<256x128xf32>
    %cst_60 = arith.constant 1.000000e+00 : f32
    %72 = vector.broadcast %cst_60 : f32 to vector<256x128xf32>
    %73 = arith.addf %72, %71 : vector<256x128xf32>
    %74 = tpu.reciprocal %73 {approx = true} : vector<256x128xf32> -> vector<256x128xf32>
    %cst_61 = arith.constant 1.06140542 : f32
    %75 = vector.broadcast %cst_61 : f32 to vector<256x128xf32>
    %76 = arith.mulf %75, %74 : vector<256x128xf32>
    %cst_62 = arith.constant -1.45315206 : f32
    %77 = vector.broadcast %cst_62 : f32 to vector<256x128xf32>
    %78 = arith.addf %76, %77 : vector<256x128xf32>
    %79 = arith.mulf %78, %74 : vector<256x128xf32>
    %cst_63 = arith.constant 1.42141378 : f32
    %80 = vector.broadcast %cst_63 : f32 to vector<256x128xf32>
    %81 = arith.addf %79, %80 : vector<256x128xf32>
    %82 = arith.mulf %81, %74 : vector<256x128xf32>
    %cst_64 = arith.constant -0.284496725 : f32
    %83 = vector.broadcast %cst_64 : f32 to vector<256x128xf32>
    %84 = arith.addf %82, %83 : vector<256x128xf32>
    %85 = arith.mulf %84, %74 : vector<256x128xf32>
    %cst_65 = arith.constant 0.254829586 : f32
    %86 = vector.broadcast %cst_65 : f32 to vector<256x128xf32>
    %87 = arith.addf %85, %86 : vector<256x128xf32>
    %88 = arith.mulf %87, %74 : vector<256x128xf32>
    %cst_66 = arith.constant 0.000000e+00 : f32
    %89 = vector.broadcast %cst_66 : f32 to vector<256x128xf32>
    %90 = arith.subf %89, %69 : vector<256x128xf32>
    %91 = arith.mulf %90, %69 : vector<256x128xf32>
    %92 = math.exp %91 : vector<256x128xf32>
    %93 = arith.mulf %88, %92 : vector<256x128xf32>
    %cst_67 = arith.constant 1.000000e+00 : f32
    %94 = vector.broadcast %cst_67 : f32 to vector<256x128xf32>
    %95 = arith.subf %94, %93 : vector<256x128xf32>
    %96 = arith.mulf %68, %95 : vector<256x128xf32>
    %cst_68 = arith.constant 1.000000e+00 : f32
    %97 = vector.broadcast %cst_68 : f32 to vector<256x128xf32>
    %98 = arith.addf %97, %96 : vector<256x128xf32>
    %99 = arith.mulf %61, %98 : vector<256x128xf32>
    %100 = arith.truncf %99 : vector<256x128xf32> to vector<256x128xbf16>
    %101 = vector.shape_cast %100 : vector<256x128xbf16> to vector<16x16x128xbf16>
    %c1_69 = arith.constant 1 : index
    %c1_70 = arith.constant 1 : index
    %c0_71 = arith.constant 0 : index
    %102 = vector.load %arg9[%c1_69, %c1_70, %c0_71] : memref<18x18x128xbf16, #tpu.memory_space<vmem>>, vector<16x16x128xbf16>
    tpu.vector_store %arg9[%c1_69, %c1_70, %c0_71], %101 {strides = array<i32>} : memref<18x18x128xbf16, #tpu.memory_space<vmem>>, vector<16x16x128xbf16>,
    %103 = vector.extract_strided_slice %101 {offsets = [1, 0, 0], sizes = [1, 16, 128], strides = [1, 1, 1]} : vector<16x16x128xbf16> to vector<1x16x128xbf16>
    %c0_72 = arith.constant 0 : index
    %c1_73 = arith.constant 1 : index
    %c0_74 = arith.constant 0 : index
    %104 = vector.load %arg9[%c0_72, %c1_73, %c0_74] : memref<18x18x128xbf16, #tpu.memory_space<vmem>>, vector<1x16x128xbf16>
    tpu.vector_store %arg9[%c0_72, %c1_73, %c0_74], %103 {strides = array<i32>} : memref<18x18x128xbf16, #tpu.memory_space<vmem>>, vector<1x16x128xbf16>,
    %105 = vector.extract_strided_slice %101 {offsets = [14, 0, 0], sizes = [1, 16, 128], strides = [1, 1, 1]} : vector<16x16x128xbf16> to vector<1x16x128xbf16>
    %c17 = arith.constant 17 : index
    %c1_75 = arith.constant 1 : index
    %c0_76 = arith.constant 0 : index
    %106 = vector.load %arg9[%c17, %c1_75, %c0_76] : memref<18x18x128xbf16, #tpu.memory_space<vmem>>, vector<1x16x128xbf16>
    tpu.vector_store %arg9[%c17, %c1_75, %c0_76], %105 {strides = array<i32>} : memref<18x18x128xbf16, #tpu.memory_space<vmem>>, vector<1x16x128xbf16>,
    %c0_77 = arith.constant 0 : index
    %c2_78 = arith.constant 2 : index
    %c0_79 = arith.constant 0 : index
    %107 = vector.load %arg9[%c0_77, %c2_78, %c0_79] : memref<18x18x128xbf16, #tpu.memory_space<vmem>>, vector<18x1x128xbf16>
    %c0_80 = arith.constant 0 : index
    %c0_81 = arith.constant 0 : index
    %c0_82 = arith.constant 0 : index
    %108 = vector.load %arg9[%c0_80, %c0_81, %c0_82] : memref<18x18x128xbf16, #tpu.memory_space<vmem>>, vector<18x1x128xbf16>
    tpu.vector_store %arg9[%c0_80, %c0_81, %c0_82], %107 {strides = array<i32>} : memref<18x18x128xbf16, #tpu.memory_space<vmem>>, vector<18x1x128xbf16>,
    %c0_83 = arith.constant 0 : index
    %c15 = arith.constant 15 : index
    %c0_84 = arith.constant 0 : index
    %109 = vector.load %arg9[%c0_83, %c15, %c0_84] : memref<18x18x128xbf16, #tpu.memory_space<vmem>>, vector<18x1x128xbf16>
    %c0_85 = arith.constant 0 : index
    %c17_86 = arith.constant 17 : index
    %c0_87 = arith.constant 0 : index
    %110 = vector.load %arg9[%c0_85, %c17_86, %c0_87] : memref<18x18x128xbf16, #tpu.memory_space<vmem>>, vector<18x1x128xbf16>
    tpu.vector_store %arg9[%c0_85, %c17_86, %c0_87], %109 {strides = array<i32>} : memref<18x18x128xbf16, #tpu.memory_space<vmem>>, vector<18x1x128xbf16>,
    %c0_88 = arith.constant 0 : index
    %c0_89 = arith.constant 0 : index
    %c0_90 = arith.constant 0 : index
    %111 = vector.load %arg9[%c0_88, %c0_89, %c0_90] : memref<18x18x128xbf16, #tpu.memory_space<vmem>>, vector<16x16x128xbf16>
    %112 = vector.shape_cast %111 : vector<16x16x128xbf16> to vector<256x128xbf16>
    %c0_91 = arith.constant 0 : index
    %c0_92 = arith.constant 0 : index
    %113 = vector.load %arg8[%c0_91, %c0_92] : memref<256x1152xbf16, #tpu.memory_space<vmem>>, vector<256x128xbf16>
    tpu.vector_store %arg8[%c0_91, %c0_92], %112 {strides = array<i32>} : memref<256x1152xbf16, #tpu.memory_space<vmem>>, vector<256x128xbf16>,
    %c0_93 = arith.constant 0 : index
    %c1_94 = arith.constant 1 : index
    %c0_95 = arith.constant 0 : index
    %114 = vector.load %arg9[%c0_93, %c1_94, %c0_95] : memref<18x18x128xbf16, #tpu.memory_space<vmem>>, vector<16x16x128xbf16>
    %115 = vector.shape_cast %114 : vector<16x16x128xbf16> to vector<256x128xbf16>
    %c0_96 = arith.constant 0 : index
    %c128_97 = arith.constant 128 : index
    %116 = vector.load %arg8[%c0_96, %c128_97] : memref<256x1152xbf16, #tpu.memory_space<vmem>>, vector<256x128xbf16>
    tpu.vector_store %arg8[%c0_96, %c128_97], %115 {strides = array<i32>} : memref<256x1152xbf16, #tpu.memory_space<vmem>>, vector<256x128xbf16>,
    %c0_98 = arith.constant 0 : index
    %c2_99 = arith.constant 2 : index
    %c0_100 = arith.constant 0 : index
    %117 = vector.load %arg9[%c0_98, %c2_99, %c0_100] : memref<18x18x128xbf16, #tpu.memory_space<vmem>>, vector<16x16x128xbf16>
    %118 = vector.shape_cast %117 : vector<16x16x128xbf16> to vector<256x128xbf16>
    %c0_101 = arith.constant 0 : index
    %c256_102 = arith.constant 256 : index
    %119 = vector.load %arg8[%c0_101, %c256_102] : memref<256x1152xbf16, #tpu.memory_space<vmem>>, vector<256x128xbf16>
    tpu.vector_store %arg8[%c0_101, %c256_102], %118 {strides = array<i32>} : memref<256x1152xbf16, #tpu.memory_space<vmem>>, vector<256x128xbf16>,
    %c1_103 = arith.constant 1 : index
    %c0_104 = arith.constant 0 : index
    %c0_105 = arith.constant 0 : index
    %120 = vector.load %arg9[%c1_103, %c0_104, %c0_105] : memref<18x18x128xbf16, #tpu.memory_space<vmem>>, vector<16x16x128xbf16>
    %121 = vector.shape_cast %120 : vector<16x16x128xbf16> to vector<256x128xbf16>
    %c0_106 = arith.constant 0 : index
    %c384_107 = arith.constant 384 : index
    %122 = vector.load %arg8[%c0_106, %c384_107] : memref<256x1152xbf16, #tpu.memory_space<vmem>>, vector<256x128xbf16>
    tpu.vector_store %arg8[%c0_106, %c384_107], %121 {strides = array<i32>} : memref<256x1152xbf16, #tpu.memory_space<vmem>>, vector<256x128xbf16>,
    %c1_108 = arith.constant 1 : index
    %c1_109 = arith.constant 1 : index
    %c0_110 = arith.constant 0 : index
    %123 = vector.load %arg9[%c1_108, %c1_109, %c0_110] : memref<18x18x128xbf16, #tpu.memory_space<vmem>>, vector<16x16x128xbf16>
    %124 = vector.shape_cast %123 : vector<16x16x128xbf16> to vector<256x128xbf16>
    %c0_111 = arith.constant 0 : index
    %c512_112 = arith.constant 512 : index
    %125 = vector.load %arg8[%c0_111, %c512_112] : memref<256x1152xbf16, #tpu.memory_space<vmem>>, vector<256x128xbf16>
    tpu.vector_store %arg8[%c0_111, %c512_112], %124 {strides = array<i32>} : memref<256x1152xbf16, #tpu.memory_space<vmem>>, vector<256x128xbf16>,
    %c1_113 = arith.constant 1 : index
    %c2_114 = arith.constant 2 : index
    %c0_115 = arith.constant 0 : index
    %126 = vector.load %arg9[%c1_113, %c2_114, %c0_115] : memref<18x18x128xbf16, #tpu.memory_space<vmem>>, vector<16x16x128xbf16>
    %127 = vector.shape_cast %126 : vector<16x16x128xbf16> to vector<256x128xbf16>
    %c0_116 = arith.constant 0 : index
    %c640_117 = arith.constant 640 : index
    %128 = vector.load %arg8[%c0_116, %c640_117] : memref<256x1152xbf16, #tpu.memory_space<vmem>>, vector<256x128xbf16>
    tpu.vector_store %arg8[%c0_116, %c640_117], %127 {strides = array<i32>} : memref<256x1152xbf16, #tpu.memory_space<vmem>>, vector<256x128xbf16>,
    %c2_118 = arith.constant 2 : index
    %c0_119 = arith.constant 0 : index
    %c0_120 = arith.constant 0 : index
    %129 = vector.load %arg9[%c2_118, %c0_119, %c0_120] : memref<18x18x128xbf16, #tpu.memory_space<vmem>>, vector<16x16x128xbf16>
    %130 = vector.shape_cast %129 : vector<16x16x128xbf16> to vector<256x128xbf16>
    %c0_121 = arith.constant 0 : index
    %c768_122 = arith.constant 768 : index
    %131 = vector.load %arg8[%c0_121, %c768_122] : memref<256x1152xbf16, #tpu.memory_space<vmem>>, vector<256x128xbf16>
    tpu.vector_store %arg8[%c0_121, %c768_122], %130 {strides = array<i32>} : memref<256x1152xbf16, #tpu.memory_space<vmem>>, vector<256x128xbf16>,
    %c2_123 = arith.constant 2 : index
    %c1_124 = arith.constant 1 : index
    %c0_125 = arith.constant 0 : index
    %132 = vector.load %arg9[%c2_123, %c1_124, %c0_125] : memref<18x18x128xbf16, #tpu.memory_space<vmem>>, vector<16x16x128xbf16>
    %133 = vector.shape_cast %132 : vector<16x16x128xbf16> to vector<256x128xbf16>
    %c0_126 = arith.constant 0 : index
    %c896_127 = arith.constant 896 : index
    %134 = vector.load %arg8[%c0_126, %c896_127] : memref<256x1152xbf16, #tpu.memory_space<vmem>>, vector<256x128xbf16>
    tpu.vector_store %arg8[%c0_126, %c896_127], %133 {strides = array<i32>} : memref<256x1152xbf16, #tpu.memory_space<vmem>>, vector<256x128xbf16>,
    %c2_128 = arith.constant 2 : index
    %c2_129 = arith.constant 2 : index
    %c0_130 = arith.constant 0 : index
    %135 = vector.load %arg9[%c2_128, %c2_129, %c0_130] : memref<18x18x128xbf16, #tpu.memory_space<vmem>>, vector<16x16x128xbf16>
    %136 = vector.shape_cast %135 : vector<16x16x128xbf16> to vector<256x128xbf16>
    %c0_131 = arith.constant 0 : index
    %c1024_132 = arith.constant 1024 : index
    %137 = vector.load %arg8[%c0_131, %c1024_132] : memref<256x1152xbf16, #tpu.memory_space<vmem>>, vector<256x128xbf16>
    tpu.vector_store %arg8[%c0_131, %c1024_132], %136 {strides = array<i32>} : memref<256x1152xbf16, #tpu.memory_space<vmem>>, vector<256x128xbf16>,
    %c0_133 = arith.constant 0 : index
    %c0_134 = arith.constant 0 : index
    %138 = vector.load %arg8[%c0_133, %c0_134] : memref<256x1152xbf16, #tpu.memory_space<vmem>>, vector<256x1152xbf16>
    %c0_135 = arith.constant 0 : index
    %c0_136 = arith.constant 0 : index
    %139 = vector.load %arg5[%c0_135, %c0_136] : memref<1152x128xbf16, #tpu.memory_space<vmem>>, vector<1152x128xbf16>
    %cst_137 = arith.constant dense<0.000000e+00> : vector<256x128xf32>
    %140 = tpu.matmul %138, %139, %cst_137 {dimension_numbers = #tpu.dot_dimension_numbers<[1], [0], [0], [1], [0, 0, 1, 1], [], []>} : vector<256x1152xbf16>, vector<1152x128xbf16>, vector<256x128xf32> -> vector<256x128xf32>
    %c0_138 = arith.constant 0 : index
    %c0_139 = arith.constant 0 : index
    %141 = vector.load %arg6[%c0_138, %c0_139] : memref<1x128xf32, #tpu.memory_space<vmem>>, vector<1x128xf32>
    %142 = vector.broadcast %141 : vector<1x128xf32> to vector<256x128xf32>
    %143 = arith.addf %140, %142 : vector<256x128xf32>
    %cst_140 = arith.constant dense<0.000000e+00> : vector<128xf32>
    %144 = vector.multi_reduction <add>, %143, %cst_140 [0] : vector<256x128xf32> to vector<128xf32>
    %145 = vector.shape_cast %144 : vector<128xf32> to vector<1x128xf32>
    %cst_141 = arith.constant 3.906250e-03 : f32
    %146 = vector.broadcast %cst_141 : f32 to vector<1x128xf32>
    %147 = arith.mulf %145, %146 : vector<1x128xf32>
    %148 = arith.mulf %143, %143 : vector<256x128xf32>
    %cst_142 = arith.constant dense<0.000000e+00> : vector<128xf32>
    %149 = vector.multi_reduction <add>, %148, %cst_142 [0] : vector<256x128xf32> to vector<128xf32>
    %150 = vector.shape_cast %149 : vector<128xf32> to vector<1x128xf32>
    %cst_143 = arith.constant 3.906250e-03 : f32
    %151 = vector.broadcast %cst_143 : f32 to vector<1x128xf32>
    %152 = arith.mulf %150, %151 : vector<1x128xf32>
    %153 = arith.mulf %147, %147 : vector<1x128xf32>
    %154 = arith.subf %152, %153 : vector<1x128xf32>
    %155 = vector.broadcast %147 : vector<1x128xf32> to vector<256x128xf32>
    %156 = arith.subf %143, %155 : vector<256x128xf32>
    %cst_144 = arith.constant 9.99999974E-6 : f32
    %157 = vector.broadcast %cst_144 : f32 to vector<1x128xf32>
    %158 = arith.addf %154, %157 : vector<1x128xf32>
    %159 = math.rsqrt %158 : vector<1x128xf32>
    %160 = vector.broadcast %159 : vector<1x128xf32> to vector<256x128xf32>
    %161 = arith.mulf %156, %160 : vector<256x128xf32>
    %c0_145 = arith.constant 0 : index
    %c0_146 = arith.constant 0 : index
    %c0_147 = arith.constant 0 : index
    %162 = vector.load %arg2[%c0_145, %c0_146, %c0_147] : memref<1x256x128xf32, #tpu.memory_space<vmem>>, vector<1x256x128xf32>
    %163 = vector.shape_cast %162 : vector<1x256x128xf32> to vector<256x128xf32>
    %164 = arith.addf %161, %163 : vector<256x128xf32>
    %c0_148 = arith.constant 0 : index
    %c0_149 = arith.constant 0 : index
    %c0_150 = arith.constant 0 : index
    %165 = vector.load %arg7[%c0_148, %c0_149, %c0_150] : memref<1x256x128xf32, #tpu.memory_space<vmem>>, vector<1x256x128xf32>
    %166 = vector.shape_cast %165 : vector<1x256x128xf32> to vector<256x128xf32>
    %167 = vector.shape_cast %164 : vector<256x128xf32> to vector<1x256x128xf32>
    tpu.vector_store %arg7[%c0_148, %c0_149, %c0_150], %167 {strides = array<i32>} : memref<1x256x128xf32, #tpu.memory_space<vmem>>, vector<1x256x128xf32>,
    return
  }
  func.func @transform_0(%arg0: i32) -> (i32, i32, i32, i32) {
    %c0_i32 = arith.constant 0 : i32
    %c0_i32_0 = arith.constant 0 : i32
    %c0_i32_1 = arith.constant 0 : i32
    %c0_i32_2 = arith.constant 0 : i32
    return %arg0, %c0_i32, %c0_i32_0, %c0_i32_1 : i32, i32, i32, i32
  }
  func.func @transform_1(%arg0: i32) -> (i32, i32, i32) {
    %c0_i32 = arith.constant 0 : i32
    %c0_i32_0 = arith.constant 0 : i32
    %c0_i32_1 = arith.constant 0 : i32
    return %arg0, %c0_i32, %c0_i32_0 : i32, i32, i32
  }
  func.func @transform_2(%arg0: i32) -> (i32, i32) {
    %c0_i32 = arith.constant 0 : i32
    %c0_i32_0 = arith.constant 0 : i32
    %c0_i32_1 = arith.constant 0 : i32
    return %c0_i32, %c0_i32_0 : i32, i32
  }
  func.func @transform_3(%arg0: i32) -> (i32, i32) {
    %c0_i32 = arith.constant 0 : i32
    %c0_i32_0 = arith.constant 0 : i32
    %c0_i32_1 = arith.constant 0 : i32
    return %c0_i32, %c0_i32_0 : i32, i32
  }
  func.func @transform_4(%arg0: i32) -> (i32, i32) {
    %c0_i32 = arith.constant 0 : i32
    %c0_i32_0 = arith.constant 0 : i32
    %c0_i32_1 = arith.constant 0 : i32
    return %c0_i32, %c0_i32_0 : i32, i32
  }
  func.func @transform_5(%arg0: i32) -> (i32, i32) {
    %c0_i32 = arith.constant 0 : i32
    %c0_i32_0 = arith.constant 0 : i32
    %c0_i32_1 = arith.constant 0 : i32
    return %c0_i32, %c0_i32_0 : i32, i32
  }
  func.func @transform_6(%arg0: i32) -> (i32, i32, i32) {
    %c0_i32 = arith.constant 0 : i32
    %c0_i32_0 = arith.constant 0 : i32
    %c0_i32_1 = arith.constant 0 : i32
    return %arg0, %c0_i32, %c0_i32_0 : i32, i32, i32
  }
}

</mosaic_0001>

<bundles_post_ra>
// kernel: resnet_block_forward.1
= control target key start
LH: loop header
LB: loop body
LE: loop exit
PB: predicated region body
PF: predicated region fallthrough
CT: control target
= control target key end

     0   :  { %11 = vsyncpa [#allocation5], 0  ;;  %s19173_s0 = inlined_call_operand.vmem [shape: bf16[2,18,18,128], index: 0, kind: input, shape index: {}]   ;;  %s19174_s1 = inlined_call_operand.vmem [shape: f32[2,256,128], index: 1, kind: input, shape index: {}]   ;;  %s19175_s2 = inlined_call_operand.vmem [shape: bf16[1152,128], index: 2, kind: input, shape index: {}]   ;;  %s19176_s3 = inlined_call_operand.vmem [shape: f32[1,128], index: 3, kind: input, shape index: {}]   ;;  %s19177_s4 = inlined_call_operand.vmem [shape: bf16[1152,128], index: 4, kind: input, shape index: {}]   ;;  %s19178_s5 = inlined_call_operand.vmem [shape: f32[1,128], index: 5, kind: input, shape index: {}]   ;;  %s19179_s6 = inlined_call_operand.hbm [shape: f32[2,256,128], index: 6, kind: output, shape index: {}]  }
   0x1   :  { %13 = vsyncpa [#allocation5 + $0x1], 0  ;;  %s13676_s21 = smov 0   ;;  %s13678_s22 = smov 0  }
   0x2   :  { %s13680_s23 = smov 0   ;;  %s13682_s24 = smov 0  }
   0x3 LB: > { %s13697_s25 = sadd.s32 4294967295, %s13635_s24   ;;  %s11217_s26 = sadd.s32 4294967294, %s13635_s24   ;;  %s13635_s24 = sphi %s13682_s24, %s19739_s24   ;;  %s13631_s23 = sphi %s13680_s23, %s19738_s23   ;;  %s13627_s22 = sphi %s13678_s22, %s19737_s22   ;;  %s13623_s21 = sphi %s13676_s21, %s19736_s21  }
   0x4   : > { %s13701_s27 = sadd.s32 1, %s13635_s24   ;;  %s162_s28 = sadd.s32 1, %s13631_s23 }
   0x5   : > { %s159_s29 = ssub.s32 %s13635_s24, %s13701_s27  ;;  %p172_p0 = scmp.ne.s32.totalorder %s13631_s23, %s13627_s22 }
   0x6   : > { %p160_p1 = scmp.eq.s32.totalorder %s159_s29, 0  ;;  %p173_p2 = scmp.eq.s32.totalorder %s13697_s25, 1 }
   0x7   : > { %p178_p3 = scmp.ne.s32.totalorder %s13627_s22, %s13623_s21  ;;  %p179_p4 = scmp.eq.s32.totalorder %s11217_s26, 1 }
   0x8   : > { %s13712_s30 = scalar_select %p160_p1, %s13631_s23, %s162_s28  }
   0x9   : > { %p13714_p5 = por %p173_p2, %p172_p0  ;;  %p13718_p6 = por %p179_p4, %p178_p3 }
   0xa   : > { %p11220_p7 = scmp.ge.s32.totalorder %s13635_s24, 1  ;;  %p225_p8 = scmp.lt.s32.totalorder %s13635_s24, 3 }
   0xc   : > { %p226_p9 = pnand %p11220_p7, %p225_p8 }
   0xe   : > { %229 = sbr.rel (%p226_p9) target bundleno = 1655 (0x677), region = 44 }
  0x15   : > { %v13201_v0 = vld [vmem:[%s19175_s2 + $0x40] sm:$0xff]   ;;  %v13205_v4 = vld [vmem:[%s19175_s2 + $0x48] sm:$0xff]   ;;  %v13209_v8 = vld [vmem:[%s19175_s2 + $0x50] sm:$0xff]   ;;  %p260_p10 = scmp.lt.s32.totalorder %s13697_s25, 1  ;;  %vm463_vm0 = vsmask.f32 3328 }
  0x16   : > { %v13202_v1 = vld [vmem:[%s19175_s2] sm:$0xff]   ;;  %12118 = vmatprep.subr.bf16.mxu0 %v13201_v0  ;;  %v13206_v5 = vld [vmem:[%s19175_s2 + $0x8] sm:$0xff]   ;;  %v13210_v9 = vld [vmem:[%s19175_s2 + $0x10] sm:$0xff]   ;;  %vm464_vm1 = vsmask.f32 7440  ;;  %v19299_v42 = vmov 0 }
  0x17   : > { %v13203_v2 = vld [vmem:[%s19175_s2 + $0xc0] sm:$0xff]   ;;  %12119 = vmatpush3.bf16.msra.mxu0 %v13202_v1  ;;  %v13207_v6 = vld [vmem:[%s19175_s2 + $0xc8] sm:$0xff]   ;;  %v13211_v10 = vld [vmem:[%s19175_s2 + $0xd0] sm:$0xff]   ;;  %s13789_s26 = scalar_select %p260_p10, %s13697_s25, 1  ;;  %vm1026_vm3 = vcmask 1042432   ;;  %vm1027_vm4 = vcmask 1046532  }
  0x18   : > { %v13204_v3 = vld [vmem:[%s19175_s2 + $0x80] sm:$0xff]   ;;  %12230 = vmatprep.subr.bf16.mxu1 %v13203_v2  ;;  %12120 = vmatprep.subr.bf16.mxu0 %v13205_v4  ;;  %v13208_v7 = vld [vmem:[%s19175_s2 + $0x88] sm:$0xff]   ;;  %v13212_v11 = vld [vmem:[%s19175_s2 + $0x90] sm:$0xff]   ;;  %v19302_v51 = vmov 0  ;;  %vm6078_vm12 = vcmask 1040384   ;;  %s257_s17 = sand.u32 1, %s13627_s22  }
  0x19   : > { %12231 = vmatpush3.bf16.msra.mxu1 %v13204_v3  ;;  %v13213_v12 = vld [vmem:[%s19175_s2 + $0x58] sm:$0xff]   ;;  %v13217_v16 = vld [vmem:[%s19175_s2 + $0x60] sm:$0xff]   ;;  %v13221_v20 = vld [vmem:[%s19175_s2 + $0x68] sm:$0xff]   ;;  %s13158_s15 = smul.u32 216, %s13789_s26  ;;  %s12084_s16 = sshll.u32 %s13789_s26, 8 }
  0x1a   : > { %12232 = vmatprep.subr.bf16.mxu1 %v13207_v6  ;;  %v13214_v13 = vld [vmem:[%s19175_s2 + $0x18] sm:$0xff]   ;;  %v13218_v17 = vld [vmem:[%s19175_s2 + $0x20] sm:$0xff]   ;;  %v13222_v21 = vld [vmem:[%s19175_s2 + $0x28] sm:$0xff]   ;;  %s18955_s19 = scalar_lea.vmem %s19174_s1, %s12084_s16  ;;  %s18963_s20 = sshll.u32 %s257_s17, 8 }
  0x1b   : > { %12121 = vmatpush3.bf16.msra.mxu0 %v13206_v5  ;;  %v13215_v14 = vld [vmem:[%s19175_s2 + $0xd8] sm:$0xff]   ;;  %v13219_v18 = vld [vmem:[%s19175_s2 + $0xe0] sm:$0xff]   ;;  %v13223_v22 = vld [vmem:[%s19175_s2 + $0xe8] sm:$0xff]   ;;  %s13819_s12 = scalar_lea.vmem %s19173_s0, %s13158_s15  ;;  %s18989_s26 = scalar_lea.vmem [#allocation4], %s18963_s20 }
  0x1c   : > { %12122 = vmatprep.subr.bf16.mxu0 %v13209_v8  ;;  %v13216_v15 = vld [vmem:[%s19175_s2 + $0x98] sm:$0xff]   ;;  %v13220_v19 = vld [vmem:[%s19175_s2 + $0xa0] sm:$0xff]   ;;  %v13224_v23 = vld [vmem:[%s19175_s2 + $0xa8] sm:$0xff]   ;;  %s12117_s28 = sshll.u32 %s13697_s25, 12  ;;  %s11143_s29 = sshll.u32 %s18989_s26, 4  ;;  %s19112_s29 = int_to_ptr.vmem [resolvable:$true] %s11143_s29 }
  0x1d   : > { %12233 = vmatpush3.bf16.msra.mxu1 %v13208_v7  ;;  %v13225_v24 = vld [vmem:[%s19175_s2 + $0x70] sm:$0xff]   ;;  %v13229_v28 = vld [vmem:[%s19175_s2 + $0x78] sm:$0xff]   ;;  %v415_v31 = vld [vmem:[%s13819_s12] sm:$0xf]  ;;  %s19108_s10 = scalar_lea.hbm %s19179_s6, %s12117_s28  ;;  %s19132_s25 = scalar_lea.sflag [#allocation5], %s257_s17 }
  0x1e   : > { %12234 = vmatprep.subr.bf16.mxu1 %v13211_v10  ;;  %v13226_v25 = vld [vmem:[%s19175_s2 + $0x30] sm:$0xff]   ;;  %v13230_v29 = vld [vmem:[%s19175_s2 + $0x38] sm:$0xff]   ;;  %v416_v32 = vld [vmem:[%s13819_s12 + $0x4] sm:$0xf]  ;;  %v467_v34 = vshrl.u32 %v415_v31, 16  ;;  %v470_v35 = vshll.u32 %v415_v31, 16 }
  0x1f   : > { %12123 = vmatpush3.bf16.msra.mxu0 %v13210_v9  ;;  %v13227_v26 = vld [vmem:[%s19175_s2 + $0xf0] sm:$0xff]   ;;  %v13231_v30 = vld [vmem:[%s19175_s2 + $0xf8] sm:$0xff]   ;;  %v417_v33 = vld [vmem:[%s13819_s12 + $0x8] sm:$0x1]  ;;  %v476_v36 = vshll.u32 %v416_v32, 16  ;;  %v480_v37 = vshrl.u32 %v416_v32, 16 }
  0x20   : > { %12124 = vmatprep.subr.bf16.mxu0 %v13213_v12  ;;  %v13228_v27 = vld [vmem:[%s19175_s2 + $0xb0] sm:$0xff]   ;;  %v486_v38 = vshll.u32 %v417_v33, 16  ;;  %v13232_v39 = vld [vmem:[%s19175_s2 + $0xb8] sm:$0xff]   ;;  %v469_v40 = vrot.slane %v467_v34, 4  ;;  %v472_v41 = vrot.slane %v470_v35, 5  ;;  %vm13833_vm2 = vmor %vm463_vm0, %vm464_vm1  ;;  %s13573_s11 = scalar_lea.vmem %s19112_s29, 4096 }
  0x21   : > { %12235 = vmatpush3.bf16.msra.mxu1 %v13212_v11  ;;  %v19300_v42 = vsel %vm13833_vm2, 4294967295, %v19299_v42  ;;  %v478_v43 = vrot.slane %v476_v36, 5  ;;  %v482_v44 = vrot.slane %v480_v37, 4  ;;  %v13234_v46 = vld [vmem:[%s19175_s2 + $0x140] sm:$0xff]   ;;  %v13235_v49 = vld [vmem:[%s13819_s12 + $0xc] sm:$0xff]   ;;  %vm13841_vm5 = vmor %vm1026_vm3, %vm1027_vm4  ;;  %p13574_p11 = scmp.ne.s32.totalorder %s19112_s29, %s13573_s11  ;;  %s13638_s13 = smov [#allocation4]  }
  0x22   : > { %12236 = vmatprep.subr.bf16.mxu1 %v13215_v14  ;;  %19301 = vst [vmem:[#allocation7_spill] sm:$0xff] %v19300_v42  ;;  %v473_v45 = vor.u32 %v472_v41, %v469_v40  ;;  %v488_v48 = vrot.slane %v486_v38, 5  ;;  %v19303_v51 = vsel %vm13841_vm5, 4294967295, %v19302_v51  ;;  %v13233_v53 = vld [vmem:[%s13819_s12] sm:$0xff]   ;;  %4031 = vmatprep.mubr.bf16.mxu1 %v13235_v49  ;;  %v932_v58 = vld [vmem:[%s13819_s12 + $0x8] sm:$0x1] }
  0x23   : > { %12125 = vmatpush3.bf16.msra.mxu0 %v13214_v13  ;;  %v483_v47 = vor.u32 %v482_v44, %v478_v43  ;;  %19304 = vst [vmem:[#allocation8_spill] sm:$0xff] %v19303_v51  ;;  %v930_v54 = vld [vmem:[%s13819_s12] sm:$0xe]  ;;  %v931_v55 = vld [vmem:[%s13819_s12 + $0x4] sm:$0xf]  ;;  %v1034_v63 = vrot.slane %v932_v58, 5  ;;  %p13575_p12 = pnand %p13574_p11, %p13714_p5 }
  0x24   : > { %12126 = vmatprep.subr.bf16.mxu0 %v13217_v16  ;;  %v474_v50 = vrot.slane %v473_v45, 4  ;;  %v13236_v57 = vld [vmem:[%s19175_s2 + $0x100] sm:$0xff]   ;;  %v11257_v59 = vrot.slane %v930_v54, 9  ;;  %v1031_v60 = vrot.slane %v931_v55, 5  ;;  %v418_v61 = vld [vmem:[%s13819_s12 + $0xc] sm:$0xf] }
  0x25   : > { %12237 = vmatpush3.bf16.msra.mxu1 %v13216_v15  ;;  %v484_v52 = vrot.slane %v483_v47, 4  ;;  %v419_v0 = vld [vmem:[%s13819_s12 + $0x10] sm:$0xf]  ;;  %v420_v1 = vld [vmem:[%s13819_s12 + $0x14] sm:$0x1]  ;;  %v491_v2 = vshrl.u32 %v418_v61, 16  ;;  %p13576_p13 = pneg %p13575_p12 }
  0x26   : > { %12238 = vmatprep.subr.bf16.mxu1 %v13219_v18  ;;  %v479_v56 = vsel %vm13833_vm2, %v474_v50, %v478_v43  ;;  %v1032_v4 = vsel %vm13841_vm5, %v11257_v59, %v1031_v60  ;;  %v1033_v5 = vrot.slane %v1031_v60, 4  ;;  %v494_v6 = vshll.u32 %v418_v61, 16  ;;  %v13238_v13 = vld [vmem:[%s13819_s12 + $0x18] sm:$0xff]   ;;  %v933_v14 = vld [vmem:[%s13819_s12 + $0xc] sm:$0xe]  ;;  %s13577_s14 = sshll.u32 %s13638_s13, 4  ;;  %s13578_s14 = int_to_ptr.vmem [resolvable:$false] %s13577_s14 }
  0x27   : > { %12127 = vmatpush3.bf16.msra.mxu0 %v13218_v17  ;;  %v489_v62 = vsel %vm13833_vm2, %v484_v52, %v488_v48  ;;  %v493_v7 = vrot.slane %v491_v2, 4  ;;  %v500_v8 = vshll.u32 %v419_v0, 16  ;;  %v504_v9 = vshrl.u32 %v419_v0, 16  ;;  %v13240_v34 = vld [vmem:[%s19175_s2 + $0x148] sm:$0xff]   ;;  %v938_v59 = vld [vmem:[%s13819_s12 + $0x20] sm:$0x1]  ;;  %p13580_p0 = scmp.lt.s32.totalorder %s19112_s29, %s13578_s14 }
  0x28   : > { %12128 = vmatprep.subr.bf16.mxu0 %v13221_v20  ;;  %v11241_v3 = vcombine.low %v479_v56, %v489_v62  ;;  %v510_v10 = vshll.u32 %v420_v1, 16  ;;  %v1035_v11 = vsel %vm13841_vm5, %v1033_v5, %v1034_v63  ;;  %v496_v12 = vrot.slane %v494_v6, 5  ;;  %v13237_v36 = vld [vmem:[%s13819_s12 + $0xc] sm:$0xff]   ;;  %v13241_v52 = vld [vmem:[%s13819_s12 + $0x24] sm:$0xff]   ;;  %v936_v56 = vld [vmem:[%s13819_s12 + $0x18] sm:$0xe] }
  0x29   : > { %12239 = vmatpush3.bf16.msra.mxu1 %v13220_v19  ;;  %v11273_v15 = vcombine.low %v1032_v4, %v1035_v11  ;;  %v502_v16 = vrot.slane %v500_v8, 5  ;;  %v506_v17 = vrot.slane %v504_v9, 4  ;;  %v934_v19 = vld [vmem:[%s13819_s12 + $0x10] sm:$0xf]  ;;  %v13242_v55 = vld [vmem:[%s19175_s2 + $0x108] sm:$0xff]   ;;  %v11259_v60 = vrot.slane %v936_v56, 9 }
  0x2a   : > { %12240 = vmatprep.subr.bf16.mxu1 %v13223_v22  ;;  %3870 = vmatprep.mubr.bf16.mxu0 %v11241_v3  ;;  %v512_v18 = vrot.slane %v510_v10, 5  ;;  %v497_v20 = vor.u32 %v496_v12, %v493_v7  ;;  %v11258_v22 = vrot.slane %v933_v14, 9  ;;  %v1048_v63 = vrot.slane %v938_v59, 5  ;;  %v424_v0 = vld [vmem:[%s13819_s12 + $0x24] sm:$0xf]  ;;  %v13239_v8 = vld [vmem:[%s13819_s12 + $0x18] sm:$0xff]  }
  0x2b   : > { %12129 = vmatpush3.bf16.msra.mxu0 %v13222_v21  ;;  %v935_v21 = vld [vmem:[%s13819_s12 + $0x14] sm:$0x1]  ;;  %v425_v1 = vld [vmem:[%s13819_s12 + $0x28] sm:$0xf]  ;;  %v426_v5 = vld [vmem:[%s13819_s12 + $0x2c] sm:$0x1] }
  0x2c   : > { %12130 = vmatprep.subr.bf16.mxu0 %v13225_v24  ;;  %v421_v24 = vld [vmem:[%s13819_s12 + $0x18] sm:$0xf]  ;;  %v539_v6 = vshrl.u32 %v424_v0, 16  ;;  %v542_v9 = vshll.u32 %v424_v0, 16  ;;  %v548_v10 = vshll.u32 %v425_v1, 16  ;;  %v552_v11 = vshrl.u32 %v425_v1, 16 }
  0x2d   : > { %12241 = vmatpush3.bf16.msra.mxu1 %v13224_v23  ;;  %v1038_v23 = vrot.slane %v934_v19, 5  ;;  %v518_v33 = vshll.u32 %v421_v24, 16  ;;  %v13247_v56 = vld [vmem:[%s13819_s12 + $0x3c] sm:$0xff]   ;;  %v13248_v59 = vld [vmem:[%s19175_s2 + $0x110] sm:$0xff]   ;;  %v944_v0 = vld [vmem:[%s13819_s12 + $0x38] sm:$0x1] }
  0x2e   : > { %12242 = vmatprep.subr.bf16.mxu1 %v13227_v26  ;;  %v1041_v26 = vrot.slane %v935_v21, 5  ;;  %v541_v14 = vrot.slane %v539_v6, 4  ;;  %v554_v19 = vrot.slane %v552_v11, 4  ;;  %v939_v21 = vld [vmem:[%s13819_s12 + $0x24] sm:$0xe]  ;;  %s13579_s16 = scalar_lea.vmem %s13578_s14, 8192 }
  0x2f   : > { %12131 = vmatpush3.bf16.msra.mxu0 %v13226_v25  ;;  %v507_v25 = vor.u32 %v506_v17, %v502_v16  ;;  %v1039_v31 = vsel %vm13841_vm5, %v11258_v22, %v1038_v23  ;;  %v1040_v32 = vrot.slane %v1038_v23, 4  ;;  %v520_v43 = vrot.slane %v518_v33, 5  ;;  %v940_v23 = vld [vmem:[%s13819_s12 + $0x28] sm:$0xf]  ;;  %p13581_p1 = scmp.lt.s32.totalorder %s13579_s16, %s13573_s11 }
  0x30   : > { %12132 = vmatprep.subr.bf16.mxu0 %v13229_v28  ;;  %v423_v28 = vld [vmem:[%s13819_s12 + $0x20] sm:$0x1]  ;;  %v544_v17 = vrot.slane %v542_v9, 5  ;;  %vm5747_vm1 = vsmask.f32 256 }
  0x31   : > { %12243 = vmatpush3.bf16.msra.mxu1 %v13228_v27  ;;  %v422_v27 = vld [vmem:[%s13819_s12 + $0x1c] sm:$0xf]  ;;  %v508_v35 = vrot.slane %v507_v25, 4  ;;  %v1042_v41 = vsel %vm13841_vm5, %v1040_v32, %v1041_v26  ;;  %v534_v44 = vshll.u32 %v423_v28, 16  ;;  %v11260_v25 = vrot.slane %v939_v21, 9  ;;  %p13582_p2 = por %p13581_p1, %p13580_p0 }
  0x32   : > { %12244 = vmatprep.subr.bf16.mxu1 %v13231_v30  ;;  %v498_v30 = vrot.slane %v497_v20, 4  ;;  %v524_v38 = vshll.u32 %v422_v27, 16  ;;  %v13244_v20 = vld [vmem:[%s13819_s12 + $0x30] sm:$0xff]   ;;  %v545_v26 = vor.u32 %v544_v17, %v541_v14  ;;  %v1052_v28 = vrot.slane %v940_v23, 5  ;;  %v429_v32 = vld [vmem:[%s13819_s12 + $0x38] sm:$0x1] }
  0x33   : > { %12133 = vmatpush3.bf16.msra.mxu0 %v13230_v29  ;;  %v515_v29 = vshrl.u32 %v421_v24, 16  ;;  %v513_v45 = vsel %vm13833_vm2, %v508_v35, %v512_v18  ;;  %v536_v54 = vrot.slane %v534_v44, 5  ;;  %v550_v18 = vrot.slane %v548_v10, 5  ;;  %v941_v24 = vld [vmem:[%s13819_s12 + $0x2c] sm:$0x1]  ;;  %p13583_p3 = pnand %p13582_p2, %p13576_p13 }
  0x34   : > { %12342 = vmatprep.subr.bf16.mxu0 %v13234_v46  ;;  %v503_v40 = vsel %vm13833_vm2, %v498_v30, %v502_v16  ;;  %v11274_v46 = vcombine.low %v1039_v31, %v1042_v41  ;;  %v526_v47 = vrot.slane %v524_v38, 5  ;;  %v427_v30 = vld [vmem:[%s13819_s12 + $0x30] sm:$0xf]  ;;  %v428_v31 = vld [vmem:[%s13819_s12 + $0x34] sm:$0xf] }
  0x35   : > { %12245 = vmatpush3.bf16.msra.mxu1 %v13232_v39  ;;  %v517_v37 = vrot.slane %v515_v29, 4  ;;  %v528_v39 = vshrl.u32 %v422_v27, 16  ;;  %v11242_v49 = vcombine.low %v503_v40, %v513_v45  ;;  %v555_v27 = vor.u32 %v554_v19, %v550_v18  ;;  %v13246_v41 = vld [vmem:[%s19175_s2 + $0x150] sm:$0xff]  }
  0x36   : > { %3871 = vmatmul.mubr.bf16.vlgmr.msra.gmra.mrb[0].mxu0 %v13233_v53  ;;  %v1055_v29 = vrot.slane %v941_v24, 5  ;;  %v563_v33 = vshrl.u32 %v427_v30, 16  ;;  %v572_v35 = vshll.u32 %v428_v31, 16  ;;  %v1054_v40 = vrot.slane %v1052_v28, 4  ;;  %v13245_v19 = vld [vmem:[%s13819_s12 + $0x30] sm:$0xff]  }
  0x37   : > { %12343 = vmatpush3.bf16.msra.mxu0 %v13236_v57  ;;  %v530_v48 = vrot.slane %v528_v39, 4  ;;  %v521_v50 = vor.u32 %v520_v43, %v517_v37  ;;  %v937_v57 = vld [vmem:[%s13819_s12 + $0x1c] sm:$0xf]  ;;  %3878 = vmatprep.mubr.bf16.mxu0 %v11242_v49  ;;  %v546_v37 = vrot.slane %v545_v26, 4  ;;  %v556_v38 = vrot.slane %v555_v27, 4  ;;  %v13243_v49 = vld [vmem:[%s13819_s12 + $0x24] sm:$0xff]  }
  0x38   : > { %4032 = vmatmul.mubr.bf16.vlgmr.msra.gmra.mrb[0].mxu1 %v11273_v15  ;;  %12344 = vmatprep.subr.bf16.mxu0 %v13240_v34  ;;  %v1045_v61 = vrot.slane %v937_v57, 5  ;;  %v558_v15 = vshll.u32 %v426_v5, 16  ;;  %v566_v34 = vshll.u32 %v427_v30, 16  ;;  %v1053_v39 = vsel %vm13841_vm5, %v11260_v25, %v1052_v28  ;;  %v13250_v26 = vld [vmem:[%s13819_s12 + $0x48] sm:$0xff]   ;;  %v946_v27 = vld [vmem:[%s13819_s12 + $0x40] sm:$0xf] }
  0x39   : > { %4039 = vmatprep.mubr.bf16.mxu1 %v13238_v13  ;;  %v531_v53 = vor.u32 %v530_v48, %v526_v47  ;;  %v522_v58 = vrot.slane %v521_v50, 4  ;;  %v565_v43 = vrot.slane %v563_v33, 4  ;;  %v574_v45 = vrot.slane %v572_v35, 5  ;;  %v947_v28 = vld [vmem:[%s13819_s12 + $0x44] sm:$0x1] }
  0x3a   : > { %v1046_v3 = vsel %vm13841_vm5, %v11259_v60, %v1045_v61  ;;  %v1047_v4 = vrot.slane %v1045_v61, 4  ;;  %v560_v22 = vrot.slane %v558_v15, 5  ;;  %v568_v44 = vrot.slane %v566_v34, 5  ;;  %v942_v60 = vld [vmem:[%s13819_s12 + $0x30] sm:$0xe] }
  0x3b   : > { %v532_v62 = vrot.slane %v531_v53, 4  ;;  %v527_v2 = vsel %vm13833_vm2, %v522_v58, %v526_v47  ;;  %12345 = vmatpush3.bf16.msra.mxu0 %v13242_v55  ;;  %v551_v47 = vsel %vm13833_vm2, %v546_v37, %v550_v18  ;;  %v1056_v50 = vsel %vm13841_vm5, %v1054_v40, %v1055_v29  ;;  %v433_v33 = vld [vmem:[%s13819_s12 + $0x48] sm:$0xf]  ;;  %v435_v37 = vld [vmem:[%s13819_s12 + $0x50] sm:$0x1] }
  0x3c   : > { %v1049_v13 = vsel %vm13841_vm5, %v1047_v4, %v1048_v63  ;;  %v561_v48 = vsel %vm13833_vm2, %v556_v38, %v560_v22  ;;  %12346 = vmatprep.subr.bf16.mxu0 %v13246_v41  ;;  %v11276_v57 = vcombine.low %v1053_v39, %v1056_v50  ;;  %v943_v63 = vld [vmem:[%s13819_s12 + $0x34] sm:$0xf]  ;;  %v11261_v1 = vrot.slane %v942_v60, 9  ;;  %v430_v4 = vld [vmem:[%s13819_s12 + $0x3c] sm:$0xf] }
  0x3d   : > { %v537_v7 = vsel %vm13833_vm2, %v532_v62, %v536_v54  ;;  %v11275_v16 = vcombine.low %v1046_v3, %v1049_v13  ;;  %v11244_v53 = vcombine.low %v551_v47, %v561_v48  ;;  %v569_v54 = vor.u32 %v568_v44, %v565_v43  ;;  %v945_v22 = vld [vmem:[%s13819_s12 + $0x3c] sm:$0xe] }
  0x3e   : > { %3879 = vmatmul.mubr.bf16.gmra.mrb[4].mxu0 %v13237_v36  ;;  %v11243_v12 = vcombine.low %v527_v2, %v537_v7  ;;  %v576_v36 = vshrl.u32 %v428_v31, 16  ;;  %v1059_v2 = vrot.slane %v943_v63, 5  ;;  %v1062_v3 = vrot.slane %v944_v0, 5  ;;  %v431_v7 = vld [vmem:[%s13819_s12 + $0x40] sm:$0xf]  ;;  %v13252_v43 = vld [vmem:[%s19175_s2 + $0x158] sm:$0xff]  }
  0x3f   : > { %v570_v61 = vrot.slane %v569_v54, 4  ;;  %12347 = vmatpush3.bf16.msra.mxu0 %v13248_v59  ;;  %v587_v9 = vshrl.u32 %v430_v4, 16  ;;  %v590_v10 = vshll.u32 %v430_v4, 16  ;;  %v596_v14 = vshll.u32 %v431_v7, 16  ;;  %v949_v63 = vld [vmem:[%s13819_s12 + $0x4c] sm:$0xf] }
  0x40   : > { %4040 = vmatmul.mubr.bf16.gmra.mrb[4].mxu1 %v11274_v46  ;;  %3886 = vmatprep.mubr.bf16.mxu0 %v11243_v12  ;;  %v578_v46 = vrot.slane %v576_v36, 4  ;;  %v1060_v12 = vsel %vm13841_vm5, %v11261_v1, %v1059_v2  ;;  %v1061_v13 = vrot.slane %v1059_v2, 4  ;;  %v600_v17 = vshrl.u32 %v431_v7, 16  ;;  %v434_v36 = vld [vmem:[%s13819_s12 + $0x4c] sm:$0xf]  ;;  %v13253_v2 = vld [vmem:[%s13819_s12 + $0x54] sm:$0xff]  }
  0x41   : > { %4047 = vmatprep.mubr.bf16.mxu1 %v13241_v52  ;;  %v582_v52 = vshll.u32 %v429_v32, 16  ;;  %v575_v5 = vsel %vm13833_vm2, %v570_v61, %v574_v45  ;;  %v589_v15 = vrot.slane %v587_v9, 4  ;;  %v598_v21 = vrot.slane %v596_v14, 5  ;;  %12348 = vmatprep.subr.bf16.mxu0 %v13252_v43  ;;  %v437_v9 = vld [vmem:[%s13819_s12 + $0x58] sm:$0xf] }
  0x42   : > { %v579_v55 = vor.u32 %v578_v46, %v574_v45  ;;  %v602_v25 = vrot.slane %v600_v17, 4  ;;  %v11262_v30 = vrot.slane %v945_v22, 9  ;;  %v1066_v31 = vrot.slane %v946_v27, 5  ;;  %v951_v27 = vld [vmem:[%s13819_s12 + $0x54] sm:$0xe] }
  0x43   : > { %v584_v58 = vrot.slane %v582_v52, 5  ;;  %v1069_v32 = vrot.slane %v947_v28, 5  ;;  %v611_v38 = vshrl.u32 %v433_v33, 16  ;;  %v614_v40 = vshll.u32 %v433_v33, 16  ;;  %v13254_v52 = vld [vmem:[%s19175_s2 + $0x118] sm:$0xff]   ;;  %v13259_v28 = vld [vmem:[%s19175_s2 + $0x1c0] sm:$0xff]  }
  0x44   : > { %v580_v62 = vrot.slane %v579_v55, 4  ;;  %v603_v35 = vor.u32 %v602_v25, %v598_v21  ;;  %v1068_v39 = vrot.slane %v1066_v31, 4  ;;  %v620_v41 = vshll.u32 %v434_v36, 16  ;;  %12349 = vmatpush3.bf16.msra.mxu0 %v13254_v52  ;;  %v953_v33 = vld [vmem:[%s13819_s12 + $0x5c] sm:$0x1]  ;;  %12454 = vmatprep.subr.bf16.mxu1 %v13259_v28 }
  0x45   : > { %v613_v46 = vrot.slane %v611_v38, 4  ;;  %v624_v47 = vshrl.u32 %v434_v36, 16  ;;  %v616_v48 = vrot.slane %v614_v40, 5  ;;  %v630_v50 = vshll.u32 %v435_v37, 16  ;;  %v13256_v36 = vld [vmem:[%s13819_s12 + $0x60] sm:$0xff]  }
  0x46   : > { %3887 = vmatmul.mubr.bf16.gmra.mrb[8].mxu0 %v13239_v8  ;;  %v585_v6 = vsel %vm13833_vm2, %v580_v62, %v584_v58  ;;  %v432_v8 = vld [vmem:[%s13819_s12 + $0x44] sm:$0x1]  ;;  %v604_v45 = vrot.slane %v603_v35, 4  ;;  %v1067_v54 = vsel %vm13841_vm5, %v11262_v30, %v1066_v31  ;;  %v1070_v55 = vsel %vm13841_vm5, %v1068_v39, %v1069_v32  ;;  %v13249_v58 = vld [vmem:[%s13819_s12 + $0x3c] sm:$0xff]   ;;  %v948_v62 = vld [vmem:[%s13819_s12 + $0x48] sm:$0xe] }
  0x47   : > { %3894 = vmatprep.mubr.bf16.mxu0 %v11244_v53  ;;  %v11245_v11 = vcombine.low %v575_v5, %v585_v6  ;;  %v606_v18 = vshll.u32 %v432_v8, 16  ;;  %v617_v59 = vor.u32 %v616_v48, %v613_v46  ;;  %v632_v60 = vrot.slane %v630_v50, 5  ;;  %v436_v8 = vld [vmem:[%s13819_s12 + $0x54] sm:$0xf]  ;;  %v952_v32 = vld [vmem:[%s13819_s12 + $0x58] sm:$0xf] }
  0x48   : > { %4048 = vmatmul.mubr.bf16.gmra.mrb[8].mxu1 %v11275_v16  ;;  %v592_v16 = vrot.slane %v590_v10, 5  ;;  %v11278_v0 = vcombine.low %v1067_v54, %v1070_v55  ;;  %v11263_v4 = vrot.slane %v948_v62, 9  ;;  %v1073_v5 = vrot.slane %v949_v63, 5  ;;  %v439_v39 = vld [vmem:[%s13819_s12 + $0x60] sm:$0xf] }
  0x49   : > { %4055 = vmatprep.mubr.bf16.mxu1 %v13244_v20  ;;  %v1063_v20 = vsel %vm13841_vm5, %v1061_v13, %v1062_v3  ;;  %v608_v29 = vrot.slane %v606_v18, 5  ;;  %v618_v1 = vrot.slane %v617_v59, 4  ;;  %v950_v3 = vld [vmem:[%s13819_s12 + $0x50] sm:$0x1]  ;;  %v438_v13 = vld [vmem:[%s13819_s12 + $0x5c] sm:$0x1] }
  0x4a   : > { %v11277_v23 = vcombine.low %v1060_v12, %v1063_v20  ;;  %v593_v24 = vor.u32 %v592_v16, %v589_v15  ;;  %v1076_v7 = vrot.slane %v950_v3, 5  ;;  %v1075_v12 = vrot.slane %v1073_v5, 4  ;;  %v440_v40 = vld [vmem:[%s13819_s12 + $0x64] sm:$0xf] }
  0x4b   : > { %v609_v53 = vsel %vm13833_vm2, %v604_v45, %v608_v29  ;;  %v635_v14 = vshrl.u32 %v436_v8, 16  ;;  %v638_v16 = vshll.u32 %v436_v8, 16  ;;  %v644_v17 = vshll.u32 %v437_v9, 16  ;;  %v13251_v29 = vld [vmem:[%s13819_s12 + $0x48] sm:$0xff]   ;;  %v13261_v59 = vld [vmem:[%s19175_s2 + $0x120] sm:$0xff]  }
  0x4c   : > { %v594_v34 = vrot.slane %v593_v24, 4  ;;  %v648_v18 = vshrl.u32 %v437_v9, 16  ;;  %v11264_v37 = vrot.slane %v951_v27, 9  ;;  %v1080_v38 = vrot.slane %v952_v32, 5  ;;  %v13260_v9 = vld [vmem:[%s13819_s12 + $0x6c] sm:$0xff]  }
  0x4d   : > { %v637_v22 = vrot.slane %v635_v14, 4  ;;  %v640_v24 = vrot.slane %v638_v16, 5  ;;  %v646_v25 = vrot.slane %v644_v17, 5  ;;  %v659_v43 = vshrl.u32 %v439_v39, 16  ;;  %v442_v16 = vld [vmem:[%s13819_s12 + $0x6c] sm:$0xf] }
  0x4e   : > { %3895 = vmatmul.mubr.bf16.gmra.mrb[12].mxu0 %v13243_v49  ;;  %v599_v44 = vsel %vm13833_vm2, %v594_v34, %v598_v21  ;;  %v622_v49 = vrot.slane %v620_v41, 5  ;;  %v1077_v21 = vsel %vm13841_vm5, %v1075_v12, %v1076_v7  ;;  %v441_v41 = vld [vmem:[%s13819_s12 + $0x68] sm:$0x1]  ;;  %v668_v45 = vshll.u32 %v440_v40, 16  ;;  %v443_v17 = vld [vmem:[%s13819_s12 + $0x70] sm:$0xf] }
  0x4f   : > { %3902 = vmatprep.mubr.bf16.mxu0 %v11245_v11  ;;  %v1074_v11 = vsel %vm13841_vm5, %v11263_v4, %v1073_v5  ;;  %v641_v34 = vor.u32 %v640_v24, %v637_v22  ;;  %v672_v46 = vshrl.u32 %v440_v40, 16  ;;  %v1083_v50 = vrot.slane %v953_v33, 5  ;;  %v13255_v4 = vld [vmem:[%s13819_s12 + $0x54] sm:$0xff]   ;;  %v13267_v27 = vld [vmem:[%s19175_s2 + $0x1c8] sm:$0xff]  }
  0x50   : > { %4056 = vmatmul.mubr.bf16.gmra.mrb[12].mxu1 %v11276_v57  ;;  %v11246_v57 = vcombine.low %v599_v44, %v609_v53  ;;  %v623_v10 = vsel %vm13833_vm2, %v618_v1, %v622_v49  ;;  %v11279_v30 = vcombine.low %v1074_v11, %v1077_v21  ;;  %v662_v44 = vshll.u32 %v439_v39, 16  ;;  %v956_v11 = vld [vmem:[%s13819_s12 + $0x68] sm:$0x1]  ;;  %v959_v39 = vld [vmem:[%s13819_s12 + $0x74] sm:$0x1] }
  0x51   : > { %4063 = vmatprep.mubr.bf16.mxu1 %v13247_v56  ;;  %v626_v56 = vrot.slane %v624_v47, 4  ;;  %v642_v47 = vrot.slane %v641_v34, 4  ;;  %v661_v52 = vrot.slane %v659_v43, 4  ;;  %v670_v54 = vrot.slane %v668_v45, 5 }
  0x52   : > { %v664_v53 = vrot.slane %v662_v44, 5  ;;  %v674_v55 = vrot.slane %v672_v46, 4  ;;  %v1081_v62 = vsel %vm13841_vm5, %v11264_v37, %v1080_v38  ;;  %v686_v21 = vshll.u32 %v442_v16, 16  ;;  %v957_v37 = vld [vmem:[%s13819_s12 + $0x6c] sm:$0xe] }
  0x53   : > { %v627_v61 = vor.u32 %v626_v56, %v622_v49  ;;  %v1082_v49 = vrot.slane %v1080_v38, 4  ;;  %v647_v56 = vsel %vm13833_vm2, %v642_v47, %v646_v25  ;;  %v692_v22 = vshll.u32 %v443_v17, 16  ;;  %v958_v38 = vld [vmem:[%s13819_s12 + $0x70] sm:$0xf]  ;;  %v445_v46 = vld [vmem:[%s13819_s12 + $0x78] sm:$0xf] }
  0x54   : > { %v11266_v43 = vrot.slane %v957_v37, 9  ;;  %v1094_v44 = vrot.slane %v958_v38, 5  ;;  %v1097_v45 = vrot.slane %v959_v39, 5  ;;  %v13269_v47 = vld [vmem:[%s19175_s2 + $0x128] sm:$0xff]   ;;  %v963_v39 = vld [vmem:[%s13819_s12 + $0x84] sm:$0xe] }
  0x55   : > { %v628_v6 = vrot.slane %v627_v61, 4  ;;  %v665_v61 = vor.u32 %v664_v53, %v661_v52  ;;  %v1084_v63 = vsel %vm13841_vm5, %v1082_v49, %v1083_v50  ;;  %v446_v50 = vld [vmem:[%s13819_s12 + $0x7c] sm:$0xf]  ;;  %v447_v52 = vld [vmem:[%s13819_s12 + $0x80] sm:$0x1]  ;;  %v707_v53 = vshrl.u32 %v445_v46, 16 }
  0x56   : > { %3903 = vmatmul.mubr.bf16.gmra.mrb[16].mxu0 %v13245_v19  ;;  %v13258_v19 = vld [vmem:[%s19175_s2 + $0x160] sm:$0xff]   ;;  %v11280_v7 = vcombine.low %v1081_v62, %v1084_v63 }
  0x57   : > { %3910 = vmatprep.mubr.bf16.mxu0 %v11246_v57  ;;  %v633_v15 = vsel %vm13833_vm2, %v628_v6, %v632_v60  ;;  %12350 = vmatprep.subr.bf16.mxu0 %v13258_v19  ;;  %v666_v3 = vrot.slane %v665_v61, 4  ;;  %v954_v6 = vld [vmem:[%s13819_s12 + $0x60] sm:$0xe]  ;;  %v444_v19 = vld [vmem:[%s13819_s12 + $0x74] sm:$0x1]  ;;  %v720_v61 = vshrl.u32 %v446_v50, 16 }
  0x58   : > { %4064 = vmatmul.mubr.bf16.gmra.mrb[16].mxu1 %v11277_v23  ;;  %v11247_v20 = vcombine.low %v623_v10, %v633_v15  ;;  %v654_v23 = vshll.u32 %v438_v13, 16  ;;  %12351 = vmatpush3.bf16.msra.mxu0 %v13261_v59  ;;  %v955_v10 = vld [vmem:[%s13819_s12 + $0x64] sm:$0xf]  ;;  %v11265_v12 = vrot.slane %v954_v6, 9  ;;  %v1090_v15 = vrot.slane %v956_v11, 5 }
  0x59   : > { %4071 = vmatprep.mubr.bf16.mxu1 %v13250_v26  ;;  %v650_v26 = vrot.slane %v648_v18, 4  ;;  %v671_v8 = vsel %vm13833_vm2, %v666_v3, %v670_v54  ;;  %v1087_v14 = vrot.slane %v955_v10, 5  ;;  %v709_v59 = vrot.slane %v707_v53, 4  ;;  %v13268_v11 = vld [vmem:[%s13819_s12 + $0x84] sm:$0xff]   ;;  %v451_v53 = vld [vmem:[%s13819_s12 + $0x90] sm:$0xf] }
  0x5a   : > { %v656_v31 = vrot.slane %v654_v23, 5  ;;  %v13266_v23 = vld [vmem:[%s19175_s2 + $0x168] sm:$0xff]   ;;  %v722_v3 = vrot.slane %v720_v61, 4 }
  0x5b   : > { %v651_v35 = vor.u32 %v650_v26, %v646_v25  ;;  %v1089_v24 = vrot.slane %v1087_v14, 4  ;;  %v696_v25 = vshrl.u32 %v443_v17, 16  ;;  %v702_v26 = vshll.u32 %v444_v19, 16  ;;  %12352 = vmatprep.subr.bf16.mxu0 %v13266_v23 }
  0x5c   : > { %12353 = vmatpush3.bf16.msra.mxu0 %v13269_v47 }
  0x5d   : > { %v652_v48 = vrot.slane %v651_v35, 4  ;;  %v1091_v32 = vsel %vm13841_vm5, %v1089_v24, %v1090_v15  ;;  %v698_v33 = vrot.slane %v696_v25, 4  ;;  %v704_v34 = vrot.slane %v702_v26, 5  ;;  %v13257_v35 = vld [vmem:[%s13819_s12 + $0x60] sm:$0xff]   ;;  %v961_v15 = vld [vmem:[%s13819_s12 + $0x7c] sm:$0xf] }
  0x5e   : > { %3911 = vmatmul.mubr.bf16.gmra.mrb[20].mxu0 %v13249_v58  ;;  %v678_v58 = vshll.u32 %v441_v41, 16  ;;  %v13264_v41 = vld [vmem:[%s13819_s12 + $0x78] sm:$0xff]   ;;  %v1101_v19 = vrot.slane %v961_v15, 5  ;;  %v450_v24 = vld [vmem:[%s13819_s12 + $0x8c] sm:$0x1]  ;;  %v13271_v15 = vld [vmem:[%s13819_s12 + $0x84] sm:$0xff]  }
  0x5f   : > { %3918 = vmatprep.mubr.bf16.mxu0 %v11247_v20  ;;  %v657_v57 = vsel %vm13833_vm2, %v652_v48, %v656_v31  ;;  %v683_v20 = vshrl.u32 %v442_v16, 16  ;;  %v1088_v31 = vsel %vm13841_vm5, %v11265_v12, %v1087_v14  ;;  %v960_v12 = vld [vmem:[%s13819_s12 + $0x78] sm:$0xe]  ;;  %v962_v16 = vld [vmem:[%s13819_s12 + $0x80] sm:$0x1] }
  0x60   : > { %4072 = vmatmul.mubr.bf16.gmra.mrb[20].mxu1 %v11278_v0  ;;  %v11248_v60 = vcombine.low %v647_v56, %v657_v57  ;;  %v675_v0 = vor.u32 %v674_v55, %v670_v54  ;;  %v680_v1 = vrot.slane %v678_v58, 5  ;;  %v11281_v48 = vcombine.low %v1088_v31, %v1091_v32  ;;  %v13270_v57 = vld [vmem:[%s19175_s2 + $0x188] sm:$0xff]  }
  0x61   : > { %4079 = vmatprep.mubr.bf16.mxu1 %v13253_v2  ;;  %v13262_v2 = vld [vmem:[%s19175_s2 + $0x180] sm:$0xff]   ;;  %v685_v28 = vrot.slane %v683_v20, 4  ;;  %v1096_v55 = vrot.slane %v1094_v44, 4  ;;  %v710_v56 = vshll.u32 %v445_v46, 16  ;;  %v11267_v17 = vrot.slane %v960_v12, 9 }
  0x62   : > { %v676_v5 = vrot.slane %v675_v0, 4  ;;  %12455 = vmatpush3.bf16.msra.mxu1 %v13262_v2  ;;  %v726_v0 = vshll.u32 %v447_v52, 16  ;;  %v1104_v20 = vrot.slane %v962_v16, 5  ;;  %v1103_v31 = vrot.slane %v1101_v19, 4  ;;  %v965_v46 = vld [vmem:[%s13819_s12 + $0x8c] sm:$0x1] }
  0x63   : > { %12456 = vmatprep.subr.bf16.mxu1 %v13267_v27  ;;  %v712_v63 = vrot.slane %v710_v56, 5  ;;  %v453_v56 = vld [vmem:[%s13819_s12 + $0x98] sm:$0x1] }
  0x64   : > { %v681_v13 = vsel %vm13833_vm2, %v676_v5, %v680_v1  ;;  %v1098_v5 = vsel %vm13841_vm5, %v1096_v55, %v1097_v45  ;;  %v1105_v37 = vsel %vm13841_vm5, %v1103_v31, %v1104_v20  ;;  %v964_v45 = vld [vmem:[%s13819_s12 + $0x88] sm:$0xf] }
  0x65   : > { %v11249_v18 = vcombine.low %v671_v8, %v681_v13  ;;  %v713_v6 = vor.u32 %v712_v63, %v709_v59  ;;  %v13263_v8 = vld [vmem:[%s13819_s12 + $0x6c] sm:$0xff]   ;;  %v1108_v52 = vrot.slane %v964_v45, 5 }
  0x66   : > { %3919 = vmatmul.mubr.bf16.gmra.mrb[24].mxu0 %v13251_v29  ;;  %v688_v29 = vrot.slane %v686_v21, 5  ;;  %12457 = vmatpush3.bf16.msra.mxu1 %v13270_v57  ;;  %v448_v21 = vld [vmem:[%s13819_s12 + $0x84] sm:$0xf]  ;;  %v755_v57 = vshrl.u32 %v451_v53, 16 }
  0x67   : > { %3926 = vmatprep.mubr.bf16.mxu0 %v11248_v60  ;;  %v716_v60 = vshll.u32 %v446_v50, 16  ;;  %v714_v10 = vrot.slane %v713_v6, 4  ;;  %v731_v25 = vshrl.u32 %v448_v21, 16  ;;  %v734_v26 = vshll.u32 %v448_v21, 16 }
  0x68   : > { %4080 = vmatmul.mubr.bf16.gmra.mrb[24].mxu1 %v11279_v30  ;;  %v694_v30 = vrot.slane %v692_v22, 5  ;;  %v449_v22 = vld [vmem:[%s13819_s12 + $0x88] sm:$0xf]  ;;  %v11268_v50 = vrot.slane %v963_v39, 9  ;;  %v1110_v61 = vrot.slane %v1108_v52, 4 }
  0x69   : > { %4087 = vmatprep.mubr.bf16.mxu1 %v13256_v36  ;;  %v689_v36 = vor.u32 %v688_v29, %v685_v28  ;;  %v718_v2 = vrot.slane %v716_v60, 5  ;;  %v740_v27 = vshll.u32 %v449_v22, 16  ;;  %v13274_v28 = vld [vmem:[%s19175_s2 + $0x170] sm:$0xff]   ;;  %v744_v32 = vshrl.u32 %v449_v22, 16 }
  0x6a   : > { %v699_v40 = vor.u32 %v698_v33, %v694_v30  ;;  %v733_v33 = vrot.slane %v731_v25, 4  ;;  %12354 = vmatprep.subr.bf16.mxu0 %v13274_v28  ;;  %v967_v22 = vld [vmem:[%s13819_s12 + $0x94] sm:$0xf]  ;;  %v13281_v25 = vld [vmem:[%s19175_s2 + $0x1d8] sm:$0xff]  }
  0x6b   : > { %v690_v49 = vrot.slane %v689_v36, 4  ;;  %v750_v36 = vshll.u32 %v450_v24, 16  ;;  %v746_v38 = vrot.slane %v744_v32, 4  ;;  %v456_v32 = vld [vmem:[%s13819_s12 + $0xa4] sm:$0x1] }
  0x6c   : > { %v700_v54 = vrot.slane %v699_v40, 4  ;;  %v13275_v40 = vld [vmem:[%s19175_s2 + $0x1d0] sm:$0xff]   ;;  %v798_v39 = vshll.u32 %v456_v32, 16  ;;  %v13289_v32 = vld [vmem:[%s19175_s2 + $0x1e8] sm:$0xff]  }
  0x6d   : > { %v695_v58 = vsel %vm13833_vm2, %v690_v49, %v694_v30  ;;  %v1102_v30 = vsel %vm13841_vm5, %v11267_v17, %v1101_v19  ;;  %v13272_v49 = vld [vmem:[%s13819_s12 + $0x90] sm:$0xff]   ;;  %12458 = vmatprep.subr.bf16.mxu1 %v13275_v40 }
  0x6e   : > { %3927 = vmatmul.mubr.bf16.gmra.mrb[28].mxu0 %v13255_v4  ;;  %v705_v62 = vsel %vm13833_vm2, %v700_v54, %v704_v34  ;;  %v1095_v4 = vsel %vm13841_vm5, %v11266_v43, %v1094_v44  ;;  %v736_v34 = vrot.slane %v734_v26, 5  ;;  %v752_v44 = vrot.slane %v750_v36, 5  ;;  %v452_v54 = vld [vmem:[%s13819_s12 + $0x94] sm:$0xf]  ;;  %v966_v19 = vld [vmem:[%s13819_s12 + $0x90] sm:$0xe] }
  0x6f   : > { %3934 = vmatprep.mubr.bf16.mxu0 %v11249_v18  ;;  %v11250_v1 = vcombine.low %v695_v58, %v705_v62  ;;  %v11282_v13 = vcombine.low %v1095_v4, %v1098_v5  ;;  %v719_v18 = vsel %vm13833_vm2, %v714_v10, %v718_v2  ;;  %v11283_v47 = vcombine.low %v1102_v30, %v1105_v37  ;;  %v13277_v4 = vld [vmem:[%s19175_s2 + $0x130] sm:$0xff]   ;;  %v455_v30 = vld [vmem:[%s13819_s12 + $0xa0] sm:$0xf]  ;;  %v13282_v36 = vld [vmem:[%s19175_s2 + $0x198] sm:$0xff]  }
  0x70   : > { %4088 = vmatmul.mubr.bf16.gmra.mrb[28].mxu1 %v11280_v7  ;;  %v728_v7 = vrot.slane %v726_v0, 5  ;;  %v737_v43 = vor.u32 %v736_v34, %v733_v33  ;;  %v758_v58 = vshll.u32 %v451_v53, 16  ;;  %v764_v59 = vshll.u32 %v452_v54, 16  ;;  %12355 = vmatpush3.bf16.msra.mxu0 %v13277_v4  ;;  %v970_v53 = vld [vmem:[%s13819_s12 + $0xa0] sm:$0xf] }
  0x71   : > { %4095 = vmatprep.mubr.bf16.mxu1 %v13260_v9  ;;  %v723_v9 = vor.u32 %v722_v3, %v718_v2  ;;  %v1111_v62 = vrot.slane %v965_v46, 5  ;;  %v768_v63 = vshrl.u32 %v452_v54, 16  ;;  %v1109_v10 = vsel %vm13841_vm5, %v11268_v50, %v1108_v52  ;;  %v969_v52 = vld [vmem:[%s13819_s12 + $0x9c] sm:$0xe]  ;;  %v971_v54 = vld [vmem:[%s13819_s12 + $0xa4] sm:$0x1] }
  0x72   : > { %v738_v55 = vrot.slane %v737_v43, 4  ;;  %v760_v2 = vrot.slane %v758_v58, 5  ;;  %v766_v3 = vrot.slane %v764_v59, 5  ;;  %v11269_v24 = vrot.slane %v966_v19, 9 }
  0x73   : > { %v724_v14 = vrot.slane %v723_v9, 4  ;;  %v770_v6 = vrot.slane %v768_v63, 4  ;;  %v1122_v58 = vrot.slane %v970_v53, 5  ;;  %v1125_v59 = vrot.slane %v971_v54, 5  ;;  %v13286_v63 = vld [vmem:[%s19175_s2 + $0x138] sm:$0xff]  }
  0x75   : > { %v729_v23 = vsel %vm13833_vm2, %v724_v14, %v728_v7  ;;  %v774_v7 = vshll.u32 %v453_v56, 16  ;;  %v771_v12 = vor.u32 %v770_v6, %v766_v3  ;;  %v13278_v14 = vld [vmem:[%s19175_s2 + $0x190] sm:$0xff]   ;;  %v13280_v56 = vld [vmem:[%s13819_s12 + $0xa8] sm:$0xff]  }
  0x76   : > { %3935 = vmatmul.mubr.bf16.gmra.mrb[32].mxu0 %v13257_v35  ;;  %v11251_v29 = vcombine.low %v719_v18, %v729_v23  ;;  %v742_v35 = vrot.slane %v740_v27, 5  ;;  %v13276_v18 = vld [vmem:[%s13819_s12 + $0x9c] sm:$0xff]   ;;  %12459 = vmatpush3.bf16.msra.mxu1 %v13278_v14  ;;  %v968_v23 = vld [vmem:[%s13819_s12 + $0x98] sm:$0x1]  ;;  %v1115_v27 = vrot.slane %v967_v22, 5 }
  0x77   : > { %3942 = vmatprep.mubr.bf16.mxu0 %v11250_v1  ;;  %v757_v1 = vrot.slane %v755_v57, 4  ;;  %v772_v17 = vrot.slane %v771_v12, 4  ;;  %v1118_v28 = vrot.slane %v968_v23, 5  ;;  %12460 = vmatprep.subr.bf16.mxu1 %v13281_v25  ;;  %v11270_v57 = vrot.slane %v969_v52, 9  ;;  %v972_v25 = vld [vmem:[%s13819_s12 + $0xa8] sm:$0xe] }
  0x78   : > { %4096 = vmatmul.mubr.bf16.gmra.mrb[32].mxu1 %v11281_v48  ;;  %v747_v48 = vor.u32 %v746_v38, %v742_v35  ;;  %v743_v0 = vsel %vm13833_vm2, %v738_v55, %v742_v35  ;;  %v788_v35 = vshll.u32 %v455_v30, 16  ;;  %v1117_v37 = vrot.slane %v1115_v27, 4  ;;  %v13283_v52 = vld [vmem:[%s13819_s12 + $0xa8] sm:$0xff]  }
  0x79   : > { %4103 = vmatprep.mubr.bf16.mxu1 %v13264_v41  ;;  %v13265_v41 = vld [vmem:[%s13819_s12 + $0x78] sm:$0xff]   ;;  %v761_v9 = vor.u32 %v760_v2, %v757_v1  ;;  %v792_v38 = vshrl.u32 %v455_v30, 16  ;;  %v1116_v45 = vsel %vm13841_vm5, %v11269_v24, %v1115_v27  ;;  %v1124_v1 = vrot.slane %v1122_v58, 4  ;;  %v458_v2 = vld [vmem:[%s13819_s12 + $0xac] sm:$0xf] }
  0x7a   : > { %v748_v60 = vrot.slane %v747_v48, 4  ;;  %v790_v43 = vrot.slane %v788_v35, 5  ;;  %v1119_v46 = vsel %vm13841_vm5, %v1117_v37, %v1118_v28  ;;  %v800_v48 = vrot.slane %v798_v39, 5  ;;  %12461 = vmatpush3.bf16.msra.mxu1 %v13282_v36  ;;  %v13285_v24 = vld [vmem:[%s13819_s12 + $0xb4] sm:$0xff]   ;;  %v13290_v37 = vld [vmem:[%s19175_s2 + $0x1a8] sm:$0xff]  }
  0x7b   : > { %v762_v16 = vrot.slane %v761_v9, 4  ;;  %v11271_v30 = vrot.slane %v972_v25, 9  ;;  %v460_v39 = vld [vmem:[%s13819_s12 + $0xb4] sm:$0xf] }
  0x7c   : > { %v753_v5 = vsel %vm13833_vm2, %v748_v60, %v752_v44  ;;  %v13284_v44 = vld [vmem:[%s19175_s2 + $0x178] sm:$0xff]   ;;  %v11285_v60 = vcombine.low %v1116_v45, %v1119_v46  ;;  %v827_v45 = vshrl.u32 %v460_v39, 16  ;;  %v830_v46 = vshll.u32 %v460_v39, 16 }
  0x7d   : > { %v767_v21 = vsel %vm13833_vm2, %v762_v16, %v766_v3  ;;  %12356 = vmatprep.subr.bf16.mxu0 %v13284_v44  ;;  %v459_v3 = vld [vmem:[%s13819_s12 + $0xb0] sm:$0x1]  ;;  %v1126_v16 = vsel %vm13841_vm5, %v1124_v1, %v1125_v59  ;;  %v462_v44 = vld [vmem:[%s13819_s12 + $0xbc] sm:$0x1] }
  0x7e   : > { %3943 = vmatmul.mubr.bf16.gmra.mrb[36].mxu0 %v13263_v8  ;;  %v11252_v8 = vcombine.low %v743_v0, %v753_v5  ;;  %v829_v53 = vrot.slane %v827_v45, 4  ;;  %v832_v54 = vrot.slane %v830_v46, 5  ;;  %v11531_v45 = vld [vmem:[%s13819_s12 + $0x20] sm:$0x1] }
  0x7f   : > { %3950 = vmatprep.mubr.bf16.mxu0 %v11251_v29  ;;  %v454_v29 = vld [vmem:[%s13819_s12 + $0x9c] sm:$0xf]  ;;  %12357 = vmatpush3.bf16.msra.mxu0 %v13286_v63  ;;  %v976_v63 = vld [vmem:[%s13819_s12 + $0xb8] sm:$0xf] }
  0x80   : > { %4104 = vmatmul.mubr.bf16.gmra.mrb[36].mxu1 %v11282_v13  ;;  %v776_v13 = vrot.slane %v774_v7, 5  ;;  %v779_v33 = vshrl.u32 %v454_v29, 16  ;;  %v782_v34 = vshll.u32 %v454_v29, 16  ;;  %v812_v7 = vshll.u32 %v458_v2, 16  ;;  %v974_v29 = vld [vmem:[%s13819_s12 + $0xb0] sm:$0x1] }
  0x81   : > { %4111 = vmatprep.mubr.bf16.mxu1 %v13268_v11  ;;  %v1112_v11 = vsel %vm13841_vm5, %v1110_v61, %v1111_v62  ;;  %v457_v62 = vld [vmem:[%s13819_s12 + $0xa8] sm:$0xf] }
  0x82   : > { %v11284_v20 = vcombine.low %v1109_v10, %v1112_v11  ;;  %v777_v26 = vsel %vm13833_vm2, %v772_v17, %v776_v13  ;;  %v781_v40 = vrot.slane %v779_v33, 4  ;;  %v803_v5 = vshrl.u32 %v457_v62, 16 }
  0x83   : > { %v11253_v31 = vcombine.low %v767_v21, %v777_v26  ;;  %v806_v6 = vshll.u32 %v457_v62, 16  ;;  %v816_v10 = vshrl.u32 %v458_v2, 16  ;;  %v822_v11 = vshll.u32 %v459_v3, 16  ;;  %v13279_v21 = vld [vmem:[%s13819_s12 + $0x9c] sm:$0xff]   ;;  %v973_v26 = vld [vmem:[%s13819_s12 + $0xac] sm:$0xf] }
  0x84   : > { %v1123_v13 = vsel %vm13841_vm5, %v11270_v57, %v1122_v58  ;;  %v805_v14 = vrot.slane %v803_v5, 4  ;;  %v814_v17 = vrot.slane %v812_v7, 5  ;;  %v13292_v58 = vld [vmem:[%s13819_s12 + $0xc0] sm:$0xff]   ;;  %v13293_v2 = vld [vmem:[%s19175_s2 + $0x1f0] sm:$0xff]  }
  0x85   : > { %v824_v19 = vrot.slane %v822_v11, 5  ;;  %v11286_v27 = vcombine.low %v1123_v13, %v1126_v16  ;;  %v13296_v11 = vld [vmem:[%s19175_s2 + $0x1b8] sm:$0xff]  }
  0x86   : > { %3951 = vmatmul.mubr.bf16.gmra.mrb[40].mxu0 %v13265_v41  ;;  %v784_v41 = vrot.slane %v782_v34, 5  ;;  %v1132_v34 = vrot.slane %v974_v29, 5  ;;  %v11339_v29 = vld [vmem:[%s13819_s12 + $0x14] sm:$0x1] }
  0x87   : > { %3958 = vmatprep.mubr.bf16.mxu0 %v11252_v8  ;;  %v13287_v8 = vld [vmem:[%s19175_s2 + $0x1e0] sm:$0xff]  }
  0x88   : > { %4112 = vmatmul.mubr.bf16.gmra.mrb[40].mxu1 %v11283_v47  ;;  %v794_v47 = vrot.slane %v792_v38, 4  ;;  %v785_v50 = vor.u32 %v784_v41, %v781_v40  ;;  %12462 = vmatprep.subr.bf16.mxu1 %v13287_v8  ;;  %v13295_v8 = vld [vmem:[%s19175_s2 + $0x1f8] sm:$0xff]  }
  0x89   : > { %4119 = vmatprep.mubr.bf16.mxu1 %v13272_v49  ;;  %v13273_v49 = vld [vmem:[%s13819_s12 + $0x90] sm:$0xff]  }
  0x8a   : > { %v795_v55 = vor.u32 %v794_v47, %v790_v43  ;;  %v786_v61 = vrot.slane %v785_v50, 4  ;;  %v846_v50 = vshll.u32 %v462_v44, 16 }
  0x8c   : > { %v796_v0 = vrot.slane %v795_v55, 4  ;;  %v791_v4 = vsel %vm13833_vm2, %v786_v61, %v790_v43  ;;  %v461_v43 = vld [vmem:[%s13819_s12 + $0xb8] sm:$0xf]  ;;  %v848_v57 = vrot.slane %v846_v50, 5  ;;  %v975_v61 = vld [vmem:[%s13819_s12 + $0xb4] sm:$0xe] }
  0x8d   : > { %v11272_v1 = vrot.slane %v975_v61, 9 }
  0x8e   : > { %3959 = vmatmul.mubr.bf16.gmra.mrb[44].mxu0 %v13271_v15  ;;  %v801_v9 = vsel %vm13833_vm2, %v796_v0, %v800_v48  ;;  %v808_v15 = vrot.slane %v806_v6, 5  ;;  %v836_v48 = vshll.u32 %v461_v43, 16  ;;  %v977_v0 = vld [vmem:[%s13819_s12 + $0xbc] sm:$0x1]  ;;  %v13294_v6 = vld [vmem:[%s19175_s2 + $0x1b0] sm:$0xff]  }
  0x8f   : > { %3966 = vmatprep.mubr.bf16.mxu0 %v11253_v31  ;;  %v11254_v12 = vcombine.low %v791_v4, %v801_v9  ;;  %v1129_v31 = vrot.slane %v973_v26, 5  ;;  %v1136_v4 = vrot.slane %v976_v63, 5  ;;  %v1139_v5 = vrot.slane %v977_v0, 5  ;;  %v11406_v0 = vld [vmem:[%s13819_s12 + $0x20] sm:$0x1] }
  0x90   : > { %4120 = vmatmul.mubr.bf16.gmra.mrb[44].mxu1 %v11284_v20  ;;  %v13288_v20 = vld [vmem:[%s19175_s2 + $0x1a0] sm:$0xff]   ;;  %v809_v22 = vor.u32 %v808_v15, %v805_v14  ;;  %v838_v55 = vrot.slane %v836_v48, 5  ;;  %v11401_v14 = vld [vmem:[%s13819_s12 + $0xc] sm:$0xe]  ;;  %v11402_v15 = vld [vmem:[%s13819_s12 + $0x10] sm:$0xf] }
  0x91   : > { %4127 = vmatprep.mubr.bf16.mxu1 %v13276_v18  ;;  %v818_v18 = vrot.slane %v816_v10, 4  ;;  %12463 = vmatpush3.bf16.msra.mxu1 %v13288_v20  ;;  %v1131_v36 = vrot.slane %v1129_v31, 4  ;;  %v1130_v41 = vsel %vm13841_vm5, %v11271_v30, %v1129_v31  ;;  %v1138_v10 = vrot.slane %v1136_v4, 4 }
  0x92   : > { %v810_v28 = vrot.slane %v809_v22, 4  ;;  %12464 = vmatprep.subr.bf16.mxu1 %v13289_v32  ;;  %v1137_v13 = vsel %vm13841_vm5, %v11272_v1, %v1136_v4  ;;  %v11449_v20 = vrot.slane %v11401_v14, 9  ;;  %v11532_v14 = vld [vmem:[%s13819_s12 + $0x24] sm:$0xf] }
  0x93   : > { %v819_v23 = vor.u32 %v818_v18, %v814_v17  ;;  %v1133_v47 = vsel %vm13841_vm5, %v1131_v36, %v1132_v34  ;;  %v1140_v18 = vsel %vm13841_vm5, %v1138_v10, %v1139_v5  ;;  %v1434_v34 = vshll.u32 %v11339_v29, 16 }
  0x94   : > { %v815_v35 = vsel %vm13833_vm2, %v810_v28, %v814_v17  ;;  %v11287_v59 = vcombine.low %v1130_v41, %v1133_v47  ;;  %v13291_v17 = vld [vmem:[%s13819_s12 + $0xb4] sm:$0xff]   ;;  %v11288_v25 = vcombine.low %v1137_v13, %v1140_v18  ;;  %v11338_v28 = vld [vmem:[%s13819_s12 + $0x10] sm:$0xf] }
  0x95   : > { %v820_v33 = vrot.slane %v819_v23, 4  ;;  %12465 = vmatpush3.bf16.msra.mxu1 %v13290_v37  ;;  %v11337_v23 = vld [vmem:[%s13819_s12 + $0xc] sm:$0xf]  ;;  %v1424_v32 = vshll.u32 %v11338_v28, 16  ;;  %v11529_v37 = vld [vmem:[%s13819_s12 + $0x18] sm:$0xf] }
  0x96   : > { %3967 = vmatmul.mubr.bf16.gmra.mrb[48].mxu0 %v13273_v49  ;;  %v840_v49 = vshrl.u32 %v461_v43, 16  ;;  %12466 = vmatprep.subr.bf16.mxu1 %v13293_v2  ;;  %v1415_v30 = vshrl.u32 %v11337_v23, 16  ;;  %v1418_v31 = vshll.u32 %v11337_v23, 16  ;;  %v11530_v43 = vld [vmem:[%s13819_s12 + $0x1c] sm:$0xf]  ;;  %v1436_v44 = vrot.slane %v1434_v34, 5 }
  0x97   : > { %3974 = vmatprep.mubr.bf16.mxu0 %v11254_v12  ;;  %v825_v38 = vsel %vm13833_vm2, %v820_v33, %v824_v19  ;;  %v11403_v19 = vld [vmem:[%s13819_s12 + $0x14] sm:$0x1]  ;;  %v1428_v33 = vshrl.u32 %v11338_v28, 16  ;;  %v2360_v46 = vshrl.u32 %v11529_v37, 16  ;;  %v2363_v47 = vshll.u32 %v11529_v37, 16 }
  0x98   : > { %4128 = vmatmul.mubr.bf16.gmra.mrb[48].mxu1 %v11285_v60  ;;  %v11255_v40 = vcombine.low %v815_v35, %v825_v38  ;;  %v833_v60 = vor.u32 %v832_v54, %v829_v53  ;;  %v1979_v22 = vrot.slane %v11403_v19, 5  ;;  %v1417_v36 = vrot.slane %v1415_v30, 4  ;;  %v11408_v37 = vld [vmem:[%s13819_s12 + $0x28] sm:$0xf] }
  0x99   : > { %4135 = vmatprep.mubr.bf16.mxu1 %v13280_v56  ;;  %v842_v56 = vrot.slane %v840_v49, 4  ;;  %12467 = vmatpush3.bf16.msra.mxu1 %v13294_v6  ;;  %v1420_v39 = vrot.slane %v1418_v31, 5  ;;  %v1430_v41 = vrot.slane %v1428_v33, 4  ;;  %v2369_v48 = vshll.u32 %v11530_v43, 16  ;;  %v11534_v31 = vld [vmem:[%s13819_s12 + $0x2c] sm:$0x1] }
  0x9a   : > { %v834_v3 = vrot.slane %v833_v60, 4  ;;  %12468 = vmatprep.subr.bf16.mxu1 %v13295_v8  ;;  %v2379_v53 = vshll.u32 %v11531_v45, 16  ;;  %v2362_v54 = vrot.slane %v2360_v46, 4  ;;  %v11341_v8 = vld [vmem:[%s13819_s12 + $0x1c] sm:$0xf]  ;;  %v2403_v46 = vshll.u32 %v11534_v31, 16 }
  0x9b   : > { %v843_v62 = vor.u32 %v842_v56, %v838_v55  ;;  %v1421_v49 = vor.u32 %v1420_v39, %v1417_v36  ;;  %v2371_v56 = vrot.slane %v2369_v48, 5  ;;  %v2384_v39 = vshrl.u32 %v11532_v14, 16  ;;  %v11343_v48 = vld [vmem:[%s13819_s12 + $0x24] sm:$0xf]  ;;  %v11411_v31 = vld [vmem:[%s13819_s12 + $0x34] sm:$0xf] }
  0x9c   : > { %v839_v9 = vsel %vm13833_vm2, %v834_v3, %v838_v55  ;;  %v2365_v55 = vrot.slane %v2363_v47, 5  ;;  %v2381_v61 = vrot.slane %v2379_v53, 5  ;;  %v11340_v3 = vld [vmem:[%s13819_s12 + $0x18] sm:$0xf] }
  0x9d   : > { %v844_v7 = vrot.slane %v843_v62, 4  ;;  %12469 = vmatpush3.bf16.msra.mxu1 %v13296_v11  ;;  %v11405_v62 = vld [vmem:[%s13819_s12 + $0x1c] sm:$0xf]  ;;  %v1439_v18 = vshrl.u32 %v11340_v3, 16  ;;  %v1442_v19 = vshll.u32 %v11340_v3, 16 }
  0x9e   : > { %3975 = vmatmul.mubr.bf16.gmra.mrb[52].mxu0 %v13279_v21  ;;  %v1976_v21 = vrot.slane %v11402_v15, 5  ;;  %v2366_v63 = vor.u32 %v2365_v55, %v2362_v54  ;;  %v1983_v2 = vrot.slane %v11405_v62, 5  ;;  %v13300_v15 = vld [vmem:[%s19175_s2 + $0x208] sm:$0xff]   ;;  %v1463_v62 = vshrl.u32 %v11343_v48, 16 }
  0x9f   : > { %3982 = vmatprep.mubr.bf16.mxu0 %v11255_v40  ;;  %v849_v12 = vsel %vm13833_vm2, %v844_v7, %v848_v57  ;;  %v1426_v40 = vrot.slane %v1424_v32, 5  ;;  %v11404_v57 = vld [vmem:[%s13819_s12 + $0x18] sm:$0xe]  ;;  %v1986_v7 = vrot.slane %v11406_v0, 5  ;;  %v1441_v29 = vrot.slane %v1439_v18, 4 }
  0xa0   : > { %4136 = vmatmul.mubr.bf16.gmra.mrb[52].mxu1 %v11286_v27  ;;  %v11256_v16 = vcombine.low %v839_v9, %v849_v12  ;;  %v1977_v26 = vsel %vm13841_vm5, %v11449_v20, %v1976_v21  ;;  %v1978_v27 = vrot.slane %v1976_v21, 4  ;;  %v11450_v1 = vrot.slane %v11404_v57, 9  ;;  %v11342_v9 = vld [vmem:[%s13819_s12 + $0x20] sm:$0x1]  ;;  %v11533_v21 = vld [vmem:[%s13819_s12 + $0x28] sm:$0xf] }
  0xa1   : > { %4143 = vmatprep.mubr.bf16.mxu1 %v13285_v24  ;;  %v14197_v24 = vld [vmem:[%s19175_s2 + $0x200] sm:$0xff]   ;;  %v1431_v50 = vor.u32 %v1430_v41, %v1426_v40  ;;  %v2367_v11 = vrot.slane %v2366_v63, 4  ;;  %v1985_v13 = vrot.slane %v1983_v2, 4  ;;  %v1448_v20 = vshll.u32 %v11341_v8, 16  ;;  %v11345_v3 = vld [vmem:[%s13819_s12 + $0x2c] sm:$0x1] }
  0xa2   : > { %13062 = vmatprep.subr.bf16.mxu0 %v14197_v24  ;;  %v1980_v35 = vsel %vm13841_vm5, %v1978_v27, %v1979_v22  ;;  %v1984_v12 = vsel %vm13841_vm5, %v11450_v1, %v1983_v2  ;;  %v1444_v30 = vrot.slane %v1442_v19, 5  ;;  %v11407_v32 = vld [vmem:[%s13819_s12 + $0x24] sm:$0xe]  ;;  %v2393_v41 = vshll.u32 %v11533_v21, 16  ;;  %v11536_v18 = vld [vmem:[%s13819_s12 + $0x34] sm:$0xf] }
  0xa3   : > { %v11465_v38 = vcombine.low %v1977_v26, %v1980_v35  ;;  %v2372_v22 = vsel %vm13833_vm2, %v2367_v11, %v2371_v56  ;;  %v1987_v23 = vsel %vm13841_vm5, %v1985_v13, %v1986_v7  ;;  %v1458_v26 = vshll.u32 %v11342_v9, 16  ;;  %v13306_v9 = vld [vmem:[%s19175_s2 + $0x218] sm:$0xff]  }
  0xa4   : > { %v11466_v28 = vcombine.low %v1984_v12, %v1987_v23  ;;  %v1450_v34 = vrot.slane %v1448_v20, 5  ;;  %v2397_v45 = vshrl.u32 %v11533_v21, 16  ;;  %v11451_v47 = vrot.slane %v11407_v32, 9  ;;  %v11537_v19 = vld [vmem:[%s13819_s12 + $0x38] sm:$0x1]  ;;  %v13299_v21 = vld [vmem:[%s13819_s12 + $0x24] sm:$0xff]  }
  0xa5   : > { %v1460_v36 = vrot.slane %v1458_v26, 5  ;;  %v2395_v53 = vrot.slane %v2393_v41, 5  ;;  %v1990_v57 = vrot.slane %v11408_v37, 5  ;;  %v1465_v7 = vrot.slane %v1463_v62, 4  ;;  %v11410_v26 = vld [vmem:[%s13819_s12 + $0x30] sm:$0xe] }
  0xa6   : > { %3983 = vmatmul.mubr.bf16.gmra.mrb[56].mxu0 %v13283_v52  ;;  %v2373_v52 = vshrl.u32 %v11530_v43, 16  ;;  %v11409_v43 = vld [vmem:[%s13819_s12 + $0x2c] sm:$0x1]  ;;  %v2399_v55 = vrot.slane %v2397_v45, 4  ;;  %v13309_v37 = vld [vmem:[%s19175_s2 + $0x220] sm:$0xff]   ;;  %v11452_v41 = vrot.slane %v11410_v26, 9 }
  0xa7   : > { %3990 = vmatprep.mubr.bf16.mxu0 %v11256_v16  ;;  %v1991_v1 = vsel %vm13841_vm5, %v11451_v47, %v1990_v57  ;;  %v1992_v2 = vrot.slane %v1990_v57, 4  ;;  %v1997_v45 = vrot.slane %v11411_v31, 5  ;;  %v11348_v57 = vld [vmem:[%s13819_s12 + $0x38] sm:$0x1]  ;;  %v11538_v62 = vld [vmem:[%s13819_s12 + $0x3c] sm:$0xf] }
  0xa8   : > { %4144 = vmatmul.mubr.bf16.gmra.mrb[56].mxu1 %v11287_v59  ;;  %v1432_v59 = vrot.slane %v1431_v50, 4  ;;  %v2375_v60 = vrot.slane %v2373_v52, 4  ;;  %v2386_v50 = vrot.slane %v2384_v39, 4  ;;  %v2400_v0 = vor.u32 %v2399_v55, %v2395_v53  ;;  %v11415_v26 = vld [vmem:[%s13819_s12 + $0x44] sm:$0x1] }
  0xa9   : > { %4151 = vmatprep.mubr.bf16.mxu1 %v13292_v58  ;;  %v1422_v58 = vrot.slane %v1421_v49, 4  ;;  %v1998_v55 = vsel %vm13841_vm5, %v11452_v41, %v1997_v45  ;;  %v11349_v31 = vld [vmem:[%s13819_s12 + $0x3c] sm:$0xf] }
  0xaa   : > { %v1437_v5 = vsel %vm13833_vm2, %v1432_v59, %v1436_v44  ;;  %v2376_v6 = vor.u32 %v2375_v60, %v2371_v56  ;;  %v2405_v56 = vrot.slane %v2403_v46, 5  ;;  %v1993_v60 = vrot.slane %v11409_v43, 5  ;;  %v11346_v46 = vld [vmem:[%s13819_s12 + $0x30] sm:$0xf] }
  0xab   : > { %v1427_v4 = vsel %vm13833_vm2, %v1422_v58, %v1426_v40  ;;  %v2387_v40 = vshll.u32 %v11532_v14, 16 }
  0xac   : > { %v11385_v10 = vcombine.low %v1427_v4, %v1437_v5  ;;  %v2377_v16 = vrot.slane %v2376_v6, 4  ;;  %v11535_v4 = vld [vmem:[%s13819_s12 + $0x30] sm:$0xf]  ;;  %v1994_v11 = vsel %vm13841_vm5, %v1992_v2, %v1993_v60  ;;  %v1487_v60 = vshrl.u32 %v11346_v46, 16 }
  0xad   : > { %v2389_v52 = vrot.slane %v2387_v40, 5  ;;  %v2427_v40 = vshll.u32 %v11537_v19, 16  ;;  %v2432_v19 = vshrl.u32 %v11538_v62, 16 }
  0xae   : > { %3991 = vmatmul.mubr.bf16.gmra.mrb[60].mxu0 %v13291_v17  ;;  %v13298_v17 = vld [vmem:[%s13819_s12 + $0x18] sm:$0xff]   ;;  %v2382_v27 = vsel %vm13833_vm2, %v2377_v16, %v2381_v61  ;;  %v11344_v61 = vld [vmem:[%s13819_s12 + $0x28] sm:$0xf] }
  0xaf   : > { %4192 = vmatprep.mubr.bf16.mxu0 %v11465_v38  ;;  %v11577_v33 = vcombine.low %v2372_v22, %v2382_v27  ;;  %v1445_v38 = vor.u32 %v1444_v30, %v1441_v29  ;;  %v2390_v59 = vor.u32 %v2389_v52, %v2386_v50  ;;  %v1472_v12 = vshll.u32 %v11344_v61, 16  ;;  %v11347_v52 = vld [vmem:[%s13819_s12 + $0x34] sm:$0xf] }
  0xb0   : > { %4152 = vmatmul.mubr.bf16.gmra.mrb[60].mxu1 %v11288_v25  ;;  %v1452_v25 = vshrl.u32 %v11341_v8, 16  ;;  %v1466_v8 = vshll.u32 %v11343_v48, 16  ;;  %v1476_v13 = vshrl.u32 %v11344_v61, 16  ;;  %v2411_v30 = vshll.u32 %v11535_v4, 16 }
  0xb1   : > { %4353 = vmatprep.mubr.bf16.mxu1 %v11577_v33  ;;  %v1446_v49 = vrot.slane %v1445_v38, 4  ;;  %v2391_v6 = vrot.slane %v2390_v59, 4  ;;  %v1474_v22 = vrot.slane %v1472_v12, 5  ;;  %v1490_v61 = vshll.u32 %v11346_v46, 16  ;;  %v13301_v12 = vld [vmem:[%s13819_s12 + $0x30] sm:$0xff]  }
  0xb2   : > { %v1454_v35 = vrot.slane %v1452_v25, 4  ;;  %v1468_v16 = vrot.slane %v1466_v8, 5  ;;  %v1478_v23 = vrot.slane %v1476_v13, 4  ;;  %v2408_v25 = vshrl.u32 %v11535_v4, 16  ;;  %v13312_v4 = vld [vmem:[%s19175_s2 + $0x228] sm:$0xff]  }
  0xb3   : > { %v1451_v58 = vsel %vm13833_vm2, %v1446_v49, %v1450_v34  ;;  %v2396_v14 = vsel %vm13833_vm2, %v2391_v6, %v2395_v53  ;;  %v2413_v39 = vrot.slane %v2411_v30, 5  ;;  %v2429_v49 = vrot.slane %v2427_v40, 5 }
  0xb4   : > { %v1455_v44 = vor.u32 %v1454_v35, %v1450_v34  ;;  %v1479_v32 = vor.u32 %v1478_v23, %v1474_v22  ;;  %v2410_v33 = vrot.slane %v2408_v25, 4  ;;  %v2417_v34 = vshll.u32 %v11536_v18, 16 }
  0xb5   : > { %v2421_v35 = vshrl.u32 %v11536_v18, 16  ;;  %v1500_v2 = vshrl.u32 %v11347_v52, 16  ;;  %v1492_v8 = vrot.slane %v1490_v61, 5 }
  0xb6   : > { %4193 = vmatmul.mubr.bf16.vlgmr.msra.gmra.mrb[64].mxu0 %v11385_v10  ;;  %v1456_v54 = vrot.slane %v1455_v44, 4  ;;  %v2401_v10 = vrot.slane %v2400_v0, 4  ;;  %v1480_v43 = vrot.slane %v1479_v32, 4  ;;  %v2414_v48 = vor.u32 %v2413_v39, %v2410_v33 }
  0xb7   : > { %13063 = vmatpush3.bf16.msra.mxu0 %v14197_v24  ;;  %4200 = vmatprep.mubr.bf16.mxu0 %v11466_v28  ;;  %v13303_v24 = vld [vmem:[%s19175_s2 + $0x210] sm:$0xff]   ;;  %v1469_v28 = vor.u32 %v1468_v16, %v1465_v7  ;;  %v2423_v44 = vrot.slane %v2421_v35, 4  ;;  %v1489_v7 = vrot.slane %v1487_v60, 4  ;;  %v11414_v16 = vld [vmem:[%s13819_s12 + $0x40] sm:$0xf] }
  0xb8   : > { %13064 = vmatprep.subr.bf16.mxu0 %v13300_v15  ;;  %4354 = vmatmul.mubr.bf16.vlgmr.msra.gmra.mrb[64].mxu1 %v13298_v17  ;;  %v1461_v63 = vsel %vm13833_vm2, %v1456_v54, %v1460_v36  ;;  %v1482_v17 = vshll.u32 %v11345_v3, 16  ;;  %v2406_v20 = vsel %vm13833_vm2, %v2401_v10, %v2405_v56  ;;  %v11412_v36 = vld [vmem:[%s13819_s12 + $0x38] sm:$0x1]  ;;  %v1999_v56 = vrot.slane %v1997_v45, 4  ;;  %v11539_v3 = vld [vmem:[%s13819_s12 + $0x40] sm:$0xf] }
  0xb9   : > { %v11386_v5 = vcombine.low %v1451_v58, %v1461_v63  ;;  %v11578_v27 = vcombine.low %v2396_v14, %v2406_v20  ;;  %v1470_v38 = vrot.slane %v1469_v28, 4  ;;  %v2000_v50 = vrot.slane %v11412_v36, 5  ;;  %v11413_v10 = vld [vmem:[%s13819_s12 + $0x3c] sm:$0xe]  ;;  %v11350_v36 = vld [vmem:[%s13819_s12 + $0x40] sm:$0xf] }
  0xba   : > { %v1484_v29 = vrot.slane %v1482_v17, 5  ;;  %v2415_v59 = vrot.slane %v2414_v48, 4  ;;  %v1502_v14 = vrot.slane %v1500_v2, 4  ;;  %v1493_v18 = vor.u32 %v1492_v8, %v1489_v7 }
  0xbb   : > { %13065 = vmatpush3.bf16.msra.mxu0 %v13300_v15  ;;  %v11467_v15 = vcombine.low %v1991_v1, %v1994_v11  ;;  %4361 = vmatprep.mubr.bf16.mxu1 %v11578_v27  ;;  %v1475_v47 = vsel %vm13833_vm2, %v1470_v38, %v1474_v22  ;;  %v2001_v0 = vsel %vm13841_vm5, %v1999_v56, %v2000_v50  ;;  %v1496_v1 = vshll.u32 %v11347_v52, 16  ;;  %v11541_v50 = vld [vmem:[%s13819_s12 + $0x48] sm:$0xf] }
  0xbc   : > { %13066 = vmatprep.subr.bf16.mxu0 %v13303_v24  ;;  %v1485_v53 = vsel %vm13833_vm2, %v1480_v43, %v1484_v29  ;;  %v11468_v6 = vcombine.low %v1998_v55, %v2001_v0  ;;  %v2435_v20 = vshll.u32 %v11538_v62, 16  ;;  %v2441_v23 = vshll.u32 %v11539_v3, 16  ;;  %v11543_v62 = vld [vmem:[%s13819_s12 + $0x50] sm:$0x1] }
  0xbd   : > { %v11387_v58 = vcombine.low %v1475_v47, %v1485_v53  ;;  %v1498_v13 = vrot.slane %v1496_v1, 5  ;;  %v2445_v25 = vshrl.u32 %v11539_v3, 16  ;;  %v1494_v27 = vrot.slane %v1493_v18, 4  ;;  %v13302_v53 = vld [vmem:[%s13819_s12 + $0x3c] sm:$0xff]  }
  0xbe   : > { %4201 = vmatmul.mubr.bf16.gmra.mrb[68].mxu0 %v11386_v5  ;;  %v2434_v28 = vrot.slane %v2432_v19, 4  ;;  %v2437_v29 = vrot.slane %v2435_v20, 5  ;;  %v2443_v33 = vrot.slane %v2441_v23, 5  ;;  %v11453_v35 = vrot.slane %v11413_v10, 9  ;;  %v13315_v10 = vld [vmem:[%s19175_s2 + $0x230] sm:$0xff]  }
  0xbf   : > { %13067 = vmatpush3.bf16.msra.mxu0 %v13303_v24  ;;  %4208 = vmatprep.mubr.bf16.mxu0 %v11467_v15  ;;  %v2419_v24 = vrot.slane %v2417_v34, 5  ;;  %v1506_v15 = vshll.u32 %v11348_v57, 16  ;;  %v2447_v34 = vrot.slane %v2445_v25, 4  ;;  %v2004_v40 = vrot.slane %v11414_v16, 5  ;;  %v11542_v57 = vld [vmem:[%s13819_s12 + $0x4c] sm:$0xf] }
  0xc0   : > { %13068 = vmatprep.subr.bf16.mxu0 %v13306_v9  ;;  %4362 = vmatmul.mubr.bf16.gmra.mrb[68].mxu1 %v13299_v21  ;;  %v1503_v21 = vor.u32 %v1502_v14, %v1498_v13  ;;  %v2438_v38 = vor.u32 %v2437_v29, %v2434_v28  ;;  %v1511_v45 = vshrl.u32 %v11349_v31, 16  ;;  %v1514_v55 = vshll.u32 %v11349_v31, 16  ;;  %v11352_v19 = vld [vmem:[%s13819_s12 + $0x48] sm:$0xf] }
  0xc1   : > { %v2424_v54 = vor.u32 %v2423_v44, %v2419_v24  ;;  %v2420_v5 = vsel %vm13833_vm2, %v2415_v59, %v2419_v24  ;;  %v1508_v22 = vrot.slane %v1506_v15, 5  ;;  %v2448_v43 = vor.u32 %v2447_v34, %v2443_v33  ;;  %v11351_v44 = vld [vmem:[%s13819_s12 + $0x44] sm:$0x1] }
  0xc2   : > { %v1504_v32 = vrot.slane %v1503_v21, 4  ;;  %v2007_v24 = vrot.slane %v11415_v26, 5  ;;  %v2439_v47 = vrot.slane %v2438_v38, 4  ;;  %v2005_v48 = vsel %vm13841_vm5, %v11453_v35, %v2004_v40  ;;  %v13318_v35 = vld [vmem:[%s19175_s2 + $0x238] sm:$0xff]  }
  0xc3   : > { %13069 = vmatpush3.bf16.msra.mxu0 %v13306_v9  ;;  %v2425_v63 = vrot.slane %v2424_v54, 4  ;;  %v11540_v9 = vld [vmem:[%s13819_s12 + $0x44] sm:$0x1]  ;;  %v2449_v52 = vrot.slane %v2448_v43, 4  ;;  %v1513_v54 = vrot.slane %v1511_v45, 4  ;;  %v1520_v56 = vshll.u32 %v11350_v36, 16 }
  0xc4   : > { %13070 = vmatprep.subr.bf16.mxu0 %v13309_v37  ;;  %v2451_v30 = vshll.u32 %v11540_v9, 16  ;;  %v1509_v41 = vsel %vm13833_vm2, %v1504_v32, %v1508_v22  ;;  %v1524_v60 = vshrl.u32 %v11350_v36, 16  ;;  %v1530_v61 = vshll.u32 %v11351_v44, 16  ;;  %v11353_v32 = vld [vmem:[%s13819_s12 + $0x4c] sm:$0xf] }
  0xc5   : > { %v2430_v11 = vsel %vm13833_vm2, %v2425_v63, %v2429_v49  ;;  %v2006_v49 = vrot.slane %v2004_v40, 4  ;;  %v11416_v63 = vld [vmem:[%s13819_s12 + $0x48] sm:$0xe]  ;;  %v1516_v2 = vrot.slane %v1514_v55, 5  ;;  %v1522_v3 = vrot.slane %v1520_v56, 5 }
  0xc6   : > { %4209 = vmatmul.mubr.bf16.gmra.mrb[72].mxu0 %v11387_v58  ;;  %v11579_v17 = vcombine.low %v2420_v5, %v2430_v11  ;;  %v2453_v39 = vrot.slane %v2451_v30, 5  ;;  %v2444_v58 = vsel %vm13833_vm2, %v2439_v47, %v2443_v33  ;;  %v11418_v5 = vld [vmem:[%s13819_s12 + $0x50] sm:$0x1]  ;;  %v1526_v7 = vrot.slane %v1524_v60, 4  ;;  %v11544_v40 = vld [vmem:[%s13819_s12 + $0x54] sm:$0xf] }
  0xc7   : > { %13071 = vmatpush3.bf16.msra.mxu0 %v13309_v37  ;;  %4216 = vmatprep.mubr.bf16.mxu0 %v11468_v6  ;;  %v1499_v37 = vsel %vm13833_vm2, %v1494_v27, %v1498_v13  ;;  %v2008_v59 = vsel %vm13841_vm5, %v2006_v49, %v2007_v24  ;;  %v1532_v8 = vrot.slane %v1530_v61, 5  ;;  %v2456_v9 = vshrl.u32 %v11541_v50, 16  ;;  %v11354_v33 = vld [vmem:[%s13819_s12 + $0x50] sm:$0x1]  ;;  %v11545_v49 = vld [vmem:[%s13819_s12 + $0x58] sm:$0xf] }
  0xc8   : > { %13072 = vmatprep.subr.bf16.mxu0 %v13312_v4  ;;  %4369 = vmatprep.mubr.bf16.mxu1 %v11579_v17  ;;  %v11388_v46 = vcombine.low %v1499_v37, %v1509_v41  ;;  %v2454_v0 = vsel %vm13833_vm2, %v2449_v52, %v2453_v39  ;;  %v11469_v1 = vcombine.low %v2005_v48, %v2008_v59  ;;  %v2465_v13 = vshll.u32 %v11542_v57, 16  ;;  %v11546_v56 = vld [vmem:[%s13819_s12 + $0x5c] sm:$0x1] }
  0xc9   : > { %4370 = vmatmul.mubr.bf16.gmra.mrb[72].mxu1 %v13301_v12  ;;  %v11580_v6 = vcombine.low %v2444_v58, %v2454_v0  ;;  %v1517_v11 = vor.u32 %v1516_v2, %v1513_v54  ;;  %v2459_v12 = vshll.u32 %v11541_v50, 16  ;;  %v2469_v14 = vshrl.u32 %v11542_v57, 16  ;;  %v11419_v57 = vld [vmem:[%s13819_s12 + $0x54] sm:$0xe] }
  0xca   : > { %v1527_v15 = vor.u32 %v1526_v7, %v1522_v3  ;;  %v2458_v16 = vrot.slane %v2456_v9, 4  ;;  %v2475_v17 = vshll.u32 %v11543_v62, 16  ;;  %v11454_v18 = vrot.slane %v11416_v63, 9  ;;  %v11420_v62 = vld [vmem:[%s13819_s12 + $0x58] sm:$0xf] }
  0xcb   : > { %13073 = vmatpush3.bf16.msra.mxu0 %v13312_v4  ;;  %v11417_v4 = vld [vmem:[%s13819_s12 + $0x4c] sm:$0xf]  ;;  %4377 = vmatprep.mubr.bf16.mxu1 %v11580_v6  ;;  %v1518_v20 = vrot.slane %v1517_v11, 4  ;;  %v2461_v21 = vrot.slane %v2459_v12, 5  ;;  %v2467_v22 = vrot.slane %v2465_v13, 5  ;;  %v2471_v23 = vrot.slane %v2469_v14, 4 }
  0xcc   : > { %13074 = vmatprep.subr.bf16.mxu0 %v13315_v10  ;;  %v1528_v25 = vrot.slane %v1527_v15, 4  ;;  %v2477_v26 = vrot.slane %v2475_v17, 5  ;;  %v2011_v27 = vrot.slane %v11417_v4, 5  ;;  %v2014_v28 = vrot.slane %v11418_v5, 5  ;;  %v11356_v13 = vld [vmem:[%s13819_s12 + $0x58] sm:$0xf] }
  0xcd   : > { %v1523_v29 = vsel %vm13833_vm2, %v1518_v20, %v1522_v3  ;;  %v2462_v30 = vor.u32 %v2461_v21, %v2458_v16  ;;  %v2472_v31 = vor.u32 %v2471_v23, %v2467_v22  ;;  %v1535_v34 = vshrl.u32 %v11352_v19, 16  ;;  %v11421_v3 = vld [vmem:[%s13819_s12 + $0x5c] sm:$0x1] }
  0xce   : > { %4217 = vmatmul.mubr.bf16.gmra.mrb[76].mxu0 %v11388_v46  ;;  %v1533_v36 = vsel %vm13833_vm2, %v1528_v25, %v1532_v8  ;;  %v2012_v37 = vsel %vm13841_vm5, %v11454_v18, %v2011_v27  ;;  %v2013_v38 = vrot.slane %v2011_v27, 4  ;;  %v1538_v39 = vshll.u32 %v11352_v19, 16  ;;  %v11355_v8 = vld [vmem:[%s13819_s12 + $0x54] sm:$0xf]  ;;  %v11357_v25 = vld [vmem:[%s13819_s12 + $0x5c] sm:$0x1] }
  0xcf   : > { %4224 = vmatprep.mubr.bf16.mxu0 %v11469_v1  ;;  %13075 = vmatpush3.bf16.msra.mxu0 %v13315_v10  ;;  %v11389_v41 = vcombine.low %v1523_v29, %v1533_v36  ;;  %v2463_v43 = vrot.slane %v2462_v30, 4  ;;  %v2473_v24 = vrot.slane %v2472_v31, 4  ;;  %v1537_v44 = vrot.slane %v1535_v34, 4 }
  0xd0   : > { %13076 = vmatprep.subr.bf16.mxu0 %v13318_v35  ;;  %v2015_v45 = vsel %vm13841_vm5, %v2013_v38, %v2014_v28  ;;  %v1540_v46 = vrot.slane %v1538_v39, 5  ;;  %v1544_v47 = vshll.u32 %v11353_v32, 16  ;;  %v1548_v48 = vshrl.u32 %v11353_v32, 16  ;;  %v11547_v32 = vld [vmem:[%s13819_s12 + $0x60] sm:$0xf] }
  0xd1   : > { %4378 = vmatmul.mubr.bf16.gmra.mrb[76].mxu1 %v13302_v53  ;;  %v2468_v50 = vsel %vm13833_vm2, %v2463_v43, %v2467_v22  ;;  %v2478_v52 = vsel %vm13833_vm2, %v2473_v24, %v2477_v26  ;;  %v13304_v53 = vld [vmem:[%s13819_s12 + $0x48] sm:$0xff]   ;;  %v11470_v54 = vcombine.low %v2012_v37, %v2015_v45  ;;  %v1554_v55 = vshll.u32 %v11354_v33, 16  ;;  %v11548_v33 = vld [vmem:[%s13819_s12 + $0x64] sm:$0xf] }
  0xd2   : > { %v11581_v58 = vcombine.low %v2468_v50, %v2478_v52  ;;  %v1541_v59 = vor.u32 %v1540_v46, %v1537_v44  ;;  %v1546_v60 = vrot.slane %v1544_v47, 5  ;;  %v1550_v61 = vrot.slane %v1548_v48, 4  ;;  %v11549_v43 = vld [vmem:[%s13819_s12 + $0x68] sm:$0x1]  ;;  %v13305_v44 = vld [vmem:[%s13819_s12 + $0x54] sm:$0xff]  }
  0xd3   : > { %13077 = vmatpush3.bf16.msra.mxu0 %v13318_v35  ;;  %v1556_v63 = vrot.slane %v1554_v55, 5  ;;  %v2480_v0 = vshrl.u32 %v11544_v40, 16  ;;  %v2483_v1 = vshll.u32 %v11544_v40, 16  ;;  %v2489_v2 = vshll.u32 %v11545_v49, 16  ;;  %v11422_v48 = vld [vmem:[%s13819_s12 + $0x60] sm:$0xe] }
  0xd4   : > { %4385 = vmatprep.mubr.bf16.mxu1 %v11581_v58  ;;  %v1542_v4 = vrot.slane %v1541_v59, 4  ;;  %v1551_v5 = vor.u32 %v1550_v61, %v1546_v60  ;;  %v2493_v6 = vshrl.u32 %v11545_v49, 16  ;;  %v2499_v7 = vshll.u32 %v11546_v56, 16  ;;  %v11423_v49 = vld [vmem:[%s13819_s12 + $0x64] sm:$0xf] }
  0xd5   : > { %v2482_v9 = vrot.slane %v2480_v0, 4  ;;  %v2485_v10 = vrot.slane %v2483_v1, 5  ;;  %v2491_v11 = vrot.slane %v2489_v2, 5  ;;  %v11455_v12 = vrot.slane %v11419_v57, 9  ;;  %v11424_v55 = vld [vmem:[%s13819_s12 + $0x68] sm:$0x1] }
  0xd6   : > { %4225 = vmatmul.mubr.bf16.gmra.mrb[80].mxu0 %v11389_v41  ;;  %v1547_v14 = vsel %vm13833_vm2, %v1542_v4, %v1546_v60  ;;  %v1552_v15 = vrot.slane %v1551_v5, 4  ;;  %v2495_v16 = vrot.slane %v2493_v6, 4  ;;  %v2501_v17 = vrot.slane %v2499_v7, 5  ;;  %v11358_v60 = vld [vmem:[%s13819_s12 + $0x60] sm:$0xf] }
  0xd7   : > { %4232 = vmatprep.mubr.bf16.mxu0 %v11470_v54  ;;  %v2486_v18 = vor.u32 %v2485_v10, %v2482_v9  ;;  %v2018_v19 = vrot.slane %v11420_v62, 5  ;;  %v2021_v20 = vrot.slane %v11421_v3, 5  ;;  %v1559_v21 = vshrl.u32 %v11355_v8, 16  ;;  %v11359_v1 = vld [vmem:[%s13819_s12 + $0x64] sm:$0xf] }
  0xd8   : > { %v1557_v22 = vsel %vm13833_vm2, %v1552_v15, %v1556_v63  ;;  %v2496_v23 = vor.u32 %v2495_v16, %v2491_v11  ;;  %v1562_v26 = vshll.u32 %v11355_v8, 16  ;;  %v1568_v27 = vshll.u32 %v11356_v13, 16  ;;  %v11550_v15 = vld [vmem:[%s13819_s12 + $0x6c] sm:$0xf] }
  0xd9   : > { %4386 = vmatmul.mubr.bf16.gmra.mrb[80].mxu1 %v13304_v53  ;;  %v11390_v28 = vcombine.low %v1547_v14, %v1557_v22  ;;  %v2487_v29 = vrot.slane %v2486_v18, 4  ;;  %v2019_v30 = vsel %vm13841_vm5, %v11455_v12, %v2018_v19  ;;  %v2020_v31 = vrot.slane %v2018_v19, 4 }
  0xda   : > { %v2497_v34 = vrot.slane %v2496_v23, 4  ;;  %v1561_v35 = vrot.slane %v1559_v21, 4  ;;  %v1564_v36 = vrot.slane %v1562_v26, 5  ;;  %v1570_v37 = vrot.slane %v1568_v27, 5 }
  0xdb   : > { %v2492_v38 = vsel %vm13833_vm2, %v2487_v29, %v2491_v11  ;;  %v2022_v39 = vsel %vm13841_vm5, %v2020_v31, %v2021_v20  ;;  %v1572_v40 = vshrl.u32 %v11356_v13, 16  ;;  %v1578_v41 = vshll.u32 %v11357_v25, 16  ;;  %v11360_v13 = vld [vmem:[%s13819_s12 + $0x68] sm:$0x1]  ;;  %v11551_v20 = vld [vmem:[%s13819_s12 + $0x70] sm:$0xf] }
  0xdc   : > { %v2502_v24 = vsel %vm13833_vm2, %v2497_v34, %v2501_v17  ;;  %v11471_v45 = vcombine.low %v2019_v30, %v2022_v39  ;;  %v1565_v46 = vor.u32 %v1564_v36, %v1561_v35  ;;  %v2504_v47 = vshrl.u32 %v11547_v32, 16  ;;  %v13307_v31 = vld [vmem:[%s13819_s12 + $0x60] sm:$0xff]   ;;  %v11552_v34 = vld [vmem:[%s13819_s12 + $0x74] sm:$0x1] }
  0xdd   : > { %v11582_v50 = vcombine.low %v2492_v38, %v2502_v24  ;;  %v1574_v52 = vrot.slane %v1572_v40, 4  ;;  %v1580_v53 = vrot.slane %v1578_v41, 5  ;;  %v2507_v54 = vshll.u32 %v11547_v32, 16  ;;  %v11425_v40 = vld [vmem:[%s13819_s12 + $0x6c] sm:$0xe] }
  0xde   : > { %4233 = vmatmul.mubr.bf16.gmra.mrb[84].mxu0 %v11390_v28  ;;  %v1566_v56 = vrot.slane %v1565_v46, 4  ;;  %v2506_v57 = vrot.slane %v2504_v47, 4  ;;  %v2513_v58 = vshll.u32 %v11548_v33, 16  ;;  %v2517_v59 = vshrl.u32 %v11548_v33, 16  ;;  %v11426_v41 = vld [vmem:[%s13819_s12 + $0x70] sm:$0xf] }
  0xdf   : > { %4240 = vmatprep.mubr.bf16.mxu0 %v11471_v45  ;;  %4393 = vmatprep.mubr.bf16.mxu1 %v11582_v50  ;;  %v1575_v61 = vor.u32 %v1574_v52, %v1570_v37  ;;  %v2509_v62 = vrot.slane %v2507_v54, 5  ;;  %v2523_v63 = vshll.u32 %v11549_v43, 16  ;;  %v11456_v0 = vrot.slane %v11422_v48, 9  ;;  %v11427_v46 = vld [vmem:[%s13819_s12 + $0x74] sm:$0x1] }
  0xe0   : > { %v1571_v2 = vsel %vm13833_vm2, %v1566_v56, %v1570_v37  ;;  %v2515_v3 = vrot.slane %v2513_v58, 5  ;;  %v2519_v4 = vrot.slane %v2517_v59, 4  ;;  %v2025_v5 = vrot.slane %v11423_v49, 5  ;;  %v11361_v52 = vld [vmem:[%s13819_s12 + $0x6c] sm:$0xf] }
  0xe1   : > { %4394 = vmatmul.mubr.bf16.gmra.mrb[84].mxu1 %v13305_v44  ;;  %v1576_v6 = vrot.slane %v1575_v61, 4  ;;  %v2510_v7 = vor.u32 %v2509_v62, %v2506_v57  ;;  %v2525_v8 = vrot.slane %v2523_v63, 5  ;;  %v2028_v9 = vrot.slane %v11424_v55, 5  ;;  %v11362_v57 = vld [vmem:[%s13819_s12 + $0x70] sm:$0xf] }
  0xe2   : > { %v2520_v10 = vor.u32 %v2519_v4, %v2515_v3  ;;  %v2026_v11 = vsel %vm13841_vm5, %v11456_v0, %v2025_v5  ;;  %v2027_v12 = vrot.slane %v2025_v5, 4  ;;  %v1583_v14 = vshrl.u32 %v11358_v60, 16 }
  0xe3   : > { %v1581_v16 = vsel %vm13833_vm2, %v1576_v6, %v1580_v53  ;;  %v2511_v17 = vrot.slane %v2510_v7, 4  ;;  %v1586_v18 = vshll.u32 %v11358_v60, 16  ;;  %v1592_v19 = vshll.u32 %v11359_v1, 16 }
  0xe4   : > { %v11391_v21 = vcombine.low %v1571_v2, %v1581_v16  ;;  %v2521_v22 = vrot.slane %v2520_v10, 4  ;;  %v2029_v23 = vsel %vm13841_vm5, %v2027_v12, %v2028_v9  ;;  %v1585_v25 = vrot.slane %v1583_v14, 4  ;;  %v11363_v9 = vld [vmem:[%s13819_s12 + $0x74] sm:$0x1]  ;;  %v11554_v16 = vld [vmem:[%s13819_s12 + $0x7c] sm:$0xf] }
  0xe5   : > { %v2516_v26 = vsel %vm13833_vm2, %v2511_v17, %v2515_v3  ;;  %v11472_v27 = vcombine.low %v2026_v11, %v2029_v23  ;;  %v1588_v28 = vrot.slane %v1586_v18, 5  ;;  %v1594_v29 = vrot.slane %v1592_v19, 5  ;;  %v11553_v11 = vld [vmem:[%s13819_s12 + $0x78] sm:$0xf]  ;;  %v11555_v17 = vld [vmem:[%s13819_s12 + $0x80] sm:$0x1] }
  0xe6   : > { %4241 = vmatmul.mubr.bf16.gmra.mrb[88].mxu0 %v11391_v21  ;;  %v2526_v30 = vsel %vm13833_vm2, %v2521_v22, %v2525_v8  ;;  %v1596_v32 = vshrl.u32 %v11359_v1, 16  ;;  %v1602_v33 = vshll.u32 %v11360_v13, 16  ;;  %v2528_v35 = vshrl.u32 %v11550_v15, 16  ;;  %v13308_v19 = vld [vmem:[%s13819_s12 + $0x6c] sm:$0xff]   ;;  %v11428_v23 = vld [vmem:[%s13819_s12 + $0x78] sm:$0xe] }
  0xe7   : > { %v11583_v36 = vcombine.low %v2516_v26, %v2526_v30  ;;  %4248 = vmatprep.mubr.bf16.mxu0 %v11472_v27  ;;  %v1589_v37 = vor.u32 %v1588_v28, %v1585_v25  ;;  %v2531_v38 = vshll.u32 %v11550_v15, 16  ;;  %v2537_v39 = vshll.u32 %v11551_v20, 16 }
  0xe8   : > { %v1598_v43 = vrot.slane %v1596_v32, 4  ;;  %v1604_v24 = vrot.slane %v1602_v33, 5  ;;  %v2530_v44 = vrot.slane %v2528_v35, 4  ;;  %v2541_v45 = vshrl.u32 %v11551_v20, 16  ;;  %v11429_v33 = vld [vmem:[%s13819_s12 + $0x7c] sm:$0xf] }
  0xe9   : > { %4401 = vmatprep.mubr.bf16.mxu1 %v11583_v36  ;;  %v1590_v47 = vrot.slane %v1589_v37, 4  ;;  %v2533_v48 = vrot.slane %v2531_v38, 5  ;;  %v2539_v49 = vrot.slane %v2537_v39, 5  ;;  %v2547_v50 = vshll.u32 %v11552_v34, 16  ;;  %v11430_v34 = vld [vmem:[%s13819_s12 + $0x80] sm:$0x1] }
  0xea   : > { %4402 = vmatmul.mubr.bf16.gmra.mrb[88].mxu1 %v13307_v31  ;;  %v1599_v53 = vor.u32 %v1598_v43, %v1594_v29  ;;  %v2543_v54 = vrot.slane %v2541_v45, 4  ;;  %v11457_v55 = vrot.slane %v11425_v40, 9  ;;  %v2032_v56 = vrot.slane %v11426_v41, 5  ;;  %v11364_v39 = vld [vmem:[%s13819_s12 + $0x78] sm:$0xf] }
  0xeb   : > { %v1595_v58 = vsel %vm13833_vm2, %v1590_v47, %v1594_v29  ;;  %v2534_v59 = vor.u32 %v2533_v48, %v2530_v44  ;;  %v2549_v60 = vrot.slane %v2547_v50, 5  ;;  %v2035_v61 = vrot.slane %v11427_v46, 5  ;;  %v11365_v40 = vld [vmem:[%s13819_s12 + $0x7c] sm:$0xf] }
  0xec   : > { %v1600_v62 = vrot.slane %v1599_v53, 4  ;;  %v2544_v63 = vor.u32 %v2543_v54, %v2539_v49  ;;  %v2033_v0 = vsel %vm13841_vm5, %v11457_v55, %v2032_v56  ;;  %v2034_v1 = vrot.slane %v2032_v56, 4  ;;  %v11366_v54 = vld [vmem:[%s13819_s12 + $0x80] sm:$0x1] }
  0xed   : > { %v2535_v2 = vrot.slane %v2534_v59, 4  ;;  %v1607_v3 = vshrl.u32 %v11361_v52, 16  ;;  %v1610_v4 = vshll.u32 %v11361_v52, 16  ;;  %v1616_v5 = vshll.u32 %v11362_v57, 16  ;;  %v11556_v59 = vld [vmem:[%s13819_s12 + $0x84] sm:$0xf] }
  0xee   : > { %v1605_v6 = vsel %vm13833_vm2, %v1600_v62, %v1604_v24  ;;  %v2545_v7 = vrot.slane %v2544_v63, 4  ;;  %v2036_v8 = vsel %vm13841_vm5, %v2034_v1, %v2035_v61  ;;  %v1620_v10 = vshrl.u32 %v11362_v57, 16  ;;  %v11558_v1 = vld [vmem:[%s13819_s12 + $0x8c] sm:$0x1] }
  0xef   : > { %v11392_v12 = vcombine.low %v1595_v58, %v1605_v6  ;;  %v2540_v13 = vsel %vm13833_vm2, %v2535_v2, %v2539_v49  ;;  %v11473_v14 = vcombine.low %v2033_v0, %v2036_v8  ;;  %v1609_v15 = vrot.slane %v1607_v3, 4  ;;  %v11431_v8 = vld [vmem:[%s13819_s12 + $0x84] sm:$0xe] }
  0xf0   : > { %v2550_v18 = vsel %vm13833_vm2, %v2545_v7, %v2549_v60  ;;  %v1612_v20 = vrot.slane %v1610_v4, 5  ;;  %v1618_v21 = vrot.slane %v1616_v5, 5  ;;  %v1622_v22 = vrot.slane %v1620_v10, 4  ;;  %v11557_v60 = vld [vmem:[%s13819_s12 + $0x88] sm:$0xf]  ;;  %v13310_v4 = vld [vmem:[%s13819_s12 + $0x78] sm:$0xff]  }
  0xf1   : > { %4249 = vmatmul.mubr.bf16.gmra.mrb[92].mxu0 %v11392_v12  ;;  %v11584_v25 = vcombine.low %v2540_v13, %v2550_v18  ;;  %v1626_v26 = vshll.u32 %v11363_v9, 16  ;;  %v2552_v27 = vshrl.u32 %v11553_v11, 16  ;;  %v2555_v28 = vshll.u32 %v11553_v11, 16 }
  0xf2   : > { %4256 = vmatprep.mubr.bf16.mxu0 %v11473_v14  ;;  %v1613_v29 = vor.u32 %v1612_v20, %v1609_v15  ;;  %v1623_v30 = vor.u32 %v1622_v22, %v1618_v21  ;;  %v2561_v31 = vshll.u32 %v11554_v16, 16  ;;  %v2565_v32 = vshrl.u32 %v11554_v16, 16  ;;  %v11432_v14 = vld [vmem:[%s13819_s12 + $0x88] sm:$0xf] }
  0xf3   : > { %4409 = vmatprep.mubr.bf16.mxu1 %v11584_v25  ;;  %v1628_v35 = vrot.slane %v1626_v26, 5  ;;  %v2554_v36 = vrot.slane %v2552_v27, 4  ;;  %v2557_v37 = vrot.slane %v2555_v28, 5  ;;  %v2571_v38 = vshll.u32 %v11555_v17, 16  ;;  %v11433_v28 = vld [vmem:[%s13819_s12 + $0x8c] sm:$0x1] }
  0xf4   : > { %4410 = vmatmul.mubr.bf16.gmra.mrb[92].mxu1 %v13308_v19  ;;  %v1614_v41 = vrot.slane %v1613_v29, 4  ;;  %v1624_v43 = vrot.slane %v1623_v30, 4  ;;  %v2563_v24 = vrot.slane %v2561_v31, 5  ;;  %v2567_v44 = vrot.slane %v2565_v32, 4 }
  0xf5   : > { %v2558_v45 = vor.u32 %v2557_v37, %v2554_v36  ;;  %v2573_v46 = vrot.slane %v2571_v38, 5  ;;  %v11458_v47 = vrot.slane %v11428_v23, 9  ;;  %v2039_v48 = vrot.slane %v11429_v33, 5 }
  0xf6   : > { %v1619_v49 = vsel %vm13833_vm2, %v1614_v41, %v1618_v21  ;;  %v1629_v50 = vsel %vm13833_vm2, %v1624_v43, %v1628_v35  ;;  %v2568_v52 = vor.u32 %v2567_v44, %v2563_v24  ;;  %v2042_v53 = vrot.slane %v11430_v34, 5  ;;  %v11367_v34 = vld [vmem:[%s13819_s12 + $0x84] sm:$0xf]  ;;  %v11368_v44 = vld [vmem:[%s13819_s12 + $0x88] sm:$0xf] }
  0xf7   : > { %v11393_v55 = vcombine.low %v1619_v49, %v1629_v50  ;;  %v2559_v56 = vrot.slane %v2558_v45, 4  ;;  %v2040_v57 = vsel %vm13841_vm5, %v11458_v47, %v2039_v48  ;;  %v2041_v58 = vrot.slane %v2039_v48, 4 }
  0xf8   : > { %v2569_v61 = vrot.slane %v2568_v52, 4  ;;  %v1631_v62 = vshrl.u32 %v11364_v39, 16  ;;  %v1634_v63 = vshll.u32 %v11364_v39, 16  ;;  %v1640_v0 = vshll.u32 %v11365_v40, 16 }
  0xf9   : > { %4257 = vmatmul.mubr.bf16.gmra.mrb[96].mxu0 %v11393_v55  ;;  %v2564_v3 = vsel %vm13833_vm2, %v2559_v56, %v2563_v24  ;;  %v2043_v5 = vsel %vm13841_vm5, %v2041_v58, %v2042_v53  ;;  %v1644_v6 = vshrl.u32 %v11365_v40, 16  ;;  %v1650_v7 = vshll.u32 %v11366_v54, 16  ;;  %v11369_v54 = vld [vmem:[%s13819_s12 + $0x8c] sm:$0x1]  ;;  %v11559_v55 = vld [vmem:[%s13819_s12 + $0x90] sm:$0xf] }
  0xfa   : > { %v2574_v10 = vsel %vm13833_vm2, %v2569_v61, %v2573_v46  ;;  %v11474_v11 = vcombine.low %v2040_v57, %v2043_v5  ;;  %v1633_v12 = vrot.slane %v1631_v62, 4  ;;  %v1636_v13 = vrot.slane %v1634_v63, 5 }
  0xfb   : > { %v11585_v17 = vcombine.low %v2564_v3, %v2574_v10  ;;  %v1642_v18 = vrot.slane %v1640_v0, 5  ;;  %v1646_v19 = vrot.slane %v1644_v6, 4  ;;  %v1652_v20 = vrot.slane %v1650_v7, 5 }
  0xfc   : > { %4264 = vmatprep.mubr.bf16.mxu0 %v11474_v11  ;;  %v1637_v23 = vor.u32 %v1636_v13, %v1633_v12  ;;  %v2576_v25 = vshrl.u32 %v11556_v59, 16  ;;  %v2579_v26 = vshll.u32 %v11556_v59, 16  ;;  %v2585_v27 = vshll.u32 %v11557_v60, 16  ;;  %v11561_v11 = vld [vmem:[%s13819_s12 + $0x98] sm:$0x1] }
  0xfd   : > { %4417 = vmatprep.mubr.bf16.mxu1 %v11585_v17  ;;  %v1647_v30 = vor.u32 %v1646_v19, %v1642_v18  ;;  %v2589_v31 = vshrl.u32 %v11557_v60, 16  ;;  %v2595_v32 = vshll.u32 %v11558_v1, 16  ;;  %v11459_v33 = vrot.slane %v11431_v8, 9  ;;  %v11560_v60 = vld [vmem:[%s13819_s12 + $0x94] sm:$0xf]  ;;  %v13311_v17 = vld [vmem:[%s13819_s12 + $0x84] sm:$0xff]  }
  0xfe   : > { %4418 = vmatmul.mubr.bf16.gmra.mrb[96].mxu1 %v13310_v4  ;;  %v1638_v36 = vrot.slane %v1637_v23, 4  ;;  %v2578_v37 = vrot.slane %v2576_v25, 4  ;;  %v2581_v38 = vrot.slane %v2579_v26, 5  ;;  %v2587_v39 = vrot.slane %v2585_v27, 5 }
  0xff   : > { %v1648_v40 = vrot.slane %v1647_v30, 4  ;;  %v2591_v41 = vrot.slane %v2589_v31, 4  ;;  %v2597_v43 = vrot.slane %v2595_v32, 5  ;;  %v2046_v24 = vrot.slane %v11432_v14, 5 }
 0x100   : > { %v1643_v45 = vsel %vm13833_vm2, %v1638_v36, %v1642_v18  ;;  %v2582_v46 = vor.u32 %v2581_v38, %v2578_v37  ;;  %v2049_v47 = vrot.slane %v11433_v28, 5  ;;  %v1655_v48 = vshrl.u32 %v11367_v34, 16  ;;  %v11434_v36 = vld [vmem:[%s13819_s12 + $0x90] sm:$0xe]  ;;  %v11435_v37 = vld [vmem:[%s13819_s12 + $0x94] sm:$0xf] }
 0x101   : > { %v1653_v49 = vsel %vm13833_vm2, %v1648_v40, %v1652_v20  ;;  %v2592_v50 = vor.u32 %v2591_v41, %v2587_v39  ;;  %v2047_v52 = vsel %vm13841_vm5, %v11459_v33, %v2046_v24  ;;  %v2048_v53 = vrot.slane %v2046_v24, 4 }
 0x102   : > { %v11394_v56 = vcombine.low %v1643_v45, %v1653_v49  ;;  %v2583_v57 = vrot.slane %v2582_v46, 4  ;;  %v1657_v58 = vrot.slane %v1655_v48, 4  ;;  %v1658_v59 = vshll.u32 %v11367_v34, 16  ;;  %v11370_v49 = vld [vmem:[%s13819_s12 + $0x90] sm:$0xf] }
 0x103   : > { %v2593_v63 = vrot.slane %v2592_v50, 4  ;;  %v2050_v0 = vsel %vm13841_vm5, %v2048_v53, %v2049_v47  ;;  %v1664_v1 = vshll.u32 %v11368_v44, 16  ;;  %v1668_v3 = vshrl.u32 %v11368_v44, 16  ;;  %v11371_v50 = vld [vmem:[%s13819_s12 + $0x94] sm:$0xf] }
 0x104   : > { %4265 = vmatmul.mubr.bf16.gmra.mrb[100].mxu0 %v11394_v56  ;;  %v2588_v6 = vsel %vm13833_vm2, %v2583_v57, %v2587_v39  ;;  %v11475_v7 = vcombine.low %v2047_v52, %v2050_v0  ;;  %v1660_v8 = vrot.slane %v1658_v59, 5  ;;  %v1674_v10 = vshll.u32 %v11369_v54, 16 }
 0x105   : > { %v2598_v14 = vsel %vm13833_vm2, %v2593_v63, %v2597_v43  ;;  %v1666_v18 = vrot.slane %v1664_v1, 5  ;;  %v1670_v19 = vrot.slane %v1668_v3, 4  ;;  %v2600_v20 = vshrl.u32 %v11559_v55, 16  ;;  %v11436_v43 = vld [vmem:[%s13819_s12 + $0x98] sm:$0x1]  ;;  %v13313_v63 = vld [vmem:[%s13819_s12 + $0x90] sm:$0xff]  }
 0x106   : > { %v11586_v26 = vcombine.low %v2588_v6, %v2598_v14  ;;  %4272 = vmatprep.mubr.bf16.mxu0 %v11475_v7  ;;  %v1661_v27 = vor.u32 %v1660_v8, %v1657_v58  ;;  %v1676_v28 = vrot.slane %v1674_v10, 5  ;;  %v2603_v30 = vshll.u32 %v11559_v55, 16 }
 0x107   : > { %v1671_v31 = vor.u32 %v1670_v19, %v1666_v18  ;;  %v2602_v32 = vrot.slane %v2600_v20, 4  ;;  %v2609_v33 = vshll.u32 %v11560_v60, 16  ;;  %v2613_v34 = vshrl.u32 %v11560_v60, 16  ;;  %v11563_v20 = vld [vmem:[%s13819_s12 + $0xa0] sm:$0xf] }
 0x108   : > { %4425 = vmatprep.mubr.bf16.mxu1 %v11586_v26  ;;  %v1662_v38 = vrot.slane %v1661_v27, 4  ;;  %v2605_v39 = vrot.slane %v2603_v30, 5  ;;  %v2619_v40 = vshll.u32 %v11561_v11, 16  ;;  %v11460_v56 = vrot.slane %v11434_v36, 9  ;;  %v11562_v11 = vld [vmem:[%s13819_s12 + $0x9c] sm:$0xf] }
 0x109   : > { %v14422_v2 = vpop.f32.mrb[0].mxu0  ;;  %4426 = vmatmul.mubr.bf16.gmra.mrb[100].mxu1 %v13311_v17  ;;  %v1672_v24 = vrot.slane %v1671_v31, 4  ;;  %v2611_v44 = vrot.slane %v2609_v33, 5  ;;  %v2615_v45 = vrot.slane %v2613_v34, 4  ;;  %v2053_v57 = vrot.slane %v11435_v37, 5 }
 0x10a   : > { %v14430_v9 = vpop.f32.mrb[1].mxu0  ;;  %v1667_v47 = vsel %vm13833_vm2, %v1662_v38, %v1666_v18  ;;  %v2606_v48 = vor.u32 %v2605_v39, %v2602_v32  ;;  %v2621_v53 = vrot.slane %v2619_v40, 5  ;;  %v2056_v0 = vrot.slane %v11436_v43, 5  ;;  %v11564_v32 = vld [vmem:[%s13819_s12 + $0xa4] sm:$0x1] }
 0x10b   : > { %v14435_v15 = vpop.f32.mrb[2].mxu0  ;;  %v14437_v16 = vpop.f32.mrb[0].mxu1  ;;  %v14487_v41 = vadd.f32 %v14430_v9, %v14422_v2  ;;  %v1677_v2 = vsel %vm13833_vm2, %v1672_v24, %v1676_v28  ;;  %v2616_v9 = vor.u32 %v2615_v45, %v2611_v44  ;;  %v2054_v7 = vsel %vm13841_vm5, %v11460_v56, %v2053_v57  ;;  %v11437_v24 = vld [vmem:[%s13819_s12 + $0x9c] sm:$0xe] }
 0x10c   : > { %v14439_v21 = vpop.f32.mrb[3].mxu0  ;;  %v14441_v22 = vpop.f32.mrb[1].mxu1  ;;  %v2607_v55 = vrot.slane %v2606_v48, 4  ;;  %v2055_v8 = vrot.slane %v2053_v57, 4  ;;  %v1682_v10 = vshll.u32 %v11370_v49, 16  ;;  %v1688_v18 = vshll.u32 %v11371_v50, 16 }
 0x10d   : > { %v14444_v29 = vpop.f32.mrb[2].mxu1  ;;  %v14492_v46 = vadd.f32 %v14439_v21, %v14435_v15  ;;  %v14504_v54 = vadd.f32 %v14441_v22, %v14437_v16  ;;  %v11372_v15 = vld [vmem:[%s13819_s12 + $0x98] sm:$0x1]  ;;  %v11395_v21 = vcombine.low %v1667_v47, %v1677_v2  ;;  %v2617_v60 = vrot.slane %v2616_v9, 4 }
 0x10e   : > { %v14447_v35 = vpop.f32.mrb[3].mxu1  ;;  %v1679_v16 = vshrl.u32 %v11370_v49, 16  ;;  %v2612_v6 = vsel %vm13833_vm2, %v2607_v55, %v2611_v44  ;;  %v1692_v19 = vshrl.u32 %v11371_v50, 16  ;;  %v2057_v28 = vsel %vm13841_vm5, %v2055_v8, %v2056_v0  ;;  %v11438_v50 = vld [vmem:[%s13819_s12 + $0xa0] sm:$0xf] }
 0x10f   : > { %19305 = vst [vmem:[#allocation9_spill] sm:$0xff] %v14504_v54  ;;  %v14514_v1 = vadd.f32 %v14447_v35, %v14444_v29  ;;  %4273 = vmatmul.mubr.bf16.gmra.mrb[104].mxu0 %v11395_v21  ;;  %v2622_v35 = vsel %vm13833_vm2, %v2617_v60, %v2621_v53  ;;  %v1684_v30 = vrot.slane %v1682_v10, 5  ;;  %v1698_v31 = vshll.u32 %v11372_v15, 16  ;;  %v11439_v55 = vld [vmem:[%s13819_s12 + $0xa4] sm:$0x1] }
 0x110   : > { %v1681_v17 = vrot.slane %v1679_v16, 4  ;;  %v11587_v27 = vcombine.low %v2612_v6, %v2622_v35  ;;  %v11476_v33 = vcombine.low %v2054_v7, %v2057_v28  ;;  %v1690_v34 = vrot.slane %v1688_v18, 5  ;;  %v11373_v0 = vld [vmem:[%s13819_s12 + $0x9c] sm:$0xf]  ;;  %v11374_v35 = vld [vmem:[%s13819_s12 + $0xa0] sm:$0xf] }
 0x111   : > { %v14459_v61 = vpop.f32.mrb[4].mxu0  ;;  %19306 = vst [vmem:[#allocation10_spill] sm:$0xff] %v14514_v1  ;;  %v1694_v36 = vrot.slane %v1692_v19, 4  ;;  %v2624_v37 = vshrl.u32 %v11562_v11, 16  ;;  %v1700_v39 = vrot.slane %v1698_v31, 5  ;;  %v2627_v40 = vshll.u32 %v11562_v11, 16 }
 0x112   : > { %v14465_v4 = vpop.f32.mrb[5].mxu0  ;;  %4433 = vmatprep.mubr.bf16.mxu1 %v11587_v27  ;;  %v1685_v38 = vor.u32 %v1684_v30, %v1681_v17  ;;  %v2633_v43 = vshll.u32 %v11563_v20, 16  ;;  %4280 = vmatprep.mubr.bf16.mxu0 %v11476_v33  ;;  %v2637_v48 = vshrl.u32 %v11563_v20, 16  ;;  %v2643_v49 = vshll.u32 %v11564_v32, 16  ;;  %v13314_v28 = vld [vmem:[%s13819_s12 + $0x9c] sm:$0xff]  }
 0x113   : > { %v14461_v62 = vpop.f32.mrb[4].mxu1  ;;  %v14472_v12 = vpop.f32.mrb[6].mxu0  ;;  %4434 = vmatmul.mubr.bf16.gmra.mrb[104].mxu1 %v13313_v63  ;;  %v1695_v45 = vor.u32 %v1694_v36, %v1690_v34  ;;  %v2626_v47 = vrot.slane %v2624_v37, 4  ;;  %v2629_v53 = vrot.slane %v2627_v40, 5  ;;  %v14545_v21 = vadd.f32 %v14465_v4, %v14459_v61  ;;  %v11375_v31 = vld [vmem:[%s13819_s12 + $0xa4] sm:$0x1] }
 0x114   : > { %v14467_v5 = vpop.f32.mrb[5].mxu1  ;;  %v14479_v23 = vpop.f32.mrb[7].mxu0  ;;  %v1686_v9 = vrot.slane %v1685_v38, 4  ;;  %v2635_v15 = vrot.slane %v2633_v43, 5  ;;  %v2639_v60 = vrot.slane %v2637_v48, 4  ;;  %v2645_v10 = vrot.slane %v2643_v49, 5 }
 0x115   : > { %v14474_v13 = vpop.f32.mrb[6].mxu1  ;;  %v1696_v57 = vrot.slane %v1695_v45, 4  ;;  %v14552_v63 = vadd.f32 %v14479_v23, %v14472_v12  ;;  %v2630_v7 = vor.u32 %v2629_v53, %v2626_v47  ;;  %v14561_v61 = vadd.f32 %v14467_v5, %v14461_v62  ;;  %v11566_v40 = vld [vmem:[%s13819_s12 + $0xac] sm:$0xf] }
 0x116   : > { %v14481_v25 = vpop.f32.mrb[7].mxu1  ;;  %v1691_v6 = vsel %vm13833_vm2, %v1686_v9, %v1690_v34  ;;  %v2640_v23 = vor.u32 %v2639_v60, %v2635_v15  ;;  %v11461_v11 = vrot.slane %v11437_v24, 9  ;;  %v2060_v62 = vrot.slane %v11438_v50, 5  ;;  %v11567_v9 = vld [vmem:[%s13819_s12 + $0xb0] sm:$0x1] }
 0x117   : > { %19307 = vst [vmem:[#allocation11_spill] sm:$0xff] %v14561_v61  ;;  %v1701_v12 = vsel %vm13833_vm2, %v1696_v57, %v1700_v39  ;;  %v2631_v19 = vrot.slane %v2630_v7, 4  ;;  %v2063_v5 = vrot.slane %v11439_v55, 5  ;;  %v14577_v30 = vadd.f32 %v14481_v25, %v14474_v13  ;;  %v11565_v39 = vld [vmem:[%s13819_s12 + $0xa8] sm:$0xf] }
 0x118   : > { %v11396_v18 = vcombine.low %v1691_v6, %v1701_v12  ;;  %v2641_v27 = vrot.slane %v2640_v23, 4  ;;  %v1703_v32 = vshrl.u32 %v11373_v0, 16  ;;  %v1706_v33 = vshll.u32 %v11373_v0, 16  ;;  %v11440_v12 = vld [vmem:[%s13819_s12 + $0xa8] sm:$0xe] }
 0x119   : > { %v14498_v52 = vpop.f32.mrb[8].mxu0  ;;  %19308 = vst [vmem:[#allocation12_spill] sm:$0xff] %v14577_v30  ;;  %v2636_v34 = vsel %vm13833_vm2, %v2631_v19, %v2635_v15  ;;  %v2061_v36 = vsel %vm13841_vm5, %v11461_v11, %v2060_v62  ;;  %v2062_v37 = vrot.slane %v2060_v62, 4  ;;  %v1712_v38 = vshll.u32 %v11374_v35, 16  ;;  %v11441_v23 = vld [vmem:[%s13819_s12 + $0xac] sm:$0xf] }
 0x11a   : > { %v14507_v58 = vpop.f32.mrb[9].mxu0  ;;  %4281 = vmatmul.mubr.bf16.gmra.mrb[108].mxu0 %v11396_v18  ;;  %v2646_v43 = vsel %vm13833_vm2, %v2641_v27, %v2645_v10  ;;  %v1705_v13 = vrot.slane %v1703_v32, 4  ;;  %v1708_v25 = vrot.slane %v1706_v33, 5  ;;  %v1716_v24 = vshrl.u32 %v11374_v35, 16 }
 0x11b   : > { %v14509_v59 = vpop.f32.mrb[8].mxu1  ;;  %v14516_v22 = vpop.f32.mrb[10].mxu0  ;;  %v11588_v47 = vcombine.low %v2636_v34, %v2646_v43  ;;  %v2064_v48 = vsel %vm13841_vm5, %v2062_v37, %v2063_v5  ;;  %v1714_v49 = vrot.slane %v1712_v38, 5  ;;  %v1722_v50 = vshll.u32 %v11375_v31, 16  ;;  %v11442_v37 = vld [vmem:[%s13819_s12 + $0xb0] sm:$0x1] }
 0x11c   : > { %v14518_v3 = vpop.f32.mrb[9].mxu1  ;;  %v14525_v14 = vpop.f32.mrb[11].mxu0  ;;  %v11477_v53 = vcombine.low %v2061_v36, %v2064_v48  ;;  %v1709_v15 = vor.u32 %v1708_v25, %v1705_v13  ;;  %v1718_v55 = vrot.slane %v1716_v24, 4  ;;  %v2648_v57 = vshrl.u32 %v11565_v39, 16  ;;  %v11376_v13 = vld [vmem:[%s13819_s12 + $0xa8] sm:$0xf] }
 0x11d   : > { %v14527_v29 = vpop.f32.mrb[10].mxu1  ;;  %4441 = vmatprep.mubr.bf16.mxu1 %v11588_v47  ;;  %v1724_v60 = vrot.slane %v1722_v50, 5  ;;  %v2651_v0 = vshll.u32 %v11565_v39, 16  ;;  %v2657_v6 = vshll.u32 %v11566_v40, 16  ;;  %v2661_v7 = vshrl.u32 %v11566_v40, 16 }
 0x11e   : > { %v14532_v26 = vpop.f32.mrb[11].mxu1  ;;  %4442 = vmatmul.mubr.bf16.gmra.mrb[108].mxu1 %v13314_v28  ;;  %4288 = vmatprep.mubr.bf16.mxu0 %v11477_v53  ;;  %v1710_v10 = vrot.slane %v1709_v15, 4  ;;  %v1719_v11 = vor.u32 %v1718_v55, %v1714_v49  ;;  %v2650_v35 = vrot.slane %v2648_v57, 4  ;;  %v2667_v18 = vshll.u32 %v11567_v9, 16  ;;  %v11377_v48 = vld [vmem:[%s13819_s12 + $0xac] sm:$0xf] }
 0x11f   : > { %v2653_v62 = vrot.slane %v2651_v0, 5  ;;  %v2659_v5 = vrot.slane %v2657_v6, 5  ;;  %v2663_v27 = vrot.slane %v2661_v7, 4  ;;  %v14599_v31 = vadd.f32 %v14507_v58, %v14498_v52  ;;  %v13316_v53 = vld [vmem:[%s13819_s12 + $0xa8] sm:$0xff]   ;;  %v11378_v6 = vld [vmem:[%s13819_s12 + $0xb0] sm:$0x1] }
 0x120   : > { %v1715_v28 = vsel %vm13833_vm2, %v1710_v10, %v1714_v49  ;;  %v1720_v34 = vrot.slane %v1719_v11, 4  ;;  %v14609_v36 = vadd.f32 %v14525_v14, %v14516_v22  ;;  %v2669_v40 = vrot.slane %v2667_v18, 5  ;;  %v11569_v18 = vld [vmem:[%s13819_s12 + $0xb8] sm:$0xf] }
 0x121   : > { %v14538_v44 = vpop.f32.mrb[12].mxu0  ;;  %v2654_v52 = vor.u32 %v2653_v62, %v2650_v35  ;;  %v2664_v58 = vor.u32 %v2663_v27, %v2659_v5  ;;  %v14618_v43 = vadd.f32 %v14518_v3, %v14509_v59  ;;  %v11462_v14 = vrot.slane %v11440_v12, 9  ;;  %v11568_v12 = vld [vmem:[%s13819_s12 + $0xb4] sm:$0xf]  ;;  %v11570_v62 = vld [vmem:[%s13819_s12 + $0xbc] sm:$0x1] }
 0x122   : > { %v14541_v2 = vpop.f32.mrb[13].mxu0  ;;  %v1725_v22 = vsel %vm13833_vm2, %v1720_v34, %v1724_v60  ;;  %v2067_v47 = vrot.slane %v11441_v23, 5  ;;  %v2070_v15 = vrot.slane %v11442_v37, 5  ;;  %v14639_v0 = vadd.f32 %v14532_v26, %v14527_v29 }
 0x123   : > { %v14548_v56 = vpop.f32.mrb[14].mxu0  ;;  %v14555_v16 = vpop.f32.mrb[12].mxu1  ;;  %19309 = vst [vmem:[#allocation13_spill] sm:$0xff] %v14618_v43  ;;  %v11397_v9 = vcombine.low %v1715_v28, %v1725_v22  ;;  %v2655_v59 = vrot.slane %v2654_v52, 4  ;;  %v2665_v3 = vrot.slane %v2664_v58, 4  ;;  %v1727_v7 = vshrl.u32 %v11376_v13, 16 }
 0x124   : > { %v14563_v4 = vpop.f32.mrb[15].mxu0  ;;  %v14565_v8 = vpop.f32.mrb[13].mxu1  ;;  %v2068_v57 = vsel %vm13841_vm5, %v11462_v14, %v2067_v47  ;;  %v2069_v60 = vrot.slane %v2067_v47, 4  ;;  %19310 = vst [vmem:[#allocation14_spill] sm:$0xff] %v14639_v0  ;;  %v1730_v11 = vshll.u32 %v11376_v13, 16  ;;  %v1736_v35 = vshll.u32 %v11377_v48, 16 }
 0x125   : > { %v14570_v17 = vpop.f32.mrb[14].mxu1  ;;  %4289 = vmatmul.mubr.bf16.gmra.mrb[112].mxu0 %v11397_v9  ;;  %v2660_v23 = vsel %vm13833_vm2, %v2655_v59, %v2659_v5  ;;  %v2670_v10 = vsel %vm13833_vm2, %v2665_v3, %v2669_v40  ;;  %v1729_v29 = vrot.slane %v1727_v7, 4  ;;  %v1740_v26 = vshrl.u32 %v11377_v48, 16 }
 0x126   : > { %v14572_v20 = vpop.f32.mrb[15].mxu1  ;;  %v11589_v27 = vcombine.low %v2660_v23, %v2670_v10  ;;  %v2071_v28 = vsel %vm13841_vm5, %v2069_v60, %v2070_v15  ;;  %v1732_v37 = vrot.slane %v1730_v11, 5  ;;  %v1738_v52 = vrot.slane %v1736_v35, 5  ;;  %v11443_v10 = vld [vmem:[%s13819_s12 + $0xb4] sm:$0xe] }
 0x127   : > { %v11478_v34 = vcombine.low %v2068_v57, %v2071_v28  ;;  %v1746_v58 = vshll.u32 %v11378_v6, 16  ;;  %v1742_v40 = vrot.slane %v1740_v26, 4  ;;  %v2672_v13 = vshrl.u32 %v11568_v12, 16 }
 0x128   : > { %4449 = vmatprep.mubr.bf16.mxu1 %v11589_v27  ;;  %v2675_v14 = vshll.u32 %v11568_v12, 16  ;;  %v2681_v47 = vshll.u32 %v11569_v18, 16  ;;  %v1733_v48 = vor.u32 %v1732_v37, %v1729_v29  ;;  %v2685_v3 = vshrl.u32 %v11569_v18, 16  ;;  %v11444_v27 = vld [vmem:[%s13819_s12 + $0xb8] sm:$0xf] }
 0x129   : > { %v14588_v45 = vpop.f32.mrb[16].mxu0  ;;  %4450 = vmatmul.mubr.bf16.gmra.mrb[112].mxu1 %v13316_v53  ;;  %4296 = vmatprep.mubr.bf16.mxu0 %v11478_v34  ;;  %v1748_v59 = vrot.slane %v1746_v58, 5  ;;  %v2691_v15 = vshll.u32 %v11570_v62, 16  ;;  %v1743_v60 = vor.u32 %v1742_v40, %v1738_v52  ;;  %v2674_v6 = vrot.slane %v2672_v13, 4  ;;  %v11445_v34 = vld [vmem:[%s13819_s12 + $0xbc] sm:$0x1] }
 0x12a   : > { %v14595_v19 = vpop.f32.mrb[17].mxu0  ;;  %v2677_v7 = vrot.slane %v2675_v14, 5  ;;  %v2683_v23 = vrot.slane %v2681_v47, 5  ;;  %v1734_v12 = vrot.slane %v1733_v48, 4  ;;  %v2687_v35 = vrot.slane %v2685_v3, 4 }
 0x12b   : > { %v14601_v32 = vpop.f32.mrb[18].mxu0  ;;  %v14603_v33 = vpop.f32.mrb[16].mxu1  ;;  %v14664_v53 = vadd.f32 %v14541_v2, %v14538_v44  ;;  %v1744_v62 = vrot.slane %v1743_v60, 4  ;;  %v14671_v29 = vadd.f32 %v14563_v4, %v14548_v56  ;;  %v14675_v26 = vadd.f32 %v14565_v8, %v14555_v16  ;;  %v11379_v13 = vld [vmem:[%s13819_s12 + $0xb4] sm:$0xf] }
 0x12c   : > { %v14612_v38 = vpop.f32.mrb[19].mxu0  ;;  %v14614_v39 = vpop.f32.mrb[17].mxu1  ;;  %v2678_v28 = vor.u32 %v2677_v7, %v2674_v6  ;;  %v1739_v44 = vsel %vm13833_vm2, %v1734_v12, %v1738_v52  ;;  %v2688_v2 = vor.u32 %v2687_v35, %v2683_v23  ;;  %v2693_v58 = vrot.slane %v2691_v15, 5  ;;  %v11380_v47 = vld [vmem:[%s13819_s12 + $0xb8] sm:$0xf] }
 0x12d   : > { %v14621_v25 = vpop.f32.mrb[18].mxu1  ;;  %19311 = vst [vmem:[#allocation15_spill] sm:$0xff] %v14675_v26  ;;  %v11463_v40 = vrot.slane %v11443_v10, 9  ;;  %v1749_v16 = vsel %vm13833_vm2, %v1744_v62, %v1748_v59  ;;  %v2074_v8 = vrot.slane %v11444_v27, 5  ;;  %v2077_v60 = vrot.slane %v11445_v34, 5  ;;  %v13317_v12 = vld [vmem:[%s13819_s12 + $0xb4] sm:$0xff]  }
 0x12e   : > { %v14628_v49 = vpop.f32.mrb[19].mxu1  ;;  %v2679_v4 = vrot.slane %v2678_v28, 4  ;;  %v11398_v3 = vcombine.low %v1739_v44, %v1749_v16  ;;  %v2689_v15 = vrot.slane %v2688_v2, 4  ;;  %v14696_v6 = vadd.f32 %v14572_v20, %v14570_v17  ;;  %v11381_v7 = vld [vmem:[%s13819_s12 + $0xbc] sm:$0x1] }
 0x12f   : > { %v2075_v35 = vsel %vm13841_vm5, %v11463_v40, %v2074_v8  ;;  %v2076_v27 = vrot.slane %v2074_v8, 4  ;;  %v1751_v62 = vshrl.u32 %v11379_v13, 16  ;;  %v11571_v28 = vld [vmem:[%s13819_s12 + $0xc0] sm:$0xf]  ;;  %v1754_v20 = vshll.u32 %v11379_v13, 16 }
 0x130   : > { %19312 = vst [vmem:[#allocation16_spill] sm:$0xff] %v14696_v6  ;;  %v2684_v59 = vsel %vm13833_vm2, %v2679_v4, %v2683_v23  ;;  %4297 = vmatmul.mubr.bf16.gmra.mrb[116].mxu0 %v11398_v3  ;;  %v2694_v17 = vsel %vm13833_vm2, %v2689_v15, %v2693_v58  ;;  %v1760_v44 = vshll.u32 %v11380_v47, 16  ;;  %v1764_v2 = vshrl.u32 %v11380_v47, 16  ;;  %v11572_v16 = vld [vmem:[%s13819_s12 + $0xc4] sm:$0xf] }
 0x131   : > { %v14623_v24 = vpop.f32.mrb[20].mxu0  ;;  %v11590_v23 = vcombine.low %v2684_v59, %v2694_v17  ;;  %v2078_v40 = vsel %vm13841_vm5, %v2076_v27, %v2077_v60  ;;  %v1753_v4 = vrot.slane %v1751_v62, 4  ;;  %v1770_v8 = vshll.u32 %v11381_v7, 16  ;;  %v11573_v26 = vld [vmem:[%s13819_s12 + $0xc8] sm:$0x1] }
 0x132   : > { %v14630_v50 = vpop.f32.mrb[21].mxu0  ;;  %v11479_v0 = vcombine.low %v2075_v35, %v2078_v40  ;;  %v1756_v43 = vrot.slane %v1754_v20, 5  ;;  %v1762_v30 = vrot.slane %v1760_v44, 5  ;;  %v1766_v3 = vrot.slane %v1764_v2, 4  ;;  %v14728_v7 = vld [vmem:[%s19176_s3] ss:$0 sm:$0xff] }
 0x133   : > { %v14633_v55 = vpop.f32.mrb[22].mxu0  ;;  %v14651_v22 = vpop.f32.mrb[20].mxu1  ;;  %4457 = vmatprep.mubr.bf16.mxu1 %v11590_v23  ;;  %v1772_v13 = vrot.slane %v1770_v8, 5  ;;  %v2696_v47 = vshrl.u32 %v11571_v28, 16  ;;  %v2699_v15 = vshll.u32 %v11571_v28, 16  ;;  %v2705_v1 = vshll.u32 %v11572_v16, 16 }
 0x134   : > { %v14653_v5 = vpop.f32.mrb[23].mxu0  ;;  %v14655_v9 = vpop.f32.mrb[21].mxu1  ;;  %4458 = vmatmul.mubr.bf16.gmra.mrb[116].mxu1 %v13317_v12  ;;  %4304 = vmatprep.mubr.bf16.mxu0 %v11479_v0  ;;  %v1757_v35 = vor.u32 %v1756_v43, %v1753_v4  ;;  %v1767_v27 = vor.u32 %v1766_v3, %v1762_v30  ;;  %v2709_v62 = vshrl.u32 %v11572_v16, 16  ;;  %v2715_v17 = vshll.u32 %v11573_v26, 16  ;;  %v11446_v12 = vld [vmem:[%s13819_s12 + $0xc0] sm:$0xe] }
 0x135   : > { %v14657_v57 = vpop.f32.mrb[22].mxu1  ;;  %v2698_v44 = vrot.slane %v2696_v47, 4  ;;  %v2701_v2 = vrot.slane %v2699_v15, 5  ;;  %v2707_v23 = vrot.slane %v2705_v1, 5  ;;  %v14736_v40 = vadd.f32 %v14595_v19, %v14588_v45  ;;  %v11447_v4 = vld [vmem:[%s13819_s12 + $0xc4] sm:$0xf] }
 0x136   : > { %v14660_v11 = vpop.f32.mrb[23].mxu1  ;;  %v1758_v43 = vrot.slane %v1757_v35, 4  ;;  %v1768_v16 = vrot.slane %v1767_v27, 4  ;;  %v2711_v26 = vrot.slane %v2709_v62, 4  ;;  %v2717_v3 = vrot.slane %v2715_v17, 5 }
 0x137   : > { %19313 = vst [vmem:[#allocation17_spill] sm:$0xff] %v14736_v40  ;;  %v2702_v8 = vor.u32 %v2701_v2, %v2698_v44  ;;  %v14744_v47 = vadd.f32 %v14612_v38, %v14601_v32  ;;  %v14748_v1 = vadd.f32 %v14614_v39, %v14603_v33  ;;  %v11448_v45 = vld [vmem:[%s13819_s12 + $0xc8] sm:$0x1]  ;;  %v11382_v19 = vld [vmem:[%s13819_s12 + $0xc0] sm:$0xf]  ;;  %v11464_v62 = vrot.slane %v11446_v12, 9 }
 0x138   : > { %v1763_v15 = vsel %vm13833_vm2, %v1758_v43, %v1762_v30  ;;  %v1773_v35 = vsel %vm13833_vm2, %v1768_v16, %v1772_v13  ;;  %v2712_v27 = vor.u32 %v2711_v26, %v2707_v23  ;;  %v11383_v17 = vld [vmem:[%s13819_s12 + $0xc4] sm:$0xf]  ;;  %v14763_v32 = vadd.f32 %v14487_v41, %v14728_v7 }
 0x139   : > { %v14667_v18 = vpop.f32.mrb[24].mxu0  ;;  %19314 = vst [vmem:[#allocation18_spill] sm:$0xff] %v14744_v47  ;;  %19315 = vst [vmem:[#allocation19_spill] sm:$0xff] %v14748_v1  ;;  %v11399_v33 = vcombine.low %v1763_v15, %v1773_v35  ;;  %v2703_v38 = vrot.slane %v2702_v8, 4  ;;  %v2081_v39 = vrot.slane %v11447_v4, 5  ;;  %v2084_v12 = vrot.slane %v11448_v45, 5 }
 0x13a   : > { %v14678_v37 = vpop.f32.mrb[25].mxu0  ;;  %19317 = vst [vmem:[#allocation21_spill] sm:$0xff] %v14763_v32  ;;  %v11384_v1 = vld [vmem:[%s13819_s12 + $0xc8] sm:$0x1]  ;;  %v2713_v13 = vrot.slane %v2712_v27, 4  ;;  %v14772_v16 = vadd.f32 %v14628_v49, %v14621_v25  ;;  %v1775_v26 = vshrl.u32 %v11382_v19, 16 }
 0x13b   : > { %v14683_v14 = vpop.f32.mrb[26].mxu0  ;;  %v14685_v56 = vpop.f32.mrb[24].mxu1  ;;  %4305 = vmatmul.mubr.bf16.gmra.mrb[120].mxu0 %v11399_v33  ;;  %v2708_v4 = vsel %vm13833_vm2, %v2703_v38, %v2707_v23  ;;  %v2082_v8 = vsel %vm13841_vm5, %v11464_v62, %v2081_v39  ;;  %v2083_v35 = vrot.slane %v2081_v39, 4  ;;  %v1778_v45 = vshll.u32 %v11382_v19, 16  ;;  %v11574_v27 = vld [vmem:[%s13819_s12 + $0xcc] sm:$0xf] }
 0x13c   : > { %v14690_v48 = vpop.f32.mrb[27].mxu0  ;;  %v14692_v52 = vpop.f32.mrb[25].mxu1  ;;  %19319 = vst [vmem:[#allocation23_spill] sm:$0xff] %v14772_v16  ;;  %v2718_v49 = vsel %vm13833_vm2, %v2713_v13, %v2717_v3  ;;  %v13319_v16 = vld [vmem:[%s13819_s12 + $0xc0] sm:$0xff]   ;;  %v1777_v32 = vrot.slane %v1775_v26, 4  ;;  %v1784_v33 = vshll.u32 %v11383_v17, 16 }
 0x13d   : > { %v14699_v10 = vpop.f32.mrb[26].mxu1  ;;  %v11575_v23 = vld [vmem:[%s13819_s12 + $0xd0] sm:$0xf]  ;;  %v11591_v38 = vcombine.low %v2708_v4, %v2718_v49  ;;  %v2085_v62 = vsel %vm13841_vm5, %v2083_v35, %v2084_v12  ;;  %v1780_v39 = vrot.slane %v1778_v45, 5  ;;  %v1794_v19 = vshll.u32 %v11384_v1, 16 }
 0x13e   : > { %v14707_v34 = vpop.f32.mrb[27].mxu1  ;;  %v11576_v47 = vld [vmem:[%s13819_s12 + $0xd4] sm:$0x1]  ;;  %v11480_v40 = vcombine.low %v2082_v8, %v2085_v62  ;;  %v2723_v26 = vshll.u32 %v11574_v27, 16  ;;  %v2733_v12 = vshrl.u32 %v11575_v23, 16 }
 0x13f   : > { %4465 = vmatprep.mubr.bf16.mxu1 %v11591_v38  ;;  %v1781_v3 = vor.u32 %v1780_v39, %v1777_v32  ;;  %v1796_v13 = vrot.slane %v1794_v19, 5  ;;  %v2739_v35 = vshll.u32 %v11576_v47, 16  ;;  %v11594_v1 = vld [vmem:[%s13819_s12 + $0x1c] sm:$0xf]  ;;  %v14810_v47 = vadd.f32 %v14492_v46, %v14728_v7 }
 0x140   : > { %4466 = vmatmul.mubr.bf16.gmra.mrb[120].mxu1 %v13319_v16  ;;  %4312 = vmatprep.mubr.bf16.mxu0 %v11480_v40  ;;  %v14829_v39 = vadd.f32 %v14655_v9, %v14651_v22  ;;  %v2921_v22 = vrot.slane %v11594_v1, 5 }
 0x141   : > { %v14712_v6 = vpop.f32.mrb[28].mxu0  ;;  %19323 = vst [vmem:[#allocation27_spill] sm:$0xff] %v14810_v47 }
 0x142   : > { %v14717_v61 = vpop.f32.mrb[29].mxu0  ;;  %19325 = vst [vmem:[#allocation29_spill] sm:$0xff] %v14829_v39  ;;  %v14842_v39 = vadd.f32 %v14660_v11, %v14657_v57  ;;  %v13320_v11 = vld [vmem:[%s13819_s12 + $0xcc] sm:$0xff]  }
 0x143   : > { %v14719_v58 = vpop.f32.mrb[28].mxu1  ;;  %v14721_v59 = vpop.f32.mrb[30].mxu0 }
 0x144   : > { %v14723_v60 = vpop.f32.mrb[29].mxu1  ;;  %v14730_v20 = vpop.f32.mrb[31].mxu0  ;;  %19326 = vst [vmem:[#allocation30_spill] sm:$0xff] %v14842_v39  ;;  %v11617_v39 = vld [vmem:[%s13819_s12 + $0x78] sm:$0xe] }
 0x145   : > { %v14732_v28 = vpop.f32.mrb[30].mxu1 }
 0x146   : > { %v14739_v0 = vpop.f32.mrb[31].mxu1 }
 0x149   : > { %v14757_v44 = vpop.f32.mrb[32].mxu0 }
 0x14a   : > { %v14766_v30 = vpop.f32.mrb[33].mxu0 }
 0x14b   : > { %v14759_v2 = vpop.f32.mrb[32].mxu1  ;;  %v14774_v41 = vpop.f32.mrb[34].mxu0 }
 0x14c   : > { %19316 = vst [vmem:[#allocation20_spill] sm:$0xff] %v14759_v2  ;;  %v14768_v43 = vpop.f32.mrb[33].mxu1  ;;  %v14783_v54 = vpop.f32.mrb[35].mxu0  ;;  %v2720_v2 = vshrl.u32 %v11574_v27, 16  ;;  %v14802_v27 = vadd.f32 %v14630_v50, %v14623_v24  ;;  %v14823_v50 = vadd.f32 %v14545_v21, %v14728_v7 }
 0x14d   : > { %19318 = vst [vmem:[#allocation22_spill] sm:$0xff] %v14768_v43  ;;  %v14776_v15 = vpop.f32.mrb[34].mxu1  ;;  %19321 = vst [vmem:[#allocation25_spill] sm:$0xff] %v14783_v54  ;;  %v1786_v43 = vrot.slane %v1784_v33, 5  ;;  %v2729_v54 = vshll.u32 %v11575_v23, 16  ;;  %v2725_v33 = vrot.slane %v2723_v26, 5  ;;  %v14814_v23 = vadd.f32 %v14653_v5, %v14633_v55 }
 0x14e   : > { %19320 = vst [vmem:[#allocation24_spill] sm:$0xff] %v14776_v15  ;;  %v14785_v25 = vpop.f32.mrb[35].mxu1  ;;  %v1788_v15 = vshrl.u32 %v11383_v17, 16  ;;  %v11593_v17 = vld [vmem:[%s13819_s12 + $0x18] sm:$0xe]  ;;  %v2722_v49 = vrot.slane %v2720_v2, 4 }
 0x14f   : > { %19322 = vst [vmem:[#allocation26_spill] sm:$0xff] %v14785_v25  ;;  %v2731_v32 = vrot.slane %v2729_v54, 5  ;;  %v11595_v54 = vld [vmem:[%s13819_s12 + $0x20] sm:$0x1]  ;;  %19324 = vst [vmem:[#allocation28_spill] sm:$0xff] %v14823_v50 }
 0x150   : > { %v1790_v25 = vrot.slane %v1788_v15, 4  ;;  %v1782_v15 = vrot.slane %v1781_v3, 4  ;;  %v2726_v62 = vor.u32 %v2725_v33, %v2722_v49  ;;  %v11596_v55 = vld [vmem:[%s13819_s12 + $0x24] sm:$0xe]  ;;  %v11597_v5 = vld [vmem:[%s13819_s12 + $0x28] sm:$0xf] }
 0x151   : > { %v14796_v45 = vpop.f32.mrb[36].mxu0  ;;  %v2924_v9 = vrot.slane %v11595_v54, 5  ;;  %v11642_v50 = vrot.slane %v11596_v55, 9  ;;  %v2928_v47 = vrot.slane %v11597_v5, 5  ;;  %v11601_v54 = vld [vmem:[%s13819_s12 + $0x38] sm:$0x1] }
 0x152   : > { %v1791_v4 = vor.u32 %v1790_v25, %v1786_v43  ;;  %v14804_v40 = vpop.f32.mrb[37].mxu0  ;;  %v2735_v25 = vrot.slane %v2733_v12, 4  ;;  %v1787_v46 = vsel %vm13833_vm2, %v1782_v15, %v1786_v43  ;;  %v11641_v12 = vrot.slane %v11593_v17, 9  ;;  %v11598_v43 = vld [vmem:[%s13819_s12 + $0x2c] sm:$0x1] }
 0x153   : > { %v14798_v8 = vpop.f32.mrb[36].mxu1  ;;  %v14817_v38 = vpop.f32.mrb[38].mxu0  ;;  %v2727_v15 = vrot.slane %v2726_v62, 4  ;;  %v2931_v1 = vrot.slane %v11598_v43, 5  ;;  %v2930_v62 = vrot.slane %v2928_v47, 4 }
 0x154   : > { %v14806_v2 = vpop.f32.mrb[37].mxu1  ;;  %v1792_v16 = vrot.slane %v1791_v4, 4  ;;  %v14833_v19 = vpop.f32.mrb[39].mxu0  ;;  %v2736_v21 = vor.u32 %v2735_v25, %v2731_v32  ;;  %v2741_v4 = vrot.slane %v2739_v35, 5  ;;  %v2922_v35 = vsel %vm13841_vm5, %v11641_v12, %v2921_v22  ;;  %v11600_v25 = vld [vmem:[%s13819_s12 + $0x34] sm:$0xf] }
 0x155   : > { %v14819_v24 = vpop.f32.mrb[38].mxu1  ;;  %v2732_v17 = vsel %vm13833_vm2, %v2727_v15, %v2731_v32  ;;  %v14858_v32 = vadd.f32 %v14678_v37, %v14667_v18  ;;  %v11602_v55 = vld [vmem:[%s13819_s12 + $0x3c] sm:$0xe]  ;;  %v11603_v18 = vld [vmem:[%s13819_s12 + $0x40] sm:$0xf] }
 0x156   : > { %v14835_v3 = vpop.f32.mrb[39].mxu1  ;;  %v1797_v26 = vsel %vm13833_vm2, %v1792_v16, %v1796_v13  ;;  %v2737_v33 = vrot.slane %v2736_v21, 4  ;;  %v11599_v13 = vld [vmem:[%s13819_s12 + $0x30] sm:$0xe]  ;;  %v2923_v16 = vrot.slane %v2921_v22, 4 }
 0x157   : > { %v11400_v49 = vcombine.low %v1787_v46, %v1797_v26  ;;  %v2929_v46 = vsel %vm13841_vm5, %v11642_v50, %v2928_v47  ;;  %v14873_v47 = vadd.f32 %v14692_v52, %v14685_v56  ;;  %v11604_v37 = vld [vmem:[%s13819_s12 + $0x44] sm:$0x1]  ;;  %v14893_v52 = vadd.f32 %v14599_v31, %v14728_v7 }
 0x158   : > { %v2742_v57 = vsel %vm13833_vm2, %v2737_v33, %v2741_v4  ;;  %v2925_v12 = vsel %vm13841_vm5, %v2923_v16, %v2924_v9  ;;  %v14869_v4 = vadd.f32 %v14690_v48, %v14683_v14  ;;  %v2932_v14 = vsel %vm13841_vm5, %v2930_v62, %v2931_v1 }
 0x159   : > { %4313 = vmatmul.mubr.bf16.gmra.mrb[124].mxu0 %v11400_v49  ;;  %v14861_v5 = vpop.f32.mrb[40].mxu0  ;;  %v11592_v21 = vcombine.low %v2732_v17, %v2742_v57  ;;  %19327 = vst [vmem:[#allocation31_spill] sm:$0xff] %v14873_v47  ;;  %v14883_v49 = vadd.f32 %v14552_v63, %v14728_v7  ;;  %v11657_v15 = vcombine.low %v2922_v35, %v2925_v12  ;;  %v11643_v48 = vrot.slane %v11599_v13, 9  ;;  %v11605_v17 = vld [vmem:[%s13819_s12 + $0x48] sm:$0xe] }
 0x15a   : > { %v14877_v50 = vpop.f32.mrb[41].mxu0  ;;  %v11658_v9 = vcombine.low %v2929_v46, %v2932_v14  ;;  %v2935_v33 = vrot.slane %v11600_v25, 5  ;;  %v2938_v63 = vrot.slane %v11601_v54, 5  ;;  %v14902_v13 = vadd.f32 %v14707_v34, %v14699_v10  ;;  %v11606_v46 = vld [vmem:[%s13819_s12 + $0x4c] sm:$0xf] }
 0x15b   : > { %v14863_v26 = vpop.f32.mrb[40].mxu1  ;;  %v14887_v22 = vpop.f32.mrb[42].mxu0  ;;  %4473 = vmatprep.mubr.bf16.mxu1 %v11592_v21  ;;  %13078 = vmatprep.mubr.bf16.mxu0 %v11657_v15  ;;  %v11644_v31 = vrot.slane %v11602_v55, 9  ;;  %v2942_v1 = vrot.slane %v11603_v18, 5  ;;  %v2945_v57 = vrot.slane %v11604_v37, 5  ;;  %v14913_v62 = vadd.f32 %v14730_v20, %v14721_v59 }
 0x15c   : > { %v14879_v43 = vpop.f32.mrb[41].mxu1  ;;  %v14896_v35 = vpop.f32.mrb[43].mxu0  ;;  %4474 = vmatmul.mubr.bf16.gmra.mrb[124].mxu1 %v13320_v11  ;;  %19328 = vst [vmem:[#allocation32_spill] sm:$0xff] %v14902_v13  ;;  %v2936_v25 = vsel %vm13841_vm5, %v11643_v48, %v2935_v33  ;;  %v2937_v54 = vrot.slane %v2935_v33, 4  ;;  %v14909_v11 = vadd.f32 %v14717_v61, %v14712_v6  ;;  %v11607_v10 = vld [vmem:[%s13819_s12 + $0x50] sm:$0x1]  ;;  %v14920_v21 = vadd.f32 %v14723_v60, %v14719_v58 }
 0x15d   : > { %v14889_v56 = vpop.f32.mrb[42].mxu1  ;;  %v2943_v34 = vsel %vm13841_vm5, %v11644_v31, %v2942_v1  ;;  %v2944_v55 = vrot.slane %v2942_v1, 4  ;;  %v11645_v12 = vrot.slane %v11605_v17, 9  ;;  %v11608_v18 = vld [vmem:[%s13819_s12 + $0x54] sm:$0xe]  ;;  %v14926_v61 = vadd.f32 %v14609_v36, %v14728_v7  ;;  %v19334_v13 = vld [vmem:[#allocation17_spill] sm:$0xff] }
 0x15e   : > { %v14898_v16 = vpop.f32.mrb[43].mxu1  ;;  %19329 = vst [vmem:[#allocation33_spill] sm:$0xff] %v14920_v21  ;;  %v11609_v37 = vld [vmem:[%s13819_s12 + $0x58] sm:$0xf]  ;;  %v14930_v6 = vadd.f32 %v14664_v53, %v14728_v7  ;;  %v2939_v59 = vsel %vm13841_vm5, %v2937_v54, %v2938_v63  ;;  %v2949_v20 = vrot.slane %v11606_v46, 5  ;;  %v2952_v48 = vrot.slane %v11607_v10, 5 }
 0x15f   : > { %v11610_v15 = vld [vmem:[%s13819_s12 + $0x5c] sm:$0x1]  ;;  %v11611_v58 = vld [vmem:[%s13819_s12 + $0x60] sm:$0xe]  ;;  %v11659_v60 = vcombine.low %v2936_v25, %v2939_v59  ;;  %v2946_v14 = vsel %vm13841_vm5, %v2944_v55, %v2945_v57  ;;  %v14940_v36 = vadd.f32 %v14739_v0, %v14732_v28  ;;  %v11612_v53 = vld [vmem:[%s13819_s12 + $0x64] sm:$0xf]  ;;  %v14949_v63 = vadd.f32 %v14671_v29, %v14728_v7 }
 0x160   : > { %v11660_v17 = vcombine.low %v2943_v34, %v2946_v14  ;;  %v2950_v31 = vsel %vm13841_vm5, %v11645_v12, %v2949_v20  ;;  %v2951_v1 = vrot.slane %v2949_v20, 4  ;;  %v11613_v57 = vld [vmem:[%s13819_s12 + $0x68] sm:$0x1]  ;;  %v11646_v0 = vrot.slane %v11608_v18, 9  ;;  %v14963_v34 = vld [vmem:[%s13819_s12 + $0x70] sm:$0xf] }
 0x161   : > { %13079 = vmatmul.mubr.bf16.vlgmr.msra.gmra.mrb[128].mxu0 %v11658_v9  ;;  %19330 = vst [vmem:[#allocation34_spill] sm:$0xff] %v14940_v36  ;;  %v14943_v33 = vpop.f32.mrb[44].mxu0  ;;  %v2956_v25 = vrot.slane %v11609_v37, 5  ;;  %v12184_v54 = vadd.f32 %v14766_v30, %v14757_v44  ;;  %v19331_v29 = vld [vmem:[#allocation25_spill] sm:$0xff]  ;;  %v2959_v20 = vrot.slane %v11610_v15, 5  ;;  %v19332_v18 = vld [vmem:[#allocation20_spill] sm:$0xff] }
 0x162   : > { %v14954_v46 = vpop.f32.mrb[45].mxu0  ;;  %13082 = vmatprep.mubr.bf16.mxu0 %v11659_v60  ;;  %v12187_v10 = vadd.f32 %v19331_v29, %v14774_v41  ;;  %v2953_v59 = vsel %vm13841_vm5, %v2951_v1, %v2952_v48  ;;  %v19333_v37 = vld [vmem:[#allocation22_spill] sm:$0xff]  ;;  %v2963_v14 = vrot.slane %v11612_v53, 5  ;;  %v11647_v36 = vrot.slane %v11611_v58, 9  ;;  %v11614_v21 = vld [vmem:[%s13819_s12 + $0x6c] sm:$0xe] }
 0x163   : > { %v14945_v9 = vpop.f32.mrb[44].mxu1  ;;  %v14965_v55 = vpop.f32.mrb[46].mxu0  ;;  %v12296_v60 = vadd.f32 %v19333_v37, %v19332_v18  ;;  %v11661_v30 = vcombine.low %v2950_v31, %v2953_v59  ;;  %v2958_v41 = vrot.slane %v2956_v25, 4  ;;  %v3937_v29 = vadd.f32 %v12184_v54, %v14728_v7  ;;  %v11616_v18 = vld [vmem:[%s13819_s12 + $0x74] sm:$0x1]  ;;  %v19339_v54 = vld [vmem:[#allocation24_spill] sm:$0xff] }
 0x164   : > { %v14956_v28 = vpop.f32.mrb[45].mxu1  ;;  %v14973_v42 = vpop.f32.mrb[47].mxu0  ;;  %v14981_v48 = vadd.f32 %v19334_v13, %v14728_v7  ;;  %v3940_v15 = vadd.f32 %v12187_v10, %v14728_v7  ;;  %v2965_v53 = vrot.slane %v2963_v14, 4  ;;  %v2966_v1 = vrot.slane %v11613_v57, 5  ;;  %v19336_v37 = vld [vmem:[#allocation18_spill] sm:$0xff] }
 0x165   : > { %v14967_v12 = vpop.f32.mrb[46].mxu1  ;;  %v14987_v47 = vadd.f32 %v19336_v37, %v14728_v7  ;;  %v14991_v31 = vadd.f32 %v14802_v27, %v14728_v7  ;;  %v14993_v58 = vadd.f32 %v12296_v60, %v3937_v29  ;;  %v19340_v13 = vld [vmem:[#allocation26_spill] sm:$0xff]  ;;  %v15001_v57 = vadd.f32 %v14814_v23, %v14728_v7  ;;  %v15011_v29 = vld [vmem:[%s13819_s12 + $0x88] sm:$0xf] }
 0x166   : > { %v14975_v44 = vpop.f32.mrb[47].mxu1  ;;  %19335 = vst [vmem:[#allocation25_spill] sm:$0xff] %v14981_v48  ;;  %v12299_v59 = vadd.f32 %v19340_v13, %v19339_v54  ;;  %v11618_v48 = vld [vmem:[%s13819_s12 + $0x7c] sm:$0xf]  ;;  %v15005_v10 = vadd.f32 %v14858_v32, %v14728_v7  ;;  %v2957_v27 = vsel %vm13841_vm5, %v11646_v0, %v2956_v25  ;;  %v2970_v60 = vrot.slane %v14963_v34, 5 }
 0x167   : > { %19337 = vst [vmem:[#allocation20_spill] sm:$0xff] %v14991_v31  ;;  %19338 = vst [vmem:[#allocation22_spill] sm:$0xff] %v14993_v58  ;;  %v2960_v37 = vsel %vm13841_vm5, %v2958_v41, %v2959_v20  ;;  %v12190_v23 = vadd.f32 %v14804_v40, %v14796_v45  ;;  %v12193_v32 = vadd.f32 %v14833_v19, %v14817_v38  ;;  %v2973_v38 = vrot.slane %v11616_v18, 5  ;;  %v15071_v31 = vld [vmem:[%s13819_s12 + $0xa0] sm:$0xf] }
 0x168   : > { %19341 = vst [vmem:[#allocation17_spill] sm:$0xff] %v15001_v57  ;;  %19342 = vst [vmem:[#allocation18_spill] sm:$0xff] %v15005_v10  ;;  %v15015_v54 = vadd.f32 %v12299_v59, %v3940_v15  ;;  %v2964_v34 = vsel %vm13841_vm5, %v11647_v36, %v2963_v14  ;;  %v2967_v20 = vsel %vm13841_vm5, %v2965_v53, %v2966_v1  ;;  %v2977_v13 = vrot.slane %v11618_v48, 5  ;;  %v15039_v36 = vld [vmem:[%s13819_s12 + $0x84] sm:$0xe] }
 0x169   : > { %13083 = vmatmul.mubr.bf16.gmra.mrb[132].mxu0 %v11660_v17  ;;  %v11619_v17 = vld [vmem:[%s13819_s12 + $0x80] sm:$0x1]  ;;  %v15022_v0 = vpop.f32.mrb[48].mxu0  ;;  %v12302_v45 = vadd.f32 %v14806_v2, %v14798_v8  ;;  %v3945_v19 = vadd.f32 %v12190_v23, %v14728_v7  ;;  %v3948_v15 = vadd.f32 %v12193_v32, %v14728_v7  ;;  %v15042_v14 = vld [vmem:[%s13819_s12 + $0x94] sm:$0xf]  ;;  %v11662_v8 = vcombine.low %v2957_v27, %v2960_v37 }
 0x16a   : > { %13086 = vmatprep.mubr.bf16.mxu0 %v11661_v30  ;;  %19343 = vst [vmem:[#allocation24_spill] sm:$0xff] %v15015_v54  ;;  %v11648_v30 = vrot.slane %v11614_v21, 9  ;;  %v15032_v40 = vpop.f32.mrb[49].mxu0  ;;  %v2972_v2 = vrot.slane %v2970_v60, 4  ;;  %v11649_v1 = vrot.slane %v11617_v39, 9  ;;  %v12305_v18 = vadd.f32 %v14835_v3, %v14819_v24 }
 0x16b   : > { %v15024_v25 = vpop.f32.mrb[48].mxu1  ;;  %v15044_v21 = vpop.f32.mrb[50].mxu0  ;;  %v11622_v59 = vld [vmem:[%s13819_s12 + $0x8c] sm:$0x1]  ;;  %v15057_v32 = vadd.f32 %v14869_v4, %v14728_v7  ;;  %v11663_v54 = vcombine.low %v2964_v34, %v2967_v20  ;;  %v15059_v58 = vadd.f32 %v12302_v45, %v3945_v19  ;;  %v2984_v27 = vrot.slane %v15011_v29, 5 }
 0x16c   : > { %v15034_v41 = vpop.f32.mrb[49].mxu1  ;;  %v15051_v23 = vpop.f32.mrb[51].mxu0  ;;  %v11623_v37 = vld [vmem:[%s13819_s12 + $0x90] sm:$0xe]  ;;  %v11625_v10 = vld [vmem:[%s13819_s12 + $0x98] sm:$0x1]  ;;  %v15066_v39 = vadd.f32 %v14909_v11, %v14728_v7  ;;  %v15068_v57 = vadd.f32 %v12305_v18, %v3948_v15  ;;  %v2971_v4 = vsel %vm13841_vm5, %v11648_v30, %v2970_v60  ;;  %v12196_v29 = vadd.f32 %v14877_v50, %v14861_v5 }
 0x16d   : > { %v15046_v53 = vpop.f32.mrb[50].mxu1  ;;  %v2979_v24 = vrot.slane %v2977_v13, 4  ;;  %v2980_v3 = vrot.slane %v11619_v17, 5  ;;  %v12199_v34 = vadd.f32 %v14896_v35, %v14887_v22  ;;  %v12308_v11 = vadd.f32 %v14879_v43, %v14863_v26  ;;  %v15090_v26 = vld [vmem:[%s13819_s12 + $0x9c] sm:$0xe] }
 0x16e   : > { %v15053_v48 = vpop.f32.mrb[51].mxu1  ;;  %v2974_v17 = vsel %vm13841_vm5, %v2972_v2, %v2973_v38  ;;  %v2978_v20 = vsel %vm13841_vm5, %v11649_v1, %v2977_v13  ;;  %v11650_v45 = vrot.slane %v15039_v36, 9  ;;  %v2991_v60 = vrot.slane %v15042_v14, 5  ;;  %v15093_v43 = vld [vmem:[%s13819_s12 + $0xac] sm:$0xf] }
 0x16f   : > { %v2986_v5 = vrot.slane %v2984_v27, 4  ;;  %v2987_v50 = vrot.slane %v11622_v59, 5  ;;  %v3953_v22 = vadd.f32 %v12196_v29, %v14728_v7  ;;  %v3956_v35 = vadd.f32 %v12199_v34, %v14728_v7  ;;  %v15104_v36 = vld [vmem:[%s13819_s12 + $0xa4] sm:$0x1] }
 0x170   : > { %v2981_v19 = vsel %vm13841_vm5, %v2979_v24, %v2980_v3  ;;  %v11651_v15 = vrot.slane %v11623_v37, 9  ;;  %v12311_v13 = vadd.f32 %v14898_v16, %v14889_v56  ;;  %v2993_v1 = vrot.slane %v2991_v60, 4  ;;  %v11629_v37 = vld [vmem:[%s13819_s12 + $0xa8] sm:$0xe] }
 0x171   : > { %13087 = vmatmul.mubr.bf16.gmra.mrb[136].mxu0 %v11662_v8  ;;  %v15095_v30 = vpop.f32.mrb[52].mxu0  ;;  %v15110_v2 = vadd.f32 %v12308_v11, %v3953_v22  ;;  %v2998_v18 = vrot.slane %v15071_v31, 5  ;;  %v12202_v59 = vadd.f32 %v14954_v46, %v14943_v33  ;;  %v11664_v56 = vcombine.low %v2971_v4, %v2974_v17  ;;  %v11631_v17 = vld [vmem:[%s13819_s12 + $0xb0] sm:$0x1]  ;;  %v11634_v22 = vld [vmem:[%s13819_s12 + $0xbc] sm:$0x1] }
 0x172   : > { %13090 = vmatprep.mubr.bf16.mxu0 %v11663_v54  ;;  %v2994_v54 = vrot.slane %v11625_v10, 5  ;;  %v15106_v14 = vpop.f32.mrb[53].mxu0  ;;  %v15120_v16 = vadd.f32 %v12311_v13, %v3956_v35  ;;  %v12205_v3 = vadd.f32 %v14973_v42, %v14965_v55  ;;  %v12314_v29 = vadd.f32 %v14956_v28, %v14945_v9  ;;  %v15156_v35 = vld [vmem:[%s13819_s12 + $0xc4] sm:$0xf] }
 0x173   : > { %v15097_v38 = vpop.f32.mrb[52].mxu1  ;;  %v15116_v10 = vpop.f32.mrb[54].mxu0  ;;  %v11665_v33 = vcombine.low %v2978_v20, %v2981_v19  ;;  %v2985_v46 = vsel %vm13841_vm5, %v11650_v45, %v2984_v27  ;;  %v2988_v4 = vsel %vm13841_vm5, %v2986_v5, %v2987_v50  ;;  %v3961_v11 = vadd.f32 %v12202_v59, %v14728_v7  ;;  %v15144_v20 = vld [vmem:[%s13819_s12 + $0xb4] sm:$0xe]  ;;  %v11633_v27 = vld [vmem:[%s13819_s12 + $0xb8] sm:$0xf] }
 0x174   : > { %v15108_v8 = vpop.f32.mrb[53].mxu1  ;;  %v15126_v31 = vpop.f32.mrb[55].mxu0  ;;  %v15138_v42 = vsel %vm13841_vm5, %v11651_v15, %v2991_v60  ;;  %v11652_v9 = vrot.slane %v15090_v26, 9  ;;  %v3964_v28 = vadd.f32 %v12205_v3, %v14728_v7  ;;  %v3005_v55 = vrot.slane %v15093_v43, 5 }
 0x175   : > { %v15118_v24 = vpop.f32.mrb[54].mxu1  ;;  %v2995_v45 = vsel %vm13841_vm5, %v2993_v1, %v2994_v54  ;;  %v3001_v5 = vrot.slane %v15104_v36, 5  ;;  %v15150_v50 = vadd.f32 %v12314_v29, %v3961_v11  ;;  %v12317_v60 = vadd.f32 %v14975_v44, %v14967_v12  ;;  %v15163_v54 = vld [vmem:[%s13819_s12 + $0xc0] sm:$0xe]  ;;  %v15172_v1 = vld [vmem:[%s13819_s12 + $0xc8] sm:$0x1] }
 0x176   : > { %v15128_v34 = vpop.f32.mrb[55].mxu1  ;;  %v15160_v26 = vadd.f32 %v14913_v62, %v14728_v7  ;;  %v11666_v43 = vcombine.low %v2985_v46, %v2988_v4  ;;  %v3000_v19 = vrot.slane %v2998_v18, 4  ;;  %v11653_v15 = vrot.slane %v11629_v37, 9  ;;  %v15175_v62 = vld [vmem:[%s13819_s12 + $0xcc] sm:$0xe] }
 0x177   : > { %v15165_v13 = vadd.f32 %v12317_v60, %v3964_v28  ;;  %v3012_v36 = vrot.slane %v11633_v27, 5  ;;  %v12208_v12 = vadd.f32 %v15032_v40, %v15022_v0  ;;  %v12211_v44 = vadd.f32 %v15051_v23, %v15044_v21  ;;  %v15181_v46 = vld [vmem:[%s13819_s12 + $0xd0] sm:$0xf] }
 0x178   : > { %v11667_v37 = vcombine.low %v15138_v42, %v2995_v45  ;;  %v3007_v3 = vrot.slane %v3005_v55, 4  ;;  %v3008_v29 = vrot.slane %v11631_v17, 5  ;;  %v15185_v40 = vsel %vm13841_vm5, %v11652_v9, %v2998_v18 }
 0x179   : > { %13091 = vmatmul.mubr.bf16.gmra.mrb[140].mxu0 %v11664_v56  ;;  %v12218_v59 = vpop.f32.mrb[56].mxu0  ;;  %v11654_v21 = vrot.slane %v15144_v20, 9  ;;  %v3969_v23 = vadd.f32 %v12208_v12, %v14728_v7  ;;  %v3972_v11 = vadd.f32 %v12211_v44, %v14728_v7  ;;  %v3002_v17 = vsel %vm13841_vm5, %v3000_v19, %v3001_v5 }
 0x17a   : > { %13094 = vmatprep.mubr.bf16.mxu0 %v11665_v33  ;;  %v12320_v33 = vadd.f32 %v15034_v41, %v15024_v25  ;;  %v12219_v4 = vpop.f32.mrb[57].mxu0  ;;  %v3015_v25 = vrot.slane %v11634_v22, 5  ;;  %v3019_v41 = vrot.slane %v15156_v35, 5  ;;  %v12323_v27 = vadd.f32 %v15053_v48, %v15046_v53 }
 0x17b   : > { %v12330_v56 = vpop.f32.mrb[56].mxu1  ;;  %v12221_v42 = vpop.f32.mrb[58].mxu0  ;;  %v3006_v9 = vsel %vm13841_vm5, %v11653_v15, %v3005_v55  ;;  %v3014_v20 = vrot.slane %v3012_v36, 4  ;;  %v11655_v12 = vrot.slane %v15163_v54, 9  ;;  %v3009_v44 = vsel %vm13841_vm5, %v3007_v3, %v3008_v29 }
 0x17c   : > { %v12331_v0 = vpop.f32.mrb[57].mxu1  ;;  %v12222_v45 = vpop.f32.mrb[59].mxu0  ;;  %v15197_v60 = vadd.f32 %v12320_v33, %v3969_v23  ;;  %v3022_v5 = vrot.slane %v15172_v1, 5  ;;  %v15203_v22 = vadd.f32 %v12323_v27, %v3972_v11  ;;  %v11656_v19 = vrot.slane %v15175_v62, 9 }
 0x17d   : > { %v12333_v28 = vpop.f32.mrb[58].mxu1  ;;  %v3021_v53 = vrot.slane %v3019_v41, 4  ;;  %v3026_v48 = vrot.slane %v15181_v46, 5  ;;  %v12214_v55 = vadd.f32 %v15106_v14, %v15095_v30  ;;  %v12217_v15 = vadd.f32 %v15126_v31, %v15116_v10 }
 0x17e   : > { %v12334_v18 = vpop.f32.mrb[59].mxu1  ;;  %v11668_v3 = vcombine.low %v15185_v40, %v3002_v17  ;;  %v12326_v29 = vadd.f32 %v15108_v8, %v15097_v38  ;;  %v12329_v33 = vadd.f32 %v15128_v34, %v15118_v24  ;;  %v12220_v23 = vadd.f32 %v12219_v4, %v12218_v59 }
 0x17f   : > { %v11669_v11 = vcombine.low %v3006_v9, %v3009_v44  ;;  %v15220_v27 = vsel %vm13841_vm5, %v11654_v21, %v3012_v36  ;;  %v3977_v30 = vadd.f32 %v12214_v55, %v14728_v7  ;;  %v3980_v14 = vadd.f32 %v12217_v15, %v14728_v7 }
 0x180   : > { %v3985_v38 = vadd.f32 %v12220_v23, %v14728_v7  ;;  %v12223_v8 = vadd.f32 %v12222_v45, %v12221_v42  ;;  %v12332_v24 = vadd.f32 %v12331_v0, %v12330_v56  ;;  %v12335_v4 = vadd.f32 %v12334_v18, %v12333_v28  ;;  %v19344_v42 = vld [vmem:[#allocation21_spill] sm:$0xff]  ;;  %v19347_v23 = vld [vmem:[#allocation10_spill] sm:$0xff] }
 0x181   : > { %13095 = vmatmul.mubr.bf16.gmra.mrb[144].mxu0 %v11666_v43  ;;  %v12224_v10 = vpop.f32.mrb[60].mxu0  ;;  %v3016_v43 = vsel %vm13841_vm5, %v3014_v20, %v3015_v25  ;;  %v15229_v36 = vadd.f32 %v12329_v33, %v3980_v14  ;;  %v19345_v56 = vld [vmem:[#allocation9_spill] sm:$0xff]  ;;  %v19346_v33 = vld [vmem:[#allocation27_spill] sm:$0xff]  ;;  %v11640_v18 = vld [vmem:[%s13819_s12 + $0xd4] sm:$0x1]  ;;  %v3028_v1 = vrot.slane %v3026_v48, 4 }
 0x182   : > { %13098 = vmatprep.mubr.bf16.mxu0 %v11667_v37  ;;  %v12225_v34 = vpop.f32.mrb[61].mxu0  ;;  %v15227_v37 = vadd.f32 %v12326_v29, %v3977_v30  ;;  %v3988_v9 = vadd.f32 %v12223_v8, %v14728_v7  ;;  %v15232_v44 = vadd.f32 %v12332_v24, %v3985_v38  ;;  %v4034_v0 = vadd.f32 %v19345_v56, %v19344_v42  ;;  %v19348_v14 = vld [vmem:[#allocation28_spill] sm:$0xff]  ;;  %v19351_v24 = vld [vmem:[#allocation13_spill] sm:$0xff] }
 0x183   : > { %v12336_v31 = vpop.f32.mrb[60].mxu1  ;;  %v12226_v40 = vadd.f32 %v12225_v34, %v12224_v10  ;;  %v12227_v21 = vpop.f32.mrb[62].mxu0  ;;  %v4037_v28 = vadd.f32 %v19347_v23, %v19346_v33  ;;  %v19349_v10 = vld [vmem:[#allocation11_spill] sm:$0xff]  ;;  %v19350_v8 = vld [vmem:[#allocation12_spill] sm:$0xff]  ;;  %v15248_v34 = vadd.f32 %v19351_v24, %v14893_v52  ;;  %v19361_v33 = vld [vmem:[#allocation30_spill] sm:$0xff]  ;;  %v3029_v35 = vrot.slane %v11640_v18, 5 }
 0x184   : > { %v12337_v59 = vpop.f32.mrb[61].mxu1  ;;  %v12228_v25 = vpop.f32.mrb[63].mxu0  ;;  %v15240_v30 = vadd.f32 %v12335_v4, %v3988_v9  ;;  %v4042_v38 = vadd.f32 %v19349_v10, %v19348_v14  ;;  %v19353_v4 = vld [vmem:[#allocation15_spill] sm:$0xff]  ;;  %v19358_v56 = vld [vmem:[#allocation20_spill] sm:$0xff]  ;;  %v19362_v23 = vld [vmem:[#allocation18_spill] sm:$0xff] }
 0x185   : > { %v12339_v17 = vpop.f32.mrb[62].mxu1  ;;  %v12338_v20 = vadd.f32 %v12337_v59, %v12336_v31  ;;  %v3993_v45 = vadd.f32 %v12226_v40, %v14728_v7  ;;  %v12229_v15 = vadd.f32 %v12228_v25, %v12227_v21  ;;  %v4045_v31 = vadd.f32 %v19350_v8, %v14883_v49  ;;  %v19352_v21 = vld [vmem:[#allocation14_spill] sm:$0xff]  ;;  %v19354_v25 = vld [vmem:[#allocation16_spill] sm:$0xff]  ;;  %v19356_v52 = vld [vmem:[#allocation19_spill] sm:$0xff] }
 0x186   : > { %v12340_v55 = vpop.f32.mrb[63].mxu1  ;;  %v15259_v9 = vadd.f32 %v19353_v4, %v14930_v6  ;;  %v15263_v49 = vadd.f32 %v19354_v25, %v14949_v63  ;;  %v19363_v14 = vld [vmem:[#allocation31_spill] sm:$0xff]  ;;  %v19364_v8 = vld [vmem:[#allocation32_spill] sm:$0xff] }
 0x187   : > { %v12341_v29 = vadd.f32 %v12340_v55, %v12339_v17  ;;  %v3996_v59 = vadd.f32 %v12229_v15, %v14728_v7  ;;  %v15251_v40 = vadd.f32 %v12338_v20, %v3993_v45  ;;  %v15255_v17 = vadd.f32 %v19352_v21, %v14926_v61  ;;  %v19355_v55 = vld [vmem:[#allocation25_spill] sm:$0xff]  ;;  %v19357_v7 = vld [vmem:[#allocation23_spill] sm:$0xff] }
 0x188   : > { %v15267_v42 = vadd.f32 %v19356_v52, %v19355_v55  ;;  %v15271_v20 = vadd.f32 %v19357_v7, %v14987_v47  ;;  %v19359_v61 = vld [vmem:[#allocation29_spill] sm:$0xff]  ;;  %v15285_v10 = vadd.f32 %v19363_v14, %v19362_v23  ;;  %v15289_v47 = vadd.f32 %v19364_v8, %v15057_v32  ;;  %v19366_v32 = vld [vmem:[#allocation34_spill] sm:$0xff] }
 0x189   : > { %13099 = vmatmul.mubr.bf16.gmra.mrb[148].mxu0 %v11668_v3  ;;  %v15275_v45 = vadd.f32 %v19359_v61, %v19358_v56  ;;  %v15277_v6 = vadd.f32 %v12341_v29, %v3996_v59  ;;  %v12358_v3 = vpop.f32.mrb[64].mxu0  ;;  %v19360_v15 = vld [vmem:[#allocation17_spill] sm:$0xff]  ;;  %v3023_v29 = vsel %vm13841_vm5, %v3021_v53, %v3022_v5  ;;  %v15307_v4 = vadd.f32 %v19366_v32, %v15160_v26 }
 0x18a   : > { %13102 = vmatprep.mubr.bf16.mxu0 %v11669_v11  ;;  %v15281_v63 = vadd.f32 %v19361_v33, %v19360_v15  ;;  %v3020_v11 = vsel %vm13841_vm5, %v11655_v12, %v3019_v41  ;;  %v12359_v24 = vpop.f32.mrb[65].mxu0  ;;  %v19365_v59 = vld [vmem:[#allocation33_spill] sm:$0xff]  ;;  %v11670_v55 = vcombine.low %v15220_v27, %v3016_v43  ;;  %v3027_v26 = vsel %vm13841_vm5, %v11656_v19, %v3026_v48 }
 0x18b   : > { %v15303_v21 = vadd.f32 %v19365_v59, %v15066_v39  ;;  %v12360_v25 = vadd.f32 %v12359_v24, %v12358_v3  ;;  %v12361_v54 = vpop.f32.mrb[66].mxu0  ;;  %v11671_v12 = vcombine.low %v3020_v11, %v3023_v29  ;;  %v12470_v52 = vpop.f32.mrb[64].mxu1  ;;  %v3030_v27 = vsel %vm13841_vm5, %v3028_v1, %v3029_v35 }
 0x18c   : > { %v12362_v41 = vpop.f32.mrb[67].mxu0  ;;  %v12471_v39 = vpop.f32.mrb[65].mxu1 }
 0x18d   : > { %v4195_v5 = vadd.f32 %v12360_v25, %v4034_v0  ;;  %v12363_v53 = vadd.f32 %v12362_v41, %v12361_v54  ;;  %v12472_v56 = vadd.f32 %v12471_v39, %v12470_v52  ;;  %v12473_v61 = vpop.f32.mrb[66].mxu1 }
 0x18e   : > { %v12474_v43 = vpop.f32.mrb[67].mxu1 }
 0x18f   : > { %v4198_v7 = vadd.f32 %v12363_v53, %v4037_v28  ;;  %v12475_v0 = vadd.f32 %v12474_v43, %v12473_v61  ;;  %v15320_v18 = vadd.f32 %v12472_v56, %v4195_v5  ;;  %v11672_v28 = vcombine.low %v3027_v26, %v3030_v27 }
 0x191   : > { %13103 = vmatmul.mubr.bf16.gmra.mrb[152].mxu0 %v11670_v55  ;;  %v12364_v3 = vpop.f32.mrb[68].mxu0  ;;  %v15322_v15 = vadd.f32 %v12475_v0, %v4198_v7 }
 0x192   : > { %13106 = vmatprep.mubr.bf16.mxu0 %v11671_v12  ;;  %v12365_v33 = vpop.f32.mrb[69].mxu0 }
 0x193   : > { %v12366_v23 = vadd.f32 %v12365_v33, %v12364_v3  ;;  %v12367_v14 = vpop.f32.mrb[70].mxu0  ;;  %v12476_v11 = vpop.f32.mrb[68].mxu1 }
 0x194   : > { %v12368_v46 = vpop.f32.mrb[71].mxu0  ;;  %v12477_v48 = vpop.f32.mrb[69].mxu1 }
 0x195   : > { %v4203_v62 = vadd.f32 %v12366_v23, %v4042_v38  ;;  %v12369_v8 = vadd.f32 %v12368_v46, %v12367_v14  ;;  %v12478_v29 = vadd.f32 %v12477_v48, %v12476_v11  ;;  %v12479_v24 = vpop.f32.mrb[70].mxu1 }
 0x196   : > { %v12480_v59 = vpop.f32.mrb[71].mxu1 }
 0x197   : > { %v4206_v19 = vadd.f32 %v12369_v8, %v4045_v31  ;;  %v12481_v32 = vadd.f32 %v12480_v59, %v12479_v24  ;;  %v15324_v35 = vadd.f32 %v12478_v29, %v4203_v62 }
 0x199   : > { %13107 = vmatmul.mubr.bf16.gmra.mrb[156].mxu0 %v11672_v28  ;;  %v12370_v25 = vpop.f32.mrb[72].mxu0  ;;  %v15326_v55 = vadd.f32 %v12481_v32, %v4206_v19 }
 0x19a   : > { %v12371_v54 = vpop.f32.mrb[73].mxu0 }
 0x19b   : > { %v12372_v1 = vadd.f32 %v12371_v54, %v12370_v25  ;;  %v12373_v41 = vpop.f32.mrb[74].mxu0 }
 0x19c   : > { %v12374_v12 = vpop.f32.mrb[75].mxu0  ;;  %v12482_v53 = vpop.f32.mrb[72].mxu1 }
 0x19d   : > { %v4211_v5 = vadd.f32 %v12372_v1, %v15248_v34  ;;  %v12375_v38 = vadd.f32 %v12374_v12, %v12373_v41  ;;  %v12483_v52 = vpop.f32.mrb[73].mxu1 }
 0x19e   : > { %v12484_v7 = vadd.f32 %v12483_v52, %v12482_v53  ;;  %v12485_v39 = vpop.f32.mrb[74].mxu1 }
 0x19f   : > { %v4214_v31 = vadd.f32 %v12375_v38, %v15255_v17  ;;  %v12486_v56 = vpop.f32.mrb[75].mxu1 }
 0x1a0   : > { %v12487_v61 = vadd.f32 %v12486_v56, %v12485_v39  ;;  %v15330_v26 = vadd.f32 %v12484_v7, %v4211_v5 }
 0x1a1   : > { %v12376_v27 = vpop.f32.mrb[76].mxu0 }
 0x1a2   : > { %v12377_v43 = vpop.f32.mrb[77].mxu0  ;;  %v15332_v0 = vadd.f32 %v12487_v61, %v4214_v31 }
 0x1a3   : > { %v12378_v28 = vadd.f32 %v12377_v43, %v12376_v27  ;;  %v12379_v3 = vpop.f32.mrb[78].mxu0 }
 0x1a4   : > { %v12380_v33 = vpop.f32.mrb[79].mxu0  ;;  %v12488_v14 = vpop.f32.mrb[76].mxu1 }
 0x1a5   : > { %v4219_v34 = vadd.f32 %v12378_v28, %v15259_v9  ;;  %v12381_v23 = vadd.f32 %v12380_v33, %v12379_v3  ;;  %v12489_v46 = vpop.f32.mrb[77].mxu1 }
 0x1a6   : > { %v12490_v62 = vadd.f32 %v12489_v46, %v12488_v14  ;;  %v12491_v8 = vpop.f32.mrb[78].mxu1 }
 0x1a7   : > { %v4222_v17 = vadd.f32 %v12381_v23, %v15263_v49  ;;  %v12492_v11 = vpop.f32.mrb[79].mxu1 }
 0x1a8   : > { %v12493_v19 = vadd.f32 %v12492_v11, %v12491_v8  ;;  %v15336_v48 = vadd.f32 %v12490_v62, %v4219_v34 }
 0x1a9   : > { %v12382_v29 = vpop.f32.mrb[80].mxu0 }
 0x1aa   : > { %v15338_v24 = vadd.f32 %v12493_v19, %v4222_v17  ;;  %v12383_v59 = vpop.f32.mrb[81].mxu0 }
 0x1ab   : > { %v12384_v32 = vadd.f32 %v12383_v59, %v12382_v29  ;;  %v12385_v25 = vpop.f32.mrb[82].mxu0 }
 0x1ac   : > { %v12386_v54 = vpop.f32.mrb[83].mxu0  ;;  %v12494_v1 = vpop.f32.mrb[80].mxu1 }
 0x1ad   : > { %v4227_v9 = vadd.f32 %v12384_v32, %v15267_v42  ;;  %v12387_v41 = vadd.f32 %v12386_v54, %v12385_v25  ;;  %v12495_v12 = vpop.f32.mrb[81].mxu1 }
 0x1ae   : > { %v12496_v5 = vadd.f32 %v12495_v12, %v12494_v1  ;;  %v12497_v38 = vpop.f32.mrb[82].mxu1 }
 0x1af   : > { %v4230_v49 = vadd.f32 %v12387_v41, %v15271_v20  ;;  %v12498_v53 = vpop.f32.mrb[83].mxu1 }
 0x1b0   : > { %v12499_v31 = vadd.f32 %v12498_v53, %v12497_v38  ;;  %v15342_v52 = vadd.f32 %v12496_v5, %v4227_v9 }
 0x1b1   : > { %v12388_v7 = vpop.f32.mrb[84].mxu0 }
 0x1b2   : > { %v15344_v39 = vadd.f32 %v12499_v31, %v4230_v49  ;;  %v12389_v56 = vpop.f32.mrb[85].mxu0 }
 0x1b3   : > { %v12390_v61 = vadd.f32 %v12389_v56, %v12388_v7  ;;  %v12391_v27 = vpop.f32.mrb[86].mxu0 }
 0x1b4   : > { %v12392_v43 = vpop.f32.mrb[87].mxu0  ;;  %v12500_v3 = vpop.f32.mrb[84].mxu1 }
 0x1b5   : > { %v4235_v42 = vadd.f32 %v12390_v61, %v15275_v45  ;;  %v12393_v28 = vadd.f32 %v12392_v43, %v12391_v27  ;;  %v12501_v20 = vpop.f32.mrb[85].mxu1 }
 0x1b6   : > { %v12502_v34 = vadd.f32 %v12501_v20, %v12500_v3  ;;  %v12503_v23 = vpop.f32.mrb[86].mxu1 }
 0x1b7   : > { %v4238_v33 = vadd.f32 %v12393_v28, %v15281_v63  ;;  %v12504_v14 = vpop.f32.mrb[87].mxu1 }
 0x1b8   : > { %v12505_v17 = vadd.f32 %v12504_v14, %v12503_v23  ;;  %v15348_v46 = vadd.f32 %v12502_v34, %v4235_v42 }
 0x1b9   : > { %v12394_v62 = vpop.f32.mrb[88].mxu0 }
 0x1ba   : > { %v15350_v8 = vadd.f32 %v12505_v17, %v4238_v33  ;;  %v12395_v11 = vpop.f32.mrb[89].mxu0 }
 0x1bb   : > { %v12396_v19 = vadd.f32 %v12395_v11, %v12394_v62  ;;  %v12397_v29 = vpop.f32.mrb[90].mxu0 }
 0x1bc   : > { %v12398_v59 = vpop.f32.mrb[91].mxu0 }
 0x1bd   : > { %v4243_v45 = vadd.f32 %v12396_v19, %v15285_v10  ;;  %v12506_v32 = vpop.f32.mrb[88].mxu1  ;;  %v12399_v25 = vadd.f32 %v12398_v59, %v12397_v29  ;;  %v19367_v19 = vld [vmem:[#allocation22_spill] sm:$0xff] }
 0x1be   : > { %v12507_v54 = vpop.f32.mrb[89].mxu1 }
 0x1bf   : > { %v4246_v63 = vadd.f32 %v12399_v25, %v15289_v47  ;;  %v12508_v9 = vadd.f32 %v12507_v54, %v12506_v32  ;;  %v12509_v1 = vpop.f32.mrb[90].mxu1 }
 0x1c0   : > { %v12510_v41 = vpop.f32.mrb[91].mxu1 }
 0x1c1   : > { %v12511_v12 = vadd.f32 %v12510_v41, %v12509_v1  ;;  %v15354_v49 = vadd.f32 %v12508_v9, %v4243_v45  ;;  %v19368_v45 = vld [vmem:[#allocation24_spill] sm:$0xff] }
 0x1c3   : > { %v15356_v5 = vadd.f32 %v12511_v12, %v4246_v63 }
 0x1c4   : > { %v12400_v38 = vpop.f32.mrb[92].mxu0 }
 0x1c5   : > { %v12401_v53 = vpop.f32.mrb[93].mxu0 }
 0x1c6   : > { %v12402_v31 = vadd.f32 %v12401_v53, %v12400_v38  ;;  %v12403_v7 = vpop.f32.mrb[94].mxu0 }
 0x1c7   : > { %v12512_v56 = vpop.f32.mrb[92].mxu1  ;;  %v12404_v61 = vpop.f32.mrb[95].mxu0 }
 0x1c8   : > { %v4251_v10 = vadd.f32 %v12402_v31, %v15303_v21  ;;  %v12405_v27 = vadd.f32 %v12404_v61, %v12403_v7  ;;  %v12513_v43 = vpop.f32.mrb[93].mxu1 }
 0x1c9   : > { %v12514_v42 = vadd.f32 %v12513_v43, %v12512_v56  ;;  %v12515_v47 = vpop.f32.mrb[94].mxu1 }
 0x1ca   : > { %v4254_v28 = vadd.f32 %v12405_v27, %v15307_v4  ;;  %v12516_v3 = vpop.f32.mrb[95].mxu1 }
 0x1cb   : > { %v12517_v33 = vadd.f32 %v12516_v3, %v12515_v47  ;;  %v15360_v20 = vadd.f32 %v12514_v42, %v4251_v10 }
 0x1cc   : > { %v12406_v34 = vpop.f32.mrb[96].mxu0 }
 0x1cd   : > { %v12407_v23 = vpop.f32.mrb[97].mxu0  ;;  %v15362_v14 = vadd.f32 %v12517_v33, %v4254_v28 }
 0x1ce   : > { %v12408_v17 = vadd.f32 %v12407_v23, %v12406_v34  ;;  %v12409_v62 = vpop.f32.mrb[98].mxu0 }
 0x1cf   : > { %v12410_v11 = vpop.f32.mrb[99].mxu0 }
 0x1d0   : > { %v4259_v29 = vadd.f32 %v12408_v17, %v19367_v19  ;;  %v12411_v21 = vadd.f32 %v12410_v11, %v12409_v62 }
 0x1d1   : > { %v12518_v59 = vpop.f32.mrb[96].mxu1 }
 0x1d2   : > { %v4262_v32 = vadd.f32 %v12411_v21, %v19368_v45  ;;  %v12519_v25 = vpop.f32.mrb[97].mxu1 }
 0x1d3   : > { %v12520_v54 = vadd.f32 %v12519_v25, %v12518_v59  ;;  %v12521_v4 = vpop.f32.mrb[98].mxu1 }
 0x1d4   : > { %v12522_v63 = vpop.f32.mrb[99].mxu1 }
 0x1d5   : > { %v12523_v9 = vadd.f32 %v12522_v63, %v12521_v4  ;;  %v15366_v1 = vadd.f32 %v12520_v54, %v4259_v29 }
 0x1d7   : > { %v12412_v41 = vpop.f32.mrb[100].mxu0  ;;  %v15368_v12 = vadd.f32 %v12523_v9, %v4262_v32 }
 0x1d8   : > { %v12413_v38 = vpop.f32.mrb[101].mxu0 }
 0x1d9   : > { %v12414_v53 = vadd.f32 %v12413_v38, %v12412_v41  ;;  %v12415_v31 = vpop.f32.mrb[102].mxu0 }
 0x1da   : > { %v12416_v7 = vpop.f32.mrb[103].mxu0 }
 0x1db   : > { %v4267_v56 = vadd.f32 %v12414_v53, %v15059_v58  ;;  %v12417_v61 = vadd.f32 %v12416_v7, %v12415_v31 }
 0x1dc   : > { %v12524_v10 = vpop.f32.mrb[100].mxu1 }
 0x1dd   : > { %v4270_v27 = vadd.f32 %v12417_v61, %v15068_v57  ;;  %v12525_v43 = vpop.f32.mrb[101].mxu1 }
 0x1de   : > { %v12526_v42 = vadd.f32 %v12525_v43, %v12524_v10  ;;  %v12527_v47 = vpop.f32.mrb[102].mxu1 }
 0x1df   : > { %v12528_v28 = vpop.f32.mrb[103].mxu1 }
 0x1e0   : > { %v12529_v3 = vadd.f32 %v12528_v28, %v12527_v47  ;;  %v15372_v33 = vadd.f32 %v12526_v42, %v4267_v56 }
 0x1e2   : > { %v12418_v34 = vpop.f32.mrb[104].mxu0  ;;  %v15374_v17 = vadd.f32 %v12529_v3, %v4270_v27 }
 0x1e3   : > { %v12419_v23 = vpop.f32.mrb[105].mxu0 }
 0x1e4   : > { %v12420_v62 = vadd.f32 %v12419_v23, %v12418_v34  ;;  %v12421_v11 = vpop.f32.mrb[106].mxu0 }
 0x1e5   : > { %v12422_v19 = vpop.f32.mrb[107].mxu0 }
 0x1e6   : > { %v4275_v58 = vadd.f32 %v12420_v62, %v15110_v2  ;;  %v12423_v29 = vadd.f32 %v12422_v19, %v12421_v11  ;;  %v12530_v21 = vpop.f32.mrb[104].mxu1 }
 0x1e7   : > { %v12531_v59 = vpop.f32.mrb[105].mxu1 }
 0x1e8   : > { %v4278_v57 = vadd.f32 %v12423_v29, %v15120_v16  ;;  %v12532_v45 = vadd.f32 %v12531_v59, %v12530_v21  ;;  %v12533_v32 = vpop.f32.mrb[106].mxu1 }
 0x1e9   : > { %v12534_v25 = vpop.f32.mrb[107].mxu1 }
 0x1ea   : > { %v12535_v54 = vadd.f32 %v12534_v25, %v12533_v32  ;;  %v15378_v4 = vadd.f32 %v12532_v45, %v4275_v58 }
 0x1ec   : > { %v15380_v63 = vadd.f32 %v12535_v54, %v4278_v57 }
 0x1ed   : > { %v12424_v9 = vpop.f32.mrb[108].mxu0 }
 0x1ee   : > { %v12425_v41 = vpop.f32.mrb[109].mxu0 }
 0x1ef   : > { %v12426_v38 = vadd.f32 %v12425_v41, %v12424_v9  ;;  %v12427_v53 = vpop.f32.mrb[110].mxu0 }
 0x1f0   : > { %v12428_v31 = vpop.f32.mrb[111].mxu0 }
 0x1f1   : > { %v4283_v2 = vadd.f32 %v12426_v38, %v15150_v50  ;;  %v12429_v7 = vadd.f32 %v12428_v31, %v12427_v53  ;;  %v12536_v56 = vpop.f32.mrb[108].mxu1 }
 0x1f2   : > { %v12537_v61 = vpop.f32.mrb[109].mxu1 }
 0x1f3   : > { %v4286_v16 = vadd.f32 %v12429_v7, %v15165_v13  ;;  %v12538_v10 = vadd.f32 %v12537_v61, %v12536_v56  ;;  %v12539_v27 = vpop.f32.mrb[110].mxu1 }
 0x1f4   : > { %v12540_v43 = vpop.f32.mrb[111].mxu1 }
 0x1f5   : > { %v12541_v42 = vadd.f32 %v12540_v43, %v12539_v27  ;;  %v15384_v47 = vadd.f32 %v12538_v10, %v4283_v2 }
 0x1f7   : > { %v15386_v28 = vadd.f32 %v12541_v42, %v4286_v16 }
 0x1f8   : > { %v12430_v3 = vpop.f32.mrb[112].mxu0 }
 0x1f9   : > { %v12431_v34 = vpop.f32.mrb[113].mxu0 }
 0x1fa   : > { %v12432_v23 = vadd.f32 %v12431_v34, %v12430_v3  ;;  %v12433_v62 = vpop.f32.mrb[114].mxu0 }
 0x1fb   : > { %v12434_v11 = vpop.f32.mrb[115].mxu0 }
 0x1fc   : > { %v4291_v50 = vadd.f32 %v12432_v23, %v15197_v60  ;;  %v12542_v19 = vpop.f32.mrb[112].mxu1  ;;  %v12435_v58 = vadd.f32 %v12434_v11, %v12433_v62 }
 0x1fd   : > { %v12543_v29 = vpop.f32.mrb[113].mxu1 }
 0x1fe   : > { %v4294_v13 = vadd.f32 %v12435_v58, %v15203_v22  ;;  %v12544_v21 = vadd.f32 %v12543_v29, %v12542_v19  ;;  %v12545_v57 = vpop.f32.mrb[114].mxu1 }
 0x1ff   : > { %v12546_v59 = vpop.f32.mrb[115].mxu1 }
 0x200   : > { %v12547_v45 = vadd.f32 %v12546_v59, %v12545_v57  ;;  %v15390_v32 = vadd.f32 %v12544_v21, %v4291_v50 }
 0x202   : > { %v15392_v25 = vadd.f32 %v12547_v45, %v4294_v13 }
 0x203   : > { %v12436_v54 = vpop.f32.mrb[116].mxu0 }
 0x204   : > { %v12437_v9 = vpop.f32.mrb[117].mxu0 }
 0x205   : > { %v12438_v41 = vadd.f32 %v12437_v9, %v12436_v54  ;;  %v12439_v38 = vpop.f32.mrb[118].mxu0 }
 0x206   : > { %v12440_v53 = vpop.f32.mrb[119].mxu0 }
 0x207   : > { %v4299_v60 = vadd.f32 %v12438_v41, %v15227_v37  ;;  %v12548_v31 = vpop.f32.mrb[116].mxu1  ;;  %v12441_v2 = vadd.f32 %v12440_v53, %v12439_v38 }
 0x208   : > { %v12549_v7 = vpop.f32.mrb[117].mxu1 }
 0x209   : > { %v4302_v22 = vadd.f32 %v12441_v2, %v15229_v36  ;;  %v12550_v56 = vadd.f32 %v12549_v7, %v12548_v31  ;;  %v12551_v16 = vpop.f32.mrb[118].mxu1 }
 0x20a   : > { %v12552_v61 = vpop.f32.mrb[119].mxu1 }
 0x20b   : > { %v12553_v10 = vadd.f32 %v12552_v61, %v12551_v16  ;;  %v15396_v27 = vadd.f32 %v12550_v56, %v4299_v60 }
 0x20d   : > { %v15398_v43 = vadd.f32 %v12553_v10, %v4302_v22 }
 0x20e   : > { %v12442_v42 = vpop.f32.mrb[120].mxu0 }
 0x20f   : > { %v12443_v3 = vpop.f32.mrb[121].mxu0 }
 0x210   : > { %v12444_v34 = vadd.f32 %v12443_v3, %v12442_v42  ;;  %v12445_v23 = vpop.f32.mrb[122].mxu0 }
 0x211   : > { %v12446_v62 = vpop.f32.mrb[123].mxu0 }
 0x212   : > { %v4307_v37 = vadd.f32 %v12444_v34, %v15232_v44  ;;  %v12447_v11 = vadd.f32 %v12446_v62, %v12445_v23 }
 0x213   : > { %v12554_v50 = vpop.f32.mrb[120].mxu1 }
 0x214   : > { %v4310_v19 = vadd.f32 %v12447_v11, %v15240_v30  ;;  %v12555_v36 = vpop.f32.mrb[121].mxu1 }
 0x215   : > { %v12556_v58 = vadd.f32 %v12555_v36, %v12554_v50  ;;  %v12557_v29 = vpop.f32.mrb[122].mxu1 }
 0x216   : > { %v12558_v13 = vpop.f32.mrb[123].mxu1 }
 0x217   : > { %v12559_v21 = vadd.f32 %v12558_v13, %v12557_v29  ;;  %v15402_v57 = vadd.f32 %v12556_v58, %v4307_v37 }
 0x219   : > { %v15404_v59 = vadd.f32 %v12559_v21, %v4310_v19 }
 0x22c   : > { %v12448_v45 = vpop.f32.mrb[124].mxu0 }
 0x22d   : > { %v12449_v54 = vpop.f32.mrb[125].mxu0 }
 0x22e   : > { %v12450_v9 = vadd.f32 %v12449_v54, %v12448_v45  ;;  %v12451_v41 = vpop.f32.mrb[126].mxu0 }
 0x22f   : > { %v12452_v38 = vpop.f32.mrb[127].mxu0  ;;  %v12560_v60 = vpop.f32.mrb[124].mxu1 }
 0x230   : > { %v4315_v44 = vadd.f32 %v12450_v9, %v15251_v40  ;;  %v12453_v53 = vadd.f32 %v12452_v38, %v12451_v41  ;;  %v12561_v31 = vpop.f32.mrb[125].mxu1 }
 0x231   : > { %v12562_v2 = vadd.f32 %v12561_v31, %v12560_v60  ;;  %v12563_v7 = vpop.f32.mrb[126].mxu1 }
 0x232   : > { %v4318_v30 = vadd.f32 %v12453_v53, %v15277_v6  ;;  %v12564_v22 = vpop.f32.mrb[127].mxu1 }
 0x233   : > { %v12565_v16 = vadd.f32 %v12564_v22, %v12563_v7  ;;  %v15411_v42 = vadd.f32 %v12562_v2, %v4315_v44 }
 0x234   : > { %v13080_v56 = vpop.f32.mrb[128].mxu0 }
 0x235   : > { %v15409_v61 = vadd.f32 %v13080_v56, %v15324_v35  ;;  %v4516_v10 = vpop.f32.mrb[129].mxu0  ;;  %v15419_v23 = vadd.f32 %v12565_v16, %v4318_v30 }
 0x236   : > { %v15414_v3 = vadd.f32 %v4516_v10, %v15320_v18  ;;  %v13081_v40 = vpop.f32.mrb[130].mxu0 }
 0x237   : > { %v15417_v34 = vadd.f32 %v13081_v40, %v15326_v55  ;;  %v4519_v6 = vpop.f32.mrb[131].mxu0  ;;  %v4683_v11 = vmul.f32 %v15409_v61, %v15409_v61 }
 0x238   : > { %v15422_v62 = vadd.f32 %v4519_v6, %v15322_v15  ;;  %v4681_v35 = vmul.f32 %v15414_v3, %v15414_v3 }
 0x239   : > { %v4684_v58 = vmul.f32 %v15417_v34, %v15417_v34 }
 0x23a   : > { %v4643_v37 = vadd.f32 %v15422_v62, %v15414_v3  ;;  %v4682_v18 = vmul.f32 %v15422_v62, %v15422_v62 }
 0x23c   : > { %v4644_v55 = vadd.f32 %v4643_v37, %v15409_v61  ;;  %v4713_v50 = vadd.f32 %v4682_v18, %v4681_v35  ;;  %v13084_v19 = vpop.f32.mrb[132].mxu0 }
 0x23d   : > { %v15434_v36 = vadd.f32 %v13084_v19, %v15336_v48  ;;  %v4532_v15 = vpop.f32.mrb[133].mxu0 }
 0x23e   : > { %v4714_v29 = vadd.f32 %v4713_v50, %v4683_v11  ;;  %v15439_v13 = vadd.f32 %v4532_v15, %v15330_v26  ;;  %v4645_v21 = vadd.f32 %v4644_v55, %v15417_v34  ;;  %v13085_v45 = vpop.f32.mrb[134].mxu0 }
 0x23f   : > { %v15443_v54 = vadd.f32 %v13085_v45, %v15338_v24  ;;  %v4535_v9 = vpop.f32.mrb[135].mxu0  ;;  %v4687_v24 = vmul.f32 %v15434_v36, %v15434_v36 }
 0x240   : > { %v4646_v41 = vadd.f32 %v4645_v21, %v15439_v13  ;;  %v4685_v48 = vmul.f32 %v15439_v13, %v15439_v13  ;;  %v4715_v38 = vadd.f32 %v4714_v29, %v4684_v58  ;;  %v15449_v44 = vadd.f32 %v4535_v9, %v15332_v0 }
 0x241   : > { %v4688_v0 = vmul.f32 %v15443_v54, %v15443_v54 }
 0x242   : > { %v4716_v53 = vadd.f32 %v4715_v38, %v4685_v48  ;;  %v4647_v26 = vadd.f32 %v4646_v41, %v15449_v44  ;;  %v4686_v60 = vmul.f32 %v15449_v44, %v15449_v44 }
 0x244   : > { %v4648_v30 = vadd.f32 %v4647_v26, %v15434_v36  ;;  %v4717_v31 = vadd.f32 %v4716_v53, %v4686_v60  ;;  %v13088_v2 = vpop.f32.mrb[136].mxu0 }
 0x245   : > { %v15458_v7 = vadd.f32 %v13088_v2, %v15348_v46  ;;  %v4548_v22 = vpop.f32.mrb[137].mxu0 }
 0x246   : > { %v4718_v56 = vadd.f32 %v4717_v31, %v4687_v24  ;;  %v15463_v16 = vadd.f32 %v4548_v22, %v15342_v52  ;;  %v4649_v10 = vadd.f32 %v4648_v30, %v15443_v54  ;;  %v13089_v40 = vpop.f32.mrb[138].mxu0 }
 0x247   : > { %v15467_v6 = vadd.f32 %v13089_v40, %v15350_v8  ;;  %v4551_v35 = vpop.f32.mrb[139].mxu0  ;;  %v4691_v8 = vmul.f32 %v15458_v7, %v15458_v7 }
 0x248   : > { %v4650_v37 = vadd.f32 %v4649_v10, %v15463_v16  ;;  %v4689_v46 = vmul.f32 %v15463_v16, %v15463_v16  ;;  %v4719_v18 = vadd.f32 %v4718_v56, %v4688_v0  ;;  %v15473_v11 = vadd.f32 %v4551_v35, %v15344_v39 }
 0x249   : > { %v4692_v39 = vmul.f32 %v15467_v6, %v15467_v6 }
 0x24a   : > { %v4720_v55 = vadd.f32 %v4719_v18, %v4689_v46  ;;  %v4651_v52 = vadd.f32 %v4650_v37, %v15473_v11  ;;  %v4690_v50 = vmul.f32 %v15473_v11, %v15473_v11 }
 0x24c   : > { %v4652_v19 = vadd.f32 %v4651_v52, %v15458_v7  ;;  %v4721_v15 = vadd.f32 %v4720_v55, %v4690_v50  ;;  %v13092_v58 = vpop.f32.mrb[140].mxu0 }
 0x24d   : > { %v15482_v29 = vadd.f32 %v13092_v58, %v15360_v20  ;;  %v4564_v21 = vpop.f32.mrb[141].mxu0 }
 0x24e   : > { %v4722_v45 = vadd.f32 %v4721_v15, %v4691_v8  ;;  %v15487_v9 = vadd.f32 %v4564_v21, %v15354_v49  ;;  %v4653_v41 = vadd.f32 %v4652_v19, %v15467_v6  ;;  %v13093_v48 = vpop.f32.mrb[142].mxu0 }
 0x24f   : > { %v15491_v38 = vadd.f32 %v13093_v48, %v15362_v14  ;;  %v4567_v53 = vpop.f32.mrb[143].mxu0  ;;  %v4695_v14 = vmul.f32 %v15482_v29, %v15482_v29 }
 0x250   : > { %v4654_v26 = vadd.f32 %v4653_v41, %v15487_v9  ;;  %v4693_v20 = vmul.f32 %v15487_v9, %v15487_v9  ;;  %v4723_v60 = vadd.f32 %v4722_v45, %v4692_v39  ;;  %v15497_v24 = vadd.f32 %v4567_v53, %v15356_v5 }
 0x251   : > { %v4696_v5 = vmul.f32 %v15491_v38, %v15491_v38 }
 0x252   : > { %v4724_v30 = vadd.f32 %v4723_v60, %v4693_v20  ;;  %v4655_v49 = vadd.f32 %v4654_v26, %v15497_v24  ;;  %v4694_v31 = vmul.f32 %v15497_v24, %v15497_v24 }
 0x254   : > { %v4656_v2 = vadd.f32 %v4655_v49, %v15482_v29  ;;  %v4725_v22 = vadd.f32 %v4724_v30, %v4694_v31  ;;  %v13096_v0 = vpop.f32.mrb[144].mxu0 }
 0x255   : > { %v15506_v56 = vadd.f32 %v13096_v0, %v15372_v33  ;;  %v4580_v10 = vpop.f32.mrb[145].mxu0 }
 0x256   : > { %v4726_v40 = vadd.f32 %v4725_v22, %v4695_v14  ;;  %v15511_v35 = vadd.f32 %v4580_v10, %v15366_v1  ;;  %v4657_v37 = vadd.f32 %v4656_v2, %v15491_v38  ;;  %v13097_v46 = vpop.f32.mrb[146].mxu0 }
 0x257   : > { %v15515_v18 = vadd.f32 %v13097_v46, %v15374_v17  ;;  %v4583_v55 = vpop.f32.mrb[147].mxu0  ;;  %v4699_v17 = vmul.f32 %v15506_v56, %v15506_v56 }
 0x258   : > { %v4658_v52 = vadd.f32 %v4657_v37, %v15511_v35  ;;  %v4697_v33 = vmul.f32 %v15511_v35, %v15511_v35  ;;  %v4727_v50 = vadd.f32 %v4726_v40, %v4696_v5  ;;  %v15521_v8 = vadd.f32 %v4583_v55, %v15368_v12 }
 0x259   : > { %v4700_v12 = vmul.f32 %v15515_v18, %v15515_v18 }
 0x25a   : > { %v4728_v19 = vadd.f32 %v4727_v50, %v4697_v33  ;;  %v4659_v1 = vadd.f32 %v4658_v52, %v15521_v8  ;;  %v4698_v15 = vmul.f32 %v15521_v8, %v15521_v8 }
 0x25c   : > { %v4660_v58 = vadd.f32 %v4659_v1, %v15506_v56  ;;  %v4729_v21 = vadd.f32 %v4728_v19, %v4698_v15  ;;  %v13100_v39 = vpop.f32.mrb[148].mxu0 }
 0x25d   : > { %v15530_v45 = vadd.f32 %v13100_v39, %v15384_v47  ;;  %v4596_v41 = vpop.f32.mrb[149].mxu0 }
 0x25e   : > { %v4730_v48 = vadd.f32 %v4729_v21, %v4699_v17  ;;  %v15535_v53 = vadd.f32 %v4596_v41, %v15378_v4  ;;  %v4661_v26 = vadd.f32 %v4660_v58, %v15515_v18  ;;  %v13101_v20 = vpop.f32.mrb[150].mxu0 }
 0x25f   : > { %v15539_v60 = vadd.f32 %v13101_v20, %v15386_v28  ;;  %v4599_v30 = vpop.f32.mrb[151].mxu0  ;;  %v4703_v28 = vmul.f32 %v15530_v45, %v15530_v45 }
 0x260   : > { %v4662_v49 = vadd.f32 %v4661_v26, %v15535_v53  ;;  %v4701_v47 = vmul.f32 %v15535_v53, %v15535_v53  ;;  %v4731_v31 = vadd.f32 %v4730_v48, %v4700_v12  ;;  %v15545_v14 = vadd.f32 %v4599_v30, %v15380_v63 }
 0x261   : > { %v4704_v63 = vmul.f32 %v15539_v60, %v15539_v60 }
 0x262   : > { %v4732_v2 = vadd.f32 %v4731_v31, %v4701_v47  ;;  %v4663_v4 = vadd.f32 %v4662_v49, %v15545_v14  ;;  %v4702_v22 = vmul.f32 %v15545_v14, %v15545_v14 }
 0x264   : > { %v4664_v0 = vadd.f32 %v4663_v4, %v15530_v45  ;;  %v4733_v10 = vadd.f32 %v4732_v2, %v4702_v22  ;;  %v13104_v5 = vpop.f32.mrb[152].mxu0 }
 0x265   : > { %v15554_v40 = vadd.f32 %v13104_v5, %v15396_v27  ;;  %v4612_v37 = vpop.f32.mrb[153].mxu0 }
 0x266   : > { %v4734_v46 = vadd.f32 %v4733_v10, %v4703_v28  ;;  %v15559_v55 = vadd.f32 %v4612_v37, %v15390_v32  ;;  %v4665_v52 = vadd.f32 %v4664_v0, %v15539_v60  ;;  %v13105_v33 = vpop.f32.mrb[154].mxu0 }
 0x267   : > { %v15563_v50 = vadd.f32 %v13105_v33, %v15398_v43  ;;  %v4615_v19 = vpop.f32.mrb[155].mxu0  ;;  %v4707_v43 = vmul.f32 %v15554_v40, %v15554_v40 }
 0x268   : > { %v4666_v1 = vadd.f32 %v4665_v52, %v15559_v55  ;;  %v4705_v27 = vmul.f32 %v15559_v55, %v15559_v55  ;;  %v4735_v15 = vadd.f32 %v4734_v46, %v4704_v63  ;;  %v15569_v17 = vadd.f32 %v4615_v19, %v15392_v25 }
 0x269   : > { %v4708_v25 = vmul.f32 %v15563_v50, %v15563_v50 }
 0x26a   : > { %v4736_v58 = vadd.f32 %v4735_v15, %v4705_v27  ;;  %v4667_v32 = vadd.f32 %v4666_v1, %v15569_v17  ;;  %v4706_v21 = vmul.f32 %v15569_v17, %v15569_v17 }
 0x26c   : > { %v4668_v39 = vadd.f32 %v4667_v32, %v15554_v40  ;;  %v4737_v41 = vadd.f32 %v4736_v58, %v4706_v21  ;;  %v13108_v12 = vpop.f32.mrb[156].mxu0 }
 0x26d   : > { %v15578_v48 = vadd.f32 %v13108_v12, %v15411_v42  ;;  %v4628_v26 = vpop.f32.mrb[157].mxu0 }
 0x26e   : > { %v4738_v20 = vadd.f32 %v4737_v41, %v4707_v43  ;;  %v15583_v30 = vadd.f32 %v4628_v26, %v15402_v57  ;;  %v4669_v49 = vadd.f32 %v4668_v39, %v15563_v50  ;;  %v13109_v47 = vpop.f32.mrb[158].mxu0 }
 0x26f   : > { %v15587_v31 = vadd.f32 %v13109_v47, %v15419_v23  ;;  %v4631_v2 = vpop.f32.mrb[159].mxu0  ;;  %v4711_v57 = vmul.f32 %v15578_v48, %v15578_v48 }
 0x270   : > { %v4670_v4 = vadd.f32 %v4669_v49, %v15583_v30  ;;  %v4709_v42 = vmul.f32 %v15583_v30, %v15583_v30  ;;  %v4739_v22 = vadd.f32 %v4738_v20, %v4708_v25  ;;  %v4632_v28 = vadd.f32 %v4631_v2, %v15404_v59 }
 0x271   : > { %v4712_v23 = vmul.f32 %v15587_v31, %v15587_v31 }
 0x272   : > { %v4740_v0 = vadd.f32 %v4739_v22, %v4709_v42  ;;  %v4671_v10 = vadd.f32 %v4670_v4, %v4632_v28  ;;  %v4710_v5 = vmul.f32 %v4632_v28, %v4632_v28 }
 0x274   : > { %v4672_v37 = vadd.f32 %v4671_v10, %v15578_v48  ;;  %v4741_v63 = vadd.f32 %v4740_v0, %v4710_v5 }
 0x276   : > { %v4673_v46 = vadd.f32 %v4672_v37, %v15587_v31  ;;  %v4742_v52 = vadd.f32 %v4741_v63, %v4711_v57 }
 0x278   : > { %v4674_v33 = vrot.slane %v4673_v46, 4  ;;  %v4743_v19 = vadd.f32 %v4742_v52, %v4712_v23 }
 0x27a   : > { %v4675_v1 = vadd.f32 %v4674_v33, %v4673_v46  ;;  %v4744_v27 = vrot.slane %v4743_v19, 4 }
 0x27c   : > { %v4676_v59 = vrot.slane %v4675_v1, 2  ;;  %v4745_v15 = vadd.f32 %v4744_v27, %v4743_v19 }
 0x27e   : > { %v4677_v58 = vadd.f32 %v4676_v59, %v4675_v1  ;;  %v4746_v32 = vrot.slane %v4745_v15, 2 }
 0x280   : > { %v4678_v21 = vrot.slane %v4677_v58, 1  ;;  %v4747_v43 = vadd.f32 %v4746_v32, %v4745_v15 }
 0x282   : > { %v4679_v39 = vadd.f32 %v4678_v21, %v4677_v58  ;;  %v4748_v41 = vrot.slane %v4747_v43, 1 }
 0x284   : > { %v15599_v12 = vmul.f32 0.00390625, %v4679_v39  ;;  %v4749_v26 = vadd.f32 %v4748_v41, %v4747_v43 }
 0x286   : > { %v4750_v25 = vmul.f32 0.00390625, %v4749_v26  ;;  %v4751_v20 = vmul.f32 %v15599_v12, %v15599_v12  ;;  %v4781_v49 = vsub.f32 %v15583_v30, %v15599_v12  ;;  %v4782_v47 = vsub.f32 %v4632_v28, %v15599_v12 }
 0x287   : > { %v4762_v4 = vsub.f32 %v15473_v11, %v15599_v12  ;;  %v4765_v22 = vsub.f32 %v15487_v9, %v15599_v12  ;;  %v4766_v0 = vsub.f32 %v15497_v24, %v15599_v12  ;;  %v4767_v10 = vsub.f32 %v15482_v29, %v15599_v12 }
 0x288   : > { %v4752_v2 = vsub.f32 %v4750_v25, %v4751_v20  ;;  %v4768_v5 = vsub.f32 %v15491_v38, %v15599_v12  ;;  %v4769_v30 = vsub.f32 %v15511_v35, %v15599_v12  ;;  %v4770_v28 = vsub.f32 %v15521_v8, %v15599_v12 }
 0x289   : > { %v4771_v11 = vsub.f32 %v15506_v56, %v15599_v12  ;;  %v4772_v9 = vsub.f32 %v15515_v18, %v15599_v12  ;;  %v4773_v24 = vsub.f32 %v15535_v53, %v15599_v12  ;;  %v4774_v29 = vsub.f32 %v15545_v14, %v15599_v12 }
 0x28a   : > { %v4785_v42 = vadd.f32 1e-05, %v4752_v2  ;;  %v4775_v38 = vsub.f32 %v15530_v45, %v15599_v12  ;;  %v4776_v35 = vsub.f32 %v15539_v60, %v15599_v12  ;;  %v4777_v8 = vsub.f32 %v15559_v55, %v15599_v12 }
 0x28b   : > { %v4778_v56 = vsub.f32 %v15569_v17, %v15599_v12  ;;  %v4779_v18 = vsub.f32 %v15554_v40, %v15599_v12  ;;  %v4780_v53 = vsub.f32 %v15563_v50, %v15599_v12  ;;  %v4783_v14 = vsub.f32 %v15578_v48, %v15599_v12 }
 0x28c   : > { %13441 = vrsqrt.f32 %v4785_v42  ;;  %v4784_v45 = vsub.f32 %v15587_v31, %v15599_v12  ;;  %v4753_v60 = vsub.f32 %v15414_v3, %v15599_v12  ;;  %v4754_v55 = vsub.f32 %v15422_v62, %v15599_v12 }
 0x28d   : > { %v4755_v17 = vsub.f32 %v15409_v61, %v15599_v12  ;;  %v4756_v40 = vsub.f32 %v15417_v34, %v15599_v12  ;;  %v4757_v50 = vsub.f32 %v15439_v13, %v15599_v12  ;;  %v4758_v48 = vsub.f32 %v15449_v44, %v15599_v12 }
 0x28e   : > { %v4759_v31 = vsub.f32 %v15434_v36, %v15599_v12  ;;  %v4760_v3 = vsub.f32 %v15443_v54, %v15599_v12  ;;  %v4761_v62 = vsub.f32 %v15463_v16, %v15599_v12  ;;  %v4763_v54 = vsub.f32 %v15458_v7, %v15599_v12 }
 0x28f   : > { %v4764_v16 = vsub.f32 %v15467_v6, %v15599_v12 }
 0x296   : > { %v13442_v57 = vpop.eup %13441 }
 0x297   : > { %v4815_v61 = vmul.f32 %v13442_v57, %v4781_v49  ;;  %v4816_v37 = vmul.f32 %v13442_v57, %v4782_v47  ;;  %v15662_v63 = vmul.f32 %v13442_v57, %v4753_v60  ;;  %v15664_v34 = vmul.f32 %v13442_v57, %v4754_v55 }
 0x298   : > { %v15666_v13 = vmul.f32 %v13442_v57, %v4755_v17  ;;  %v15668_v23 = vmul.f32 %v13442_v57, %v4756_v40  ;;  %v15670_v44 = vmul.f32 %v13442_v57, %v4757_v50  ;;  %v15672_v46 = vmul.f32 %v13442_v57, %v4758_v48 }
 0x299   : > { %v4879_v36 = vmul.f32 0.70710677, %v4815_v61  ;;  %v4880_v52 = vmul.f32 0.70710677, %v4816_v37  ;;  %v15678_v33 = vmul.f32 %v13442_v57, %v4759_v31  ;;  %v15680_v19 = vmul.f32 %v13442_v57, %v4760_v3 }
 0x29a   : > { %v15682_v1 = vmul.f32 %v13442_v57, %v4761_v62  ;;  %v15684_v27 = vmul.f32 %v13442_v57, %v4762_v4  ;;  %v15686_v58 = vmul.f32 %v13442_v57, %v4763_v54  ;;  %v15688_v32 = vmul.f32 %v13442_v57, %v4764_v16 }
 0x29b   : > { %v4975_v59 = vand.u32 2147483647, %v4879_v36  ;;  %v4976_v15 = vand.u32 2147483647, %v4880_v52  ;;  %v15690_v41 = vmul.f32 %v13442_v57, %v4765_v22  ;;  %v15692_v6 = vmul.f32 %v13442_v57, %v4766_v0 }
 0x29c   : > { %v15694_v12 = vmul.f32 %v13442_v57, %v4767_v10  ;;  %v15696_v26 = vmul.f32 %v13442_v57, %v4768_v5  ;;  %vm4911_vm6 = vcmp.ge.f32.partialorder %v4879_v36, 0.0  ;;  %v15698_v49 = vmul.f32 %v13442_v57, %v4769_v30 }
 0x29d   : > { %v5007_v21 = vmul.f32 0.3275911, %v4975_v59  ;;  %v5008_v43 = vmul.f32 0.3275911, %v4976_v15  ;;  %v5391_v7 = vsub.f32 0.0, %v4975_v59  ;;  %v5392_v39 = vsub.f32 0.0, %v4976_v15 }
 0x29e   : > { %v15700_v47 = vmul.f32 %v13442_v57, %v4770_v28  ;;  %v15702_v2 = vmul.f32 %v13442_v57, %v4771_v11  ;;  %v15704_v4 = vmul.f32 %v13442_v57, %v4772_v9  ;;  %v15706_v0 = vmul.f32 %v13442_v57, %v4773_v24 }
 0x29f   : > { %v5039_v25 = vadd.f32 1.0, %v5007_v21  ;;  %v5040_v20 = vadd.f32 1.0, %v5008_v43  ;;  %v5423_v42 = vmul.f32 %v5391_v7, %v4975_v59  ;;  %v5424_v22 = vmul.f32 %v5392_v39, %v4976_v15 }
 0x2a0   : > { %v15708_v10 = vmul.f32 %v13442_v57, %v4774_v29  ;;  %v15710_v5 = vmul.f32 %v13442_v57, %v4775_v38  ;;  %v15712_v60 = vmul.f32 %v13442_v57, %v4776_v35  ;;  %vm4912_vm7 = vcmp.ge.f32.partialorder %v4880_v52, 0.0 }
 0x2a1   : > { %13443 = vrcp.f32 %v5039_v25  ;;  %v15714_v30 = vmul.f32 %v13442_v57, %v4777_v8  ;;  %v15716_v28 = vmul.f32 %v13442_v57, %v4778_v56  ;;  %v15718_v11 = vmul.f32 %v13442_v57, %v4779_v18 }
 0x2a2   : > { %13445 = vrcp.f32 %v5040_v20  ;;  %v15720_v9 = vmul.f32 %v13442_v57, %v4780_v53  ;;  %v15722_v55 = vmul.f32 %v13442_v57, %v4783_v14  ;;  %v15724_v24 = vmul.f32 %v13442_v57, %v4784_v45 }
 0x2a3   : > { %v15726_v17 = vmul.f32 0.5, %v4815_v61  ;;  %v15728_v29 = vmul.f32 0.5, %v4816_v37  ;;  %v19182_v38 = vmov -1.0   ;;  %v5483_v56 = vmul.f32 1.442695, %v5423_v42 }
 0x2a4   : > { %v15732_v35 = vsel %vm4911_vm6, 1.0, %v19182_v38  ;;  %v15735_v8 = vsel %vm4912_vm7, 1.0, %v19182_v38  ;;  %v5485_v18 = vmul.f32 1.442695, %v5424_v22  ;;  %v15738_v53 = vmul.f32 0.5, %v15662_v63 }
 0x2a5   : > { %v15741_v14 = vmul.f32 0.5, %v15664_v34  ;;  %v15744_v45 = vmul.f32 0.5, %v15666_v13  ;;  %v15747_v40 = vmul.f32 0.5, %v15668_v23  ;;  %v15750_v50 = vmul.f32 0.5, %v15670_v44 }
 0x2a6   : > { %19369 = vst [vmem:[#allocation26_spill] sm:$0xff] %v15738_v53  ;;  %v15753_v57 = vmul.f32 0.5, %v15672_v46  ;;  %v15756_v48 = vmul.f32 0.5, %v15678_v33  ;;  %v15759_v31 = vmul.f32 0.5, %v15680_v19  ;;  %v15762_v3 = vmul.f32 0.5, %v15682_v1 }
 0x2a7   : > { %19370 = vst [vmem:[#allocation21_spill] sm:$0xff] %v15741_v14  ;;  %19371 = vst [vmem:[#allocation9_spill] sm:$0xff] %v15744_v45  ;;  %v15765_v62 = vmul.f32 0.5, %v15684_v27  ;;  %v15768_v61 = vmul.f32 0.5, %v15686_v58  ;;  %v15771_v37 = vmul.f32 0.5, %v15688_v32  ;;  %v15774_v36 = vmul.f32 0.5, %v15690_v41 }
 0x2a8   : > { %19372 = vst [vmem:[#allocation27_spill] sm:$0xff] %v15747_v40  ;;  %19373 = vst [vmem:[#allocation10_spill] sm:$0xff] %v15750_v50  ;;  %v15777_v52 = vmul.f32 0.5, %v15692_v6  ;;  %v15780_v54 = vmul.f32 0.5, %v15694_v12  ;;  %v15783_v16 = vmul.f32 0.5, %v15696_v26  ;;  %v15788_v15 = vmul.f32 0.5, %v15698_v49 }
 0x2a9   : > { %19374 = vst [vmem:[#allocation28_spill] sm:$0xff] %v15753_v57  ;;  %19375 = vst [vmem:[#allocation11_spill] sm:$0xff] %v15756_v48  ;;  %v15791_v21 = vmul.f32 0.5, %v15700_v47  ;;  %v15794_v43 = vmul.f32 0.5, %v15702_v2  ;;  %v15797_v7 = vmul.f32 0.5, %v15704_v4  ;;  %v15803_v20 = vmul.f32 0.5, %v15706_v0 }
 0x2aa   : > { %19376 = vst [vmem:[#allocation12_spill] sm:$0xff] %v15759_v31  ;;  %19377 = vst [vmem:[#allocation13_spill] sm:$0xff] %v15762_v3  ;;  %v15806_v42 = vmul.f32 0.5, %v15708_v10  ;;  %v15809_v22 = vmul.f32 0.5, %v15710_v5  ;;  %v15813_v51 = vmul.f32 0.70710677, %v15662_v63  ;;  %13447 = vpow2.f32 %v5483_v56 }
 0x2ab   : > { %19378 = vst [vmem:[#allocation14_spill] sm:$0xff] %v15765_v62  ;;  %19379 = vst [vmem:[#allocation15_spill] sm:$0xff] %v15768_v61  ;;  %v15785_v59 = vpop.eup %13443  ;;  %13449 = vpow2.f32 %v5485_v18  ;;  %v15867_v56 = vmul.f32 0.70710677, %v15700_v47  ;;  %v15874_v18 = vmul.f32 0.70710677, %v15704_v4 }
 0x2ac   : > { %19380 = vst [vmem:[#allocation16_spill] sm:$0xff] %v15771_v37  ;;  %19381 = vst [vmem:[#allocation25_spill] sm:$0xff] %v15774_v36  ;;  %v15799_v39 = vpop.eup %13445  ;;  %v5103_v25 = vmul.f32 1.0614054, %v15785_v59  ;;  %v15886_v47 = vmul.f32 0.70710677, %v15712_v60 }
 0x2ad   : > { %19382 = vst [vmem:[#allocation19_spill] sm:$0xff] %v15777_v52  ;;  %19383 = vst [vmem:[#allocation23_spill] sm:$0xff] %v15780_v54  ;;  %v5104_v38 = vmul.f32 1.0614054, %v15799_v39  ;;  %v15892_v4 = vmul.f32 0.70710677, %v15716_v28 }
 0x2ae   : > { %19384 = vst [vmem:[#allocation20_spill] sm:$0xff] %v15783_v16  ;;  %19385 = vst [vmem:[#allocation29_spill] sm:$0xff] %v15788_v15  ;;  %v15832_v16 = vmul.f32 0.70710677, %v15678_v33  ;;  %v15851_v33 = vmul.f32 0.70710677, %v15690_v41 }
 0x2af   : > { %19386 = vst [vmem:[#allocation17_spill] sm:$0xff] %v15791_v21  ;;  %19387 = vst [vmem:[#allocation30_spill] sm:$0xff] %v15794_v43  ;;  %v5135_v43 = vadd.f32 -1.4531521, %v5103_v25  ;;  %v15819_v21 = vmul.f32 0.70710677, %v15666_v13 }
 0x2b0   : > { %19388 = vst [vmem:[#allocation18_spill] sm:$0xff] %v15797_v7  ;;  %19389 = vst [vmem:[#allocation31_spill] sm:$0xff] %v15803_v20  ;;  %v15816_v7 = vmul.f32 0.70710677, %v15664_v34  ;;  %v15822_v20 = vmul.f32 0.70710677, %v15668_v23 }
 0x2b1   : > { %19390 = vst [vmem:[#allocation32_spill] sm:$0xff] %v15806_v42  ;;  %19391 = vst [vmem:[#allocation33_spill] sm:$0xff] %v15809_v22  ;;  %v5136_v15 = vadd.f32 -1.4531521, %v5104_v38  ;;  %v15825_v42 = vmul.f32 0.70710677, %v15670_v44  ;;  %v5167_v63 = vmul.f32 %v15785_v59, %v5135_v43 }
 0x2b2   : > { %v15828_v22 = vmul.f32 0.70710677, %v15672_v46  ;;  %v15835_v34 = vmul.f32 0.70710677, %v15680_v19  ;;  %v15838_v13 = vmul.f32 0.70710677, %v15682_v1 }
 0x2b3   : > { %v5168_v23 = vmul.f32 %v15799_v39, %v5136_v15  ;;  %v15842_v38 = vmul.f32 0.70710677, %v15684_v27  ;;  %v15845_v44 = vmul.f32 0.70710677, %v15686_v58  ;;  %v15848_v46 = vmul.f32 0.70710677, %v15688_v32 }
 0x2b4   : > { %v5199_v43 = vadd.f32 1.4214138, %v5167_v63  ;;  %v15854_v19 = vmul.f32 0.70710677, %v15692_v6  ;;  %v15857_v15 = vmul.f32 0.70710677, %v15694_v12 }
 0x2b5   : > { %v5200_v1 = vadd.f32 1.4214138, %v5168_v23  ;;  %v15860_v27 = vmul.f32 0.70710677, %v15696_v26  ;;  %v15864_v32 = vmul.f32 0.70710677, %v15698_v49 }
 0x2b6   : > { %v5231_v58 = vmul.f32 %v15785_v59, %v5199_v43  ;;  %v15870_v41 = vmul.f32 0.70710677, %v15702_v2  ;;  %v15877_v12 = vmul.f32 0.70710677, %v15706_v0  ;;  %v15880_v26 = vmul.f32 0.70710677, %v15708_v10 }
 0x2b7   : > { %v5232_v6 = vmul.f32 %v15799_v39, %v5200_v1  ;;  %v15883_v49 = vmul.f32 0.70710677, %v15710_v5  ;;  %v15889_v63 = vmul.f32 0.70710677, %v15714_v30  ;;  %v15896_v23 = vmul.f32 0.70710677, %v15718_v11 }
 0x2b8   : > { %v5263_v25 = vadd.f32 -0.28449672, %v5231_v58  ;;  %v15899_v10 = vmul.f32 0.70710677, %v15720_v9  ;;  %v15902_v5 = vmul.f32 0.70710677, %v15722_v55 }
 0x2b9   : > { %v5264_v2 = vadd.f32 -0.28449672, %v5232_v6  ;;  %v15906_v1 = vmul.f32 0.70710677, %v15724_v24  ;;  %vm4883_vm8 = vcmp.ge.f32.partialorder %v15813_v51, 0.0  ;;  %vm4884_vm9 = vcmp.ge.f32.partialorder %v15816_v7, 0.0 }
 0x2ba   : > { %v5295_v0 = vmul.f32 %v15785_v59, %v5263_v25  ;;  %vm4885_vm10 = vcmp.ge.f32.partialorder %v15819_v21, 0.0  ;;  %vm4886_vm11 = vcmp.ge.f32.partialorder %v15822_v20, 0.0  ;;  %v13448_v25 = vpop.eup %13447  ;;  %vm4905_vm7 = vcmp.ge.f32.partialorder %v15883_v49, 0.0 }
 0x2bb   : > { %v5296_v43 = vmul.f32 %v15799_v39, %v5264_v2  ;;  %vm4906_vm15 = vcmp.ge.f32.partialorder %v15886_v47, 0.0  ;;  %vm4907_vm14 = vcmp.ge.f32.partialorder %v15889_v63, 0.0  ;;  %vm4908_vm0 = vcmp.ge.f32.partialorder %v15892_v4, 0.0 }
 0x2bc   : > { %v5327_v58 = vadd.f32 0.2548296, %v5295_v0  ;;  %v13450_v0 = vpop.eup %13449  ;;  %vm4909_vm13 = vcmp.ge.f32.partialorder %v15896_v23, 0.0  ;;  %vm4910_vm3 = vcmp.ge.f32.partialorder %v15899_v10, 0.0  ;;  %vm4913_vm4 = vcmp.ge.f32.partialorder %v15902_v5, 0.0 }
 0x2bd   : > { %v5328_v6 = vadd.f32 0.2548296, %v5296_v43  ;;  %vm19432_vm6 = vcmp.ge.f32.partialorder %v15880_v26, 0.0 }
 0x2be   : > { %v5359_v2 = vmul.f32 %v15785_v59, %v5327_v58 }
 0x2bf   : > { %v5360_v54 = vmul.f32 %v15799_v39, %v5328_v6 }
 0x2c0   : > { %v5519_v43 = vmul.f32 %v13448_v25, %v5359_v2  ;;  %v19392_v25 = vmov -1.0  }
 0x2c1   : > { %v5520_v59 = vmul.f32 %v13450_v0, %v5360_v54  ;;  %v15944_v2 = vsel %vm4883_vm8, 1.0, %v19392_v25  ;;  %v15949_v0 = vsel %vm4884_vm9, 1.0, %v19392_v25  ;;  %vm19397_vm8 = vcmp.ge.f32.partialorder %v15825_v42, 0.0 }
 0x2c2   : > { %v5551_v39 = vsub.f32 1.0, %v5519_v43  ;;  %19393 = vst [vmem:[#allocation34_spill] sm:$0xff] %v15944_v2  ;;  %19394 = vst [vmem:[#allocation22_spill] sm:$0xff] %v15949_v0  ;;  %vm19399_vm9 = vcmp.ge.f32.partialorder %v15828_v22, 0.0  ;;  %v16060_v53 = vsel %vm4905_vm7, 1.0, %v19392_v25 }
 0x2c3   : > { %v5552_v58 = vsub.f32 1.0, %v5520_v59  ;;  %v15964_v59 = vsel %vm19397_vm8, 1.0, %v19392_v25  ;;  %vm19405_vm8 = vcmp.ge.f32.partialorder %v15838_v13, 0.0  ;;  %19434 = vst [vmem:[#allocation55_spill] sm:$0xff] %v16060_v53  ;;  %v16080_v53 = vsel %vm4908_vm0, 1.0, %v19392_v25 }
 0x2c4   : > { %v5583_v54 = vmul.f32 %v5551_v39, %v15732_v35  ;;  %v15954_v35 = vsel %vm4885_vm10, 1.0, %v19392_v25  ;;  %19398 = vst [vmem:[#allocation36_spill] sm:$0xff] %v15964_v59  ;;  %v15969_v39 = vsel %vm19399_vm9, 1.0, %v19392_v25  ;;  %vm19401_vm10 = vcmp.ge.f32.partialorder %v15832_v16, 0.0  ;;  %19439 = vst [vmem:[#allocation60_spill] sm:$0xff] %v16080_v53 }
 0x2c5   : > { %v5584_v6 = vmul.f32 %v5552_v58, %v15735_v8  ;;  %19395 = vst [vmem:[#allocation24_spill] sm:$0xff] %v15954_v35  ;;  %v15959_v8 = vsel %vm4886_vm11, 1.0, %v19392_v25  ;;  %19400 = vst [vmem:[#allocation37_spill] sm:$0xff] %v15969_v39  ;;  %vm19403_vm11 = vcmp.ge.f32.partialorder %v15835_v34, 0.0  ;;  %v15984_v36 = vsel %vm19405_vm8, 1.0, %v19392_v25 }
 0x2c6   : > { %v5615_v43 = vadd.f32 1.0, %v5583_v54  ;;  %19396 = vst [vmem:[#allocation35_spill] sm:$0xff] %v15959_v8  ;;  %v15974_v54 = vsel %vm19401_vm10, 1.0, %v19392_v25  ;;  %v15979_v52 = vsel %vm19403_vm11, 1.0, %v19392_v25  ;;  %19406 = vst [vmem:[#allocation40_spill] sm:$0xff] %v15984_v36  ;;  %vm19407_vm9 = vcmp.ge.f32.partialorder %v15842_v38, 0.0 }
 0x2c7   : > { %v5616_v58 = vadd.f32 1.0, %v5584_v6  ;;  %19402 = vst [vmem:[#allocation38_spill] sm:$0xff] %v15974_v54  ;;  %19404 = vst [vmem:[#allocation39_spill] sm:$0xff] %v15979_v52  ;;  %v15990_v6 = vsel %vm19407_vm9, 1.0, %v19392_v25  ;;  %vm19409_vm10 = vcmp.ge.f32.partialorder %v15845_v44, 0.0  ;;  %vm19411_vm11 = vcmp.ge.f32.partialorder %v15848_v46, 0.0 }
 0x2c8   : > { %v5647_v37 = vmul.f32 %v5615_v43, %v15726_v17  ;;  %19408 = vst [vmem:[#allocation41_spill] sm:$0xff] %v15990_v6  ;;  %v15995_v61 = vsel %vm19409_vm10, 1.0, %v19392_v25  ;;  %v16000_v62 = vsel %vm19411_vm11, 1.0, %v19392_v25  ;;  %vm19413_vm8 = vcmp.ge.f32.partialorder %v15851_v33, 0.0 }
 0x2c9   : > { %19410 = vst [vmem:[#allocation42_spill] sm:$0xff] %v15995_v61  ;;  %19412 = vst [vmem:[#allocation43_spill] sm:$0xff] %v16000_v62  ;;  %v5648_v3 = vmul.f32 %v5616_v58, %v15728_v29  ;;  %v16006_v17 = vsel %vm19413_vm8, 1.0, %v19392_v25  ;;  %vm19415_vm9 = vcmp.ge.f32.partialorder %v15854_v19, 0.0  ;;  %vm19417_vm10 = vcmp.ge.f32.partialorder %v15857_v15, 0.0 }
 0x2ca   : > { %19414 = vst [vmem:[#allocation44_spill] sm:$0xff] %v16006_v17  ;;  %v16011_v43 = vsel %vm19415_vm9, 1.0, %v19392_v25  ;;  %v16016_v31 = vsel %vm19417_vm10, 1.0, %v19392_v25  ;;  %v16018_v48 = vpack.c.bf16 %v5647_v37, %v5647_v37  ;;  %vm19420_vm11 = vcmp.ge.f32.partialorder %v15860_v27, 0.0 }
 0x2cb   : > { %19416 = vst [vmem:[#allocation45_spill] sm:$0xff] %v16011_v43  ;;  %19418 = vst [vmem:[#allocation46_spill] sm:$0xff] %v16016_v31  ;;  %v16023_v29 = vsel %vm19420_vm11, 1.0, %v19392_v25  ;;  %vm19422_vm8 = vcmp.ge.f32.partialorder %v15864_v32, 0.0  ;;  %vm19424_vm9 = vcmp.ge.f32.partialorder %v15867_v56, 0.0  ;;  %v12114_v50 = vpack.c.bf16 %v5648_v3, %v5648_v3 }
 0x2cc   : > { %19419 = vst [vmem:[#allocation47_spill] sm:$0xff] %v16018_v48  ;;  %19421 = vst [vmem:[#allocation48_spill] sm:$0xff] %v16023_v29  ;;  %v16028_v58 = vsel %vm19422_vm8, 1.0, %v19392_v25  ;;  %v16033_v57 = vsel %vm19424_vm9, 1.0, %v19392_v25  ;;  %vm19426_vm10 = vcmp.ge.f32.partialorder %v15870_v41, 0.0  ;;  %vm19428_vm11 = vcmp.ge.f32.partialorder %v15874_v18, 0.0 }
 0x2cd   : > { %19423 = vst [vmem:[#allocation49_spill] sm:$0xff] %v16028_v58  ;;  %19425 = vst [vmem:[#allocation50_spill] sm:$0xff] %v16033_v57  ;;  %v16038_v37 = vsel %vm19426_vm10, 1.0, %v19392_v25  ;;  %v16043_v40 = vsel %vm19428_vm11, 1.0, %v19392_v25  ;;  %vm19430_vm8 = vcmp.ge.f32.partialorder %v15877_v12, 0.0  ;;  %v5989_v14 = vshrl.u32 %v16018_v48, 16 }
 0x2ce   : > { %19427 = vst [vmem:[#allocation51_spill] sm:$0xff] %v16038_v37  ;;  %19429 = vst [vmem:[#allocation52_spill] sm:$0xff] %v16043_v40  ;;  %v16048_v45 = vsel %vm19430_vm8, 1.0, %v19392_v25  ;;  %vm4914_vm9 = vcmp.ge.f32.partialorder %v15906_v1, 0.0  ;;  %v16055_v3 = vsel %vm19432_vm6, 1.0, %v19392_v25  ;;  %v5997_v40 = vshrl.u32 %v12114_v50, 16 }
 0x2cf   : > { %19431 = vst [vmem:[#allocation53_spill] sm:$0xff] %v16048_v45  ;;  %19433 = vst [vmem:[#allocation54_spill] sm:$0xff] %v16055_v3  ;;  %v16063_v37 = vmul.f32 0.5, %v15712_v60  ;;  %v16068_v45 = vsel %vm4906_vm15, 1.0, %v19392_v25  ;;  %v16073_v57 = vsel %vm4907_vm14, 1.0, %v19392_v25  ;;  %v16075_v3 = vrot.slane %v5989_v14, 7 }
 0x2d0   : > { %19436 = vst [vmem:[#allocation57_spill] sm:$0xff] %v16068_v45  ;;  %19437 = vst [vmem:[#allocation58_spill] sm:$0xff] %v16073_v57  ;;  %v16085_v60 = vsel %vm4909_vm13, 1.0, %v19392_v25  ;;  %v19442_v14 = vmov 0  ;;  %v5999_v57 = vrot.slane %v5997_v40, 7  ;;  %v6000_v45 = vshll.u32 %v12114_v50, 16 }
 0x2d1   : > { %19435 = vst [vmem:[#allocation56_spill] sm:$0xff] %v16063_v37  ;;  %19438 = vst [vmem:[#allocation59_spill] sm:$0xff] %v16075_v3  ;;  %v16090_v37 = vsel %vm4910_vm3, 1.0, %v19392_v25  ;;  %v6178_v58 = vld [vmem:[#allocation3 + $0xbc] sm:$0x1]  ;;  %v16101_v53 = vsel %vm4913_vm4, 1.0, %v19392_v25 }
 0x2d2   : > { %19440 = vst [vmem:[#allocation61_spill] sm:$0xff] %v16085_v60  ;;  %19441 = vst [vmem:[#allocation62_spill] sm:$0xff] %v16090_v37  ;;  %v16106_v60 = vsel %vm4914_vm9, 1.0, %v19392_v25  ;;  %vm19447_vm13 = vsmask.f32 4368  ;;  %v19448_v37 = vmov 0  ;;  %v6002_v25 = vor.u32 %v6000_v45, %v5999_v57 }
 0x2d3   : > { %vm16094_vm14 = vmand %vm6078_vm12, %vm5747_vm1  ;;  %19445 = vst [vmem:[#allocation64_spill] sm:$0xff] %v16101_v53  ;;  %v5995_v40 = vrot.slane %v16075_v3, 4  ;;  %v6200_v50 = vld [vmem:[#allocation3 + $0xd4] sm:$0x1]  ;;  %v16116_v29 = vmul.f32 0.5, %v15714_v30  ;;  %v16119_v31 = vmul.f32 0.5, %v15716_v28 }
 0x2d4   : > { %v19443_v14 = vsel %vm16094_vm14, 4294967295, %v19442_v14  ;;  %19446 = vst [vmem:[#allocation65_spill] sm:$0xff] %v16106_v60  ;;  %vm16110_vm15 = vmor %vm5747_vm1, %vm19447_vm13  ;;  %v16122_v53 = vmul.f32 0.5, %v15718_v11  ;;  %v6004_v60 = vrot.slane %v5999_v57, 4  ;;  %v16125_v43 = vmul.f32 0.5, %v15720_v9 }
 0x2d5   : > { %19444 = vst [vmem:[#allocation63_spill] sm:$0xff] %v19443_v14  ;;  %v19449_v37 = vsel %vm16110_vm15, 4294967295, %v19448_v37  ;;  %19451 = vst [vmem:[#allocation67_spill] sm:$0xff] %v16116_v29  ;;  %v16128_v17 = vmul.f32 0.5, %v15722_v55  ;;  %vm6072_vm0 = vsmask.f32 7938  ;;  %v6003_v45 = vsel %vm16110_vm15, %v5995_v40, %v6002_v25 }
 0x2d6   : > { %19450 = vst [vmem:[#allocation66_spill] sm:$0xff] %v19449_v37  ;;  %19452 = vst [vmem:[#allocation68_spill] sm:$0xff] %v16119_v31  ;;  %v16132_v30 = vmul.f32 0.5, %v15724_v24  ;;  %v16135_v28 = vand.u32 2147483647, %v15813_v51  ;;  %v6179_v9 = vsel %vm16094_vm14, %v6004_v60, %v6178_v58  ;;  %v6201_v55 = vsel %vm16094_vm14, %v6004_v60, %v6200_v50 }
 0x2d7   : > { %19453 = vst [vmem:[#allocation69_spill] sm:$0xff] %v16122_v53  ;;  %19454 = vst [vmem:[#allocation70_spill] sm:$0xff] %v16125_v43  ;;  %v16138_v11 = vand.u32 2147483647, %v15816_v7  ;;  %v16147_v57 = vand.u32 2147483647, %v15819_v21 }
 0x2d8   : > { %19455 = vst [vmem:[#allocation71_spill] sm:$0xff] %v16128_v17  ;;  %19456 = vst [vmem:[#allocation72_spill] sm:$0xff] %v16132_v30  ;;  %v16150_v51 = vand.u32 2147483647, %v15822_v20  ;;  %v16153_v24 = vand.u32 2147483647, %v15825_v42 }
 0x2d9   : > { %6177 = vst [vmem:[#allocation3 + $0xb8] sm:$0xf] %v6003_v45  ;;  %6180 = vst [vmem:[#allocation3 + $0xbc] sm:$0x1] %v6179_v9  ;;  %v16156_v7 = vand.u32 2147483647, %v15828_v22 }
 0x2da   : > { %6199 = vst [vmem:[#allocation3 + $0xd0] sm:$0xf] %v6003_v45  ;;  %6202 = vst [vmem:[#allocation3 + $0xd4] sm:$0x1] %v6201_v55  ;;  %v16159_v58 = vand.u32 2147483647, %v15832_v16 }
 0x2db   : > { %v16162_v60 = vand.u32 2147483647, %v15835_v34  ;;  %v16165_v21 = vand.u32 2147483647, %v15838_v13  ;;  %v16168_v40 = vand.u32 2147483647, %v15842_v38  ;;  %vm16214_vm1 = vmand %vm6078_vm12, %vm6072_vm0 }
 0x2dc   : > { %v16171_v20 = vand.u32 2147483647, %v15845_v44  ;;  %v16174_v42 = vand.u32 2147483647, %v15848_v46  ;;  %v16177_v22 = vand.u32 2147483647, %v15851_v33 }
 0x2dd   : > { %19457 = vst [vmem:[#allocation73_spill] sm:$0xff] %v16162_v60  ;;  %19458 = vst [vmem:[#allocation74_spill] sm:$0xff] %v16165_v21  ;;  %v16180_v16 = vand.u32 2147483647, %v15854_v19  ;;  %v16183_v34 = vand.u32 2147483647, %v15857_v15 }
 0x2de   : > { %19459 = vst [vmem:[#allocation75_spill] sm:$0xff] %v16168_v40  ;;  %19460 = vst [vmem:[#allocation76_spill] sm:$0xff] %v16171_v20  ;;  %v16186_v13 = vand.u32 2147483647, %v15860_v27  ;;  %v16189_v38 = vand.u32 2147483647, %v15864_v32 }
 0x2df   : > { %19461 = vst [vmem:[#allocation77_spill] sm:$0xff] %v16174_v42  ;;  %19462 = vst [vmem:[#allocation78_spill] sm:$0xff] %v16177_v22  ;;  %v16192_v44 = vand.u32 2147483647, %v15867_v56  ;;  %v16195_v46 = vand.u32 2147483647, %v15870_v41 }
 0x2e0   : > { %19463 = vst [vmem:[#allocation79_spill] sm:$0xff] %v16180_v16  ;;  %19464 = vst [vmem:[#allocation80_spill] sm:$0xff] %v16183_v34  ;;  %v16198_v33 = vand.u32 2147483647, %v15874_v18  ;;  %v16201_v19 = vand.u32 2147483647, %v15877_v12 }
 0x2e1   : > { %19465 = vst [vmem:[#allocation81_spill] sm:$0xff] %v16186_v13  ;;  %19466 = vst [vmem:[#allocation82_spill] sm:$0xff] %v16189_v38  ;;  %v16204_v15 = vand.u32 2147483647, %v15880_v26  ;;  %v16207_v27 = vand.u32 2147483647, %v15883_v49 }
 0x2e2   : > { %19467 = vst [vmem:[#allocation83_spill] sm:$0xff] %v16192_v44  ;;  %19468 = vst [vmem:[#allocation84_spill] sm:$0xff] %v16195_v46  ;;  %v16210_v32 = vand.u32 2147483647, %v15886_v47  ;;  %v19474_v56 = vmov 0  ;;  %vm6071_vm12 = vcmask 1043456  }
 0x2e3   : > { %19469 = vst [vmem:[#allocation85_spill] sm:$0xff] %v16198_v33  ;;  %19470 = vst [vmem:[#allocation86_spill] sm:$0xff] %v16201_v19  ;;  %v19475_v56 = vsel %vm16214_vm1, 4294967295, %v19474_v56  ;;  %v6362_v41 = vld [vmem:[#allocation3 + $0xb8] sm:$0x8] }
 0x2e4   : > { %19471 = vst [vmem:[#allocation87_spill] sm:$0xff] %v16204_v15  ;;  %19472 = vst [vmem:[#allocation88_spill] sm:$0xff] %v16207_v27  ;;  %v6364_v18 = vld [vmem:[#allocation3 + $0xd0] sm:$0x8]  ;;  %v16219_v12 = vand.u32 2147483647, %v15889_v63 }
 0x2e5   : > { %19473 = vst [vmem:[#allocation89_spill] sm:$0xff] %v16210_v32  ;;  %19476 = vst [vmem:[#allocation90_spill] sm:$0xff] %v19475_v56  ;;  %v11811_v50 = vrot.slane %v6362_v41, 11  ;;  %v11813_v26 = vrot.slane %v6364_v18, 11  ;;  %v16222_v25 = vand.u32 2147483647, %v15892_v4 }
 0x2e6   : > { %19477 = vst [vmem:[#allocation91_spill] sm:$0xff] %v16219_v12  ;;  %v16225_v49 = vand.u32 2147483647, %v15896_v23  ;;  %v6483_v47 = vld [vmem:[#allocation3 + $0xbc] sm:$0x1]  ;;  %vm16782_vm3 = vmand %vm6071_vm12, %vm6072_vm0 }
 0x2e7   : > { %19478 = vst [vmem:[#allocation92_spill] sm:$0xff] %v16222_v25  ;;  %v6489_v45 = vld [vmem:[#allocation3 + $0xd4] sm:$0x1]  ;;  %v16228_v9 = vand.u32 2147483647, %v15899_v10  ;;  %v6484_v55 = vsel %vm16214_vm1, %v11811_v50, %v6483_v47 }
 0x2e8   : > { %19479 = vst [vmem:[#allocation93_spill] sm:$0xff] %v16225_v49  ;;  %v6490_v63 = vsel %vm16214_vm1, %v11813_v26, %v6489_v45  ;;  %v16235_v41 = vand.u32 2147483647, %v15902_v5  ;;  %v16238_v4 = vand.u32 2147483647, %v15906_v1 }
 0x2e9   : > { %19480 = vst [vmem:[#allocation94_spill] sm:$0xff] %v16228_v9  ;;  %6485 = vst [vmem:[#allocation3 + $0xbc] sm:$0x1] %v6484_v55  ;;  %v4979_v23 = vmul.f32 0.3275911, %v16135_v28 }
 0x2ea   : > { %19481 = vst [vmem:[#allocation95_spill] sm:$0xff] %v16235_v41  ;;  %19482 = vst [vmem:[#allocation96_spill] sm:$0xff] %v16238_v4  ;;  %v4980_v18 = vmul.f32 0.3275911, %v16138_v11  ;;  %v4981_v10 = vmul.f32 0.3275911, %v16147_v57 }
 0x2eb   : > { %6491 = vst [vmem:[#allocation3 + $0xd4] sm:$0x1] %v6490_v63  ;;  %v4982_v62 = vmul.f32 0.3275911, %v16150_v51  ;;  %v4983_v50 = vmul.f32 0.3275911, %v16153_v24 }
 0x2ec   : > { %v4984_v26 = vmul.f32 0.3275911, %v16156_v7  ;;  %v4985_v5 = vmul.f32 0.3275911, %v16159_v58  ;;  %v4986_v47 = vmul.f32 0.3275911, %v16162_v60 }
 0x2ed   : > { %v4987_v1 = vmul.f32 0.3275911, %v16165_v21  ;;  %v4988_v45 = vmul.f32 0.3275911, %v16168_v40  ;;  %v4989_v55 = vmul.f32 0.3275911, %v16171_v20 }
 0x2ee   : > { %v4990_v63 = vmul.f32 0.3275911, %v16174_v42  ;;  %v4991_v56 = vmul.f32 0.3275911, %v16177_v22  ;;  %v4992_v14 = vmul.f32 0.3275911, %v16180_v16 }
 0x2ef   : > { %v4993_v37 = vmul.f32 0.3275911, %v16183_v34  ;;  %v4994_v30 = vmul.f32 0.3275911, %v16186_v13  ;;  %v4995_v17 = vmul.f32 0.3275911, %v16189_v38 }
 0x2f0   : > { %v4996_v43 = vmul.f32 0.3275911, %v16192_v44  ;;  %v4997_v53 = vmul.f32 0.3275911, %v16195_v46  ;;  %v4998_v31 = vmul.f32 0.3275911, %v16198_v33 }
 0x2f1   : > { %v4999_v29 = vmul.f32 0.3275911, %v16201_v19  ;;  %v5000_v61 = vmul.f32 0.3275911, %v16204_v15  ;;  %v5001_v6 = vmul.f32 0.3275911, %v16207_v27 }
 0x2f2   : > { %v5002_v36 = vmul.f32 0.3275911, %v16210_v32  ;;  %v5003_v52 = vmul.f32 0.3275911, %v16219_v12  ;;  %v5004_v54 = vmul.f32 0.3275911, %v16222_v25 }
 0x2f3   : > { %v5005_v39 = vmul.f32 0.3275911, %v16225_v49  ;;  %v5006_v59 = vmul.f32 0.3275911, %v16228_v9  ;;  %v5009_v8 = vmul.f32 0.3275911, %v16235_v41 }
 0x2f4   : > { %v5010_v35 = vmul.f32 0.3275911, %v16238_v4  ;;  %v5011_v0 = vadd.f32 1.0, %v4979_v23  ;;  %v5012_v2 = vadd.f32 1.0, %v4980_v18  ;;  %v5013_v48 = vadd.f32 1.0, %v4981_v10 }
 0x2f5   : > { %v5014_v3 = vadd.f32 1.0, %v4982_v62  ;;  %v5015_v15 = vadd.f32 1.0, %v4983_v50  ;;  %v5016_v27 = vadd.f32 1.0, %v4984_v26  ;;  %v5017_v19 = vadd.f32 1.0, %v4985_v5 }
 0x2f6   : > { %v5018_v32 = vadd.f32 1.0, %v4986_v47  ;;  %v5019_v33 = vadd.f32 1.0, %v4987_v1  ;;  %v5020_v12 = vadd.f32 1.0, %v4988_v45  ;;  %v5021_v46 = vadd.f32 1.0, %v4989_v55 }
 0x2f7   : > { %v5022_v25 = vadd.f32 1.0, %v4990_v63  ;;  %v5023_v44 = vadd.f32 1.0, %v4991_v56  ;;  %v5024_v49 = vadd.f32 1.0, %v4992_v14  ;;  %v5025_v38 = vadd.f32 1.0, %v4993_v37 }
 0x2f8   : > { %v16270_v9 = vadd.f32 1.0, %v4994_v30  ;;  %v16272_v41 = vadd.f32 1.0, %v4995_v17  ;;  %v16274_v4 = vadd.f32 1.0, %v4996_v43  ;;  %v16276_v23 = vadd.f32 1.0, %v4997_v53 }
 0x2f9   : > { %13451 = vrcp.f32 %v5011_v0  ;;  %v16278_v62 = vadd.f32 1.0, %v4998_v31  ;;  %v16280_v18 = vadd.f32 1.0, %v4999_v29  ;;  %v16282_v10 = vadd.f32 1.0, %v5000_v61 }
 0x2fa   : > { %13453 = vrcp.f32 %v5012_v2  ;;  %v16284_v50 = vadd.f32 1.0, %v5001_v6  ;;  %v16286_v14 = vadd.f32 1.0, %v5002_v36  ;;  %v16288_v37 = vadd.f32 1.0, %v5003_v52 }
 0x2fb   : > { %13455 = vrcp.f32 %v5013_v48  ;;  %v16290_v17 = vadd.f32 1.0, %v5004_v54  ;;  %v16292_v43 = vadd.f32 1.0, %v5005_v39  ;;  %v16294_v53 = vadd.f32 1.0, %v5006_v59 }
 0x2fc   : > { %13457 = vrcp.f32 %v5014_v3  ;;  %v16296_v31 = vadd.f32 1.0, %v5009_v8  ;;  %v16298_v0 = vadd.f32 1.0, %v5010_v35  ;;  %v5363_v61 = vsub.f32 0.0, %v16135_v28 }
 0x2fd   : > { %13459 = vrcp.f32 %v5015_v15  ;;  %v5364_v36 = vsub.f32 0.0, %v16138_v11  ;;  %v5365_v52 = vsub.f32 0.0, %v16147_v57  ;;  %v5366_v48 = vsub.f32 0.0, %v16150_v51 }
 0x2fe   : > { %13461 = vrcp.f32 %v5016_v27  ;;  %v16352_v35 = vmul.f32 %v5363_v61, %v16135_v28 }
 0x2ff   : > { %13463 = vrcp.f32 %v5017_v19  ;;  %v16359_v2 = vmul.f32 %v5364_v36, %v16138_v11  ;;  %v16368_v28 = vmul.f32 %v5366_v48, %v16150_v51  ;;  %v19508_v11 = vsub.f32 0.0, %v16153_v24 }
 0x300   : > { %13465 = vrcp.f32 %v5018_v32  ;;  %19501 = vst [vmem:[#allocation101_spill] sm:$0xff] %v16352_v35 }
 0x301   : > { %13467 = vrcp.f32 %v5019_v33  ;;  %19503 = vst [vmem:[#allocation103_spill] sm:$0xff] %v16359_v2  ;;  %19506 = vst [vmem:[#allocation106_spill] sm:$0xff] %v16368_v28  ;;  %v16376_v36 = vmul.f32 %v19508_v11, %v16153_v24 }
 0x302   : > { %13469 = vrcp.f32 %v5020_v12 }
 0x303   : > { %v16316_v27 = vpop.eup %13451  ;;  %13471 = vrcp.f32 %v5021_v46  ;;  %19509 = vst [vmem:[#allocation108_spill] sm:$0xff] %v16376_v36 }
 0x304   : > { %v16321_v1 = vpop.eup %13453  ;;  %13473 = vrcp.f32 %v5022_v25  ;;  %v5075_v46 = vmul.f32 1.0614054, %v16316_v27 }
 0x305   : > { %v16326_v3 = vpop.eup %13455  ;;  %13475 = vrcp.f32 %v5023_v44  ;;  %v5076_v25 = vmul.f32 1.0614054, %v16321_v1 }
 0x306   : > { %19489 = vst [vmem:[#allocation97_spill] sm:$0xff] %v16326_v3  ;;  %v16331_v6 = vpop.eup %13457  ;;  %13477 = vrcp.f32 %v5024_v49  ;;  %v5077_v44 = vmul.f32 1.0614054, %v16326_v3  ;;  %v5107_v54 = vadd.f32 -1.4531521, %v5075_v46  ;;  %v16365_v46 = vmul.f32 %v5365_v52, %v16147_v57 }
 0x307   : > { %19492 = vst [vmem:[#allocation98_spill] sm:$0xff] %v16331_v6  ;;  %v16336_v39 = vpop.eup %13459  ;;  %13479 = vrcp.f32 %v5025_v38  ;;  %v5078_v49 = vmul.f32 1.0614054, %v16331_v6  ;;  %v5108_v8 = vadd.f32 -1.4531521, %v5076_v25 }
 0x308   : > { %v16341_v59 = vpop.eup %13461  ;;  %13481 = vrcp.f32 %v16270_v9  ;;  %v5079_v38 = vmul.f32 1.0614054, %v16336_v39  ;;  %19505 = vst [vmem:[#allocation105_spill] sm:$0xff] %v16365_v46 }
 0x309   : > { %19497 = vst [vmem:[#allocation99_spill] sm:$0xff] %v16341_v59  ;;  %v16347_v63 = vpop.eup %13463  ;;  %13483 = vrcp.f32 %v16272_v41  ;;  %v5080_v9 = vmul.f32 1.0614054, %v16341_v59  ;;  %v5109_v41 = vadd.f32 -1.4531521, %v5077_v44 }
 0x30a   : > { %19500 = vst [vmem:[#allocation100_spill] sm:$0xff] %v16347_v63  ;;  %v16354_v56 = vpop.eup %13465  ;;  %13485 = vrcp.f32 %v16274_v4  ;;  %v5110_v4 = vadd.f32 -1.4531521, %v5078_v49  ;;  %v5081_v51 = vmul.f32 1.0614054, %v16347_v63 }
 0x30b   : > { %19502 = vst [vmem:[#allocation102_spill] sm:$0xff] %v16354_v56  ;;  %v16361_v47 = vpop.eup %13467  ;;  %13487 = vrcp.f32 %v16276_v23  ;;  %v19510_v23 = vsub.f32 0.0, %v16156_v7  ;;  %v5111_v52 = vadd.f32 -1.4531521, %v5079_v38  ;;  %v5082_v24 = vmul.f32 1.0614054, %v16354_v56 }
 0x30c   : > { %19504 = vst [vmem:[#allocation104_spill] sm:$0xff] %v16361_v47  ;;  %v16370_v61 = vpop.eup %13469  ;;  %13489 = vrcp.f32 %v16278_v62  ;;  %v16388_v62 = vmul.f32 %v16316_v27, %v5107_v54  ;;  %v5112_v44 = vadd.f32 -1.4531521, %v5080_v9  ;;  %v16403_v54 = vmul.f32 %v16326_v3, %v5109_v41 }
 0x30d   : > { %19507 = vst [vmem:[#allocation107_spill] sm:$0xff] %v16370_v61  ;;  %v16381_v25 = vmul.f32 %v19510_v23, %v16156_v7  ;;  %v16383_v57 = vpop.eup %13471  ;;  %13491 = vrcp.f32 %v16280_v18  ;;  %v16395_v7 = vmul.f32 %v16321_v1, %v5108_v8  ;;  %v5083_v18 = vmul.f32 1.0614054, %v16361_v47 }
 0x30e   : > { %19512 = vst [vmem:[#allocation110_spill] sm:$0xff] %v16383_v57  ;;  %v16390_v48 = vpop.eup %13473  ;;  %13493 = vrcp.f32 %v16282_v10  ;;  %v5084_v38 = vmul.f32 1.0614054, %v16370_v61  ;;  %v5085_v10 = vmul.f32 1.0614054, %v16383_v57  ;;  %v16411_v9 = vmul.f32 %v16331_v6, %v5110_v4 }
 0x30f   : > { %19511 = vst [vmem:[#allocation109_spill] sm:$0xff] %v16381_v25  ;;  %19513 = vst [vmem:[#allocation111_spill] sm:$0xff] %v16390_v48  ;;  %v16397_v49 = vpop.eup %13475  ;;  %13495 = vrcp.f32 %v16284_v50  ;;  %v5086_v8 = vmul.f32 1.0614054, %v16390_v48  ;;  %v5113_v12 = vadd.f32 -1.4531521, %v5081_v51  ;;  %v16418_v41 = vmul.f32 %v16336_v39, %v5111_v52 }
 0x310   : > { %19514 = vst [vmem:[#allocation112_spill] sm:$0xff] %v16397_v49  ;;  %v16405_v11 = vpop.eup %13477  ;;  %13497 = vrcp.f32 %v16286_v14  ;;  %v5087_v50 = vmul.f32 1.0614054, %v16397_v49  ;;  %v5114_v19 = vadd.f32 -1.4531521, %v5082_v24  ;;  %v16425_v4 = vmul.f32 %v16341_v59, %v5112_v44 }
 0x311   : > { %19515 = vst [vmem:[#allocation113_spill] sm:$0xff] %v16405_v11  ;;  %v16413_v23 = vpop.eup %13479  ;;  %13499 = vrcp.f32 %v16288_v37  ;;  %v5088_v14 = vmul.f32 1.0614054, %v16405_v11  ;;  %v5115_v51 = vadd.f32 -1.4531521, %v5083_v18 }
 0x312   : > { %19516 = vst [vmem:[#allocation114_spill] sm:$0xff] %v16413_v23  ;;  %v16420_v33 = vpop.eup %13481  ;;  %13501 = vrcp.f32 %v16290_v17  ;;  %v5089_v37 = vmul.f32 1.0614054, %v16413_v23  ;;  %v5116_v29 = vadd.f32 -1.4531521, %v5084_v38  ;;  %v5145_v38 = vmul.f32 %v16347_v63, %v5113_v12 }
 0x313   : > { %19517 = vst [vmem:[#allocation115_spill] sm:$0xff] %v16420_v33  ;;  %v16427_v25 = vpop.eup %13483  ;;  %13503 = vrcp.f32 %v16292_v43  ;;  %v5090_v17 = vmul.f32 1.0614054, %v16420_v33  ;;  %v5117_v15 = vadd.f32 -1.4531521, %v5085_v10  ;;  %v5146_v28 = vmul.f32 %v16354_v56, %v5114_v19 }
 0x314   : > { %19518 = vst [vmem:[#allocation116_spill] sm:$0xff] %v16427_v25  ;;  %v16431_v52 = vpop.eup %13485  ;;  %13505 = vrcp.f32 %v16294_v53  ;;  %v5118_v36 = vadd.f32 -1.4531521, %v5086_v8  ;;  %v5091_v44 = vmul.f32 1.0614054, %v16427_v25  ;;  %v5148_v46 = vmul.f32 %v16370_v61, %v5116_v29 }
 0x315   : > { %19519 = vst [vmem:[#allocation117_spill] sm:$0xff] %v16431_v52  ;;  %v16435_v24 = vpop.eup %13487  ;;  %13507 = vrcp.f32 %v16296_v31  ;;  %v5092_v43 = vmul.f32 1.0614054, %v16431_v52  ;;  %v5119_v30 = vadd.f32 -1.4531521, %v5087_v50  ;;  %v5147_v31 = vmul.f32 %v16361_v47, %v5115_v51 }
 0x316   : > { %19520 = vst [vmem:[#allocation118_spill] sm:$0xff] %v16435_v24  ;;  %v16440_v55 = vpop.eup %13489  ;;  %13509 = vrcp.f32 %v16298_v0  ;;  %v5093_v18 = vmul.f32 1.0614054, %v16435_v24  ;;  %v5120_v53 = vadd.f32 -1.4531521, %v5088_v14  ;;  %v5149_v0 = vmul.f32 %v16383_v57, %v5117_v15 }
 0x317   : > { %19521 = vst [vmem:[#allocation119_spill] sm:$0xff] %v16440_v55  ;;  %v16445_v10 = vpop.eup %13491  ;;  %v5121_v8 = vadd.f32 -1.4531521, %v5089_v37  ;;  %v5094_v50 = vmul.f32 1.0614054, %v16440_v55  ;;  %v5150_v14 = vmul.f32 %v16390_v48, %v5118_v36  ;;  %v5151_v19 = vmul.f32 %v16397_v49, %v5119_v30 }
 0x318   : > { %19522 = vst [vmem:[#allocation120_spill] sm:$0xff] %v16445_v10  ;;  %v16450_v45 = vpop.eup %13493  ;;  %v5122_v5 = vadd.f32 -1.4531521, %v5090_v17  ;;  %v5095_v12 = vmul.f32 1.0614054, %v16445_v10  ;;  %v5152_v32 = vmul.f32 %v16405_v11, %v5120_v53 }
 0x319   : > { %19523 = vst [vmem:[#allocation121_spill] sm:$0xff] %v16450_v45  ;;  %v16455_v2 = vpop.eup %13495  ;;  %v5123_v37 = vadd.f32 -1.4531521, %v5091_v44  ;;  %v5124_v35 = vadd.f32 -1.4531521, %v5092_v43  ;;  %v5153_v44 = vmul.f32 %v16413_v23, %v5121_v8 }
 0x31a   : > { %19524 = vst [vmem:[#allocation122_spill] sm:$0xff] %v16455_v2  ;;  %v16459_v51 = vpop.eup %13497  ;;  %v5096_v29 = vmul.f32 1.0614054, %v16450_v45  ;;  %v5125_v26 = vadd.f32 -1.4531521, %v5093_v18  ;;  %v5154_v53 = vmul.f32 %v16420_v33, %v5122_v5 }
 0x31b   : > { %19525 = vst [vmem:[#allocation123_spill] sm:$0xff] %v16459_v51  ;;  %v16464_v17 = vadd.f32 1.4214138, %v16388_v62  ;;  %v16466_v15 = vpop.eup %13499  ;;  %v5097_v36 = vmul.f32 1.0614054, %v16455_v2  ;;  %v5155_v8 = vmul.f32 %v16427_v25, %v5123_v37 }
 0x31c   : > { %19526 = vst [vmem:[#allocation124_spill] sm:$0xff] %v16466_v15  ;;  %v5098_v13 = vmul.f32 1.0614054, %v16459_v51  ;;  %v16472_v30 = vadd.f32 1.4214138, %v16395_v7  ;;  %v16474_v43 = vpop.eup %13501 }
 0x31d   : > { %19527 = vst [vmem:[#allocation125_spill] sm:$0xff] %v16474_v43  ;;  %v5099_v18 = vmul.f32 1.0614054, %v16466_v15  ;;  %v5126_v34 = vadd.f32 -1.4531521, %v5094_v50  ;;  %v16481_v16 = vpop.eup %13503  ;;  %v5156_v50 = vmul.f32 %v16431_v52, %v5124_v35 }
 0x31e   : > { %v16479_v62 = vadd.f32 1.4214138, %v16403_v54  ;;  %19528 = vst [vmem:[#allocation126_spill] sm:$0xff] %v16481_v16  ;;  %v5100_v22 = vmul.f32 1.0614054, %v16474_v43  ;;  %v16486_v20 = vpop.eup %13505 }
 0x31f   : > { %v5127_v42 = vadd.f32 -1.4531521, %v5095_v12  ;;  %v5174_v7 = vadd.f32 1.4214138, %v16411_v9  ;;  %19529 = vst [vmem:[#allocation127_spill] sm:$0xff] %v16486_v20  ;;  %v16491_v54 = vpop.eup %13507  ;;  %v5157_v12 = vmul.f32 %v16435_v24, %v5125_v26 }
 0x320   : > { %v5101_v40 = vmul.f32 1.0614054, %v16481_v16  ;;  %v5128_v21 = vadd.f32 -1.4531521, %v5096_v29  ;;  %v5175_v5 = vadd.f32 1.4214138, %v16418_v41  ;;  %v16495_v37 = vpop.eup %13509  ;;  %v5158_v29 = vmul.f32 %v16440_v55, %v5126_v34 }
 0x321   : > { %19530 = vst [vmem:[#allocation128_spill] sm:$0xff] %v16491_v54  ;;  %v5102_v60 = vmul.f32 1.0614054, %v16486_v20  ;;  %v5129_v33 = vadd.f32 -1.4531521, %v5097_v36  ;;  %19531 = vst [vmem:[#allocation129_spill] sm:$0xff] %v16495_v37  ;;  %v5159_v41 = vmul.f32 %v16445_v10, %v5127_v42 }
 0x322   : > { %v5130_v23 = vadd.f32 -1.4531521, %v5098_v13  ;;  %v5105_v9 = vmul.f32 1.0614054, %v16491_v54  ;;  %v5131_v25 = vadd.f32 -1.4531521, %v5099_v18  ;;  %v5160_v13 = vmul.f32 %v16450_v45, %v5128_v21 }
 0x323   : > { %v5132_v11 = vadd.f32 -1.4531521, %v5100_v22  ;;  %v5106_v35 = vmul.f32 1.0614054, %v16495_v37  ;;  %v5133_v52 = vadd.f32 -1.4531521, %v5101_v40  ;;  %v5161_v57 = vmul.f32 %v16455_v2, %v5129_v33 }
 0x324   : > { %v5176_v49 = vadd.f32 1.4214138, %v16425_v4  ;;  %v5134_v48 = vadd.f32 -1.4531521, %v5102_v60  ;;  %v5137_v36 = vadd.f32 -1.4531521, %v5105_v9  ;;  %v5162_v18 = vmul.f32 %v16459_v51, %v5130_v23 }
 0x325   : > { %v5177_v26 = vadd.f32 1.4214138, %v5145_v38  ;;  %v5138_v24 = vadd.f32 -1.4531521, %v5106_v35  ;;  %v5178_v22 = vadd.f32 1.4214138, %v5146_v28  ;;  %v5163_v34 = vmul.f32 %v16466_v15, %v5131_v25 }
 0x326   : > { %v5164_v55 = vmul.f32 %v16474_v43, %v5132_v11  ;;  %v5179_v40 = vadd.f32 1.4214138, %v5147_v31  ;;  %v5180_v61 = vadd.f32 1.4214138, %v5148_v46  ;;  %v5165_v42 = vmul.f32 %v16481_v16, %v5133_v52 }
 0x327   : > { %v5181_v4 = vadd.f32 1.4214138, %v5149_v0  ;;  %v5182_v60 = vadd.f32 1.4214138, %v5150_v14  ;;  %v5183_v9 = vadd.f32 1.4214138, %v5151_v19  ;;  %v5166_v21 = vmul.f32 %v16486_v20, %v5134_v48 }
 0x328   : > { %v5169_v38 = vmul.f32 %v16491_v54, %v5137_v36  ;;  %v5184_v35 = vadd.f32 1.4214138, %v5152_v32  ;;  %v5185_v33 = vadd.f32 1.4214138, %v5153_v44  ;;  %v5170_v23 = vmul.f32 %v16495_v37, %v5138_v24 }
 0x329   : > { %v5186_v28 = vadd.f32 1.4214138, %v5154_v53  ;;  %v5187_v51 = vadd.f32 1.4214138, %v5155_v8  ;;  %v5188_v25 = vadd.f32 1.4214138, %v5156_v50  ;;  %v5203_v32 = vmul.f32 %v16316_v27, %v16464_v17 }
 0x32a   : > { %v5189_v15 = vadd.f32 1.4214138, %v5157_v12  ;;  %v5190_v11 = vadd.f32 1.4214138, %v5158_v29  ;;  %v5191_v31 = vadd.f32 1.4214138, %v5159_v41  ;;  %v5204_v53 = vmul.f32 %v16321_v1, %v16472_v30 }
 0x32b   : > { %v19532_v46 = vsub.f32 0.0, %v16159_v58  ;;  %v5192_v0 = vadd.f32 1.4214138, %v5160_v13  ;;  %v5193_v14 = vadd.f32 1.4214138, %v5161_v57  ;;  %v5205_v29 = vmul.f32 %v16326_v3, %v16479_v62  ;;  %v19534_v13 = vld [vmem:[#allocation107_spill] sm:$0xff] }
 0x32c   : > { %v5194_v48 = vadd.f32 1.4214138, %v5162_v18  ;;  %v5195_v19 = vadd.f32 1.4214138, %v5163_v34  ;;  %v5196_v44 = vadd.f32 1.4214138, %v5164_v55  ;;  %v5207_v57 = vmul.f32 %v16336_v39, %v5175_v5 }
 0x32d   : > { %v16514_v52 = vmul.f32 %v19532_v46, %v16159_v58  ;;  %v5197_v24 = vadd.f32 1.4214138, %v5165_v42  ;;  %v5198_v8 = vadd.f32 1.4214138, %v5166_v21  ;;  %v5201_v50 = vadd.f32 1.4214138, %v5169_v38 }
 0x32e   : > { %v5202_v12 = vadd.f32 1.4214138, %v5170_v23  ;;  %v5206_v58 = vmul.f32 %v16331_v6, %v5174_v7  ;;  %v5208_v41 = vmul.f32 %v16341_v59, %v5176_v49  ;;  %v5209_v17 = vmul.f32 %v16347_v63, %v5177_v26  ;;  %v19535_v18 = vld [vmem:[#allocation110_spill] sm:$0xff]  ;;  %v19536_v42 = vld [vmem:[#allocation111_spill] sm:$0xff]  ;;  %v19537_v38 = vld [vmem:[#allocation112_spill] sm:$0xff] }
 0x32f   : > { %19533 = vst [vmem:[#allocation130_spill] sm:$0xff] %v16514_v52  ;;  %v5210_v55 = vmul.f32 %v16354_v56, %v5178_v22  ;;  %v5211_v36 = vmul.f32 %v16361_v47, %v5179_v40  ;;  %v5212_v30 = vmul.f32 %v19534_v13, %v5180_v61  ;;  %v5213_v34 = vmul.f32 %v19535_v18, %v5181_v4  ;;  %v19538_v23 = vld [vmem:[#allocation113_spill] sm:$0xff]  ;;  %v19539_v46 = vld [vmem:[#allocation114_spill] sm:$0xff]  ;;  %v19540_v52 = vld [vmem:[#allocation115_spill] sm:$0xff] }
 0x330   : > { %v5214_v21 = vmul.f32 %v19536_v42, %v5182_v60  ;;  %v5215_v62 = vmul.f32 %v19537_v38, %v5183_v9  ;;  %v5216_v7 = vmul.f32 %v19538_v23, %v5184_v35  ;;  %v5217_v5 = vmul.f32 %v19539_v46, %v5185_v33  ;;  %v19541_v59 = vld [vmem:[#allocation116_spill] sm:$0xff]  ;;  %v19542_v63 = vld [vmem:[#allocation117_spill] sm:$0xff]  ;;  %v19543_v56 = vld [vmem:[#allocation118_spill] sm:$0xff] }
 0x331   : > { %v5218_v49 = vmul.f32 %v19540_v52, %v5186_v28  ;;  %v5219_v26 = vmul.f32 %v19541_v59, %v5187_v51  ;;  %v5220_v22 = vmul.f32 %v19542_v63, %v5188_v25  ;;  %v5221_v40 = vmul.f32 %v19543_v56, %v5189_v15  ;;  %v19544_v47 = vld [vmem:[#allocation119_spill] sm:$0xff]  ;;  %v19546_v33 = vld [vmem:[#allocation124_spill] sm:$0xff] }
 0x332   : > { %v5222_v61 = vmul.f32 %v19544_v47, %v5190_v11  ;;  %v5223_v4 = vmul.f32 %v16445_v10, %v5191_v31  ;;  %v5224_v60 = vmul.f32 %v16450_v45, %v5192_v0  ;;  %v5235_v42 = vadd.f32 -0.28449672, %v5203_v32  ;;  %v19545_v35 = vld [vmem:[#allocation123_spill] sm:$0xff]  ;;  %v19547_v32 = vld [vmem:[#allocation73_spill] sm:$0xff] }
 0x333   : > { %v5225_v9 = vmul.f32 %v16455_v2, %v5193_v14  ;;  %v5226_v23 = vmul.f32 %v19545_v35, %v5194_v48  ;;  %v5227_v46 = vmul.f32 %v19546_v33, %v5195_v19  ;;  %v5236_v28 = vadd.f32 -0.28449672, %v5204_v53 }
 0x334   : > { %v5228_v51 = vmul.f32 %v16474_v43, %v5196_v44  ;;  %v5229_v25 = vmul.f32 %v16481_v16, %v5197_v24  ;;  %v5230_v15 = vmul.f32 %v16486_v20, %v5198_v8  ;;  %v5237_v56 = vadd.f32 -0.28449672, %v5205_v29 }
 0x335   : > { %v5233_v11 = vmul.f32 %v16491_v54, %v5201_v50  ;;  %v5234_v31 = vmul.f32 %v16495_v37, %v5202_v12  ;;  %v5238_v0 = vadd.f32 -0.28449672, %v5206_v58  ;;  %v19548_v14 = vsub.f32 0.0, %v19547_v32 }
 0x336   : > { %v5239_v48 = vadd.f32 -0.28449672, %v5207_v57  ;;  %v5240_v19 = vadd.f32 -0.28449672, %v5208_v41  ;;  %v5241_v53 = vadd.f32 -0.28449672, %v5209_v17  ;;  %v5267_v44 = vmul.f32 %v16316_v27, %v5235_v42 }
 0x337   : > { %v16552_v2 = vmul.f32 %v19548_v14, %v19547_v32  ;;  %v5242_v43 = vadd.f32 -0.28449672, %v5210_v55  ;;  %v5243_v24 = vadd.f32 -0.28449672, %v5211_v36  ;;  %v5244_v16 = vadd.f32 -0.28449672, %v5212_v30 }
 0x338   : > { %v5268_v8 = vmul.f32 %v16321_v1, %v5236_v28  ;;  %v5245_v29 = vadd.f32 -0.28449672, %v5213_v34  ;;  %v5246_v50 = vadd.f32 -0.28449672, %v5214_v21  ;;  %v5247_v54 = vadd.f32 -0.28449672, %v5215_v62 }
 0x339   : > { %19549 = vst [vmem:[#allocation107_spill] sm:$0xff] %v16552_v2  ;;  %v5269_v12 = vmul.f32 %v16326_v3, %v5237_v56  ;;  %v5248_v58 = vadd.f32 -0.28449672, %v5216_v7  ;;  %v5249_v37 = vadd.f32 -0.28449672, %v5217_v5  ;;  %v5270_v32 = vmul.f32 %v16331_v6, %v5238_v0  ;;  %v19550_v14 = vld [vmem:[#allocation99_spill] sm:$0xff] }
 0x33a   : > { %v5250_v20 = vadd.f32 -0.28449672, %v5218_v49  ;;  %v5251_v57 = vadd.f32 -0.28449672, %v5219_v26  ;;  %v5252_v41 = vadd.f32 -0.28449672, %v5220_v22  ;;  %v5271_v42 = vmul.f32 %v16336_v39, %v5239_v48 }
 0x33b   : > { %v5253_v17 = vadd.f32 -0.28449672, %v5221_v40  ;;  %v5254_v55 = vadd.f32 -0.28449672, %v5222_v61  ;;  %v5255_v36 = vadd.f32 -0.28449672, %v5223_v4  ;;  %v5272_v28 = vmul.f32 %v19550_v14, %v5240_v19 }
 0x33c   : > { %v5256_v30 = vadd.f32 -0.28449672, %v5224_v60  ;;  %v5257_v34 = vadd.f32 -0.28449672, %v5225_v9  ;;  %v5258_v21 = vadd.f32 -0.28449672, %v5226_v23  ;;  %v5276_v61 = vmul.f32 %v19534_v13, %v5244_v16 }
 0x33d   : > { %v5259_v62 = vadd.f32 -0.28449672, %v5227_v46  ;;  %v19551_v2 = vld [vmem:[#allocation100_spill] sm:$0xff]  ;;  %v5260_v7 = vadd.f32 -0.28449672, %v5228_v51  ;;  %v19552_v3 = vld [vmem:[#allocation102_spill] sm:$0xff]  ;;  %v5277_v4 = vmul.f32 %v19535_v18, %v5245_v29  ;;  %v5279_v23 = vmul.f32 %v19537_v38, %v5247_v54 }
 0x33e   : > { %v5273_v56 = vmul.f32 %v19551_v2, %v5241_v53  ;;  %v5261_v5 = vadd.f32 -0.28449672, %v5229_v25  ;;  %v5262_v49 = vadd.f32 -0.28449672, %v5230_v15  ;;  %v5274_v0 = vmul.f32 %v19552_v3, %v5242_v43  ;;  %v19553_v40 = vld [vmem:[#allocation104_spill] sm:$0xff]  ;;  %v19554_v60 = vld [vmem:[#allocation111_spill] sm:$0xff] }
 0x33f   : > { %v5265_v26 = vadd.f32 -0.28449672, %v5233_v11  ;;  %v5266_v22 = vadd.f32 -0.28449672, %v5234_v31  ;;  %v5275_v6 = vmul.f32 %v19553_v40, %v5243_v24  ;;  %v5278_v48 = vmul.f32 %v19554_v60, %v5246_v50  ;;  %v19555_v46 = vld [vmem:[#allocation113_spill] sm:$0xff]  ;;  %v19556_v19 = vld [vmem:[#allocation114_spill] sm:$0xff] }
 0x340   : > { %v5280_v9 = vmul.f32 %v19555_v46, %v5248_v58  ;;  %v5281_v51 = vmul.f32 %v19556_v19, %v5249_v37  ;;  %v5282_v25 = vmul.f32 %v19540_v52, %v5250_v20  ;;  %v5283_v43 = vmul.f32 %v19541_v59, %v5251_v57  ;;  %v19557_v11 = vld [vmem:[#allocation118_spill] sm:$0xff]  ;;  %v19559_v58 = vld [vmem:[#allocation125_spill] sm:$0xff]  ;;  %v19561_v59 = vld [vmem:[#allocation127_spill] sm:$0xff] }
 0x341   : > { %v5284_v15 = vmul.f32 %v19542_v63, %v5252_v41  ;;  %v5285_v31 = vmul.f32 %v19557_v11, %v5253_v17  ;;  %v5286_v16 = vmul.f32 %v19544_v47, %v5254_v55  ;;  %v5287_v53 = vmul.f32 %v16445_v10, %v5255_v36  ;;  %v19558_v29 = vld [vmem:[#allocation122_spill] sm:$0xff]  ;;  %v19562_v63 = vld [vmem:[#allocation128_spill] sm:$0xff]  ;;  %v19563_v55 = vld [vmem:[#allocation129_spill] sm:$0xff] }
 0x342   : > { %v5288_v24 = vmul.f32 %v16450_v45, %v5256_v30  ;;  %v5289_v54 = vmul.f32 %v19558_v29, %v5257_v34  ;;  %v5290_v50 = vmul.f32 %v19545_v35, %v5258_v21  ;;  %v5291_v37 = vmul.f32 %v19546_v33, %v5259_v62  ;;  %v19560_v52 = vld [vmem:[#allocation126_spill] sm:$0xff] }
 0x343   : > { %v5292_v20 = vmul.f32 %v19559_v58, %v5260_v7  ;;  %v5293_v57 = vmul.f32 %v19560_v52, %v5261_v5  ;;  %v5294_v41 = vmul.f32 %v19561_v59, %v5262_v49  ;;  %v5297_v17 = vmul.f32 %v19562_v63, %v5265_v26  ;;  %v19564_v21 = vld [vmem:[#allocation74_spill] sm:$0xff]  ;;  %v19567_v49 = vld [vmem:[#allocation75_spill] sm:$0xff] }
 0x344   : > { %v5299_v11 = vadd.f32 0.2548296, %v5267_v44  ;;  %v5298_v47 = vmul.f32 %v19563_v55, %v5266_v22  ;;  %v5300_v36 = vadd.f32 0.2548296, %v5268_v8  ;;  %v5301_v10 = vadd.f32 0.2548296, %v5269_v12 }
 0x345   : > { %v5302_v30 = vadd.f32 0.2548296, %v5270_v32  ;;  %v5303_v45 = vadd.f32 0.2548296, %v5271_v42  ;;  %v5304_v34 = vadd.f32 0.2548296, %v5272_v28 }
 0x346   : > { %v5305_v29 = vadd.f32 0.2548296, %v5273_v56  ;;  %v19565_v62 = vsub.f32 0.0, %v19564_v21  ;;  %v5306_v7 = vadd.f32 0.2548296, %v5274_v0  ;;  %v19568_v26 = vsub.f32 0.0, %v19567_v49 }
 0x347   : > { %v5307_v5 = vadd.f32 0.2548296, %v5275_v6  ;;  %v5308_v52 = vadd.f32 0.2548296, %v5276_v61  ;;  %v5309_v22 = vadd.f32 0.2548296, %v5277_v4  ;;  %v16595_v32 = vmul.f32 %v16316_v27, %v5299_v11 }
 0x348   : > { %v16587_v33 = vmul.f32 %v19565_v62, %v19564_v21  ;;  %v16592_v44 = vmul.f32 %v19568_v26, %v19567_v49  ;;  %v5310_v8 = vadd.f32 0.2548296, %v5278_v48  ;;  %v5311_v12 = vadd.f32 0.2548296, %v5279_v23  ;;  %v19569_v62 = vld [vmem:[#allocation97_spill] sm:$0xff]  ;;  %v19570_v48 = vld [vmem:[#allocation98_spill] sm:$0xff] }
 0x349   : > { %v5312_v42 = vadd.f32 0.2548296, %v5280_v9  ;;  %v5313_v28 = vadd.f32 0.2548296, %v5281_v51  ;;  %v5314_v56 = vadd.f32 0.2548296, %v5282_v25  ;;  %v16598_v21 = vmul.f32 %v16321_v1, %v5300_v36 }
 0x34a   : > { %19566 = vst [vmem:[#allocation110_spill] sm:$0xff] %v16587_v33  ;;  %v5315_v0 = vadd.f32 0.2548296, %v5283_v43  ;;  %v5316_v6 = vadd.f32 0.2548296, %v5284_v15  ;;  %v16601_v33 = vmul.f32 %v19569_v62, %v5301_v10  ;;  %v16604_v23 = vmul.f32 %v19570_v48, %v5302_v30  ;;  %v13333_v51 = vld [vmem:[%s19177_s4 + $0xc0] sm:$0xff]  }
 0x34b   : > { %v5317_v61 = vadd.f32 0.2548296, %v5285_v31  ;;  %v5318_v49 = vadd.f32 0.2548296, %v5286_v16  ;;  %v5319_v26 = vadd.f32 0.2548296, %v5287_v53  ;;  %v16607_v9 = vmul.f32 %v16336_v39, %v5303_v45  ;;  %12702 = vmatprep.subr.bf16.mxu0 %v13333_v51 }
 0x34c   : > { %v5320_v4 = vadd.f32 0.2548296, %v5288_v24  ;;  %v5321_v27 = vadd.f32 0.2548296, %v5289_v54  ;;  %v5322_v11 = vadd.f32 0.2548296, %v5290_v50  ;;  %v16610_v1 = vmul.f32 %v19550_v14, %v5304_v34 }
 0x34d   : > { %v13334_v10 = vld [vmem:[%s19177_s4 + $0x80] sm:$0xff]   ;;  %v5323_v25 = vadd.f32 0.2548296, %v5291_v37  ;;  %v5324_v43 = vadd.f32 0.2548296, %v5292_v20  ;;  %v16619_v31 = vmul.f32 %v19551_v2, %v5305_v29  ;;  %v16622_v14 = vmul.f32 %v19552_v3, %v5306_v7  ;;  %v13335_v2 = vld [vmem:[%s19177_s4 + $0xc8] sm:$0xff]  }
 0x34e   : > { %v5325_v15 = vadd.f32 0.2548296, %v5293_v57  ;;  %v5326_v16 = vadd.f32 0.2548296, %v5294_v41  ;;  %v5329_v39 = vadd.f32 0.2548296, %v5297_v17  ;;  %v16625_v53 = vmul.f32 %v19553_v40, %v5307_v5  ;;  %12703 = vmatpush3.bf16.msra.mxu0 %v13334_v10 }
 0x34f   : > { %v5330_v45 = vadd.f32 0.2548296, %v5298_v47  ;;  %v16628_v24 = vmul.f32 %v19534_v13, %v5308_v52  ;;  %v16631_v54 = vmul.f32 %v19535_v18, %v5309_v22  ;;  %v16634_v50 = vmul.f32 %v19554_v60, %v5310_v8  ;;  %v19571_v13 = vld [vmem:[#allocation115_spill] sm:$0xff]  ;;  %v13336_v40 = vld [vmem:[%s19177_s4 + $0x88] sm:$0xff]   ;;  %v19572_v60 = vld [vmem:[#allocation116_spill] sm:$0xff]  ;;  %12704 = vmatprep.subr.bf16.mxu0 %v13335_v2 }
 0x350   : > { %v16640_v3 = vmul.f32 %v19537_v38, %v5311_v12  ;;  %v16643_v47 = vmul.f32 %v19555_v46, %v5312_v42  ;;  %v16646_v52 = vmul.f32 %v19556_v19, %v5313_v28  ;;  %v16649_v18 = vmul.f32 %v19571_v13, %v5314_v56  ;;  %v19573_v37 = vld [vmem:[#allocation117_spill] sm:$0xff]  ;;  %v19574_v38 = vld [vmem:[#allocation118_spill] sm:$0xff]  ;;  %v19575_v46 = vld [vmem:[#allocation119_spill] sm:$0xff] }
 0x351   : > { %v16655_v29 = vmul.f32 %v19572_v60, %v5315_v0  ;;  %v16658_v20 = vmul.f32 %v19573_v37, %v5316_v6  ;;  %v16661_v57 = vmul.f32 %v19574_v38, %v5317_v61  ;;  %v16664_v41 = vmul.f32 %v19575_v46, %v5318_v49  ;;  %v19576_v19 = vld [vmem:[#allocation120_spill] sm:$0xff]  ;;  %v19577_v36 = vld [vmem:[#allocation121_spill] sm:$0xff]  ;;  %v19578_v34 = vld [vmem:[#allocation122_spill] sm:$0xff] }
 0x352   : > { %v16667_v17 = vmul.f32 %v19576_v19, %v5319_v26  ;;  %v16670_v30 = vmul.f32 %v19577_v36, %v5320_v4  ;;  %v16673_v7 = vmul.f32 %v19578_v34, %v5321_v27  ;;  %v16676_v5 = vmul.f32 %v19545_v35, %v5322_v11  ;;  %v13321_v22 = vld [vmem:[%s19177_s4 + $0x40] sm:$0xff]   ;;  %v19581_v28 = vld [vmem:[#allocation126_spill] sm:$0xff]  ;;  %12705 = vmatpush3.bf16.msra.mxu0 %v13336_v40  ;;  %v19588_v26 = vld [vmem:[#allocation77_spill] sm:$0xff] }
 0x353   : > { %v19579_v8 = vld [vmem:[#allocation124_spill] sm:$0xff]  ;;  %v16685_v42 = vmul.f32 %v19559_v58, %v5324_v43  ;;  %v16688_v56 = vmul.f32 %v19581_v28, %v5325_v15  ;;  %v16691_v0 = vmul.f32 %v19561_v59, %v5326_v16  ;;  %v13339_v6 = vld [vmem:[%s19177_s4 + $0xd0] sm:$0xff]   ;;  %v16700_v61 = vmul.f32 %v19562_v63, %v5329_v39  ;;  %12590 = vmatprep.subr.bf16.mxu1 %v13321_v22  ;;  %v19592_v10 = vld [vmem:[#allocation79_spill] sm:$0xff] }
 0x354   : > { %v16682_v12 = vmul.f32 %v19579_v8, %v5323_v25  ;;  %v13322_v35 = vld [vmem:[%s19177_s4] sm:$0xff]   ;;  %v16703_v58 = vmul.f32 %v19563_v55, %v5330_v45  ;;  %v19589_v4 = vsub.f32 0.0, %v19588_v26  ;;  %v13340_v27 = vld [vmem:[%s19177_s4 + $0x90] sm:$0xff]   ;;  %v19593_v55 = vsub.f32 0.0, %v19592_v10  ;;  %v19596_v39 = vld [vmem:[#allocation81_spill] sm:$0xff]  ;;  %12706 = vmatprep.subr.bf16.mxu0 %v13339_v6 }
 0x355   : > { %19580 = vst [vmem:[#allocation112_spill] sm:$0xff] %v16685_v42  ;;  %19582 = vst [vmem:[#allocation123_spill] sm:$0xff] %v16688_v56  ;;  %v19586_v62 = vld [vmem:[#allocation76_spill] sm:$0xff]  ;;  %v19590_v11 = vld [vmem:[#allocation78_spill] sm:$0xff]  ;;  %v19597_v45 = vsub.f32 0.0, %v19596_v39  ;;  %12591 = vmatpush3.bf16.msra.mxu1 %v13322_v35 }
 0x356   : > { %19583 = vst [vmem:[#allocation73_spill] sm:$0xff] %v16691_v0  ;;  %19584 = vst [vmem:[#allocation99_spill] sm:$0xff] %v16700_v61  ;;  %v19587_v49 = vsub.f32 0.0, %v19586_v62  ;;  %v5406_v48 = vmul.f32 %v19589_v4, %v19588_v26  ;;  %v19591_v63 = vsub.f32 0.0, %v19590_v11  ;;  %v5408_v25 = vmul.f32 %v19593_v55, %v19592_v10  ;;  %v19594_v43 = vld [vmem:[#allocation80_spill] sm:$0xff]  ;;  %v19598_v13 = vld [vmem:[#allocation82_spill] sm:$0xff]  ;;  %12707 = vmatpush3.bf16.msra.mxu0 %v13340_v27 }
 0x357   : > { %19585 = vst [vmem:[#allocation100_spill] sm:$0xff] %v16703_v58  ;;  %v19595_v15 = vsub.f32 0.0, %v19594_v43  ;;  %v5410_v2 = vmul.f32 %v19597_v45, %v19596_v39  ;;  %v19599_v40 = vsub.f32 0.0, %v19598_v13  ;;  %v19600_v37 = vld [vmem:[#allocation83_spill] sm:$0xff]  ;;  %v19602_v19 = vld [vmem:[#allocation101_spill] sm:$0xff]  ;;  %v19604_v28 = vld [vmem:[#allocation84_spill] sm:$0xff] }
 0x358   : > { %v5405_v59 = vmul.f32 %v19587_v49, %v19586_v62  ;;  %v5407_v51 = vmul.f32 %v19591_v63, %v19590_v11  ;;  %v19601_v38 = vsub.f32 0.0, %v19600_v37  ;;  %v5427_v36 = vmul.f32 1.442695, %v19602_v19  ;;  %v19603_v34 = vld [vmem:[#allocation103_spill] sm:$0xff]  ;;  %v13323_v8 = vld [vmem:[%s19177_s4 + $0x48] sm:$0xff]   ;;  %v19609_v10 = vld [vmem:[#allocation106_spill] sm:$0xff] }
 0x359   : > { %v5409_v16 = vmul.f32 %v19595_v15, %v19594_v43  ;;  %v5411_v60 = vmul.f32 %v19599_v40, %v19598_v13  ;;  %v5429_v22 = vmul.f32 1.442695, %v19603_v34  ;;  %v19605_v35 = vsub.f32 0.0, %v19604_v28  ;;  %v19606_v49 = vld [vmem:[#allocation85_spill] sm:$0xff]  ;;  %v19610_v43 = vld [vmem:[#allocation86_spill] sm:$0xff]  ;;  %v19612_v45 = vld [vmem:[#allocation87_spill] sm:$0xff]  ;;  %12592 = vmatprep.subr.bf16.mxu1 %v13323_v8 }
 0x35a   : > { %v5412_v46 = vmul.f32 %v19601_v38, %v19600_v37  ;;  %v19607_v26 = vsub.f32 0.0, %v19606_v49  ;;  %v19608_v11 = vld [vmem:[#allocation105_spill] sm:$0xff]  ;;  %v5433_v55 = vmul.f32 1.442695, %v19609_v10  ;;  %v19611_v15 = vsub.f32 0.0, %v19610_v43  ;;  %v19614_v40 = vld [vmem:[#allocation108_spill] sm:$0xff] }
 0x35b   : > { %v5413_v62 = vmul.f32 %v19605_v35, %v19604_v28  ;;  %v5431_v63 = vmul.f32 1.442695, %v19608_v11  ;;  %v19613_v6 = vsub.f32 0.0, %v19612_v45  ;;  %13511 = vpow2.f32 %v5427_v36  ;;  %v19615_v38 = vld [vmem:[#allocation88_spill] sm:$0xff]  ;;  %v19617_v28 = vld [vmem:[#allocation89_spill] sm:$0xff]  ;;  %v19620_v11 = vld [vmem:[#allocation91_spill] sm:$0xff] }
 0x35c   : > { %v5414_v4 = vmul.f32 %v19607_v26, %v19606_v49  ;;  %v5415_v39 = vmul.f32 %v19611_v15, %v19610_v43  ;;  %v5435_v37 = vmul.f32 1.442695, %v19614_v40  ;;  %v19616_v19 = vsub.f32 0.0, %v19615_v38  ;;  %v19619_v49 = vld [vmem:[#allocation109_spill] sm:$0xff]  ;;  %v19622_v15 = vld [vmem:[#allocation92_spill] sm:$0xff]  ;;  %v19624_v8 = vld [vmem:[#allocation130_spill] sm:$0xff] }
 0x35d   : > { %v5416_v13 = vmul.f32 %v19613_v6, %v19612_v45  ;;  %v19618_v35 = vsub.f32 0.0, %v19617_v28  ;;  %13513 = vpow2.f32 %v5429_v22  ;;  %v5437_v26 = vmul.f32 1.442695, %v19619_v49  ;;  %v19625_v40 = vld [vmem:[#allocation93_spill] sm:$0xff]  ;;  %v19627_v58 = vld [vmem:[#allocation94_spill] sm:$0xff]  ;;  %v19634_v56 = vld [vmem:[#allocation47_spill] sm:$0xff] }
 0x35e   : > { %v5417_v34 = vmul.f32 %v19616_v19, %v19615_v38  ;;  %v19621_v10 = vsub.f32 0.0, %v19620_v11  ;;  %v19623_v36 = vsub.f32 0.0, %v19622_v15  ;;  %13515 = vpow2.f32 %v5431_v63  ;;  %v6174_v61 = vld [vmem:[#allocation3 + $0xb4] sm:$0xf] }
 0x35f   : > { %v5418_v27 = vmul.f32 %v19618_v35, %v19617_v28  ;;  %v5439_v6 = vmul.f32 1.442695, %v19624_v8  ;;  %v19626_v38 = vsub.f32 0.0, %v19625_v40  ;;  %v19628_v22 = vsub.f32 0.0, %v19627_v58  ;;  %v19629_v35 = vld [vmem:[#allocation107_spill] sm:$0xff]  ;;  %v19632_v63 = vld [vmem:[#allocation110_spill] sm:$0xff] }
 0x360   : > { %v5419_v43 = vmul.f32 %v19621_v10, %v19620_v11  ;;  %v5420_v45 = vmul.f32 %v19623_v36, %v19622_v15  ;;  %13517 = vpow2.f32 %v5433_v55  ;;  %v5441_v49 = vmul.f32 1.442695, %v19629_v35  ;;  %v6196_v11 = vld [vmem:[#allocation3 + $0xcc] sm:$0xf]  ;;  %v19630_v10 = vld [vmem:[#allocation95_spill] sm:$0xff] }
 0x361   : > { %v5421_v19 = vmul.f32 %v19626_v38, %v19625_v40  ;;  %v5422_v28 = vmul.f32 %v19628_v22, %v19627_v58  ;;  %v19631_v0 = vsub.f32 0.0, %v19630_v10  ;;  %13519 = vpow2.f32 %v5435_v37  ;;  %v19633_v8 = vld [vmem:[#allocation59_spill] sm:$0xff] }
 0x362   : > { %v5443_v36 = vmul.f32 1.442695, %v19632_v63  ;;  %v19635_v42 = vshll.u32 %v19634_v56, 16  ;;  %13521 = vpow2.f32 %v5437_v26  ;;  %v5445_v55 = vmul.f32 1.442695, %v16592_v44 }
 0x363   : > { %v5425_v15 = vmul.f32 %v19631_v0, %v19630_v10  ;;  %v5447_v38 = vmul.f32 1.442695, %v5405_v59  ;;  %v5449_v22 = vmul.f32 1.442695, %v5406_v48  ;;  %13523 = vpow2.f32 %v5439_v6  ;;  %v13324_v59 = vld [vmem:[%s19177_s4 + $0x8] sm:$0xff]   ;;  %v13325_v48 = vld [vmem:[%s19177_s4 + $0x50] sm:$0xff]  }
 0x364   : > { %v5994_v40 = vor.u32 %v19635_v42, %v19633_v8  ;;  %v5451_v0 = vmul.f32 1.442695, %v5407_v51  ;;  %v5453_v37 = vmul.f32 1.442695, %v5408_v25  ;;  %v5455_v35 = vmul.f32 1.442695, %v5409_v16  ;;  %12593 = vmatpush3.bf16.msra.mxu1 %v13324_v59 }
 0x365   : > { %13525 = vpow2.f32 %v5441_v49  ;;  %v5457_v10 = vmul.f32 1.442695, %v5410_v2  ;;  %v5459_v63 = vmul.f32 1.442695, %v5411_v60  ;;  %v16787_v56 = vmul.f32 1.442695, %v5412_v46  ;;  %12594 = vmatprep.subr.bf16.mxu1 %v13325_v48 }
 0x366   : > { %13527 = vpow2.f32 %v5443_v36  ;;  %v16789_v42 = vmul.f32 1.442695, %v5413_v62  ;;  %v6175_v8 = vsel %vm16782_vm3, %v5994_v40, %v6174_v61  ;;  %v6197_v44 = vsel %vm16782_vm3, %v5994_v40, %v6196_v11  ;;  %v13512_v61 = vpop.eup %13511  ;;  %v19638_v2 = vld [vmem:[#allocation96_spill] sm:$0xff]  ;;  %v19640_v59 = vld [vmem:[#allocation34_spill] sm:$0xff] }
 0x367   : > { %13529 = vpow2.f32 %v5445_v55  ;;  %v16801_v51 = vmul.f32 1.442695, %v5414_v4  ;;  %v16803_v25 = vmul.f32 1.442695, %v5415_v39  ;;  %v16805_v16 = vmul.f32 1.442695, %v5416_v13  ;;  %v13514_v39 = vpop.eup %13513 }
 0x368   : > { %6176 = vst [vmem:[#allocation3 + $0xb4] sm:$0xf] %v6175_v8  ;;  %6198 = vst [vmem:[#allocation3 + $0xcc] sm:$0xf] %v6197_v44  ;;  %v19639_v60 = vsub.f32 0.0, %v19638_v2  ;;  %13531 = vpow2.f32 %v5447_v38  ;;  %v13326_v4 = vld [vmem:[%s19177_s4 + $0x10] sm:$0xff]   ;;  %v5491_v49 = vmul.f32 %v13512_v61, %v16595_v32  ;;  %v13516_v11 = vpop.eup %13515 }
 0x369   : > { %v16810_v62 = vmul.f32 1.442695, %v5417_v34  ;;  %v16812_v26 = vmul.f32 1.442695, %v5418_v27  ;;  %13533 = vpow2.f32 %v5449_v22  ;;  %v16817_v13 = vmul.f32 1.442695, %v5419_v43  ;;  %12595 = vmatpush3.bf16.msra.mxu1 %v13326_v4 }
 0x36a   : > { %v5426_v46 = vmul.f32 %v19639_v60, %v19638_v2  ;;  %v16819_v6 = vmul.f32 1.442695, %v5420_v45  ;;  %v13327_v34 = vld [vmem:[%s19177_s4 + $0x58] sm:$0xff]   ;;  %13535 = vpow2.f32 %v5451_v0  ;;  %v16828_v36 = vmul.f32 1.442695, %v5421_v19  ;;  %v13343_v45 = vld [vmem:[%s19177_s4 + $0xe0] sm:$0xff]   ;;  %v13518_v55 = vpop.eup %13517 }
 0x36b   : > { %v13341_v27 = vld [vmem:[%s19177_s4 + $0xd8] sm:$0xff]   ;;  %v16830_v40 = vmul.f32 1.442695, %v5422_v28  ;;  %v5492_v43 = vmul.f32 %v13514_v39, %v16598_v21  ;;  %13537 = vpow2.f32 %v5453_v37  ;;  %v16839_v38 = vmul.f32 1.442695, %v5425_v15  ;;  %v13520_v28 = vpop.eup %13519  ;;  %v13344_v15 = vld [vmem:[%s19177_s4 + $0xa0] sm:$0xff]   ;;  %12596 = vmatprep.subr.bf16.mxu1 %v13327_v34 }
 0x36c   : > { %v13342_v32 = vld [vmem:[%s19177_s4 + $0x98] sm:$0xff]   ;;  %v5493_v22 = vmul.f32 %v13516_v11, %v16601_v33  ;;  %v5523_v19 = vsub.f32 1.0, %v5491_v49  ;;  %12708 = vmatprep.subr.bf16.mxu0 %v13341_v27  ;;  %13539 = vpow2.f32 %v5455_v35  ;;  %v16842_v0 = vmul.f32 1.442695, %v5426_v46  ;;  %v13522_v33 = vpop.eup %13521  ;;  %v13345_v61 = vld [vmem:[%s19177_s4 + $0xe8] sm:$0xff]   ;;  %v19642_v34 = vld [vmem:[#allocation24_spill] sm:$0xff] }
 0x36d   : > { %v5494_v21 = vmul.f32 %v13518_v55, %v16604_v23  ;;  %v5524_v8 = vsub.f32 1.0, %v5492_v43  ;;  %v13328_v44 = vld [vmem:[%s19177_s4 + $0x18] sm:$0xff]   ;;  %12709 = vmatpush3.bf16.msra.mxu0 %v13342_v32  ;;  %13541 = vpow2.f32 %v5457_v10  ;;  %v5495_v37 = vmul.f32 %v13520_v28, %v16607_v9  ;;  %v13329_v23 = vld [vmem:[%s19177_s4 + $0x60] sm:$0xff]   ;;  %v13524_v2 = vpop.eup %13523  ;;  %v19641_v9 = vld [vmem:[#allocation22_spill] sm:$0xff] }
 0x36e   : > { %v5525_v35 = vsub.f32 1.0, %v5493_v22  ;;  %v16853_v48 = vmul.f32 %v5523_v19, %v19640_v59  ;;  %12710 = vmatprep.subr.bf16.mxu0 %v13343_v45  ;;  %13543 = vpow2.f32 %v5459_v63  ;;  %v5496_v10 = vmul.f32 %v13522_v33, %v16610_v1  ;;  %v19643_v1 = vld [vmem:[#allocation35_spill] sm:$0xff]  ;;  %12597 = vmatpush3.bf16.msra.mxu1 %v13328_v44  ;;  %v19644_v55 = vld [vmem:[#allocation36_spill] sm:$0xff]  ;;  %v13331_v19 = vld [vmem:[%s19177_s4 + $0x68] sm:$0xff]  }
 0x36f   : > { %v5526_v60 = vsub.f32 1.0, %v5494_v21  ;;  %v16863_v46 = vmul.f32 %v5524_v8, %v19641_v9  ;;  %v13526_v4 = vpop.eup %13525  ;;  %13545 = vpow2.f32 %v16787_v56  ;;  %v5497_v39 = vmul.f32 %v13524_v2, %v16619_v31  ;;  %v13330_v56 = vld [vmem:[%s19177_s4 + $0x20] sm:$0xff]   ;;  %v13346_v31 = vld [vmem:[%s19177_s4 + $0xa8] sm:$0xff]   ;;  %12598 = vmatprep.subr.bf16.mxu1 %v13329_v23  ;;  %v13349_v28 = vld [vmem:[%s19177_s4 + $0xf0] sm:$0xff]  }
 0x370   : > { %v5527_v49 = vsub.f32 1.0, %v5495_v37  ;;  %v16868_v27 = vmul.f32 %v5525_v35, %v19642_v34  ;;  %v13528_v11 = vpop.eup %13527  ;;  %13547 = vpow2.f32 %v16789_v42  ;;  %v5498_v63 = vmul.f32 %v13526_v4, %v16622_v14  ;;  %v19645_v8 = vld [vmem:[#allocation37_spill] sm:$0xff]  ;;  %v19646_v35 = vld [vmem:[#allocation38_spill] sm:$0xff] }
 0x371   : > { %v5528_v43 = vsub.f32 1.0, %v5496_v10  ;;  %v16873_v32 = vmul.f32 %v5526_v60, %v19643_v1  ;;  %12711 = vmatpush3.bf16.msra.mxu0 %v13344_v15  ;;  %v13530_v45 = vpop.eup %13529  ;;  %13549 = vpow2.f32 %v16801_v51  ;;  %v5499_v42 = vmul.f32 %v13528_v11, %v16625_v53  ;;  %v19648_v60 = vld [vmem:[#allocation40_spill] sm:$0xff]  ;;  %v13337_v4 = vld [vmem:[%s19177_s4 + $0x70] sm:$0xff]   ;;  %v19649_v34 = vld [vmem:[#allocation41_spill] sm:$0xff] }
 0x372   : > { %v5529_v14 = vsub.f32 1.0, %v5497_v39  ;;  %v16884_v22 = vmul.f32 %v5527_v49, %v19644_v55  ;;  %12712 = vmatprep.subr.bf16.mxu0 %v13345_v61  ;;  %v13532_v21 = vpop.eup %13531  ;;  %13551 = vpow2.f32 %v16803_v25  ;;  %v5500_v51 = vmul.f32 %v13530_v45, %v16628_v24  ;;  %v19647_v24 = vld [vmem:[#allocation39_spill] sm:$0xff]  ;;  %12599 = vmatpush3.bf16.msra.mxu1 %v13330_v56  ;;  %v19650_v56 = vld [vmem:[#allocation42_spill] sm:$0xff] }
 0x373   : > { %v5530_v53 = vsub.f32 1.0, %v5498_v63  ;;  %v16895_v44 = vmul.f32 %v5528_v43, %v19645_v8  ;;  %v13534_v15 = vpop.eup %13533  ;;  %13553 = vpow2.f32 %v16805_v16  ;;  %v5501_v33 = vmul.f32 %v13532_v21, %v16631_v54  ;;  %v13332_v16 = vld [vmem:[%s19177_s4 + $0x28] sm:$0xff]   ;;  %v13350_v54 = vld [vmem:[%s19177_s4 + $0xb0] sm:$0xff]   ;;  %12600 = vmatprep.subr.bf16.mxu1 %v13331_v19  ;;  %v13351_v39 = vld [vmem:[%s19177_s4 + $0xf8] sm:$0xff]  }
 0x374   : > { %v5531_v37 = vsub.f32 1.0, %v5499_v42  ;;  %v16900_v59 = vmul.f32 %v5529_v14, %v19646_v35  ;;  %v13536_v23 = vpop.eup %13535  ;;  %13555 = vpow2.f32 %v16810_v62  ;;  %v5502_v25 = vmul.f32 %v13534_v15, %v16634_v50  ;;  %v19652_v19 = vld [vmem:[#allocation44_spill] sm:$0xff]  ;;  %v13347_v21 = vld [vmem:[%s19177_s4 + $0x78] sm:$0xff]   ;;  %v19653_v15 = vld [vmem:[#allocation45_spill] sm:$0xff] }
 0x375   : > { %v5532_v61 = vsub.f32 1.0, %v5500_v51  ;;  %v16905_v2 = vmul.f32 %v5530_v53, %v19647_v24  ;;  %12713 = vmatpush3.bf16.msra.mxu0 %v13346_v31  ;;  %v13538_v10 = vpop.eup %13537  ;;  %13557 = vpow2.f32 %v16812_v26  ;;  %v5503_v62 = vmul.f32 %v13536_v23, %v16640_v3  ;;  %v19654_v35 = vld [vmem:[#allocation46_spill] sm:$0xff] }
 0x376   : > { %v5533_v50 = vsub.f32 1.0, %v5501_v33  ;;  %v16916_v9 = vmul.f32 %v5531_v37, %v19648_v60  ;;  %12714 = vmatprep.subr.bf16.mxu0 %v13349_v28  ;;  %v13540_v49 = vpop.eup %13539  ;;  %13559 = vpow2.f32 %v16817_v13  ;;  %v5504_v26 = vmul.f32 %v13538_v10, %v16643_v47  ;;  %v19651_v47 = vld [vmem:[#allocation43_spill] sm:$0xff]  ;;  %12601 = vmatpush3.bf16.msra.mxu1 %v13332_v16 }
 0x377   : > { %v5534_v3 = vsub.f32 1.0, %v5502_v25  ;;  %v16927_v11 = vmul.f32 %v5532_v61, %v19649_v34  ;;  %v13542_v63 = vpop.eup %13541  ;;  %13561 = vpow2.f32 %v16819_v6  ;;  %v5505_v43 = vmul.f32 %v13540_v49, %v16646_v52  ;;  %v13338_v6 = vld [vmem:[%s19177_s4 + $0x30] sm:$0xff]   ;;  %v13352_v52 = vld [vmem:[%s19177_s4 + $0xb8] sm:$0xff]   ;;  %12602 = vmatprep.subr.bf16.mxu1 %v13337_v4 }
 0x378   : > { %v5535_v1 = vsub.f32 1.0, %v5503_v62  ;;  %v16932_v31 = vmul.f32 %v5533_v50, %v19650_v56  ;;  %v13544_v45 = vpop.eup %13543  ;;  %13563 = vpow2.f32 %v16828_v36  ;;  %v5506_v13 = vmul.f32 %v13542_v63, %v16649_v18  ;;  %v19656_v62 = vld [vmem:[#allocation49_spill] sm:$0xff]  ;;  %v19657_v49 = vld [vmem:[#allocation50_spill] sm:$0xff] }
 0x379   : > { %v5536_v42 = vsub.f32 1.0, %v5504_v26  ;;  %v16937_v14 = vmul.f32 %v5534_v3, %v19651_v47  ;;  %12715 = vmatpush3.bf16.msra.mxu0 %v13350_v54  ;;  %v13546_v55 = vpop.eup %13545  ;;  %13565 = vpow2.f32 %v16830_v40  ;;  %v5507_v36 = vmul.f32 %v13544_v45, %v16655_v29 }
 0x37a   : > { %v5537_v18 = vsub.f32 1.0, %v5505_v43  ;;  %v16948_v28 = vmul.f32 %v5535_v1, %v19652_v19  ;;  %12716 = vmatprep.subr.bf16.mxu0 %v13351_v39  ;;  %v13548_v51 = vpop.eup %13547  ;;  %13567 = vpow2.f32 %v16839_v38  ;;  %v5508_v53 = vmul.f32 %v13546_v55, %v16658_v20  ;;  %v19655_v38 = vld [vmem:[#allocation48_spill] sm:$0xff]  ;;  %12603 = vmatpush3.bf16.msra.mxu1 %v13338_v6 }
 0x37b   : > { %v5538_v8 = vsub.f32 1.0, %v5506_v13  ;;  %v16956_v40 = vmul.f32 %v5536_v42, %v19653_v15  ;;  %v13550_v29 = vpop.eup %13549  ;;  %13569 = vpow2.f32 %v16842_v0  ;;  %v5509_v33 = vmul.f32 %v13548_v51, %v16661_v57  ;;  %v13348_v0 = vld [vmem:[%s19177_s4 + $0x38] sm:$0xff]   ;;  %12604 = vmatprep.subr.bf16.mxu1 %v13347_v21 }
 0x37c   : > { %v5539_v37 = vsub.f32 1.0, %v5507_v36  ;;  %v16961_v23 = vmul.f32 %v5537_v18, %v19654_v35  ;;  %v13552_v25 = vpop.eup %13551  ;;  %v5510_v61 = vmul.f32 %v13550_v29, %v16664_v41  ;;  %v5540_v24 = vsub.f32 1.0, %v5508_v53  ;;  %v19661_v18 = vld [vmem:[#allocation112_spill] sm:$0xff] }
 0x37d   : > { %v16965_v16 = vmul.f32 %v5538_v8, %v19655_v38  ;;  %v16968_v20 = vadd.f32 1.0, %v16853_v48  ;;  %12717 = vmatpush3.bf16.msra.mxu0 %v13352_v52  ;;  %v13554_v57 = vpop.eup %13553  ;;  %v5511_v54 = vmul.f32 %v13552_v25, %v16667_v17  ;;  %v5541_v10 = vsub.f32 1.0, %v5509_v33  ;;  %v13356_v48 = vld [vmem:[%s19177_s4 + $0x140] sm:$0xff]   ;;  %v19664_v33 = vld [vmem:[#allocation55_spill] sm:$0xff]  ;;  %v19665_v25 = vld [vmem:[#allocation73_spill] sm:$0xff] }
 0x37e   : > { %v5571_v50 = vmul.f32 %v5539_v37, %v19656_v62  ;;  %v16976_v41 = vadd.f32 1.0, %v16863_v46  ;;  %v13556_v60 = vpop.eup %13555  ;;  %v5512_v4 = vmul.f32 %v13554_v57, %v16670_v30  ;;  %v5542_v39 = vsub.f32 1.0, %v5510_v61  ;;  %v19658_v46 = vld [vmem:[#allocation51_spill] sm:$0xff]  ;;  %v19659_v30 = vld [vmem:[#allocation52_spill] sm:$0xff]  ;;  %12605 = vmatpush3.bf16.msra.mxu1 %v13348_v0  ;;  %v19668_v62 = vld [vmem:[#allocation58_spill] sm:$0xff] }
 0x37f   : > { %v5572_v26 = vmul.f32 %v5540_v24, %v19657_v49  ;;  %v16984_v3 = vadd.f32 1.0, %v16868_v27  ;;  %v13558_v17 = vpop.eup %13557  ;;  %v5513_v34 = vmul.f32 %v13556_v60, %v16673_v7  ;;  %v5543_v63 = vsub.f32 1.0, %v5511_v54  ;;  %v19660_v7 = vld [vmem:[#allocation53_spill] sm:$0xff]  ;;  %12814 = vmatprep.subr.bf16.mxu1 %v13356_v48  ;;  %v19667_v54 = vld [vmem:[#allocation99_spill] sm:$0xff] }
 0x380   : > { %v5573_v43 = vmul.f32 %v5541_v10, %v19658_v46  ;;  %v16989_v1 = vadd.f32 1.0, %v16873_v32  ;;  %v13560_v56 = vpop.eup %13559  ;;  %v5514_v45 = vmul.f32 %v13558_v17, %v16676_v5  ;;  %v5544_v13 = vsub.f32 1.0, %v5512_v4  ;;  %v19662_v5 = vld [vmem:[#allocation54_spill] sm:$0xff]  ;;  %v19666_v24 = vld [vmem:[#allocation57_spill] sm:$0xff]  ;;  %v19669_v4 = vld [vmem:[#allocation100_spill] sm:$0xff] }
 0x381   : > { %v5574_v42 = vmul.f32 %v5542_v39, %v19659_v30  ;;  %v5591_v47 = vadd.f32 1.0, %v16884_v22  ;;  %v13562_v27 = vpop.eup %13561  ;;  %v5515_v6 = vmul.f32 %v13560_v56, %v16682_v12  ;;  %v5545_v52 = vsub.f32 1.0, %v5513_v34  ;;  %v19663_v22 = vld [vmem:[#allocation123_spill] sm:$0xff]  ;;  %v19671_v46 = vld [vmem:[#allocation61_spill] sm:$0xff]  ;;  %v19672_v30 = vld [vmem:[#allocation62_spill] sm:$0xff] }
 0x382   : > { %v5575_v55 = vmul.f32 %v5543_v63, %v19660_v7  ;;  %v5592_v36 = vadd.f32 1.0, %v16895_v44  ;;  %v13564_v32 = vpop.eup %13563  ;;  %v5516_v19 = vmul.f32 %v13562_v27, %v19661_v18  ;;  %v5546_v21 = vsub.f32 1.0, %v5514_v45 }
 0x383   : > { %v5576_v51 = vmul.f32 %v5544_v13, %v19662_v5  ;;  %v5593_v53 = vadd.f32 1.0, %v16900_v59  ;;  %v13566_v8 = vpop.eup %13565  ;;  %v5517_v15 = vmul.f32 %v13564_v32, %v19663_v22  ;;  %v5547_v29 = vsub.f32 1.0, %v5515_v6 }
 0x384   : > { %v5577_v12 = vmul.f32 %v5545_v52, %v19664_v33  ;;  %v5594_v37 = vadd.f32 1.0, %v16905_v2  ;;  %v13568_v35 = vpop.eup %13567  ;;  %v5518_v44 = vmul.f32 %v13566_v8, %v19665_v25  ;;  %v5548_v61 = vsub.f32 1.0, %v5516_v19  ;;  %v19670_v2 = vld [vmem:[#allocation60_spill] sm:$0xff]  ;;  %v19674_v19 = vld [vmem:[#allocation65_spill] sm:$0xff] }
 0x385   : > { %v5578_v38 = vmul.f32 %v5546_v21, %v19666_v24  ;;  %v5595_v0 = vadd.f32 1.0, %v16916_v9  ;;  %v13570_v57 = vpop.eup %13569  ;;  %v5521_v10 = vmul.f32 %v13568_v35, %v19667_v54  ;;  %v5549_v59 = vsub.f32 1.0, %v5517_v15  ;;  %v19673_v52 = vld [vmem:[#allocation64_spill] sm:$0xff] }
 0x386   : > { %v5579_v48 = vmul.f32 %v5547_v29, %v19668_v62  ;;  %v5596_v60 = vadd.f32 1.0, %v16927_v11  ;;  %v5522_v39 = vmul.f32 %v13570_v57, %v19669_v4  ;;  %v5550_v49 = vsub.f32 1.0, %v5518_v44  ;;  %v19675_v44 = vld [vmem:[#allocation26_spill] sm:$0xff]  ;;  %v19680_v24 = vld [vmem:[#allocation28_spill] sm:$0xff]  ;;  %v19681_v57 = vld [vmem:[#allocation11_spill] sm:$0xff] }
 0x387   : > { %v5580_v17 = vmul.f32 %v5548_v61, %v19670_v2  ;;  %v5597_v34 = vadd.f32 1.0, %v16932_v31  ;;  %v5553_v63 = vsub.f32 1.0, %v5521_v10  ;;  %v5581_v56 = vmul.f32 %v5549_v59, %v19671_v46  ;;  %v19682_v10 = vld [vmem:[#allocation12_spill] sm:$0xff]  ;;  %v19683_v62 = vld [vmem:[#allocation13_spill] sm:$0xff]  ;;  %v19689_v46 = vld [vmem:[#allocation23_spill] sm:$0xff] }
 0x388   : > { %v5598_v9 = vadd.f32 1.0, %v16937_v14  ;;  %v5599_v45 = vadd.f32 1.0, %v16948_v28  ;;  %v5554_v13 = vsub.f32 1.0, %v5522_v39  ;;  %v5582_v27 = vmul.f32 %v5550_v49, %v19672_v30  ;;  %v19685_v39 = vld [vmem:[#allocation15_spill] sm:$0xff]  ;;  %v19686_v49 = vld [vmem:[#allocation16_spill] sm:$0xff]  ;;  %v19692_v30 = vld [vmem:[#allocation17_spill] sm:$0xff] }
 0x389   : > { %v5600_v6 = vadd.f32 1.0, %v16956_v40  ;;  %v5601_v11 = vadd.f32 1.0, %v16961_v23  ;;  %v5585_v7 = vmul.f32 %v5553_v63, %v19673_v52  ;;  %v5602_v32 = vadd.f32 1.0, %v16965_v16  ;;  %v19676_v16 = vld [vmem:[#allocation21_spill] sm:$0xff]  ;;  %v19688_v63 = vld [vmem:[#allocation19_spill] sm:$0xff]  ;;  %v19694_v52 = vld [vmem:[#allocation18_spill] sm:$0xff] }
 0x38a   : > { %v5603_v18 = vadd.f32 1.0, %v5571_v50  ;;  %v5604_v31 = vadd.f32 1.0, %v5572_v26  ;;  %v5586_v21 = vmul.f32 %v5554_v13, %v19674_v19  ;;  %v5605_v5 = vadd.f32 1.0, %v5573_v43  ;;  %v19677_v26 = vld [vmem:[#allocation9_spill] sm:$0xff]  ;;  %v19696_v19 = vld [vmem:[#allocation32_spill] sm:$0xff] }
 0x38b   : > { %v5606_v8 = vadd.f32 1.0, %v5574_v42  ;;  %v5607_v14 = vadd.f32 1.0, %v5575_v55  ;;  %v5608_v22 = vadd.f32 1.0, %v5576_v51  ;;  %v5609_v28 = vadd.f32 1.0, %v5577_v12  ;;  %v19678_v42 = vld [vmem:[#allocation27_spill] sm:$0xff]  ;;  %v19679_v51 = vld [vmem:[#allocation10_spill] sm:$0xff] }
 0x38c   : > { %v5610_v15 = vadd.f32 1.0, %v5578_v38  ;;  %v5611_v29 = vadd.f32 1.0, %v5579_v48  ;;  %v5612_v33 = vadd.f32 1.0, %v5580_v17  ;;  %v5613_v35 = vadd.f32 1.0, %v5581_v56  ;;  %v19690_v56 = vld [vmem:[#allocation20_spill] sm:$0xff]  ;;  %v19691_v13 = vld [vmem:[#allocation29_spill] sm:$0xff] }
 0x38d   : > { %v5614_v40 = vadd.f32 1.0, %v5582_v27  ;;  %v5617_v25 = vadd.f32 1.0, %v5585_v7  ;;  %v5618_v23 = vadd.f32 1.0, %v5586_v21  ;;  %v5619_v61 = vmul.f32 %v16968_v20, %v19675_v44  ;;  %v19684_v20 = vld [vmem:[#allocation14_spill] sm:$0xff]  ;;  %v19695_v7 = vld [vmem:[#allocation31_spill] sm:$0xff]  ;;  %v19697_v21 = vld [vmem:[#allocation33_spill] sm:$0xff] }
 0x38e   : > { %v5620_v50 = vmul.f32 %v16976_v41, %v19676_v16  ;;  %v5621_v43 = vmul.f32 %v16984_v3, %v19677_v26  ;;  %v5622_v55 = vmul.f32 %v16989_v1, %v19678_v42  ;;  %v5623_v12 = vmul.f32 %v5591_v47, %v19679_v51  ;;  %v19687_v3 = vld [vmem:[#allocation25_spill] sm:$0xff]  ;;  %v19693_v27 = vld [vmem:[#allocation30_spill] sm:$0xff]  ;;  %v19698_v44 = vld [vmem:[#allocation56_spill] sm:$0xff] }
 0x38f   : > { %v5624_v38 = vmul.f32 %v5592_v36, %v19680_v24  ;;  %v5625_v54 = vmul.f32 %v5593_v53, %v19681_v57  ;;  %v5626_v59 = vmul.f32 %v5594_v37, %v19682_v10  ;;  %v5627_v48 = vmul.f32 %v5595_v0, %v19683_v62  ;;  %v19699_v16 = vld [vmem:[#allocation67_spill] sm:$0xff]  ;;  %v19700_v26 = vld [vmem:[#allocation68_spill] sm:$0xff]  ;;  %v19701_v42 = vld [vmem:[#allocation69_spill] sm:$0xff] }
 0x390   : > { %v5628_v4 = vmul.f32 %v5596_v60, %v19684_v20  ;;  %v5629_v41 = vmul.f32 %v5597_v34, %v19685_v39  ;;  %v5630_v2 = vmul.f32 %v5598_v9, %v19686_v49  ;;  %v5631_v17 = vmul.f32 %v5599_v45, %v19687_v3  ;;  %v19702_v51 = vld [vmem:[#allocation70_spill] sm:$0xff]  ;;  %v19703_v24 = vld [vmem:[#allocation71_spill] sm:$0xff]  ;;  %v19704_v57 = vld [vmem:[#allocation72_spill] sm:$0xff] }
 0x391   : > { %v5632_v1 = vmul.f32 %v5600_v6, %v19688_v63  ;;  %v5633_v47 = vmul.f32 %v5601_v11, %v19689_v46  ;;  %v5634_v36 = vmul.f32 %v5602_v32, %v19690_v56  ;;  %v5635_v53 = vmul.f32 %v5603_v18, %v19691_v13 }
 0x392   : > { %v5636_v37 = vmul.f32 %v5604_v31, %v19692_v30  ;;  %v5637_v0 = vmul.f32 %v5605_v5, %v19693_v27  ;;  %v5638_v60 = vmul.f32 %v5606_v8, %v19694_v52  ;;  %v5639_v34 = vmul.f32 %v5607_v14, %v19695_v7 }
 0x393   : > { %v5640_v9 = vmul.f32 %v5608_v22, %v19696_v19  ;;  %v5641_v45 = vmul.f32 %v5609_v28, %v19697_v21  ;;  %v5642_v6 = vmul.f32 %v5610_v15, %v19698_v44  ;;  %v5643_v11 = vmul.f32 %v5611_v29, %v19699_v16 }
 0x394   : > { %v5644_v32 = vmul.f32 %v5612_v33, %v19700_v26  ;;  %v5645_v18 = vmul.f32 %v5613_v35, %v19701_v42  ;;  %v5646_v31 = vmul.f32 %v5614_v40, %v19702_v51  ;;  %v5649_v5 = vmul.f32 %v5617_v25, %v19703_v24  ;;  %v6164_v26 = vld [vmem:[#allocation3 + $0xa4] sm:$0x1] }
 0x395   : > { %v5650_v8 = vmul.f32 %v5618_v23, %v19704_v57  ;;  %v12085_v10 = vpack.c.bf16 %v5619_v61, %v5619_v61  ;;  %v12086_v14 = vpack.c.bf16 %v5620_v50, %v5620_v50  ;;  %v12087_v62 = vpack.c.bf16 %v5621_v43, %v5621_v43 }
 0x396   : > { %v12088_v22 = vpack.c.bf16 %v5622_v55, %v5622_v55  ;;  %v12089_v20 = vpack.c.bf16 %v5623_v12, %v5623_v12  ;;  %v12090_v28 = vpack.c.bf16 %v5624_v38, %v5624_v38  ;;  %v17055_v39 = vpack.c.bf16 %v5625_v54, %v5625_v54 }
 0x397   : > { %v17057_v15 = vpack.c.bf16 %v5626_v59, %v5626_v59  ;;  %v17059_v29 = vpack.c.bf16 %v5627_v48, %v5627_v48  ;;  %v17061_v33 = vpack.c.bf16 %v5628_v4, %v5628_v4  ;;  %v17063_v35 = vpack.c.bf16 %v5629_v41, %v5629_v41 }
 0x398   : > { %v17065_v40 = vpack.c.bf16 %v5630_v2, %v5630_v2  ;;  %v17067_v25 = vpack.c.bf16 %v5631_v17, %v5631_v17  ;;  %v17069_v23 = vpack.c.bf16 %v5632_v1, %v5632_v1  ;;  %v17071_v61 = vpack.c.bf16 %v5633_v47, %v5633_v47 }
 0x399   : > { %v17073_v50 = vpack.c.bf16 %v5634_v36, %v5634_v36  ;;  %v17075_v43 = vpack.c.bf16 %v5635_v53, %v5635_v53  ;;  %v17077_v55 = vpack.c.bf16 %v5636_v37, %v5636_v37  ;;  %v17079_v12 = vpack.c.bf16 %v5637_v0, %v5637_v0 }
 0x39a   : > { %v17081_v38 = vpack.c.bf16 %v5638_v60, %v5638_v60  ;;  %v17083_v54 = vpack.c.bf16 %v5639_v34, %v5639_v34  ;;  %v17085_v59 = vpack.c.bf16 %v5640_v9, %v5640_v9  ;;  %v17087_v48 = vpack.c.bf16 %v5641_v45, %v5641_v45 }
 0x39b   : > { %v17089_v4 = vpack.c.bf16 %v5642_v6, %v5642_v6  ;;  %v17091_v41 = vpack.c.bf16 %v5643_v11, %v5643_v11  ;;  %v17093_v49 = vpack.c.bf16 %v5644_v32, %v5644_v32  ;;  %v17095_v2 = vpack.c.bf16 %v5645_v18, %v5645_v18 }
 0x39c   : > { %v17097_v3 = vpack.c.bf16 %v5646_v31, %v5646_v31  ;;  %v17099_v17 = vpack.c.bf16 %v5649_v5, %v5649_v5  ;;  %v17101_v63 = vpack.c.bf16 %v5650_v8, %v5650_v8  ;;  %v5751_v1 = vshrl.u32 %v12085_v10, 16 }
 0x39d   : > { %v5754_v46 = vshll.u32 %v12085_v10, 16  ;;  %v5759_v47 = vshrl.u32 %v12086_v14, 16  ;;  %v5762_v56 = vshll.u32 %v12086_v14, 16  ;;  %v5768_v36 = vshrl.u32 %v12087_v62, 16 }
 0x39e   : > { %v5771_v13 = vshll.u32 %v12087_v62, 16  ;;  %v5776_v53 = vshrl.u32 %v12088_v22, 16  ;;  %v5753_v30 = vrot.slane %v5751_v1, 7  ;;  %v5779_v27 = vshll.u32 %v12088_v22, 16  ;;  %v6129_v62 = vld [vmem:[#allocation3 + $0x68] sm:$0x1] }
 0x39f   : > { %v17103_v37 = vrot.slane %v5759_v47, 7  ;;  %v5785_v0 = vshrl.u32 %v12089_v20, 16  ;;  %v5770_v52 = vrot.slane %v5768_v36, 7  ;;  %v5788_v7 = vshll.u32 %v12089_v20, 16 }
 0x3a0   : > { %v17105_v60 = vrot.slane %v5776_v53, 7  ;;  %v5793_v34 = vshrl.u32 %v12090_v28, 16  ;;  %v17107_v19 = vor.u32 %v5754_v46, %v5753_v30  ;;  %v5757_v9 = vrot.slane %v5753_v30, 4  ;;  %v6125_v30 = vld [vmem:[#allocation3 + $0x60] sm:$0xf] }
 0x3a1   : > { %v5764_v21 = vor.u32 %v5762_v56, %v17103_v37  ;;  %v5766_v45 = vrot.slane %v17103_v37, 4  ;;  %v17111_v44 = vor.u32 %v5771_v13, %v5770_v52  ;;  %v5774_v6 = vrot.slane %v5770_v52, 4 }
 0x3a2   : > { %19705 = vst [vmem:[#allocation102_spill] sm:$0xff] %v17105_v60  ;;  %v5781_v16 = vor.u32 %v5779_v27, %v17105_v60  ;;  %v19296_v11 = vrot.slane %v17105_v60, 4  ;;  %v5787_v42 = vrot.slane %v5785_v0, 7  ;;  %v17117_v18 = vrot.slane %v5793_v34, 7  ;;  %v6150_v60 = vld [vmem:[#allocation3 + $0x8c] sm:$0x1] }
 0x3a3   : > { %v5765_v32 = vsel %vm16110_vm15, %v5757_v9, %v5764_v21  ;;  %v5796_v51 = vshll.u32 %v12090_v28, 16  ;;  %v5802_v24 = vshrl.u32 %v17055_v39, 16  ;;  %v5805_v5 = vshll.u32 %v17055_v39, 16 }
 0x3a4   : > { %v5782_v31 = vsel %vm16110_vm15, %v5774_v6, %v5781_v16  ;;  %v5810_v57 = vshrl.u32 %v17057_v15, 16  ;;  %6077 = vst [vmem:[#allocation3 + $0x10] sm:$0xf] %v5765_v32  ;;  %v17124_v8 = vor.u32 %v5788_v7, %v5787_v42  ;;  %v5791_v10 = vrot.slane %v5787_v42, 4 }
 0x3a5   : > { %v5798_v14 = vor.u32 %v5796_v51, %v17117_v18  ;;  %6086 = vst [vmem:[#allocation3 + $0x1c] sm:$0xf] %v5782_v31  ;;  %6191 = vst [vmem:[#allocation3 + $0x4] sm:$0xf] %v5782_v31  ;;  %v5804_v22 = vrot.slane %v5802_v24, 7  ;;  %v5813_v28 = vshll.u32 %v17057_v15, 16 }
 0x3a6   : > { %v17128_v20 = vrot.slane %v5810_v57, 7  ;;  %v5819_v1 = vshrl.u32 %v17059_v29, 16  ;;  %v5822_v46 = vshll.u32 %v17059_v29, 16  ;;  %v5827_v47 = vshrl.u32 %v17061_v33, 16 }
 0x3a7   : > { %v5799_v39 = vsel %vm16110_vm15, %v5791_v10, %v5798_v14  ;;  %v5830_v56 = vshll.u32 %v17061_v33, 16  ;;  %v17137_v36 = vor.u32 %v5805_v5, %v5804_v22  ;;  %v5808_v13 = vrot.slane %v5804_v22, 4 }
 0x3a8   : > { %v5815_v53 = vor.u32 %v5813_v28, %v17128_v20  ;;  %6093 = vst [vmem:[#allocation3 + $0x28] sm:$0xf] %v5799_v39  ;;  %v5821_v15 = vrot.slane %v5819_v1, 7  ;;  %v17141_v27 = vrot.slane %v5827_v47, 7  ;;  %v5836_v0 = vshrl.u32 %v17063_v35, 16 }
 0x3a9   : > { %v5839_v52 = vshll.u32 %v17063_v35, 16  ;;  %v5844_v33 = vshrl.u32 %v17065_v40, 16  ;;  %v5847_v7 = vshll.u32 %v17065_v40, 16  ;;  %v5853_v34 = vshrl.u32 %v17067_v25, 16 }
 0x3aa   : > { %v5816_v29 = vsel %vm16110_vm15, %v5808_v13, %v5815_v53  ;;  %v17150_v9 = vor.u32 %v5822_v46, %v5821_v15  ;;  %v5825_v21 = vrot.slane %v5821_v15, 4  ;;  %v5832_v6 = vor.u32 %v5830_v56, %v17141_v27 }
 0x3ab   : > { %6100 = vst [vmem:[#allocation3 + $0x34] sm:$0xf] %v5816_v29  ;;  %v5838_v32 = vrot.slane %v5836_v0, 7  ;;  %v17154_v42 = vrot.slane %v5844_v33, 7  ;;  %v5855_v35 = vrot.slane %v5853_v34, 7  ;;  %v5856_v51 = vshll.u32 %v17067_v25, 16 }
 0x3ac   : > { %v5833_v31 = vsel %vm16110_vm15, %v5825_v21, %v5832_v6  ;;  %v5861_v40 = vshrl.u32 %v17069_v23, 16  ;;  %v5864_v24 = vshll.u32 %v17069_v23, 16  ;;  %v5870_v5 = vshrl.u32 %v17071_v61, 16  ;;  %v13381_v6 = vld [vmem:[%s19177_s4 + $0x1c0] sm:$0xff]  }
 0x3ad   : > { %v17162_v57 = vor.u32 %v5839_v52, %v5838_v32  ;;  %v5842_v10 = vrot.slane %v5838_v32, 4  ;;  %v5849_v14 = vor.u32 %v5847_v7, %v17154_v42  ;;  %6107 = vst [vmem:[#allocation3 + $0x40] sm:$0xf] %v5833_v31  ;;  %v17166_v28 = vor.u32 %v5856_v51, %v5855_v35  ;;  %12926 = vmatprep.subr.bf16.mxu0 %v13381_v6 }
 0x3ae   : > { %v5859_v25 = vrot.slane %v5855_v35, 4  ;;  %v17168_v1 = vrot.slane %v5861_v40, 7  ;;  %v5872_v39 = vrot.slane %v5870_v5, 7  ;;  %v5873_v23 = vshll.u32 %v17071_v61, 16  ;;  %v6122_v35 = vld [vmem:[#allocation3 + $0x5c] sm:$0x1] }
 0x3af   : > { %v5850_v46 = vsel %vm16110_vm15, %v5842_v10, %v5849_v14  ;;  %v5878_v47 = vshrl.u32 %v17073_v50, 16  ;;  %v5881_v56 = vshll.u32 %v17073_v50, 16  ;;  %v5887_v0 = vshrl.u32 %v17075_v43, 16  ;;  %v6118_v14 = vld [vmem:[#allocation3 + $0x54] sm:$0xf] }
 0x3b0   : > { %v5866_v13 = vor.u32 %v5864_v24, %v17168_v1  ;;  %v5876_v15 = vrot.slane %v5872_v39, 4  ;;  %6114 = vst [vmem:[#allocation3 + $0x4c] sm:$0xf] %v5850_v46  ;;  %v17178_v52 = vor.u32 %v5873_v23, %v5872_v39  ;;  %v5890_v33 = vshll.u32 %v17075_v43, 16 }
 0x3b1   : > { %v17180_v29 = vrot.slane %v5878_v47, 7  ;;  %v5895_v61 = vshrl.u32 %v17077_v55, 16  ;;  %v5889_v50 = vrot.slane %v5887_v0, 7  ;;  %v5898_v34 = vshll.u32 %v17077_v55, 16 }
 0x3b2   : > { %v5867_v7 = vsel %vm16110_vm15, %v5859_v25, %v5866_v13  ;;  %v5904_v21 = vshrl.u32 %v17079_v12, 16  ;;  %v5907_v43 = vshll.u32 %v17079_v12, 16  ;;  %v5912_v55 = vshrl.u32 %v17081_v38, 16 }
 0x3b3   : > { %v5883_v32 = vor.u32 %v5881_v56, %v17180_v29  ;;  %v17193_v51 = vrot.slane %v5895_v61, 7  ;;  %6121 = vst [vmem:[#allocation3 + $0x58] sm:$0xf] %v5867_v7  ;;  %v17196_v31 = vor.u32 %v5890_v33, %v5889_v50  ;;  %v5893_v40 = vrot.slane %v5889_v50, 4 }
 0x3b4   : > { %v5906_v24 = vrot.slane %v5904_v21, 7  ;;  %v5915_v25 = vshll.u32 %v17081_v38, 16  ;;  %v17206_v46 = vrot.slane %v5912_v55, 7  ;;  %v5921_v23 = vshrl.u32 %v17083_v54, 16  ;;  %v6111_v38 = vld [vmem:[#allocation3 + $0x48] sm:$0xf] }
 0x3b5   : > { %v5884_v5 = vsel %vm16110_vm15, %v5876_v15, %v5883_v32  ;;  %v5900_v10 = vor.u32 %v5898_v34, %v17193_v51  ;;  %v5924_v56 = vshll.u32 %v17083_v54, 16  ;;  %v5929_v13 = vshrl.u32 %v17085_v59, 16 }
 0x3b6   : > { %v17204_v39 = vor.u32 %v5907_v43, %v5906_v24  ;;  %v5910_v12 = vrot.slane %v5906_v24, 4  ;;  %6128 = vst [vmem:[#allocation3 + $0x64] sm:$0xf] %v5884_v5  ;;  %v5932_v15 = vshll.u32 %v17085_v59, 16  ;;  %v5917_v0 = vor.u32 %v5915_v25, %v17206_v46 }
 0x3b7   : > { %v5901_v47 = vsel %vm16110_vm15, %v5893_v40, %v5900_v10  ;;  %v5923_v33 = vrot.slane %v5921_v23, 7  ;;  %v5938_v61 = vshrl.u32 %v17087_v48, 16  ;;  %v17217_v7 = vrot.slane %v5929_v13, 7  ;;  %v6104_v40 = vld [vmem:[#allocation3 + $0x3c] sm:$0xf] }
 0x3b8   : > { %6135 = vst [vmem:[#allocation3 + $0x70] sm:$0xf] %v5901_v47  ;;  %v5941_v50 = vshll.u32 %v17087_v48, 16  ;;  %v5946_v34 = vshrl.u32 %v17089_v4, 16  ;;  %v5949_v54 = vshll.u32 %v17089_v4, 16  ;;  %v5918_v21 = vsel %vm16110_vm15, %v5910_v12, %v5917_v0 }
 0x3b9   : > { %v17224_v59 = vor.u32 %v5924_v56, %v5923_v33  ;;  %v5927_v6 = vrot.slane %v5923_v33, 4  ;;  %v5940_v32 = vrot.slane %v5938_v61, 7  ;;  %v5934_v43 = vor.u32 %v5932_v15, %v17217_v7  ;;  %6142 = vst [vmem:[#allocation3 + $0x7c] sm:$0xf] %v5918_v21  ;;  %v6074_v33 = vld [vmem:[#allocation3 + $0xc] sm:$0xf] }
 0x3ba   : > { %v17228_v24 = vrot.slane %v5946_v34, 7  ;;  %v5955_v55 = vshrl.u32 %v17091_v41, 16  ;;  %v5958_v4 = vshll.u32 %v17091_v41, 16  ;;  %v5963_v10 = vshrl.u32 %v17093_v49, 16  ;;  %v6083_v41 = vld [vmem:[#allocation3 + $0x18] sm:$0xf] }
 0x3bb   : > { %v17231_v48 = vor.u32 %v5941_v50, %v5940_v32  ;;  %v5944_v5 = vrot.slane %v5940_v32, 4  ;;  %v5935_v25 = vsel %vm16110_vm15, %v5927_v6, %v5934_v43  ;;  %v5966_v13 = vshll.u32 %v17093_v49, 16  ;;  %v6087_v61 = vld [vmem:[#allocation3 + $0x20] sm:$0x1]  ;;  %v6080_v6 = vld [vmem:[#allocation3 + $0x14] sm:$0x1] }
 0x3bc   : > { %v5951_v12 = vor.u32 %v5949_v54, %v17228_v24  ;;  %v5957_v47 = vrot.slane %v5955_v55, 7  ;;  %v17239_v56 = vrot.slane %v5963_v10, 7  ;;  %v5972_v15 = vshrl.u32 %v17095_v2, 16  ;;  %6149 = vst [vmem:[#allocation3 + $0x88] sm:$0xf] %v5935_v25 }
 0x3bd   : > { %v5975_v0 = vshll.u32 %v17095_v2, 16  ;;  %v5980_v21 = vshrl.u32 %v17097_v3, 16  ;;  %v5983_v2 = vshll.u32 %v17097_v3, 16  ;;  %v6097_v55 = vld [vmem:[#allocation3 + $0x30] sm:$0xf] }
 0x3be   : > { %v5952_v50 = vsel %vm16110_vm15, %v5944_v5, %v5951_v12  ;;  %v17246_v34 = vor.u32 %v5958_v4, %v5957_v47  ;;  %v5961_v54 = vrot.slane %v5957_v47, 4  ;;  %v5968_v32 = vor.u32 %v5966_v13, %v17239_v56  ;;  %v6090_v10 = vld [vmem:[#allocation3 + $0x24] sm:$0xf]  ;;  %v6094_v25 = vld [vmem:[#allocation3 + $0x2c] sm:$0x1] }
 0x3bf   : > { %v5974_v43 = vrot.slane %v5972_v15, 7  ;;  %6156 = vst [vmem:[#allocation3 + $0x94] sm:$0xf] %v5952_v50  ;;  %v17252_v23 = vrot.slane %v5980_v21, 7  ;;  %v6006_v5 = vshrl.u32 %v17099_v17, 16  ;;  %v6009_v4 = vshll.u32 %v17099_v17, 16 }
 0x3c0   : > { %v6014_v12 = vshrl.u32 %v17101_v63, 16  ;;  %v6101_v47 = vld [vmem:[#allocation3 + $0x38] sm:$0x1]  ;;  %v6108_v13 = vld [vmem:[#allocation3 + $0x44] sm:$0x1]  ;;  %v5969_v15 = vsel %vm16110_vm15, %v5961_v54, %v5968_v32  ;;  %v6017_v50 = vshll.u32 %v17101_v63, 16  ;;  %v6081_v32 = vsel %vm16094_vm14, %v5766_v45, %v6080_v6 }
 0x3c1   : > { %v17259_v49 = vor.u32 %v5975_v0, %v5974_v43  ;;  %v5978_v3 = vrot.slane %v5974_v43, 4  ;;  %v6115_v21 = vld [vmem:[#allocation3 + $0x50] sm:$0x1]  ;;  %v5985_v53 = vor.u32 %v5983_v2, %v17252_v23  ;;  %v6008_v22 = vrot.slane %v6006_v5, 7  ;;  %6163 = vst [vmem:[#allocation3 + $0xa0] sm:$0xf] %v5969_v15 }
 0x3c2   : > { %v17264_v16 = vrot.slane %v6014_v12, 7  ;;  %v6132_v54 = vld [vmem:[#allocation3 + $0x6c] sm:$0xf]  ;;  %v6075_v0 = vsel %vm16782_vm3, %v17107_v19, %v6074_v33  ;;  %v6084_v43 = vsel %vm16782_vm3, %v17111_v44, %v6083_v41  ;;  %v6088_v2 = vsel %vm16094_vm14, %v19296_v11, %v6087_v61  ;;  %v6139_v5 = vld [vmem:[#allocation3 + $0x78] sm:$0xf] }
 0x3c3   : > { %v6143_v12 = vld [vmem:[#allocation3 + $0x80] sm:$0x1]  ;;  %v6136_v15 = vld [vmem:[#allocation3 + $0x74] sm:$0x1]  ;;  %v6146_v17 = vld [vmem:[#allocation3 + $0x84] sm:$0xf]  ;;  %v5986_v19 = vsel %vm16110_vm15, %v5978_v3, %v5985_v53  ;;  %v17282_v37 = vor.u32 %v6009_v4, %v6008_v22  ;;  %v6091_v11 = vsel %vm16782_vm3, %v17124_v8, %v6090_v10  ;;  %v6098_v4 = vsel %vm16782_vm3, %v17137_v36, %v6097_v55 }
 0x3c4   : > { %v6012_v33 = vrot.slane %v6008_v22, 4  ;;  %v6019_v45 = vor.u32 %v6017_v50, %v17264_v16  ;;  %6076 = vst [vmem:[#allocation3 + $0xc] sm:$0xf] %v6075_v0  ;;  %6082 = vst [vmem:[#allocation3 + $0x14] sm:$0x1] %v6081_v32  ;;  %v6021_v61 = vrot.slane %v17264_v16, 4  ;;  %v6105_v10 = vsel %vm16782_vm3, %v17150_v9, %v6104_v40 }
 0x3c5   : > { %6085 = vst [vmem:[#allocation3 + $0x18] sm:$0xf] %v6084_v43  ;;  %6089 = vst [vmem:[#allocation3 + $0x20] sm:$0x1] %v6088_v2  ;;  %v6153_v41 = vld [vmem:[#allocation3 + $0x90] sm:$0xf] }
 0x3c6   : > { %v6157_v6 = vld [vmem:[#allocation3 + $0x98] sm:$0x1]  ;;  %v19708_v53 = vrot.slane %v17117_v18, 4  ;;  %6170 = vst [vmem:[#allocation3 + $0xac] sm:$0xf] %v5986_v19  ;;  %v6020_v16 = vsel %vm16110_vm15, %v6012_v33, %v6019_v45  ;;  %v19709_v8 = vrot.slane %v17128_v20, 4 }
 0x3c7   : > { %v6167_v3 = vld [vmem:[#allocation3 + $0xa8] sm:$0xf]  ;;  %v6160_v50 = vld [vmem:[#allocation3 + $0x9c] sm:$0xf]  ;;  %v6171_v0 = vld [vmem:[#allocation3 + $0xb0] sm:$0x1] }
 0x3c8   : > { %v6095_v22 = vsel %vm16094_vm14, %v19708_v53, %v6094_v25  ;;  %6092 = vst [vmem:[#allocation3 + $0x24] sm:$0xf] %v6091_v11  ;;  %6099 = vst [vmem:[#allocation3 + $0x30] sm:$0xf] %v6098_v4  ;;  %v6102_v18 = vsel %vm16094_vm14, %v19709_v8, %v6101_v47  ;;  %v19710_v36 = vrot.slane %v17141_v27, 4  ;;  %v6112_v11 = vsel %vm16782_vm3, %v17162_v57, %v6111_v38 }
 0x3c9   : > { %6096 = vst [vmem:[#allocation3 + $0x2c] sm:$0x1] %v6095_v22  ;;  %v6188_v25 = vld [vmem:[#allocation3] sm:$0xf]  ;;  %6103 = vst [vmem:[#allocation3 + $0x38] sm:$0x1] %v6102_v18  ;;  %v6119_v27 = vsel %vm16782_vm3, %v17166_v28, %v6118_v14 }
 0x3ca   : > { %v6109_v55 = vsel %vm16094_vm14, %v19710_v36, %v6108_v13  ;;  %6106 = vst [vmem:[#allocation3 + $0x3c] sm:$0xf] %v6105_v10  ;;  %v19711_v20 = vrot.slane %v17154_v42, 4  ;;  %v19712_v9 = vrot.slane %v17168_v1, 4  ;;  %6184 = vst [vmem:[#allocation3 + $0xc4] sm:$0xf] %v6020_v16  ;;  %v6126_v42 = vsel %vm16782_vm3, %v17178_v52, %v6125_v30 }
 0x3cb   : > { %6110 = vst [vmem:[#allocation3 + $0x44] sm:$0x1] %v6109_v55  ;;  %v6181_v13 = vld [vmem:[#allocation3 + $0xc0] sm:$0xf]  ;;  %v6185_v32 = vld [vmem:[#allocation3 + $0xc8] sm:$0x1]  ;;  %v6133_v1 = vsel %vm16782_vm3, %v17196_v31, %v6132_v54  ;;  %v6140_v30 = vsel %vm16782_vm3, %v17204_v39, %v6139_v5  ;;  %v6154_v39 = vsel %vm16782_vm3, %v17231_v48, %v6153_v41 }
 0x3cc   : > { %v6116_v47 = vsel %vm16094_vm14, %v19711_v20, %v6115_v21  ;;  %v6123_v40 = vsel %vm16094_vm14, %v19712_v9, %v6122_v35  ;;  %6113 = vst [vmem:[#allocation3 + $0x48] sm:$0xf] %v6112_v11  ;;  %6120 = vst [vmem:[#allocation3 + $0x54] sm:$0xf] %v6119_v27  ;;  %v19713_v57 = vrot.slane %v17180_v29, 4  ;;  %v19714_v35 = vrot.slane %v17193_v51, 4 }
 0x3cd   : > { %6117 = vst [vmem:[#allocation3 + $0x50] sm:$0x1] %v6116_v47  ;;  %6124 = vst [vmem:[#allocation3 + $0x5c] sm:$0x1] %v6123_v40  ;;  %v6192_v38 = vld [vmem:[#allocation3 + $0x8] sm:$0x1]  ;;  %v6147_v29 = vsel %vm16782_vm3, %v17224_v59, %v6146_v17 }
 0x3ce   : > { %v6130_v28 = vsel %vm16094_vm14, %v19713_v57, %v6129_v62  ;;  %v6137_v14 = vsel %vm16094_vm14, %v19714_v35, %v6136_v15  ;;  %6127 = vst [vmem:[#allocation3 + $0x60] sm:$0xf] %v6126_v42  ;;  %6134 = vst [vmem:[#allocation3 + $0x6c] sm:$0xf] %v6133_v1  ;;  %v19715_v62 = vrot.slane %v17206_v46, 4  ;;  %v19716_v51 = vrot.slane %v17217_v7, 4 }
 0x3cf   : > { %6131 = vst [vmem:[#allocation3 + $0x68] sm:$0x1] %v6130_v28  ;;  %6138 = vst [vmem:[#allocation3 + $0x74] sm:$0x1] %v6137_v14  ;;  %v6218_v21 = vld [vmem:[#allocation3 + $0xb4] sm:$0x2]  ;;  %v6161_v7 = vsel %vm16782_vm3, %v17246_v34, %v6160_v50  ;;  %v6186_v34 = vsel %vm16094_vm14, %v6021_v61, %v6185_v32 }
 0x3d0   : > { %v6144_v52 = vsel %vm16094_vm14, %v19715_v62, %v6143_v12  ;;  %v6151_v31 = vsel %vm16094_vm14, %v19716_v51, %v6150_v60  ;;  %6141 = vst [vmem:[#allocation3 + $0x78] sm:$0xf] %v6140_v30  ;;  %6148 = vst [vmem:[#allocation3 + $0x84] sm:$0xf] %v6147_v29  ;;  %v19717_v46 = vrot.slane %v17228_v24, 4  ;;  %v19718_v60 = vrot.slane %v17239_v56, 4 }
 0x3d1   : > { %6145 = vst [vmem:[#allocation3 + $0x80] sm:$0x1] %v6144_v52  ;;  %6152 = vst [vmem:[#allocation3 + $0x8c] sm:$0x1] %v6151_v31  ;;  %v6220_v17 = vld [vmem:[#allocation3 + $0xcc] sm:$0x2]  ;;  %v6168_v24 = vsel %vm16782_vm3, %v17259_v49, %v6167_v3  ;;  %v6182_v56 = vsel %vm16782_vm3, %v17282_v37, %v6181_v13 }
 0x3d2   : > { %v6158_v54 = vsel %vm16094_vm14, %v19717_v46, %v6157_v6  ;;  %v6165_v59 = vsel %vm16094_vm14, %v19718_v60, %v6164_v26  ;;  %6155 = vst [vmem:[#allocation3 + $0x90] sm:$0xf] %v6154_v39  ;;  %6162 = vst [vmem:[#allocation3 + $0x9c] sm:$0xf] %v6161_v7  ;;  %v19719_v48 = vrot.slane %v17252_v23, 4  ;;  %v6189_v23 = vsel %vm16782_vm3, %v17111_v44, %v6188_v25  ;;  %v19720_v49 = vld [vmem:[#allocation102_spill] sm:$0xff] }
 0x3d3   : > { %6159 = vst [vmem:[#allocation3 + $0x98] sm:$0x1] %v6158_v54  ;;  %6166 = vst [vmem:[#allocation3 + $0xa4] sm:$0x1] %v6165_v59  ;;  %v6204_v2 = vld [vmem:[#allocation3 + $0xc] sm:$0x2] }
 0x3d4   : > { %v6172_v43 = vsel %vm16094_vm14, %v19719_v48, %v6171_v0  ;;  %v6205_v5 = vld [vmem:[#allocation3 + $0x18] sm:$0x2]  ;;  %v17377_v12 = vld [vmem:[#allocation3 + $0x4] sm:$0x8]  ;;  %6169 = vst [vmem:[#allocation3 + $0xa8] sm:$0xf] %v6168_v24 }
 0x3d5   : > { %6173 = vst [vmem:[#allocation3 + $0xb0] sm:$0x1] %v6172_v43  ;;  %6183 = vst [vmem:[#allocation3 + $0xc0] sm:$0xf] %v6182_v56  ;;  %v19721_v15 = vrot.slane %v19720_v49, 4  ;;  %v11779_v37 = vrot.slane %v6204_v2, 9 }
 0x3d6   : > { %6187 = vst [vmem:[#allocation3 + $0xc8] sm:$0x1] %v6186_v34  ;;  %v11780_v33 = vrot.slane %v6205_v5, 9  ;;  %v6296_v45 = vld [vmem:[#allocation3 + $0xc] sm:$0x1]  ;;  %v11793_v4 = vrot.slane %v6218_v21, 9 }
 0x3d7   : > { %v6193_v19 = vsel %vm16094_vm14, %v19721_v15, %v6192_v38  ;;  %v6299_v41 = vld [vmem:[#allocation3 + $0x18] sm:$0x1]  ;;  %v6338_v6 = vld [vmem:[#allocation3 + $0xb4] sm:$0x1]  ;;  %v6344_v61 = vld [vmem:[#allocation3 + $0xcc] sm:$0x1]  ;;  %v6297_v0 = vsel %vm16094_vm14, %v11779_v37, %v6296_v45 }
 0x3d8   : > { %6190 = vst [vmem:[#allocation3] sm:$0xf] %v6189_v23  ;;  %6194 = vst [vmem:[#allocation3 + $0x8] sm:$0x1] %v6193_v19  ;;  %v6206_v53 = vld [vmem:[#allocation3 + $0x24] sm:$0x2]  ;;  %v6300_v16 = vsel %vm16094_vm14, %v11780_v33, %v6299_v41  ;;  %v6339_v55 = vsel %vm16094_vm14, %v11793_v4, %v6338_v6 }
 0x3d9   : > { %v6207_v22 = vld [vmem:[#allocation3 + $0x30] sm:$0x2]  ;;  %v11795_v3 = vrot.slane %v6220_v17, 9  ;;  %v6208_v50 = vld [vmem:[#allocation3 + $0x3c] sm:$0x2]  ;;  %v11781_v58 = vrot.slane %v6206_v53, 9 }
 0x3da   : > { %v11782_v44 = vrot.slane %v6207_v22, 9  ;;  %v6302_v8 = vld [vmem:[#allocation3 + $0x24] sm:$0x1]  ;;  %v6209_v18 = vld [vmem:[#allocation3 + $0x48] sm:$0x2]  ;;  %v11783_v36 = vrot.slane %v6208_v50, 9 }
 0x3db   : > { %v6210_v10 = vld [vmem:[#allocation3 + $0x54] sm:$0x2]  ;;  %6298 = vst [vmem:[#allocation3 + $0xc] sm:$0x1] %v6297_v0  ;;  %6301 = vst [vmem:[#allocation3 + $0x18] sm:$0x1] %v6300_v16  ;;  %v6345_v25 = vsel %vm16094_vm14, %v11795_v3, %v6344_v61  ;;  %v6303_v9 = vsel %vm16094_vm14, %v11781_v58, %v6302_v8 }
 0x3dc   : > { %v11796_v26 = vrot.slane %v17377_v12, 11  ;;  %v6211_v11 = vld [vmem:[#allocation3 + $0x60] sm:$0x2]  ;;  %v6212_v20 = vld [vmem:[#allocation3 + $0x6c] sm:$0x2]  ;;  %v11784_v47 = vrot.slane %v6209_v18, 9 }
 0x3dd   : > { %v11785_v27 = vrot.slane %v6210_v10, 9  ;;  %6340 = vst [vmem:[#allocation3 + $0xb4] sm:$0x1] %v6339_v55  ;;  %6346 = vst [vmem:[#allocation3 + $0xcc] sm:$0x1] %v6345_v25  ;;  %v11786_v42 = vrot.slane %v6211_v11, 9 }
 0x3de   : > { %v17397_v40 = vld [vmem:[#allocation3 + $0x10] sm:$0x8]  ;;  %v6213_v13 = vld [vmem:[#allocation3 + $0x78] sm:$0x2]  ;;  %v6214_v32 = vld [vmem:[#allocation3 + $0x84] sm:$0x2] }
 0x3df   : > { %v11787_v57 = vrot.slane %v6212_v20, 9  ;;  %6304 = vst [vmem:[#allocation3 + $0x24] sm:$0x1] %v6303_v9  ;;  %v6215_v28 = vld [vmem:[#allocation3 + $0x90] sm:$0x2]  ;;  %v11788_v35 = vrot.slane %v6213_v13, 9 }
 0x3e0   : > { %v6216_v1 = vld [vmem:[#allocation3 + $0x9c] sm:$0x2]  ;;  %v11789_v14 = vrot.slane %v6214_v32, 9  ;;  %v6217_v38 = vld [vmem:[#allocation3 + $0xa8] sm:$0x2]  ;;  %v11790_v62 = vrot.slane %v6215_v28, 9 }
 0x3e1   : > { %v17399_v30 = vld [vmem:[#allocation3 + $0xc0] sm:$0x2]  ;;  %v11791_v52 = vrot.slane %v6216_v1, 9  ;;  %v11792_v51 = vrot.slane %v6217_v38, 9  ;;  %v6293_v21 = vld [vmem:[#allocation3] sm:$0x1] }
 0x3e2   : > { %v6203_v29 = vld [vmem:[#allocation3] sm:$0x2]  ;;  %v11794_v31 = vrot.slane %v17399_v30, 9  ;;  %v17402_v39 = vld [vmem:[#allocation3 + $0x1c] sm:$0x8]  ;;  %v11797_v24 = vrot.slane %v17397_v40, 11 }
 0x3e3   : > { %v11778_v46 = vrot.slane %v6203_v29, 9  ;;  %v6305_v54 = vld [vmem:[#allocation3 + $0x30] sm:$0x1]  ;;  %v6308_v7 = vld [vmem:[#allocation3 + $0x3c] sm:$0x1]  ;;  %v11798_v20 = vrot.slane %v17402_v39, 11 }
 0x3e4   : > { %v17404_v60 = vld [vmem:[#allocation3 + $0x28] sm:$0x8]  ;;  %v17406_v59 = vld [vmem:[#allocation3 + $0x34] sm:$0x8]  ;;  %v17408_v17 = vld [vmem:[#allocation3 + $0x40] sm:$0x8]  ;;  %v6306_v48 = vsel %vm16094_vm14, %v11782_v44, %v6305_v54  ;;  %v6309_v43 = vsel %vm16094_vm14, %v11783_v36, %v6308_v7 }
 0x3e5   : > { %v6311_v56 = vld [vmem:[#allocation3 + $0x48] sm:$0x1]  ;;  %v6314_v34 = vld [vmem:[#allocation3 + $0x54] sm:$0x1]  ;;  %v6317_v2 = vld [vmem:[#allocation3 + $0x60] sm:$0x1]  ;;  %v6294_v19 = vsel %vm16094_vm14, %v11778_v46, %v6293_v21 }
 0x3e6   : > { %v17415_v5 = vld [vmem:[#allocation3 + $0x4c] sm:$0x8]  ;;  %v17417_v23 = vld [vmem:[#allocation3 + $0x58] sm:$0x8]  ;;  %v17419_v49 = vld [vmem:[#allocation3 + $0x64] sm:$0x8]  ;;  %v6312_v37 = vsel %vm16094_vm14, %v11784_v47, %v6311_v56  ;;  %v6315_v33 = vsel %vm16094_vm14, %v11785_v27, %v6314_v34  ;;  %v6318_v45 = vsel %vm16094_vm14, %v11786_v42, %v6317_v2 }
 0x3e7   : > { %v17421_v15 = vld [vmem:[#allocation3 + $0x70] sm:$0x8]  ;;  %6307 = vst [vmem:[#allocation3 + $0x30] sm:$0x1] %v6306_v48  ;;  %6310 = vst [vmem:[#allocation3 + $0x3c] sm:$0x1] %v6309_v43 }
 0x3e8   : > { %v6320_v41 = vld [vmem:[#allocation3 + $0x6c] sm:$0x1]  ;;  %v6323_v6 = vld [vmem:[#allocation3 + $0x78] sm:$0x1]  ;;  %v6326_v61 = vld [vmem:[#allocation3 + $0x84] sm:$0x1] }
 0x3e9   : > { %v17431_v53 = vld [vmem:[#allocation3 + $0x7c] sm:$0x8]  ;;  %v17433_v22 = vld [vmem:[#allocation3 + $0x88] sm:$0x8]  ;;  %v17435_v4 = vld [vmem:[#allocation3 + $0x94] sm:$0x8]  ;;  %v6321_v50 = vsel %vm16094_vm14, %v11787_v57, %v6320_v41  ;;  %v6324_v58 = vsel %vm16094_vm14, %v11788_v35, %v6323_v6  ;;  %v6327_v44 = vsel %vm16094_vm14, %v11789_v14, %v6326_v61 }
 0x3ea   : > { %v17437_v3 = vld [vmem:[#allocation3 + $0xa0] sm:$0x8]  ;;  %6295 = vst [vmem:[#allocation3] sm:$0x1] %v6294_v19  ;;  %6313 = vst [vmem:[#allocation3 + $0x48] sm:$0x1] %v6312_v37 }
 0x3eb   : > { %6316 = vst [vmem:[#allocation3 + $0x54] sm:$0x1] %v6315_v33  ;;  %6319 = vst [vmem:[#allocation3 + $0x60] sm:$0x1] %v6318_v45  ;;  %v6329_v0 = vld [vmem:[#allocation3 + $0x90] sm:$0x1] }
 0x3ec   : > { %v6332_v16 = vld [vmem:[#allocation3 + $0x9c] sm:$0x1]  ;;  %v6335_v8 = vld [vmem:[#allocation3 + $0xa8] sm:$0x1]  ;;  %v17445_v18 = vld [vmem:[#allocation3 + $0xac] sm:$0x8]  ;;  %v6330_v10 = vsel %vm16094_vm14, %v11790_v62, %v6329_v0 }
 0x3ed   : > { %6322 = vst [vmem:[#allocation3 + $0x6c] sm:$0x1] %v6321_v50  ;;  %6325 = vst [vmem:[#allocation3 + $0x78] sm:$0x1] %v6324_v58  ;;  %v6333_v36 = vsel %vm16094_vm14, %v11791_v52, %v6332_v16  ;;  %v6336_v55 = vsel %vm16094_vm14, %v11792_v51, %v6335_v8  ;;  %v6341_v25 = vld [vmem:[#allocation3 + $0xc0] sm:$0x1] }
 0x3ee   : > { %6328 = vst [vmem:[#allocation3 + $0x84] sm:$0x1] %v6327_v44  ;;  %v17453_v11 = vld [vmem:[#allocation3 + $0xc4] sm:$0x8]  ;;  %v13353_v47 = vld [vmem:[#allocation3 + $0xc] sm:$0xff]   ;;  %v6342_v27 = vsel %vm16094_vm14, %v11794_v31, %v6341_v25  ;;  %v11799_v9 = vrot.slane %v17404_v60, 11 }
 0x3ef   : > { %6331 = vst [vmem:[#allocation3 + $0x90] sm:$0x1] %v6330_v10  ;;  %6334 = vst [vmem:[#allocation3 + $0x9c] sm:$0x1] %v6333_v36  ;;  %v11800_v13 = vrot.slane %v17406_v59, 11  ;;  %v11801_v32 = vrot.slane %v17408_v17, 11  ;;  %10245 = vmatprep.mubr.bf16.mxu0 %v13353_v47 }
 0x3f0   : > { %6337 = vst [vmem:[#allocation3 + $0xa8] sm:$0x1] %v6336_v55  ;;  %v6438_v42 = vld [vmem:[#allocation3 + $0x8] sm:$0x1]  ;;  %6343 = vst [vmem:[#allocation3 + $0xc0] sm:$0x1] %v6342_v27 }
 0x3f1   : > { %v11802_v57 = vrot.slane %v17415_v5, 11  ;;  %v11803_v28 = vrot.slane %v17417_v23, 11  ;;  %v11804_v1 = vrot.slane %v17419_v49, 11  ;;  %v11805_v35 = vrot.slane %v17421_v15, 11  ;;  %v6441_v14 = vld [vmem:[#allocation3 + $0x14] sm:$0x1] }
 0x3f2   : > { %v11806_v63 = vrot.slane %v17431_v53, 11  ;;  %v11807_v38 = vrot.slane %v17433_v22, 11  ;;  %v11808_v30 = vrot.slane %v17435_v4, 11  ;;  %v11809_v62 = vrot.slane %v17437_v3, 11  ;;  %v6444_v52 = vld [vmem:[#allocation3 + $0x20] sm:$0x1] }
 0x3f3   : > { %v11810_v29 = vrot.slane %v17445_v18, 11  ;;  %v11812_v51 = vrot.slane %v17453_v11, 11  ;;  %v6439_v21 = vsel %vm16214_vm1, %v11796_v26, %v6438_v42  ;;  %v6442_v39 = vsel %vm16214_vm1, %v11797_v24, %v6441_v14  ;;  %v6447_v46 = vld [vmem:[#allocation3 + $0x2c] sm:$0x1]  ;;  %v6450_v54 = vld [vmem:[#allocation3 + $0x38] sm:$0x1] }
 0x3f4   : > { %v7149_v7 = vld [vmem:[#allocation3 + $0x4] sm:$0xf]  ;;  %6440 = vst [vmem:[#allocation3 + $0x8] sm:$0x1] %v6439_v21  ;;  %6443 = vst [vmem:[#allocation3 + $0x14] sm:$0x1] %v6442_v39  ;;  %v6445_v59 = vsel %vm16214_vm1, %v11798_v20, %v6444_v52  ;;  %v6448_v12 = vsel %vm16214_vm1, %v11799_v9, %v6447_v46  ;;  %v6451_v26 = vsel %vm16214_vm1, %v11800_v13, %v6450_v54 }
 0x3f5   : > { %v6637_v60 = vld [vmem:[#allocation3 + $0x4] sm:$0xf]  ;;  %v6456_v40 = vld [vmem:[#allocation3 + $0x50] sm:$0x1]  ;;  %v6459_v48 = vld [vmem:[#allocation3 + $0x5c] sm:$0x1] }
 0x3f6   : > { %v6453_v17 = vld [vmem:[#allocation3 + $0x44] sm:$0x1]  ;;  %6446 = vst [vmem:[#allocation3 + $0x20] sm:$0x1] %v6445_v59  ;;  %6449 = vst [vmem:[#allocation3 + $0x2c] sm:$0x1] %v6448_v12  ;;  %v6457_v43 = vsel %vm16214_vm1, %v11802_v57, %v6456_v40  ;;  %v6460_v56 = vsel %vm16214_vm1, %v11803_v28, %v6459_v48 }
 0x3f7   : > { %6452 = vst [vmem:[#allocation3 + $0x38] sm:$0x1] %v6451_v26  ;;  %v6454_v24 = vsel %vm16214_vm1, %v11801_v32, %v6453_v17  ;;  %v6462_v34 = vld [vmem:[#allocation3 + $0x68] sm:$0x1]  ;;  %v6465_v2 = vld [vmem:[#allocation3 + $0x74] sm:$0x1] }
 0x3f8   : > { %v6468_v5 = vld [vmem:[#allocation3 + $0x80] sm:$0x1]  ;;  %6455 = vst [vmem:[#allocation3 + $0x44] sm:$0x1] %v6454_v24  ;;  %6458 = vst [vmem:[#allocation3 + $0x50] sm:$0x1] %v6457_v43  ;;  %v6463_v23 = vsel %vm16214_vm1, %v11804_v1, %v6462_v34  ;;  %v6466_v49 = vsel %vm16214_vm1, %v11805_v35, %v6465_v2 }
 0x3f9   : > { %6461 = vst [vmem:[#allocation3 + $0x5c] sm:$0x1] %v6460_v56  ;;  %v6469_v15 = vsel %vm16214_vm1, %v11806_v63, %v6468_v5  ;;  %v6471_v19 = vld [vmem:[#allocation3 + $0x8c] sm:$0x1]  ;;  %v6474_v37 = vld [vmem:[#allocation3 + $0x98] sm:$0x1] }
 0x3fa   : > { %v6477_v33 = vld [vmem:[#allocation3 + $0xa4] sm:$0x1]  ;;  %v6640_v45 = vld [vmem:[#allocation3 + $0x10] sm:$0xf]  ;;  %6464 = vst [vmem:[#allocation3 + $0x68] sm:$0x1] %v6463_v23  ;;  %v6472_v41 = vsel %vm16214_vm1, %v11807_v38, %v6471_v19  ;;  %v6475_v6 = vsel %vm16214_vm1, %v11808_v30, %v6474_v37 }
 0x3fb   : > { %6467 = vst [vmem:[#allocation3 + $0x74] sm:$0x1] %v6466_v49  ;;  %6470 = vst [vmem:[#allocation3 + $0x80] sm:$0x1] %v6469_v15  ;;  %v6478_v61 = vsel %vm16214_vm1, %v11809_v62, %v6477_v33  ;;  %v6480_v53 = vld [vmem:[#allocation3 + $0xb0] sm:$0x1] }
 0x3fc   : > { %v6486_v22 = vld [vmem:[#allocation3 + $0xc8] sm:$0x1]  ;;  %6473 = vst [vmem:[#allocation3 + $0x8c] sm:$0x1] %v6472_v41  ;;  %6476 = vst [vmem:[#allocation3 + $0x98] sm:$0x1] %v6475_v6  ;;  %v6481_v4 = vsel %vm16214_vm1, %v11810_v29, %v6480_v53 }
 0x3fd   : > { %6479 = vst [vmem:[#allocation3 + $0xa4] sm:$0x1] %v6478_v61  ;;  %v6487_v3 = vsel %vm16214_vm1, %v11812_v51, %v6486_v22  ;;  %v7148_v50 = vld [vmem:[#allocation3] sm:$0xe]  ;;  %v7246_v58 = vrot.slane %v7149_v7, 5  ;;  %v6694_v44 = vshll.u32 %v6637_v60, 16 }
 0x3fe   : > { %6482 = vst [vmem:[#allocation3 + $0xb0] sm:$0x1] %v6481_v4  ;;  %6488 = vst [vmem:[#allocation3 + $0xc8] sm:$0x1] %v6487_v3  ;;  %v11846_v0 = vrot.slane %v7148_v50, 9  ;;  %v6698_v8 = vshrl.u32 %v6637_v60, 16 }
 0x3ff   : > { %v6636_v16 = vld [vmem:[#allocation3] sm:$0xf]  ;;  %v7248_v18 = vrot.slane %v7246_v58, 4  ;;  %v6696_v55 = vrot.slane %v6694_v44, 5  ;;  %v7150_v25 = vld [vmem:[#allocation3 + $0x8] sm:$0x1] }
 0x400   : > { %v6685_v10 = vshrl.u32 %v6636_v16, 16  ;;  %v6688_v36 = vshll.u32 %v6636_v16, 16  ;;  %v7247_v20 = vsel %vm13841_vm5, %v11846_v0, %v7246_v58  ;;  %v6638_v47 = vld [vmem:[#allocation3 + $0x8] sm:$0x1]  ;;  %v6700_v27 = vrot.slane %v6698_v8, 4  ;;  %v13383_v35 = vld [vmem:[%s19177_s4 + $0x180] sm:$0xff]  }
 0x401   : > { %v6718_v9 = vshll.u32 %v6640_v45, 16  ;;  %v7249_v13 = vrot.slane %v7150_v25, 5  ;;  %v6704_v57 = vshll.u32 %v6638_v47, 16  ;;  %v6639_v28 = vld [vmem:[#allocation3 + $0xc] sm:$0xf]  ;;  %v6722_v21 = vshrl.u32 %v6640_v45, 16 }
 0x402   : > { %v6687_v32 = vrot.slane %v6685_v10, 4  ;;  %v6690_v42 = vrot.slane %v6688_v36, 5  ;;  %v7152_v1 = vld [vmem:[#allocation3 + $0x10] sm:$0xf]  ;;  %v6701_v14 = vor.u32 %v6700_v27, %v6696_v55  ;;  %v6641_v63 = vld [vmem:[#allocation3 + $0x14] sm:$0x1] }
 0x403   : > { %v6709_v38 = vshrl.u32 %v6639_v28, 16  ;;  %v6712_v30 = vshll.u32 %v6639_v28, 16  ;;  %v6720_v62 = vrot.slane %v6718_v9, 5  ;;  %v13389_v52 = vld [vmem:[%s19177_s4 + $0x1c8] sm:$0xff]   ;;  %v7250_v29 = vsel %vm13841_vm5, %v7248_v18, %v7249_v13  ;;  %v7153_v46 = vld [vmem:[#allocation3 + $0x14] sm:$0x1] }
 0x404   : > { %v6691_v51 = vor.u32 %v6690_v42, %v6687_v32  ;;  %v6706_v31 = vrot.slane %v6704_v57, 5  ;;  %v7151_v39 = vld [vmem:[#allocation3 + $0xc] sm:$0xe]  ;;  %v11862_v54 = vcombine.low %v7247_v20, %v7250_v29  ;;  %v13354_v7 = vld [vmem:[#allocation3 + $0x18] sm:$0xff]   ;;  %v6702_v60 = vrot.slane %v6701_v14, 4  ;;  %v13357_v5 = vld [vmem:[%s19177_s4 + $0x100] sm:$0xff]  }
 0x405   : > { %v6711_v59 = vrot.slane %v6709_v38, 4  ;;  %v6714_v12 = vrot.slane %v6712_v30, 5  ;;  %v6724_v17 = vrot.slane %v6722_v21, 4  ;;  %v6728_v40 = vshll.u32 %v6641_v63, 16  ;;  %v6642_v23 = vld [vmem:[#allocation3 + $0x18] sm:$0xf] }
 0x406   : > { %v6692_v26 = vrot.slane %v6691_v51, 4  ;;  %v11847_v48 = vrot.slane %v7151_v39, 9  ;;  %10246 = vmatmul.mubr.bf16.vlgmr.msra.gmra.mrb[160].mxu0 %v11862_v54  ;;  %v6707_v43 = vsel %vm13833_vm2, %v6702_v60, %v6706_v31  ;;  %v7253_v34 = vrot.slane %v7152_v1, 5  ;;  %v6643_v49 = vld [vmem:[#allocation3 + $0x1c] sm:$0xf]  ;;  %v13355_v19 = vld [vmem:[#allocation3] sm:$0xff]  }
 0x407   : > { %v6715_v56 = vor.u32 %v6714_v12, %v6711_v59  ;;  %v7256_v2 = vrot.slane %v7153_v46, 5  ;;  %10253 = vmatprep.mubr.bf16.mxu0 %v13354_v7  ;;  %v6725_v37 = vor.u32 %v6724_v17, %v6720_v62  ;;  %v6730_v33 = vrot.slane %v6728_v40, 5  ;;  %v6644_v45 = vld [vmem:[#allocation3 + $0x20] sm:$0x1]  ;;  %v13362_v6 = vld [vmem:[%s19177_s4 + $0x148] sm:$0xff]   ;;  %12927 = vmatpush3.bf16.msra.mxu0 %v13383_v35  ;;  %v13368_v14 = vld [vmem:[%s19177_s4 + $0x150] sm:$0xff]  }
 0x408   : > { %v6697_v15 = vsel %vm13833_vm2, %v6692_v26, %v6696_v55  ;;  %v6733_v41 = vshrl.u32 %v6642_v23, 16  ;;  %v7254_v22 = vsel %vm13841_vm5, %v11847_v48, %v7253_v34  ;;  %v7255_v4 = vrot.slane %v7253_v34, 4  ;;  %v7155_v3 = vld [vmem:[#allocation3 + $0x1c] sm:$0xf]  ;;  %12928 = vmatprep.subr.bf16.mxu0 %v13389_v52  ;;  %v7154_v16 = vld [vmem:[#allocation3 + $0x18] sm:$0xe] }
 0x409   : > { %v11830_v61 = vcombine.low %v6697_v15, %v6707_v43  ;;  %v6716_v53 = vrot.slane %v6715_v56, 4  ;;  %v6726_v50 = vrot.slane %v6725_v37, 4  ;;  %v6736_v44 = vshll.u32 %v6642_v23, 16  ;;  %v7156_v55 = vld [vmem:[#allocation3 + $0x20] sm:$0x1]  ;;  %v13363_v32 = vld [vmem:[%s19177_s4 + $0x108] sm:$0xff]  }
 0x40a   : > { %v6735_v58 = vrot.slane %v6733_v41, 4  ;;  %v6742_v0 = vshll.u32 %v6643_v49, 16  ;;  %v7257_v18 = vsel %vm13841_vm5, %v7255_v4, %v7256_v2  ;;  %v6746_v10 = vshrl.u32 %v6643_v49, 16  ;;  %v6645_v25 = vld [vmem:[#allocation3 + $0x24] sm:$0xf]  ;;  %v13369_v46 = vld [vmem:[%s19177_s4 + $0x110] sm:$0xff]  }
 0x40b   : > { %10084 = vmatprep.mubr.bf16.mxu1 %v11830_v61  ;;  %v6721_v8 = vsel %vm13833_vm2, %v6716_v53, %v6720_v62  ;;  %v6752_v36 = vshll.u32 %v6644_v45, 16  ;;  %v6731_v20 = vsel %vm13833_vm2, %v6726_v50, %v6730_v33  ;;  %v11863_v47 = vcombine.low %v7254_v22, %v7257_v18  ;;  %v6646_v13 = vld [vmem:[#allocation3 + $0x28] sm:$0xf]  ;;  %v6647_v35 = vld [vmem:[#allocation3 + $0x2c] sm:$0x1]  ;;  %v13374_v17 = vld [vmem:[%s19177_s4 + $0x158] sm:$0xff]  }
 0x40c   : > { %10085 = vmatmul.mubr.bf16.vlgmr.msra.gmra.mrb[128].mxu1 %v13355_v19  ;;  %v6738_v27 = vrot.slane %v6736_v44, 5  ;;  %v6744_v9 = vrot.slane %v6742_v0, 5  ;;  %v11831_v42 = vcombine.low %v6721_v8, %v6731_v20  ;;  %v6748_v57 = vrot.slane %v6746_v10, 4  ;;  %v13358_v63 = vld [vmem:[#allocation3 + $0x24] sm:$0xff]   ;;  %v13359_v54 = vld [vmem:[#allocation3 + $0xc] sm:$0xff]  }
 0x40d   : > { %12815 = vmatpush3.bf16.msra.mxu1 %v13357_v5  ;;  %v6754_v28 = vrot.slane %v6752_v36, 5  ;;  %v11848_v1 = vrot.slane %v7154_v16, 9  ;;  %v7260_v30 = vrot.slane %v7155_v3, 5  ;;  %v7263_v62 = vrot.slane %v7156_v55, 5  ;;  %v7157_v39 = vld [vmem:[#allocation3 + $0x24] sm:$0xe] }
 0x40e   : > { %v6739_v38 = vor.u32 %v6738_v27, %v6735_v58  ;;  %12816 = vmatprep.subr.bf16.mxu1 %v13362_v6  ;;  %v6757_v52 = vshrl.u32 %v6645_v25, 16  ;;  %10092 = vmatprep.mubr.bf16.mxu1 %v11831_v42  ;;  %v6749_v29 = vor.u32 %v6748_v57, %v6744_v9  ;;  %v6760_v51 = vshll.u32 %v6645_v25, 16  ;;  %v7158_v26 = vld [vmem:[#allocation3 + $0x28] sm:$0xf]  ;;  %v7159_v34 = vld [vmem:[#allocation3 + $0x2c] sm:$0x1] }
 0x40f   : > { %10254 = vmatmul.mubr.bf16.gmra.mrb[164].mxu0 %v11863_v47  ;;  %v6766_v31 = vshll.u32 %v6646_v13, 16  ;;  %v6770_v21 = vshrl.u32 %v6646_v13, 16  ;;  %v7261_v60 = vsel %vm13841_vm5, %v11848_v1, %v7260_v30  ;;  %v7262_v59 = vrot.slane %v7260_v30, 4  ;;  %v6648_v15 = vld [vmem:[#allocation3 + $0x30] sm:$0xf]  ;;  %v13375_v6 = vld [vmem:[%s19177_s4 + $0x118] sm:$0xff]  }
 0x410   : > { %10261 = vmatprep.mubr.bf16.mxu0 %v13358_v63  ;;  %v6740_v7 = vrot.slane %v6739_v38, 4  ;;  %v6759_v12 = vrot.slane %v6757_v52, 4  ;;  %v6750_v40 = vrot.slane %v6749_v29, 4  ;;  %v6762_v48 = vrot.slane %v6760_v51, 5  ;;  %v6649_v41 = vld [vmem:[#allocation3 + $0x34] sm:$0xf] }
 0x411   : > { %v6768_v43 = vrot.slane %v6766_v31, 5  ;;  %v6772_v56 = vrot.slane %v6770_v21, 4  ;;  %12817 = vmatpush3.bf16.msra.mxu1 %v13363_v32  ;;  %v7264_v5 = vsel %vm13841_vm5, %v7262_v59, %v7263_v62  ;;  %v6776_v23 = vshll.u32 %v6647_v35, 16  ;;  %v6650_v3 = vld [vmem:[#allocation3 + $0x38] sm:$0x1]  ;;  %v13380_v58 = vld [vmem:[%s19177_s4 + $0x160] sm:$0xff]  }
 0x412   : > { %v6745_v2 = vsel %vm13833_vm2, %v6740_v7, %v6744_v9  ;;  %v11849_v49 = vrot.slane %v7157_v39, 9  ;;  %12818 = vmatprep.subr.bf16.mxu1 %v13368_v14  ;;  %v6755_v19 = vsel %vm13833_vm2, %v6750_v40, %v6754_v28  ;;  %v11864_v37 = vcombine.low %v7261_v60, %v7264_v5  ;;  %v17558_v50 = vld [vmem:[#allocation3 + $0x30] sm:$0xe]  ;;  %v7161_v18 = vld [vmem:[#allocation3 + $0x34] sm:$0xf]  ;;  %v13382_v14 = vld [vmem:[%s19177_s4 + $0x120] sm:$0xff]  }
 0x413   : > { %v6763_v33 = vor.u32 %v6762_v48, %v6759_v12  ;;  %v6773_v45 = vor.u32 %v6772_v56, %v6768_v43  ;;  %v11832_v61 = vcombine.low %v6745_v2, %v6755_v19  ;;  %v6778_v53 = vrot.slane %v6776_v23, 5  ;;  %v7162_v10 = vld [vmem:[#allocation3 + $0x38] sm:$0x1]  ;;  %v13360_v36 = vld [vmem:[#allocation3 + $0x30] sm:$0xff]   ;;  %v6651_v32 = vld [vmem:[#allocation3 + $0x3c] sm:$0xf] }
 0x414   : > { %10093 = vmatmul.mubr.bf16.gmra.mrb[132].mxu1 %v13359_v54  ;;  %v7267_v22 = vrot.slane %v7158_v26, 5  ;;  %v7270_v4 = vrot.slane %v7159_v34, 5  ;;  %v6781_v16 = vshrl.u32 %v6648_v15, 16  ;;  %v6784_v8 = vshll.u32 %v6648_v15, 16  ;;  %v6652_v35 = vld [vmem:[#allocation3 + $0x40] sm:$0xf] }
 0x415   : > { %v6764_v44 = vrot.slane %v6763_v33, 4  ;;  %v6774_v0 = vrot.slane %v6773_v45, 4  ;;  %12819 = vmatpush3.bf16.msra.mxu1 %v13369_v46  ;;  %10100 = vmatprep.mubr.bf16.mxu1 %v11832_v61  ;;  %v6790_v25 = vshll.u32 %v6649_v41, 16  ;;  %v6794_v20 = vshrl.u32 %v6649_v41, 16  ;;  %v13388_v63 = vld [vmem:[%s19177_s4 + $0x168] sm:$0xff]   ;;  %v13361_v51 = vld [vmem:[#allocation3 + $0x18] sm:$0xff]  }
 0x416   : > { %v7269_v55 = vrot.slane %v7267_v22, 4  ;;  %12820 = vmatprep.subr.bf16.mxu1 %v13374_v17  ;;  %v6783_v9 = vrot.slane %v6781_v16, 4  ;;  %v6786_v13 = vrot.slane %v6784_v8, 5  ;;  %v7268_v57 = vsel %vm13841_vm5, %v11849_v49, %v7267_v22  ;;  %v6653_v29 = vld [vmem:[#allocation3 + $0x44] sm:$0x1]  ;;  %v13390_v15 = vld [vmem:[%s19177_s4 + $0x128] sm:$0xff]  }
 0x417   : > { %10262 = vmatmul.mubr.bf16.gmra.mrb[168].mxu0 %v11864_v37  ;;  %v6769_v47 = vsel %vm13833_vm2, %v6764_v44, %v6768_v43  ;;  %v6779_v27 = vsel %vm13833_vm2, %v6774_v0, %v6778_v53  ;;  %v6792_v28 = vrot.slane %v6790_v25, 5  ;;  %v6796_v1 = vrot.slane %v6794_v20, 4  ;;  %v7163_v12 = vld [vmem:[#allocation3 + $0x3c] sm:$0xe]  ;;  %v7164_v26 = vld [vmem:[#allocation3 + $0x40] sm:$0xf] }
 0x418   : > { %10269 = vmatprep.mubr.bf16.mxu0 %v13360_v36  ;;  %v11833_v42 = vcombine.low %v6769_v47, %v6779_v27  ;;  %v7271_v38 = vsel %vm13841_vm5, %v7269_v55, %v7270_v4  ;;  %v6787_v30 = vor.u32 %v6786_v13, %v6783_v9  ;;  %v6800_v62 = vshll.u32 %v6650_v3, 16  ;;  %v7165_v56 = vld [vmem:[#allocation3 + $0x44] sm:$0x1]  ;;  %v6654_v49 = vld [vmem:[#allocation3 + $0x48] sm:$0xf]  ;;  %v13364_v19 = vld [vmem:[#allocation3 + $0x3c] sm:$0xff]  }
 0x419   : > { %v11850_v52 = vrot.slane %v17558_v50, 9  ;;  %12821 = vmatpush3.bf16.msra.mxu1 %v13375_v6  ;;  %v6797_v31 = vor.u32 %v6796_v1, %v6792_v28  ;;  %v7274_v21 = vrot.slane %v7161_v18, 5  ;;  %v7277_v39 = vrot.slane %v7162_v10, 5  ;;  %v6655_v6 = vld [vmem:[#allocation3 + $0x4c] sm:$0xf]  ;;  %v13365_v25 = vld [vmem:[#allocation3 + $0x24] sm:$0xff]  }
 0x41a   : > { %v6805_v46 = vshrl.u32 %v6651_v32, 16  ;;  %12822 = vmatprep.subr.bf16.mxu1 %v13380_v58  ;;  %v6788_v54 = vrot.slane %v6787_v30, 4  ;;  %v6802_v7 = vrot.slane %v6800_v62, 5  ;;  %v6808_v60 = vshll.u32 %v6651_v32, 16  ;;  %v6656_v44 = vld [vmem:[#allocation3 + $0x50] sm:$0x1] }
 0x41b   : > { %v6814_v59 = vshll.u32 %v6652_v35, 16  ;;  %v11865_v17 = vcombine.low %v7268_v57, %v7271_v38  ;;  %v6798_v40 = vrot.slane %v6797_v31, 4  ;;  %v7276_v48 = vrot.slane %v7274_v21, 4  ;;  %v7167_v16 = vld [vmem:[#allocation3 + $0x4c] sm:$0xf] }
 0x41c   : > { %10101 = vmatmul.mubr.bf16.gmra.mrb[136].mxu1 %v13361_v51  ;;  %v6807_v43 = vrot.slane %v6805_v46, 4  ;;  %v6793_v34 = vsel %vm13833_vm2, %v6788_v54, %v6792_v28  ;;  %v6810_v2 = vrot.slane %v6808_v60, 5  ;;  %v6818_v23 = vshrl.u32 %v6652_v35, 16  ;;  %v7166_v55 = vld [vmem:[#allocation3 + $0x48] sm:$0xe] }
 0x41d   : > { %10108 = vmatprep.mubr.bf16.mxu1 %v11833_v42  ;;  %v6816_v5 = vrot.slane %v6814_v59, 5  ;;  %12823 = vmatpush3.bf16.msra.mxu1 %v13382_v14  ;;  %v6803_v37 = vsel %vm13833_vm2, %v6798_v40, %v6802_v7  ;;  %v7275_v33 = vsel %vm13841_vm5, %v11850_v52, %v7274_v21  ;;  %v7278_v45 = vsel %vm13841_vm5, %v7276_v48, %v7277_v39  ;;  %v7168_v13 = vld [vmem:[#allocation3 + $0x50] sm:$0x1]  ;;  %v6657_v38 = vld [vmem:[#allocation3 + $0x54] sm:$0xf]  ;;  %v13366_v30 = vld [vmem:[#allocation3 + $0x48] sm:$0xff]  }
 0x41e   : > { %v6824_v41 = vshll.u32 %v6653_v29, 16  ;;  %12824 = vmatprep.subr.bf16.mxu1 %v13388_v63  ;;  %v11834_v61 = vcombine.low %v6793_v34, %v6803_v37  ;;  %v6811_v53 = vor.u32 %v6810_v2, %v6807_v43  ;;  %v6820_v22 = vrot.slane %v6818_v23, 4  ;;  %v6658_v31 = vld [vmem:[#allocation3 + $0x58] sm:$0xf]  ;;  %v6659_v7 = vld [vmem:[#allocation3 + $0x5c] sm:$0x1] }
 0x41f   : > { %10270 = vmatmul.mubr.bf16.gmra.mrb[172].mxu0 %v11865_v17  ;;  %v11851_v4 = vrot.slane %v7163_v12, 9  ;;  %v7281_v50 = vrot.slane %v7164_v26, 5  ;;  %v7284_v58 = vrot.slane %v7165_v56, 5  ;;  %v6829_v0 = vshrl.u32 %v6654_v49, 16  ;;  %v7169_v60 = vld [vmem:[#allocation3 + $0x54] sm:$0xe] }
 0x420   : > { %10277 = vmatprep.mubr.bf16.mxu0 %v13364_v19  ;;  %v6826_v3 = vrot.slane %v6824_v41, 5  ;;  %v6812_v8 = vrot.slane %v6811_v53, 4  ;;  %v6821_v18 = vor.u32 %v6820_v22, %v6816_v5  ;;  %v6832_v10 = vshll.u32 %v6654_v49, 16  ;;  %v7170_v40 = vld [vmem:[#allocation3 + $0x58] sm:$0xf]  ;;  %v13391_v48 = vld [vmem:[%s19177_s4 + $0x188] sm:$0xff]  }
 0x421   : > { %v6838_v36 = vshll.u32 %v6655_v6, 16  ;;  %12825 = vmatpush3.bf16.msra.mxu1 %v13390_v15  ;;  %v11866_v20 = vcombine.low %v7275_v33, %v7278_v45  ;;  %v7283_v47 = vrot.slane %v7281_v50, 4  ;;  %v6831_v27 = vrot.slane %v6829_v0, 4  ;;  %v7171_v19 = vld [vmem:[#allocation3 + $0x5c] sm:$0x1]  ;;  %12929 = vmatpush3.bf16.msra.mxu0 %v13391_v48  ;;  %v13367_v33 = vld [vmem:[#allocation3 + $0x30] sm:$0xff]  }
 0x422   : > { %v6842_v9 = vshrl.u32 %v6655_v6, 16  ;;  %v6822_v32 = vrot.slane %v6821_v18, 4  ;;  %v17591_v42 = vsel %vm13841_vm5, %v11851_v4, %v7281_v50  ;;  %v6834_v57 = vrot.slane %v6832_v10, 5  ;;  %v6660_v37 = vld [vmem:[#allocation3 + $0x60] sm:$0xf] }
 0x423   : > { %v17593_v28 = vrot.slane %v6838_v36, 5  ;;  %v6817_v1 = vsel %vm13833_vm2, %v6812_v8, %v6816_v5  ;;  %v17599_v35 = vsel %vm13841_vm5, %v7283_v47, %v7284_v58  ;;  %v6848_v63 = vshll.u32 %v6656_v44, 16  ;;  %v6661_v53 = vld [vmem:[#allocation3 + $0x64] sm:$0xf]  ;;  %v6662_v58 = vld [vmem:[#allocation3 + $0x68] sm:$0x1] }
 0x424   : > { %10109 = vmatmul.mubr.bf16.gmra.mrb[140].mxu1 %v13365_v25  ;;  %v6844_v14 = vrot.slane %v6842_v9, 4  ;;  %v6827_v62 = vsel %vm13833_vm2, %v6822_v32, %v6826_v3  ;;  %v6835_v52 = vor.u32 %v6834_v57, %v6831_v27  ;;  %v11852_v29 = vrot.slane %v7166_v55, 9  ;;  %v7172_v18 = vld [vmem:[#allocation3 + $0x60] sm:$0xe]  ;;  %v7174_v47 = vld [vmem:[#allocation3 + $0x68] sm:$0x1] }
 0x425   : > { %10116 = vmatprep.mubr.bf16.mxu1 %v11834_v61  ;;  %v7288_v51 = vrot.slane %v7167_v16, 5  ;;  %v11867_v21 = vcombine.low %v17591_v42, %v17599_v35  ;;  %v6850_v46 = vrot.slane %v6848_v63, 5  ;;  %v7291_v54 = vrot.slane %v7168_v13, 5  ;;  %v13370_v27 = vld [vmem:[#allocation3 + $0x54] sm:$0xff]  }
 0x426   : > { %v6845_v39 = vor.u32 %v6844_v14, %v17593_v28  ;;  %v11835_v59 = vcombine.low %v6817_v1, %v6827_v62  ;;  %v6836_v12 = vrot.slane %v6835_v52, 4  ;;  %v6853_v17 = vshrl.u32 %v6657_v38, 16  ;;  %v6663_v62 = vld [vmem:[#allocation3 + $0x6c] sm:$0xf]  ;;  %v13371_v52 = vld [vmem:[#allocation3 + $0x3c] sm:$0xff]  }
 0x427   : > { %10278 = vmatmul.mubr.bf16.gmra.mrb[176].mxu0 %v11866_v20  ;;  %v7290_v26 = vrot.slane %v7288_v51, 4  ;;  %v6856_v56 = vshll.u32 %v6657_v38, 16  ;;  %v6862_v34 = vshll.u32 %v6658_v31, 16  ;;  %v6866_v2 = vshrl.u32 %v6658_v31, 16  ;;  %v7173_v20 = vld [vmem:[#allocation3 + $0x64] sm:$0xf] }
 0x428   : > { %10285 = vmatprep.mubr.bf16.mxu0 %v13366_v30  ;;  %v6846_v43 = vrot.slane %v6845_v39, 4  ;;  %v17611_v5 = vsel %vm13841_vm5, %v11852_v29, %v7288_v51  ;;  %v6855_v49 = vrot.slane %v6853_v17, 4  ;;  %v6872_v15 = vshll.u32 %v6659_v7, 16  ;;  %v6664_v39 = vld [vmem:[#allocation3 + $0x70] sm:$0xf] }
 0x429   : > { %v17615_v23 = vsel %vm13841_vm5, %v7290_v26, %v7291_v54  ;;  %v6841_v45 = vsel %vm13833_vm2, %v6836_v12, %v17593_v28  ;;  %v6858_v6 = vrot.slane %v6856_v56, 5  ;;  %v6864_v61 = vrot.slane %v6862_v34, 5  ;;  %v17638_v12 = vld [vmem:[#allocation3 + $0x6c] sm:$0xe]  ;;  %v13396_v26 = vld [vmem:[%s19177_s4 + $0x170] sm:$0xff]  }
 0x42a   : > { %v6851_v41 = vsel %vm13833_vm2, %v6846_v43, %v6850_v46  ;;  %v11868_v22 = vcombine.low %v17611_v5, %v17615_v23  ;;  %v6868_v4 = vrot.slane %v6866_v2, 4  ;;  %v6874_v3 = vrot.slane %v6872_v15, 5  ;;  %v7176_v56 = vld [vmem:[#allocation3 + $0x70] sm:$0xf]  ;;  %v7177_v34 = vld [vmem:[#allocation3 + $0x74] sm:$0x1]  ;;  %12826 = vmatprep.subr.bf16.mxu1 %v13396_v26 }
 0x42b   : > { %v11853_v50 = vrot.slane %v7169_v60, 9  ;;  %v6859_v44 = vor.u32 %v6858_v6, %v6855_v49  ;;  %v7295_v0 = vrot.slane %v7170_v40, 5  ;;  %v7298_v16 = vrot.slane %v7171_v19, 5  ;;  %v6666_v2 = vld [vmem:[#allocation3 + $0x78] sm:$0xf]  ;;  %v13372_v49 = vld [vmem:[#allocation3 + $0x60] sm:$0xff]  }
 0x42c   : > { %10117 = vmatmul.mubr.bf16.gmra.mrb[144].mxu1 %v13367_v33  ;;  %v6877_v8 = vshrl.u32 %v6660_v37, 16  ;;  %v6869_v10 = vor.u32 %v6868_v4, %v6864_v61  ;;  %v6880_v36 = vshll.u32 %v6660_v37, 16  ;;  %v6886_v55 = vshll.u32 %v6661_v53, 16  ;;  %v13398_v5 = vld [vmem:[%s19177_s4 + $0x130] sm:$0xff]  }
 0x42d   : > { %10124 = vmatprep.mubr.bf16.mxu1 %v11835_v59  ;;  %v6890_v25 = vshrl.u32 %v6661_v53, 16  ;;  %v11836_v9 = vcombine.low %v6841_v45, %v6851_v41  ;;  %v6860_v13 = vrot.slane %v6859_v44, 4  ;;  %v7297_v32 = vrot.slane %v7295_v0, 4  ;;  %v6665_v59 = vld [vmem:[#allocation3 + $0x74] sm:$0x1]  ;;  %12827 = vmatpush3.bf16.msra.mxu1 %v13398_v5 }
 0x42e   : > { %v6879_v42 = vrot.slane %v6877_v8, 4  ;;  %v6870_v57 = vrot.slane %v6869_v10, 4  ;;  %v6882_v28 = vrot.slane %v6880_v36, 5  ;;  %v6888_v1 = vrot.slane %v6886_v55, 5  ;;  %v13397_v45 = vld [vmem:[%s19177_s4 + $0x1d0] sm:$0xff]   ;;  %v13373_v36 = vld [vmem:[#allocation3 + $0x48] sm:$0xff]  }
 0x42f   : > { %10286 = vmatmul.mubr.bf16.gmra.mrb[180].mxu0 %v11867_v21  ;;  %v6892_v35 = vrot.slane %v6890_v25, 4  ;;  %v6865_v14 = vsel %vm13833_vm2, %v6860_v13, %v6864_v61  ;;  %v17628_v63 = vsel %vm13841_vm5, %v11853_v50, %v7295_v0  ;;  %v17632_v38 = vsel %vm13841_vm5, %v7297_v32, %v7298_v16  ;;  %v6667_v44 = vld [vmem:[#allocation3 + $0x7c] sm:$0xf]  ;;  %12930 = vmatprep.subr.bf16.mxu0 %v13397_v45  ;;  %v6668_v10 = vld [vmem:[#allocation3 + $0x80] sm:$0x1] }
 0x430   : > { %10293 = vmatprep.mubr.bf16.mxu0 %v13370_v27  ;;  %v6896_v30 = vshll.u32 %v6662_v58, 16  ;;  %v6875_v29 = vsel %vm13833_vm2, %v6870_v57, %v6874_v3  ;;  %v6883_v51 = vor.u32 %v6882_v28, %v6879_v42  ;;  %v11854_v21 = vrot.slane %v7172_v18, 9  ;;  %v17664_v27 = vld [vmem:[#allocation3 + $0x78] sm:$0xe]  ;;  %v17669_v32 = vld [vmem:[#allocation3 + $0x7c] sm:$0xf] }
 0x431   : > { %v6893_v31 = vor.u32 %v6892_v35, %v6888_v1  ;;  %v11869_v46 = vcombine.low %v17628_v63, %v17632_v38  ;;  %v7302_v7 = vrot.slane %v7173_v20, 5  ;;  %v7305_v60 = vrot.slane %v7174_v47, 5  ;;  %v7180_v42 = vld [vmem:[#allocation3 + $0x80] sm:$0x1]  ;;  %v6669_v57 = vld [vmem:[#allocation3 + $0x84] sm:$0xf] }
 0x432   : > { %v6898_v54 = vrot.slane %v6896_v30, 5  ;;  %v6884_v17 = vrot.slane %v6883_v51, 4  ;;  %v6901_v48 = vshrl.u32 %v6663_v62, 16  ;;  %v6904_v43 = vshll.u32 %v6663_v62, 16  ;;  %v6670_v30 = vld [vmem:[#allocation3 + $0x88] sm:$0xf] }
 0x433   : > { %v6894_v40 = vrot.slane %v6893_v31, 4  ;;  %v11837_v15 = vcombine.low %v6865_v14, %v6875_v29  ;;  %v7304_v19 = vrot.slane %v7302_v7, 4  ;;  %v6910_v37 = vshll.u32 %v6664_v39, 16  ;;  %v13399_v62 = vld [vmem:[%s19177_s4 + $0x190] sm:$0xff]   ;;  %v7182_v45 = vld [vmem:[#allocation3 + $0x88] sm:$0xf] }
 0x434   : > { %10125 = vmatmul.mubr.bf16.gmra.mrb[148].mxu1 %v13371_v52  ;;  %v6914_v33 = vshrl.u32 %v6664_v39, 16  ;;  %v6889_v41 = vsel %vm13833_vm2, %v6884_v17, %v6888_v1  ;;  %v6903_v61 = vrot.slane %v6901_v48, 4  ;;  %v6906_v53 = vrot.slane %v6904_v43, 5  ;;  %12931 = vmatpush3.bf16.msra.mxu0 %v13399_v62  ;;  %v13401_v48 = vld [vmem:[%s19177_s4 + $0x1d8] sm:$0xff]   ;;  %v7183_v63 = vld [vmem:[#allocation3 + $0x8c] sm:$0x1] }
 0x435   : > { %10132 = vmatprep.mubr.bf16.mxu1 %v11836_v9  ;;  %v6899_v6 = vsel %vm13833_vm2, %v6894_v40, %v6898_v54  ;;  %v17654_v3 = vsel %vm13841_vm5, %v11854_v21, %v7302_v7  ;;  %v6912_v50 = vrot.slane %v6910_v37, 5  ;;  %v17661_v0 = vsel %vm13841_vm5, %v7304_v19, %v7305_v60  ;;  %v13376_v60 = vld [vmem:[#allocation3 + $0x6c] sm:$0xff]   ;;  %12932 = vmatprep.subr.bf16.mxu0 %v13401_v48  ;;  %v6675_v48 = vld [vmem:[#allocation3 + $0x9c] sm:$0xf] }
 0x436   : > { %v17650_v4 = vcombine.low %v6889_v41, %v6899_v6  ;;  %v6916_v58 = vrot.slane %v6914_v33, 4  ;;  %v6907_v16 = vor.u32 %v6906_v53, %v6903_v61  ;;  %v6920_v8 = vshll.u32 %v6665_v59, 16  ;;  %v6671_v40 = vld [vmem:[#allocation3 + $0x8c] sm:$0x1]  ;;  %v13402_v41 = vld [vmem:[%s19177_s4 + $0x198] sm:$0xff]  }
 0x437   : > { %10294 = vmatmul.mubr.bf16.gmra.mrb[184].mxu0 %v11868_v22  ;;  %v11855_v18 = vrot.slane %v17638_v12, 9  ;;  %v7309_v25 = vrot.slane %v7176_v56, 5  ;;  %v7312_v20 = vrot.slane %v7177_v34, 5  ;;  %v6925_v47 = vshrl.u32 %v6666_v2, 16 }
 0x438   : > { %10301 = vmatprep.mubr.bf16.mxu0 %v13372_v49  ;;  %v6917_v55 = vor.u32 %v6916_v58, %v6912_v50  ;;  %v6908_v23 = vrot.slane %v6907_v16, 4  ;;  %v6922_v22 = vrot.slane %v6920_v8, 5  ;;  %v6928_v9 = vshll.u32 %v6666_v2, 16  ;;  %v7181_v49 = vld [vmem:[#allocation3 + $0x84] sm:$0xe]  ;;  %12933 = vmatpush3.bf16.msra.mxu0 %v13402_v41 }
 0x439   : > { %v6934_v13 = vshll.u32 %v6667_v44, 16  ;;  %v11870_v28 = vcombine.low %v17654_v3, %v17661_v0  ;;  %v7311_v35 = vrot.slane %v7309_v25, 4  ;;  %v6927_v14 = vrot.slane %v6925_v47, 4  ;;  %v6672_v16 = vld [vmem:[#allocation3 + $0x90] sm:$0xf]  ;;  %v13404_v8 = vld [vmem:[%s19177_s4 + $0x1e0] sm:$0xff]  }
 0x43a   : > { %v6918_v1 = vrot.slane %v6917_v55, 4  ;;  %v6913_v52 = vsel %vm13833_vm2, %v6908_v23, %v6912_v50  ;;  %v6930_v29 = vrot.slane %v6928_v9, 5  ;;  %v6938_v31 = vshrl.u32 %v6667_v44, 16  ;;  %12934 = vmatprep.subr.bf16.mxu0 %v13404_v8  ;;  %v13378_v9 = vld [vmem:[#allocation3 + $0x78] sm:$0xff]  }
 0x43b   : > { %v17678_v51 = vrot.slane %v6934_v13, 5  ;;  %v17684_v39 = vsel %vm13841_vm5, %v11855_v18, %v7309_v25  ;;  %v17688_v54 = vsel %vm13841_vm5, %v7311_v35, %v7312_v20  ;;  %v6944_v7 = vshll.u32 %v6668_v10, 16  ;;  %v13377_v18 = vld [vmem:[#allocation3 + $0x54] sm:$0xff]  }
 0x43c   : > { %10133 = vmatmul.mubr.bf16.gmra.mrb[152].mxu1 %v13373_v36  ;;  %v6923_v21 = vsel %vm13833_vm2, %v6918_v1, %v6922_v22  ;;  %v6931_v12 = vor.u32 %v6930_v29, %v6927_v14  ;;  %v6940_v26 = vrot.slane %v6938_v31, 4  ;;  %v11856_v17 = vrot.slane %v17664_v27, 9  ;;  %v6673_v20 = vld [vmem:[#allocation3 + $0x94] sm:$0xf]  ;;  %v13406_v22 = vld [vmem:[%s19177_s4 + $0x1a0] sm:$0xff]   ;;  %v13407_v29 = vld [vmem:[%s19177_s4 + $0x1e8] sm:$0xff]  }
 0x43d   : > { %10140 = vmatprep.mubr.bf16.mxu1 %v11837_v15  ;;  %v17690_v59 = vcombine.low %v6913_v52, %v6923_v21  ;;  %v6946_v43 = vrot.slane %v6944_v7, 5  ;;  %v7316_v56 = vrot.slane %v17669_v32, 5  ;;  %v7319_v34 = vrot.slane %v7180_v42, 5  ;;  %v6674_v1 = vld [vmem:[#allocation3 + $0x98] sm:$0x1]  ;;  %12935 = vmatpush3.bf16.msra.mxu0 %v13406_v22 }
 0x43e   : > { %v6949_v2 = vshrl.u32 %v6669_v57, 16  ;;  %v6932_v15 = vrot.slane %v6931_v12, 4  ;;  %v6941_v19 = vor.u32 %v6940_v26, %v17678_v51  ;;  %v6952_v37 = vshll.u32 %v6669_v57, 16  ;;  %v7184_v52 = vld [vmem:[#allocation3 + $0x90] sm:$0xe]  ;;  %12936 = vmatprep.subr.bf16.mxu0 %v13407_v29 }
 0x43f   : > { %10302 = vmatmul.mubr.bf16.gmra.mrb[188].mxu0 %v11869_v46  ;;  %v6958_v33 = vshll.u32 %v6670_v30, 16  ;;  %v11871_v6 = vcombine.low %v17684_v39, %v17688_v54  ;;  %v7318_v61 = vrot.slane %v7316_v56, 4  ;;  %v6962_v50 = vshrl.u32 %v6670_v30, 16  ;;  %v7189_v22 = vld [vmem:[#allocation3 + $0xa4] sm:$0x1] }
 0x440   : > { %10309 = vmatprep.mubr.bf16.mxu0 %v13376_v60  ;;  %v6951_v53 = vrot.slane %v6949_v2, 4  ;;  %v6937_v38 = vsel %vm13833_vm2, %v6932_v15, %v17678_v51  ;;  %v6942_v46 = vrot.slane %v6941_v19, 4  ;;  %v6954_v58 = vrot.slane %v6952_v37, 5  ;;  %v7185_v60 = vld [vmem:[#allocation3 + $0x94] sm:$0xf]  ;;  %v13408_v37 = vld [vmem:[%s19177_s4 + $0x1a8] sm:$0xff]  }
 0x441   : > { %v17709_v44 = vrot.slane %v6958_v33, 5  ;;  %v17716_v10 = vsel %vm13841_vm5, %v7318_v61, %v7319_v34  ;;  %v6964_v36 = vrot.slane %v6962_v50, 4  ;;  %v6968_v55 = vshll.u32 %v6671_v40, 16  ;;  %v7186_v40 = vld [vmem:[#allocation3 + $0x98] sm:$0x1]  ;;  %v13379_v33 = vld [vmem:[#allocation3 + $0x60] sm:$0xff]   ;;  %12937 = vmatpush3.bf16.msra.mxu0 %v13408_v37 }
 0x442   : > { %v11857_v25 = vrot.slane %v7181_v49, 9  ;;  %v6947_v47 = vsel %vm13833_vm2, %v6942_v46, %v6946_v43  ;;  %v17722_v27 = vsel %vm13841_vm5, %v11856_v17, %v7316_v56  ;;  %v6955_v5 = vor.u32 %v6954_v58, %v6951_v53  ;;  %v6676_v56 = vld [vmem:[#allocation3 + $0xa0] sm:$0xf]  ;;  %v6677_v19 = vld [vmem:[#allocation3 + $0xa4] sm:$0x1] }
 0x443   : > { %v7323_v23 = vrot.slane %v7182_v45, 5  ;;  %v11872_v13 = vcombine.low %v17722_v27, %v17716_v10  ;;  %v6965_v32 = vor.u32 %v6964_v36, %v17709_v44  ;;  %v6970_v42 = vrot.slane %v6968_v55, 5  ;;  %v17759_v50 = vld [vmem:[#allocation3 + $0x9c] sm:$0xe]  ;;  %v7188_v55 = vld [vmem:[#allocation3 + $0xa0] sm:$0xf] }
 0x444   : > { %10141 = vmatmul.mubr.bf16.gmra.mrb[156].mxu1 %v13377_v18  ;;  %v7326_v57 = vrot.slane %v7183_v63, 5  ;;  %v17731_v35 = vcombine.low %v6937_v38, %v6947_v47  ;;  %v6956_v14 = vrot.slane %v6955_v5, 4  ;;  %v6973_v62 = vshrl.u32 %v6672_v16, 16  ;;  %v6679_v29 = vld [vmem:[#allocation3 + $0xac] sm:$0xf] }
 0x445   : > { %10148 = vmatprep.mubr.bf16.mxu1 %v17650_v4  ;;  %v7325_v30 = vrot.slane %v7323_v23, 4  ;;  %v6966_v51 = vrot.slane %v6965_v32, 4  ;;  %v6976_v31 = vshll.u32 %v6672_v16, 16  ;;  %v6982_v21 = vshll.u32 %v6673_v20, 16 }
 0x446   : > { %v6986_v7 = vshrl.u32 %v6673_v20, 16  ;;  %v17741_v4 = vsel %vm13841_vm5, %v11857_v25, %v7323_v23  ;;  %v6975_v26 = vrot.slane %v6973_v62, 4  ;;  %v6992_v17 = vshll.u32 %v6674_v1, 16  ;;  %v13411_v25 = vld [vmem:[%s19177_s4 + $0x138] sm:$0xff]   ;;  %v6678_v1 = vld [vmem:[#allocation3 + $0xa8] sm:$0xf] }
 0x447   : > { %10310 = vmatmul.mubr.bf16.gmra.mrb[192].mxu0 %v11870_v28  ;;  %v17745_v12 = vsel %vm13841_vm5, %v7325_v30, %v7326_v57  ;;  %v6961_v43 = vsel %vm13833_vm2, %v6956_v14, %v17709_v44  ;;  %v6971_v3 = vsel %vm13833_vm2, %v6966_v51, %v6970_v42  ;;  %v6978_v0 = vrot.slane %v6976_v31, 5  ;;  %v13410_v44 = vld [vmem:[%s19177_s4 + $0x178] sm:$0xff]   ;;  %v13412_v51 = vld [vmem:[%s19177_s4 + $0x1f0] sm:$0xff]  }
 0x448   : > { %10317 = vmatprep.mubr.bf16.mxu0 %v13378_v9  ;;  %v17752_v28 = vrot.slane %v6982_v21, 5  ;;  %v11873_v34 = vcombine.low %v17741_v4, %v17745_v12  ;;  %v6988_v2 = vrot.slane %v6986_v7, 4  ;;  %v6994_v49 = vrot.slane %v6992_v17, 5  ;;  %12828 = vmatprep.subr.bf16.mxu1 %v13410_v44  ;;  %v13384_v9 = vld [vmem:[#allocation3 + $0x84] sm:$0xff]   ;;  %v13385_v31 = vld [vmem:[#allocation3 + $0x6c] sm:$0xff]  }
 0x449   : > { %v11858_v15 = vrot.slane %v7184_v52, 9  ;;  %v6979_v45 = vor.u32 %v6978_v0, %v6975_v26  ;;  %v7330_v41 = vrot.slane %v7185_v60, 5  ;;  %v7333_v61 = vrot.slane %v7186_v40, 5  ;;  %12829 = vmatpush3.bf16.msra.mxu1 %v13411_v25  ;;  %v17793_v60 = vld [vmem:[#allocation3 + $0xa8] sm:$0xe]  ;;  %v13413_v26 = vld [vmem:[%s19177_s4 + $0x1b0] sm:$0xff]   ;;  %12938 = vmatprep.subr.bf16.mxu0 %v13412_v51 }
 0x44a   : > { %v6997_v53 = vshrl.u32 %v6675_v48, 16  ;;  %v6989_v63 = vor.u32 %v6988_v2, %v17752_v28  ;;  %v7000_v38 = vshll.u32 %v6675_v48, 16  ;;  %v7006_v46 = vshll.u32 %v6676_v56, 16  ;;  %v7192_v0 = vld [vmem:[#allocation3 + $0xb0] sm:$0x1]  ;;  %12939 = vmatpush3.bf16.msra.mxu0 %v13413_v26 }
 0x44b   : > { %v7010_v58 = vshrl.u32 %v6676_v56, 16  ;;  %v17765_v16 = vcombine.low %v6961_v43, %v6971_v3  ;;  %v6980_v8 = vrot.slane %v6979_v45, 4  ;;  %v7332_v18 = vrot.slane %v7330_v41, 4  ;;  %v7191_v3 = vld [vmem:[#allocation3 + $0xac] sm:$0xf] }
 0x44c   : > { %10149 = vmatmul.mubr.bf16.gmra.mrb[160].mxu1 %v13379_v33  ;;  %v6999_v36 = vrot.slane %v6997_v53, 4  ;;  %v6990_v20 = vrot.slane %v6989_v63, 4  ;;  %v7002_v47 = vrot.slane %v7000_v38, 5  ;;  %v7008_v5 = vrot.slane %v7006_v46, 5  ;;  %v6682_v46 = vld [vmem:[#allocation3 + $0xb8] sm:$0xf] }
 0x44d   : > { %10156 = vmatprep.mubr.bf16.mxu1 %v17690_v59  ;;  %v7012_v23 = vrot.slane %v7010_v58, 4  ;;  %v6985_v32 = vsel %vm13833_vm2, %v6980_v8, %v17752_v28  ;;  %v17776_v42 = vsel %vm13841_vm5, %v11858_v15, %v7330_v41  ;;  %v17780_v57 = vsel %vm13841_vm5, %v7332_v18, %v7333_v61  ;;  %v6681_v15 = vld [vmem:[#allocation3 + $0xb4] sm:$0xf]  ;;  %v13415_v61 = vld [vmem:[%s19177_s4 + $0x1b8] sm:$0xff]   ;;  %v8528_v4 = vld [vmem:[#allocation3 + $0x24] sm:$0xf] }
 0x44e   : > { %v7016_v59 = vshll.u32 %v6677_v19, 16  ;;  %v6995_v14 = vsel %vm13833_vm2, %v6990_v20, %v6994_v49  ;;  %v7003_v30 = vor.u32 %v7002_v47, %v6999_v36  ;;  %v11859_v52 = vrot.slane %v17759_v50, 9  ;;  %v13414_v19 = vld [vmem:[%s19177_s4 + $0x1f8] sm:$0xff]  }
 0x44f   : > { %10318 = vmatmul.mubr.bf16.gmra.mrb[196].mxu0 %v11871_v6  ;;  %v7013_v62 = vor.u32 %v7012_v23, %v7008_v5  ;;  %v11874_v21 = vcombine.low %v17776_v42, %v17780_v57  ;;  %v7337_v39 = vrot.slane %v7188_v55, 5  ;;  %v7340_v54 = vrot.slane %v7189_v22, 5  ;;  %v6680_v6 = vld [vmem:[#allocation3 + $0xb0] sm:$0x1]  ;;  %12940 = vmatprep.subr.bf16.mxu0 %v13414_v19  ;;  %v6683_v36 = vld [vmem:[#allocation3 + $0xbc] sm:$0x1] }
 0x450   : > { %10325 = vmatprep.mubr.bf16.mxu0 %v13384_v9  ;;  %v7018_v7 = vrot.slane %v7016_v59, 5  ;;  %v7004_v17 = vrot.slane %v7003_v30, 4  ;;  %v7021_v48 = vshrl.u32 %v6678_v1, 16  ;;  %v7024_v43 = vshll.u32 %v6678_v1, 16  ;;  %v13386_v55 = vld [vmem:[#allocation3 + $0x90] sm:$0xff]   ;;  %12941 = vmatpush3.bf16.msra.mxu0 %v13415_v61 }
 0x451   : > { %v7014_v40 = vrot.slane %v7013_v62, 4  ;;  %v17798_v28 = vcombine.low %v6985_v32, %v6995_v14  ;;  %v7339_v56 = vrot.slane %v7337_v39, 4  ;;  %v7030_v2 = vshll.u32 %v6679_v29, 16  ;;  %v7193_v23 = vld [vmem:[#allocation3 + $0xb4] sm:$0xe] }
 0x452   : > { %v7034_v49 = vshrl.u32 %v6679_v29, 16  ;;  %v7009_v37 = vsel %vm13833_vm2, %v7004_v17, %v7008_v5  ;;  %v7023_v45 = vrot.slane %v7021_v48, 4  ;;  %v7026_v41 = vrot.slane %v7024_v43, 5  ;;  %v7194_v59 = vld [vmem:[#allocation3 + $0xb8] sm:$0xf]  ;;  %v17830_v29 = vld [vmem:[%s19177_s4 + $0x200] sm:$0xff]  }
 0x453   : > { %v7019_v33 = vsel %vm13833_vm2, %v7014_v40, %v7018_v7  ;;  %v17814_v50 = vsel %vm13841_vm5, %v11859_v52, %v7337_v39  ;;  %v7032_v63 = vrot.slane %v7030_v2, 5  ;;  %v17819_v58 = vsel %vm13841_vm5, %v7339_v56, %v7340_v54  ;;  %v7195_v52 = vld [vmem:[#allocation3 + $0xbc] sm:$0x1]  ;;  %13110 = vmatprep.subr.bf16.mxu1 %v17830_v29  ;;  %v8093_v19 = vld [vmem:[#allocation3 + $0x10] sm:$0xf] }
 0x454   : > { %10157 = vmatmul.mubr.bf16.gmra.mrb[164].mxu1 %v13385_v31  ;;  %v17810_v53 = vcombine.low %v7009_v37, %v7019_v33  ;;  %v7036_v38 = vrot.slane %v7034_v49, 4  ;;  %v7027_v44 = vor.u32 %v7026_v41, %v7023_v45  ;;  %v7040_v8 = vshll.u32 %v6680_v6, 16  ;;  %v8525_v31 = vld [vmem:[#allocation3 + $0x18] sm:$0xf]  ;;  %v8526_v26 = vld [vmem:[#allocation3 + $0x1c] sm:$0xf] }
 0x455   : > { %10164 = vmatprep.mubr.bf16.mxu1 %v17731_v35  ;;  %v11860_v18 = vrot.slane %v17793_v60, 9  ;;  %v7344_v20 = vrot.slane %v7191_v3, 5  ;;  %v7347_v47 = vrot.slane %v7192_v0, 5  ;;  %v7045_v5 = vshrl.u32 %v6681_v15, 16  ;;  %v13387_v7 = vld [vmem:[#allocation3 + $0x78] sm:$0xff]   ;;  %v13395_v42 = vld [vmem:[#allocation3 + $0x90] sm:$0xff]  }
 0x456   : > { %v7037_v25 = vor.u32 %v7036_v38, %v7032_v63  ;;  %v7028_v35 = vrot.slane %v7027_v44, 4  ;;  %v7042_v22 = vrot.slane %v7040_v8, 5  ;;  %v7048_v9 = vshll.u32 %v6681_v15, 16  ;;  %v8527_v3 = vld [vmem:[#allocation3 + $0x20] sm:$0x1] }
 0x457   : > { %10326 = vmatmul.mubr.bf16.gmra.mrb[200].mxu0 %v11872_v13  ;;  %v7054_v32 = vshll.u32 %v6682_v46, 16  ;;  %v11875_v1 = vcombine.low %v17814_v50, %v17819_v58  ;;  %v7346_v30 = vrot.slane %v7344_v20, 4  ;;  %v7047_v62 = vrot.slane %v7045_v5, 4  ;;  %v8092_v15 = vld [vmem:[#allocation3 + $0xc] sm:$0xe] }
 0x458   : > { %10333 = vmatprep.mubr.bf16.mxu0 %v13386_v55  ;;  %v7038_v14 = vrot.slane %v7037_v25, 4  ;;  %v7033_v10 = vsel %vm13833_vm2, %v7028_v35, %v7032_v63  ;;  %v7050_v27 = vrot.slane %v7048_v9, 5  ;;  %v7058_v51 = vshrl.u32 %v6682_v46, 16  ;;  %v8094_v61 = vld [vmem:[#allocation3 + $0x14] sm:$0x1]  ;;  %v13392_v63 = vld [vmem:[#allocation3 + $0x9c] sm:$0xff]  }
 0x459   : > { %v7056_v13 = vrot.slane %v7054_v32, 5  ;;  %v17838_v54 = vsel %vm13841_vm5, %v11860_v18, %v7344_v20  ;;  %v17842_v6 = vsel %vm13841_vm5, %v7346_v30, %v7347_v47  ;;  %v7064_v60 = vshll.u32 %v6683_v36, 16  ;;  %v13393_v9 = vld [vmem:[#allocation3 + $0x84] sm:$0xff]  }
 0x45a   : > { %v7043_v39 = vsel %vm13833_vm2, %v7038_v14, %v7042_v22  ;;  %v7051_v40 = vor.u32 %v7050_v27, %v7047_v62  ;;  %v7060_v48 = vrot.slane %v7058_v51, 4  ;;  %v11861_v43 = vrot.slane %v7193_v23, 9  ;;  %v8529_v22 = vld [vmem:[#allocation3 + $0x28] sm:$0xf]  ;;  %v8530_v62 = vld [vmem:[#allocation3 + $0x2c] sm:$0x1] }
 0x45b   : > { %v17845_v17 = vcombine.low %v7033_v10, %v7043_v39  ;;  %v7066_v0 = vrot.slane %v7064_v60, 5  ;;  %v7351_v56 = vrot.slane %v7194_v59, 5  ;;  %v7354_v2 = vrot.slane %v7195_v52, 5  ;;  %v7580_v51 = vld [vmem:[#allocation3 + $0xc] sm:$0xf] }
 0x45c   : > { %10165 = vmatmul.mubr.bf16.gmra.mrb[168].mxu1 %v13387_v7  ;;  %v8574_v49 = vshrl.u32 %v8525_v31, 16  ;;  %v7052_v37 = vrot.slane %v7051_v40, 4  ;;  %v7061_v33 = vor.u32 %v7060_v48, %v7056_v13  ;;  %v8577_v45 = vshll.u32 %v8525_v31, 16  ;;  %v13394_v31 = vld [vmem:[#allocation3 + $0xa8] sm:$0xff]   ;;  %v7581_v40 = vld [vmem:[#allocation3 + $0x10] sm:$0xf] }
 0x45d   : > { %10172 = vmatprep.mubr.bf16.mxu1 %v17765_v16  ;;  %v8583_v41 = vshll.u32 %v8526_v26, 16  ;;  %v11876_v38 = vcombine.low %v17838_v54, %v17842_v6  ;;  %v7353_v46 = vrot.slane %v7351_v56, 4  ;;  %v8587_v8 = vshrl.u32 %v8526_v26, 16 }
 0x45e   : > { %v8576_v44 = vrot.slane %v8574_v49, 4  ;;  %v7062_v18 = vrot.slane %v7061_v33, 4  ;;  %v17855_v16 = vsel %vm13841_vm5, %v11861_v43, %v7351_v56  ;;  %v8579_v36 = vrot.slane %v8577_v45, 5  ;;  %v7582_v56 = vld [vmem:[#allocation3 + $0x14] sm:$0x1] }
 0x45f   : > { %10334 = vmatmul.mubr.bf16.gmra.mrb[204].mxu0 %v11873_v34  ;;  %v17857_v55 = vrot.slane %v8583_v41, 5  ;;  %v7057_v25 = vsel %vm13833_vm2, %v7052_v37, %v7056_v13  ;;  %v17863_v20 = vsel %vm13841_vm5, %v7353_v46, %v7354_v2  ;;  %v8589_v47 = vrot.slane %v8587_v8, 4  ;;  %v8095_v2 = vld [vmem:[#allocation3 + $0x18] sm:$0xe] }
 0x460   : > { %10341 = vmatprep.mubr.bf16.mxu0 %v13392_v63  ;;  %v8593_v5 = vshll.u32 %v8527_v3, 16  ;;  %v7067_v12 = vsel %vm13833_vm2, %v7062_v18, %v7066_v0  ;;  %v8580_v34 = vor.u32 %v8579_v36, %v8576_v44  ;;  %v11910_v23 = vrot.slane %v8092_v15, 9  ;;  %v8097_v18 = vld [vmem:[#allocation3 + $0x20] sm:$0x1] }
 0x461   : > { %v8190_v35 = vrot.slane %v8093_v19, 5  ;;  %v11877_v32 = vcombine.low %v17855_v16, %v17863_v20  ;;  %v8590_v59 = vor.u32 %v8589_v47, %v17857_v55  ;;  %v8193_v30 = vrot.slane %v8094_v61, 5  ;;  %v8096_v61 = vld [vmem:[#allocation3 + $0x1c] sm:$0xf] }
 0x462   : > { %v8595_v14 = vrot.slane %v8593_v5, 5  ;;  %v17870_v52 = vcombine.low %v7057_v25, %v7067_v12  ;;  %v8581_v10 = vrot.slane %v8580_v34, 4  ;;  %v8598_v13 = vshrl.u32 %v8528_v4, 16  ;;  %v8531_v5 = vld [vmem:[#allocation3 + $0x30] sm:$0xf] }
 0x463   : > { %v8192_v27 = vrot.slane %v8190_v35, 4  ;;  %v8591_v7 = vrot.slane %v8590_v59, 4  ;;  %v8601_v39 = vshll.u32 %v8528_v4, 16  ;;  %v8607_v60 = vshll.u32 %v8529_v22, 16 }
 0x464   : > { %10173 = vmatmul.mubr.bf16.gmra.mrb[172].mxu1 %v13393_v9  ;;  %v8611_v26 = vshrl.u32 %v8529_v22, 16  ;;  %v17875_v48 = vsel %vm13841_vm5, %v11910_v23, %v8190_v35  ;;  %v8600_v3 = vrot.slane %v8598_v13, 4  ;;  %v8617_v0 = vshll.u32 %v8530_v62, 16  ;;  %v8533_v62 = vld [vmem:[#allocation3 + $0x38] sm:$0x1] }
 0x465   : > { %10180 = vmatprep.mubr.bf16.mxu1 %v17798_v28  ;;  %v17879_v43 = vsel %vm13841_vm5, %v8192_v27, %v8193_v30  ;;  %v8586_v49 = vsel %vm13833_vm2, %v8581_v10, %v17857_v55  ;;  %v8596_v15 = vsel %vm13833_vm2, %v8591_v7, %v8595_v14  ;;  %v8603_v28 = vrot.slane %v8601_v39, 5  ;;  %v8532_v30 = vld [vmem:[#allocation3 + $0x34] sm:$0xf]  ;;  %v7583_v7 = vld [vmem:[#allocation3 + $0x18] sm:$0xf] }
 0x466   : > { %v8609_v19 = vrot.slane %v8607_v60, 5  ;;  %v11926_v37 = vcombine.low %v17875_v48, %v17879_v43  ;;  %v8613_v33 = vrot.slane %v8611_v26, 4  ;;  %v8619_v45 = vrot.slane %v8617_v0, 5  ;;  %v7584_v39 = vld [vmem:[#allocation3 + $0x1c] sm:$0xf]  ;;  %v13400_v60 = vld [vmem:[#allocation3 + $0xb4] sm:$0xff]  }
 0x467   : > { %10342 = vmatmul.mubr.bf16.gmra.mrb[208].mxu0 %v11874_v21  ;;  %v7629_v41 = vshrl.u32 %v7580_v51, 16  ;;  %v8604_v63 = vor.u32 %v8603_v28, %v8600_v3  ;;  %v7632_v46 = vshll.u32 %v7580_v51, 16  ;;  %v7638_v44 = vshll.u32 %v7581_v40, 16 }
 0x468   : > { %10349 = vmatprep.mubr.bf16.mxu0 %v13394_v31  ;;  %v7642_v8 = vshrl.u32 %v7581_v40, 16  ;;  %v8614_v36 = vor.u32 %v8613_v33, %v8609_v19  ;;  %v7648_v25 = vshll.u32 %v7582_v56, 16  ;;  %v11911_v47 = vrot.slane %v8095_v2, 9 }
 0x469   : > { %v7631_v55 = vrot.slane %v7629_v41, 4  ;;  %v8605_v57 = vrot.slane %v8604_v63, 4  ;;  %v7634_v21 = vrot.slane %v7632_v46, 5  ;;  %v17891_v4 = vrot.slane %v7638_v44, 5  ;;  %v8098_v63 = vld [vmem:[#allocation3 + $0x24] sm:$0xe] }
 0x46a   : > { %v7644_v12 = vrot.slane %v7642_v8, 4  ;;  %v17893_v34 = vcombine.low %v8586_v49, %v8596_v15  ;;  %v8615_v23 = vrot.slane %v8614_v36, 4  ;;  %v8197_v35 = vrot.slane %v8096_v61, 5  ;;  %v13403_v15 = vld [vmem:[#allocation3 + $0x9c] sm:$0xff]   ;;  %v8099_v46 = vld [vmem:[#allocation3 + $0x28] sm:$0xf] }
 0x46b   : > { %v8200_v22 = vrot.slane %v8097_v18, 5  ;;  %v7635_v9 = vor.u32 %v7634_v21, %v7631_v55  ;;  %v17896_v14 = vrot.slane %v7648_v25, 5  ;;  %v8622_v10 = vshrl.u32 %v8531_v5, 16  ;;  %v8100_v55 = vld [vmem:[#allocation3 + $0x2c] sm:$0x1] }
 0x46c   : > { %10181 = vmatmul.mubr.bf16.gmra.mrb[176].mxu1 %v13395_v42  ;;  %v7645_v59 = vor.u32 %v7644_v12, %v17891_v4  ;;  %v8610_v27 = vsel %vm13833_vm2, %v8605_v57, %v8609_v19  ;;  %v8620_v13 = vsel %vm13833_vm2, %v8615_v23, %v8619_v45  ;;  %v8199_v51 = vrot.slane %v8197_v35, 4  ;;  %v8534_v57 = vld [vmem:[#allocation3 + $0x3c] sm:$0xf] }
 0x46d   : > { %10188 = vmatprep.mubr.bf16.mxu1 %v17810_v53  ;;  %v8625_v31 = vshll.u32 %v8531_v5, 16  ;;  %v7636_v26 = vrot.slane %v7635_v9, 4  ;;  %v17905_v3 = vsel %vm13841_vm5, %v11911_v47, %v8197_v35  ;;  %v8624_v0 = vrot.slane %v8622_v10, 4  ;;  %v8535_v35 = vld [vmem:[#allocation3 + $0x40] sm:$0xf] }
 0x46e   : > { %v7646_v40 = vrot.slane %v7645_v59, 4  ;;  %v17912_v53 = vsel %vm13841_vm5, %v8199_v51, %v8200_v22  ;;  %v8631_v2 = vshll.u32 %v8532_v30, 16  ;;  %v8635_v49 = vshrl.u32 %v8532_v30, 16  ;;  %v13405_v30 = vld [vmem:[#allocation3 + $0xc0] sm:$0xff]  }
 0x46f   : > { %10350 = vmatmul.mubr.bf16.gmra.mrb[212].mxu0 %v11875_v1  ;;  %v8627_v56 = vrot.slane %v8625_v31, 5  ;;  %v17914_v28 = vcombine.low %v8610_v27, %v8620_v13  ;;  %v7641_v19 = vsel %vm13833_vm2, %v7636_v26, %v17891_v4  ;;  %v8641_v58 = vshll.u32 %v8533_v62, 16  ;;  %v7585_v1 = vld [vmem:[#allocation3 + $0x20] sm:$0x1]  ;;  %v8536_v13 = vld [vmem:[#allocation3 + $0x44] sm:$0x1] }
 0x470   : > { %10357 = vmatprep.mubr.bf16.mxu0 %v13400_v60  ;;  %v7651_v50 = vsel %vm13833_vm2, %v7646_v40, %v17896_v14  ;;  %v11927_v33 = vcombine.low %v17905_v3, %v17912_v53  ;;  %v8633_v41 = vrot.slane %v8631_v2, 5  ;;  %v8637_v61 = vrot.slane %v8635_v49, 4  ;;  %v13409_v2 = vld [vmem:[#allocation3 + $0xa8] sm:$0xff]   ;;  %v13424_v3 = vld [vmem:[%s19177_s4 + $0x210] sm:$0xff]  }
 0x471   : > { %v8628_v45 = vor.u32 %v8627_v56, %v8624_v0  ;;  %v8643_v44 = vrot.slane %v8641_v58, 5  ;;  %v7653_v8 = vshrl.u32 %v7583_v7, 16  ;;  %v7656_v18 = vshll.u32 %v7583_v7, 16  ;;  %v7586_v56 = vld [vmem:[#allocation3 + $0x24] sm:$0xf] }
 0x472   : > { %v7662_v36 = vshll.u32 %v7584_v39, 16  ;;  %v8638_v47 = vor.u32 %v8637_v61, %v8633_v41  ;;  %v7666_v5 = vshrl.u32 %v7584_v39, 16  ;;  %v7672_v42 = vshll.u32 %v7585_v1, 16 }
 0x473   : > { %v8629_v25 = vrot.slane %v8628_v45, 4  ;;  %v7655_v21 = vrot.slane %v7653_v8, 4  ;;  %v7658_v4 = vrot.slane %v7656_v18, 5  ;;  %v11912_v23 = vrot.slane %v8098_v63, 9  ;;  %v7588_v45 = vld [vmem:[#allocation3 + $0x2c] sm:$0x1] }
 0x474   : > { %10189 = vmatmul.mubr.bf16.gmra.mrb[180].mxu1 %v13403_v15  ;;  %v7664_v12 = vrot.slane %v7662_v36, 5  ;;  %v8639_v9 = vrot.slane %v8638_v47, 4  ;;  %v7668_v59 = vrot.slane %v7666_v5, 4  ;;  %v7674_v14 = vrot.slane %v7672_v42, 5  ;;  %v8102_v8 = vld [vmem:[#allocation3 + $0x34] sm:$0xf] }
 0x475   : > { %10196 = vmatprep.mubr.bf16.mxu1 %v17845_v17  ;;  %v8634_v22 = vsel %vm13833_vm2, %v8629_v25, %v8633_v41  ;;  %v7659_v62 = vor.u32 %v7658_v4, %v7655_v21  ;;  %v8204_v10 = vrot.slane %v8099_v46, 5  ;;  %v8207_v27 = vrot.slane %v8100_v55, 5  ;;  %v8103_v47 = vld [vmem:[#allocation3 + $0x38] sm:$0x1]  ;;  %v8537_v5 = vld [vmem:[#allocation3 + $0x48] sm:$0xf] }
 0x476   : > { %v8646_v51 = vshrl.u32 %v8534_v57, 16  ;;  %v8644_v31 = vsel %vm13833_vm2, %v8639_v9, %v8643_v44  ;;  %v7669_v17 = vor.u32 %v7668_v59, %v7664_v12  ;;  %v8649_v7 = vshll.u32 %v8534_v57, 16  ;;  %v8101_v44 = vld [vmem:[#allocation3 + $0x30] sm:$0xe] }
 0x477   : > { %10358 = vmatmul.mubr.bf16.gmra.mrb[216].mxu0 %v11876_v38  ;;  %v8655_v39 = vshll.u32 %v8535_v35, 16  ;;  %v17932_v60 = vcombine.low %v7641_v19, %v7651_v50  ;;  %v17934_v26 = vcombine.low %v8634_v22, %v8644_v31  ;;  %v7660_v40 = vrot.slane %v7659_v62, 4  ;;  %v7587_v50 = vld [vmem:[#allocation3 + $0x28] sm:$0xf] }
 0x478   : > { %10365 = vmatprep.mubr.bf16.mxu0 %v13405_v30  ;;  %v8206_v0 = vrot.slane %v8204_v10, 4  ;;  %v7670_v49 = vrot.slane %v7669_v17, 4  ;;  %v8648_v15 = vrot.slane %v8646_v51, 4  ;;  %v8651_v58 = vrot.slane %v8649_v7, 5  ;;  %v8539_v7 = vld [vmem:[#allocation3 + $0x50] sm:$0x1] }
 0x479   : > { %v8657_v54 = vrot.slane %v8655_v39, 5  ;;  %v7665_v6 = vsel %vm13833_vm2, %v7660_v40, %v7664_v12  ;;  %v8659_v1 = vshrl.u32 %v8535_v35, 16  ;;  %v8665_v19 = vshll.u32 %v8536_v13, 16  ;;  %v8538_v12 = vld [vmem:[#allocation3 + $0x4c] sm:$0xf]  ;;  %v13416_v40 = vld [vmem:[#allocation3 + $0xb4] sm:$0xff]  }
 0x47a   : > { %v17940_v38 = vsel %vm13841_vm5, %v8206_v0, %v8207_v27  ;;  %v7675_v41 = vsel %vm13833_vm2, %v7670_v49, %v7674_v14  ;;  %v17946_v61 = vsel %vm13841_vm5, %v11912_v23, %v8204_v10  ;;  %v8652_v63 = vor.u32 %v8651_v58, %v8648_v15 }
 0x47b   : > { %v7677_v46 = vshrl.u32 %v7586_v56, 16  ;;  %v17948_v18 = vcombine.low %v7665_v6, %v7675_v41  ;;  %v11928_v36 = vcombine.low %v17946_v61, %v17940_v38  ;;  %v8661_v55 = vrot.slane %v8659_v1, 4  ;;  %v8104_v41 = vld [vmem:[#allocation3 + $0x3c] sm:$0xe]  ;;  %v13430_v38 = vld [vmem:[%s19177_s4 + $0x220] sm:$0xff]  }
 0x47c   : > { %10197 = vmatmul.mubr.bf16.gmra.mrb[184].mxu1 %v13409_v2  ;;  %v7680_v25 = vshll.u32 %v7586_v56, 16  ;;  %v8653_v42 = vrot.slane %v8652_v63, 4  ;;  %v7686_v21 = vshll.u32 %v7587_v50, 16  ;;  %v7690_v4 = vshrl.u32 %v7587_v50, 16  ;;  %v7589_v56 = vld [vmem:[#allocation3 + $0x30] sm:$0xf] }
 0x47d   : > { %10204 = vmatprep.mubr.bf16.mxu1 %v17870_v52  ;;  %v7679_v57 = vrot.slane %v7677_v46, 4  ;;  %v8662_v23 = vor.u32 %v8661_v55, %v8657_v54  ;;  %v8667_v35 = vrot.slane %v8665_v19, 5  ;;  %v7696_v9 = vshll.u32 %v7588_v45, 16  ;;  %v7591_v45 = vld [vmem:[#allocation3 + $0x38] sm:$0x1] }
 0x47e   : > { %v7682_v22 = vrot.slane %v7680_v25, 5  ;;  %v7688_v59 = vrot.slane %v7686_v21, 5  ;;  %v7692_v14 = vrot.slane %v7690_v4, 4  ;;  %v11913_v30 = vrot.slane %v8101_v44, 9  ;;  %v8105_v55 = vld [vmem:[#allocation3 + $0x40] sm:$0xf] }
 0x47f   : > { %10366 = vmatmul.mubr.bf16.gmra.mrb[220].mxu0 %v11877_v32  ;;  %v8211_v62 = vrot.slane %v8102_v8, 5  ;;  %v8658_v52 = vsel %vm13833_vm2, %v8653_v42, %v8657_v54  ;;  %v8663_v10 = vrot.slane %v8662_v23, 4  ;;  %v8214_v13 = vrot.slane %v8103_v47, 5  ;;  %v7590_v54 = vld [vmem:[#allocation3 + $0x34] sm:$0xf] }
 0x480   : > { %10567 = vmatprep.mubr.bf16.mxu0 %v17893_v34  ;;  %v7683_v27 = vor.u32 %v7682_v22, %v7679_v57  ;;  %v7693_v51 = vor.u32 %v7692_v14, %v7688_v59  ;;  %v7698_v31 = vrot.slane %v7696_v9, 5  ;;  %v8670_v39 = vshrl.u32 %v8537_v5, 16  ;;  %v13417_v34 = vld [vmem:[#allocation3 + $0x18] sm:$0xff]   ;;  %v8540_v22 = vld [vmem:[#allocation3 + $0x54] sm:$0xf] }
 0x481   : > { %v8213_v17 = vrot.slane %v8211_v62, 4  ;;  %v8668_v16 = vsel %vm13833_vm2, %v8663_v10, %v8667_v35  ;;  %v8673_v32 = vshll.u32 %v8537_v5, 16  ;;  %v8679_v0 = vshll.u32 %v8538_v12, 16  ;;  %v8106_v35 = vld [vmem:[#allocation3 + $0x44] sm:$0x1]  ;;  %v13421_v10 = vld [vmem:[%s19177_s4 + $0x208] sm:$0xff]  }
 0x482   : > { %v7684_v20 = vrot.slane %v7683_v27, 4  ;;  %v17961_v2 = vcombine.low %v8658_v52, %v8668_v16  ;;  %v17965_v49 = vsel %vm13841_vm5, %v11913_v30, %v8211_v62  ;;  %v8672_v58 = vrot.slane %v8670_v39, 4  ;;  %v8541_v62 = vld [vmem:[#allocation3 + $0x58] sm:$0xf]  ;;  %v8542_v16 = vld [vmem:[#allocation3 + $0x5c] sm:$0x1] }
 0x483   : > { %v17969_v15 = vsel %vm13841_vm5, %v8213_v17, %v8214_v13  ;;  %v7694_v1 = vrot.slane %v7693_v51, 4  ;;  %v8675_v50 = vrot.slane %v8673_v32, 5  ;;  %v8681_v63 = vrot.slane %v8679_v0, 5  ;;  %v13419_v51 = vld [vmem:[#allocation3 + $0x24] sm:$0xff]  }
 0x484   : > { %10205 = vmatmul.mubr.bf16.gmra.mrb[188].mxu1 %v13416_v40  ;;  %v7689_v6 = vsel %vm13833_vm2, %v7684_v20, %v7688_v59  ;;  %v11929_v19 = vcombine.low %v17965_v49, %v17969_v15  ;;  %v8683_v46 = vshrl.u32 %v8538_v12, 16  ;;  %v8689_v44 = vshll.u32 %v8539_v7, 16 }
 0x485   : > { %10406 = vmatprep.mubr.bf16.mxu1 %v11926_v37  ;;  %v7701_v8 = vshrl.u32 %v7589_v56, 16  ;;  %v7699_v25 = vsel %vm13833_vm2, %v7694_v1, %v7698_v31  ;;  %v8676_v47 = vor.u32 %v8675_v50, %v8672_v58  ;;  %v7704_v5 = vshll.u32 %v7589_v56, 16  ;;  %v7593_v1 = vld [vmem:[#allocation3 + $0x40] sm:$0xf] }
 0x486   : > { %v7710_v42 = vshll.u32 %v7590_v54, 16  ;;  %v8685_v57 = vrot.slane %v8683_v46, 4  ;;  %v8691_v21 = vrot.slane %v8689_v44, 5  ;;  %v7714_v23 = vshrl.u32 %v7590_v54, 16  ;;  %v7592_v54 = vld [vmem:[#allocation3 + $0x3c] sm:$0xf] }
 0x487   : > { %10568 = vmatmul.mubr.bf16.vlgmr.msra.gmra.mrb[224].mxu0 %v13417_v34  ;;  %v7703_v4 = vrot.slane %v7701_v8, 4  ;;  %v8677_v48 = vrot.slane %v8676_v47, 4  ;;  %v7706_v43 = vrot.slane %v7704_v5, 5  ;;  %v7720_v12 = vshll.u32 %v7591_v45, 16  ;;  %v7594_v46 = vld [vmem:[#allocation3 + $0x44] sm:$0x1] }
 0x488   : > { %10575 = vmatprep.mubr.bf16.mxu0 %v17914_v28  ;;  %v17981_v37 = vrot.slane %v7710_v42, 5  ;;  %v8686_v9 = vor.u32 %v8685_v57, %v8681_v63  ;;  %v7716_v59 = vrot.slane %v7714_v23, 4  ;;  %v11914_v14 = vrot.slane %v8104_v41, 9  ;;  %v13427_v47 = vld [vmem:[%s19177_s4 + $0x218] sm:$0xff]   ;;  %v8108_v23 = vld [vmem:[#allocation3 + $0x4c] sm:$0xf] }
 0x489   : > { %v8218_v30 = vrot.slane %v8105_v55, 5  ;;  %v17983_v52 = vcombine.low %v7689_v6, %v7699_v25  ;;  %v8682_v28 = vsel %vm13833_vm2, %v8677_v48, %v8681_v63  ;;  %v7707_v27 = vor.u32 %v7706_v43, %v7703_v4  ;;  %v8107_v4 = vld [vmem:[#allocation3 + $0x48] sm:$0xe] }
 0x48a   : > { %v8221_v13 = vrot.slane %v8106_v35, 5  ;;  %v8687_v31 = vrot.slane %v8686_v9, 4  ;;  %v7717_v17 = vor.u32 %v7716_v59, %v17981_v37  ;;  %v17991_v7 = vrot.slane %v7720_v12, 5 }
 0x48b   : > { %v8220_v39 = vrot.slane %v8218_v30, 4  ;;  %v17994_v40 = vrot.slane %v7707_v27, 4  ;;  %v8694_v20 = vshrl.u32 %v8540_v22, 16  ;;  %v8697_v32 = vshll.u32 %v8540_v22, 16  ;;  %v8544_v27 = vld [vmem:[#allocation3 + $0x64] sm:$0xf] }
 0x48c   : > { %10407 = vmatmul.mubr.bf16.vlgmr.msra.gmra.mrb[192].mxu1 %v17932_v60  ;;  %v8703_v0 = vshll.u32 %v8541_v62, 16  ;;  %v8692_v56 = vsel %vm13833_vm2, %v8687_v31, %v8691_v21  ;;  %v18004_v34 = vsel %vm13841_vm5, %v11914_v14, %v8218_v30  ;;  %v8707_v58 = vshrl.u32 %v8541_v62, 16  ;;  %v8543_v14 = vld [vmem:[#allocation3 + $0x60] sm:$0xf] }
 0x48d   : > { %10414 = vmatprep.mubr.bf16.mxu1 %v11927_v33  ;;  %13111 = vmatpush3.bf16.msra.mxu1 %v17830_v29  ;;  %v18008_v60 = vsel %vm13841_vm5, %v8220_v39, %v8221_v13  ;;  %v18013_v53 = vcombine.low %v8682_v28, %v8692_v56  ;;  %v7713_v29 = vsel %vm13833_vm2, %v17994_v40, %v17981_v37  ;;  %v7718_v33 = vrot.slane %v7717_v17, 4  ;;  %v8109_v37 = vld [vmem:[#allocation3 + $0x50] sm:$0x1] }
 0x48e   : > { %13112 = vmatprep.subr.bf16.mxu1 %v13421_v10  ;;  %v8696_v6 = vrot.slane %v8694_v20, 4  ;;  %v11930_v50 = vcombine.low %v18004_v34, %v18008_v60  ;;  %v8699_v45 = vrot.slane %v8697_v32, 5  ;;  %v8705_v41 = vrot.slane %v8703_v0, 5  ;;  %v13420_v13 = vld [vmem:[#allocation3 + $0x30] sm:$0xff]  }
 0x48f   : > { %10576 = vmatmul.mubr.bf16.gmra.mrb[228].mxu0 %v13419_v51  ;;  %v8709_v63 = vrot.slane %v8707_v58, 4  ;;  %v7723_v44 = vsel %vm13833_vm2, %v7718_v33, %v17991_v7  ;;  %v8713_v8 = vshll.u32 %v8542_v16, 16  ;;  %v7725_v55 = vshrl.u32 %v7592_v54, 16  ;;  %v8545_v7 = vld [vmem:[#allocation3 + $0x68] sm:$0x1] }
 0x490   : > { %10583 = vmatprep.mubr.bf16.mxu0 %v17934_v26  ;;  %v7728_v25 = vshll.u32 %v7592_v54, 16  ;;  %v8700_v5 = vor.u32 %v8699_v45, %v8696_v6  ;;  %v7734_v57 = vshll.u32 %v7593_v1, 16  ;;  %v7738_v21 = vshrl.u32 %v7593_v1, 16  ;;  %v7596_v33 = vld [vmem:[#allocation3 + $0x4c] sm:$0xf] }
 0x491   : > { %13113 = vmatpush3.bf16.msra.mxu1 %v13421_v10  ;;  %v8710_v42 = vor.u32 %v8709_v63, %v8705_v41  ;;  %v8715_v35 = vrot.slane %v8713_v8, 5  ;;  %v7727_v26 = vrot.slane %v7725_v55, 4  ;;  %v7744_v43 = vshll.u32 %v7594_v46, 16  ;;  %v8110_v63 = vld [vmem:[#allocation3 + $0x54] sm:$0xe] }
 0x492   : > { %v7730_v48 = vrot.slane %v7728_v25, 5  ;;  %13114 = vmatprep.subr.bf16.mxu1 %v13424_v3  ;;  %v8701_v12 = vrot.slane %v8700_v5, 4  ;;  %v18028_v9 = vrot.slane %v7734_v57, 5  ;;  %v7740_v59 = vrot.slane %v7738_v21, 4  ;;  %v8111_v25 = vld [vmem:[#allocation3 + $0x58] sm:$0xf] }
 0x493   : > { %v8711_v22 = vrot.slane %v8710_v42, 4  ;;  %v18031_v62 = vrot.slane %v7744_v43, 5  ;;  %v11915_v10 = vrot.slane %v8107_v4, 9  ;;  %v8225_v28 = vrot.slane %v8108_v23, 5  ;;  %v13433_v5 = vld [vmem:[%s19177_s4 + $0x228] sm:$0xff]  }
 0x494   : > { %10415 = vmatmul.mubr.bf16.gmra.mrb[196].mxu1 %v17948_v18  ;;  %v7731_v30 = vor.u32 %v7730_v48, %v7727_v26  ;;  %v8706_v51 = vsel %vm13833_vm2, %v8701_v12, %v8705_v41  ;;  %v7741_v17 = vor.u32 %v7740_v59, %v18028_v9  ;;  %v8228_v18 = vrot.slane %v8109_v37, 5  ;;  %v7597_v41 = vld [vmem:[#allocation3 + $0x50] sm:$0x1]  ;;  %v8112_v23 = vld [vmem:[#allocation3 + $0x5c] sm:$0x1] }
 0x495   : > { %10422 = vmatprep.mubr.bf16.mxu1 %v11928_v36  ;;  %v8716_v31 = vsel %vm13833_vm2, %v8711_v22, %v8715_v35  ;;  %13115 = vmatpush3.bf16.msra.mxu1 %v13424_v3  ;;  %v18041_v39 = vcombine.low %v7713_v29, %v7723_v44  ;;  %v8227_v20 = vrot.slane %v8225_v28, 4  ;;  %v8718_v36 = vshrl.u32 %v8543_v14, 16  ;;  %v7595_v29 = vld [vmem:[#allocation3 + $0x48] sm:$0xf]  ;;  %v8546_v37 = vld [vmem:[#allocation3 + $0x6c] sm:$0xf] }
 0x496   : > { %v18043_v40 = vcombine.low %v8706_v51, %v8716_v31  ;;  %v7732_v16 = vrot.slane %v7731_v30, 4  ;;  %13116 = vmatprep.subr.bf16.mxu1 %v13427_v47  ;;  %v7742_v61 = vrot.slane %v7741_v17, 4  ;;  %v8721_v32 = vshll.u32 %v8543_v14, 16 }
 0x497   : > { %10584 = vmatmul.mubr.bf16.gmra.mrb[232].mxu0 %v13420_v13  ;;  %v8727_v0 = vshll.u32 %v8544_v27, 16  ;;  %v18051_v56 = vsel %vm13841_vm5, %v11915_v10, %v8225_v28  ;;  %v18055_v58 = vsel %vm13841_vm5, %v8227_v20, %v8228_v18  ;;  %v8731_v54 = vshrl.u32 %v8544_v27, 16  ;;  %v13436_v10 = vld [vmem:[%s19177_s4 + $0x230] sm:$0xff]  }
 0x498   : > { %10591 = vmatprep.mubr.bf16.mxu0 %v17961_v2  ;;  %v8737_v3 = vshll.u32 %v8545_v7, 16  ;;  %v7737_v6 = vsel %vm13833_vm2, %v7732_v16, %v18028_v9  ;;  %v7747_v2 = vsel %vm13833_vm2, %v7742_v61, %v18031_v62  ;;  %v8720_v1 = vrot.slane %v8718_v36, 4  ;;  %v8547_v28 = vld [vmem:[#allocation3 + $0x70] sm:$0xf]  ;;  %v8548_v18 = vld [vmem:[#allocation3 + $0x74] sm:$0x1] }
 0x499   : > { %v8723_v45 = vrot.slane %v8721_v32, 5  ;;  %13117 = vmatpush3.bf16.msra.mxu1 %v13427_v47  ;;  %v11931_v46 = vcombine.low %v18051_v56, %v18055_v58  ;;  %v8729_v44 = vrot.slane %v8727_v0, 5  ;;  %v8733_v8 = vrot.slane %v8731_v54, 4  ;;  %v13422_v47 = vld [vmem:[#allocation3 + $0x3c] sm:$0xff]   ;;  %v7598_v7 = vld [vmem:[#allocation3 + $0x54] sm:$0xf] }
 0x49a   : > { %v8739_v55 = vrot.slane %v8737_v3, 5  ;;  %13118 = vmatprep.subr.bf16.mxu1 %v13430_v38  ;;  %v7749_v57 = vshrl.u32 %v7595_v29, 16  ;;  %v7752_v21 = vshll.u32 %v7595_v29, 16  ;;  %v7758_v4 = vshll.u32 %v7596_v33, 16  ;;  %v7599_v36 = vld [vmem:[#allocation3 + $0x58] sm:$0xf] }
 0x49b   : > { %v8724_v42 = vor.u32 %v8723_v45, %v8720_v1  ;;  %v8734_v35 = vor.u32 %v8733_v8, %v8729_v44  ;;  %v7762_v26 = vshrl.u32 %v7596_v33, 16  ;;  %v7768_v48 = vshll.u32 %v7597_v41, 16  ;;  %v7600_v3 = vld [vmem:[#allocation3 + $0x5c] sm:$0x1]  ;;  %v8113_v45 = vld [vmem:[#allocation3 + $0x60] sm:$0xe] }
 0x49c   : > { %10423 = vmatmul.mubr.bf16.gmra.mrb[200].mxu1 %v17983_v52  ;;  %v11916_v43 = vrot.slane %v8110_v63, 9  ;;  %v7751_v22 = vrot.slane %v7749_v57, 4  ;;  %v7754_v9 = vrot.slane %v7752_v21, 5  ;;  %v18072_v59 = vrot.slane %v7758_v4, 5  ;;  %v13439_v29 = vld [vmem:[%s19177_s4 + $0x238] sm:$0xff]   ;;  %v13423_v41 = vld [vmem:[#allocation3 + $0x48] sm:$0xff]  }
 0x49d   : > { %10430 = vmatprep.mubr.bf16.mxu1 %v11929_v19  ;;  %v8725_v12 = vrot.slane %v8724_v42, 4  ;;  %13119 = vmatpush3.bf16.msra.mxu1 %v13430_v38  ;;  %v18074_v14 = vcombine.low %v7737_v6, %v7747_v2  ;;  %v8735_v30 = vrot.slane %v8734_v35, 4  ;;  %v7764_v52 = vrot.slane %v7762_v26, 4  ;;  %v8115_v35 = vld [vmem:[#allocation3 + $0x68] sm:$0x1] }
 0x49e   : > { %v8232_v62 = vrot.slane %v8111_v25, 5  ;;  %13120 = vmatprep.subr.bf16.mxu1 %v13433_v5  ;;  %v7755_v15 = vor.u32 %v7754_v9, %v7751_v22  ;;  %v8235_v19 = vrot.slane %v8112_v23, 5  ;;  %v8742_v27 = vshrl.u32 %v8546_v37, 16  ;;  %v8114_v25 = vld [vmem:[#allocation3 + $0x64] sm:$0xf] }
 0x49f   : > { %10592 = vmatmul.mubr.bf16.gmra.mrb[236].mxu0 %v13422_v47  ;;  %v8730_v49 = vsel %vm13833_vm2, %v8725_v12, %v8729_v44  ;;  %v8740_v13 = vsel %vm13833_vm2, %v8735_v30, %v8739_v55  ;;  %v7765_v51 = vor.u32 %v7764_v52, %v18072_v59  ;;  %v7770_v31 = vrot.slane %v7768_v48, 5  ;;  %v8549_v22 = vld [vmem:[#allocation3 + $0x78] sm:$0xf] }
 0x4a0   : > { %10599 = vmatprep.mubr.bf16.mxu0 %v18013_v53  ;;  %v8234_v17 = vrot.slane %v8232_v62, 4  ;;  %v7756_v16 = vrot.slane %v7755_v15, 4  ;;  %v18087_v20 = vsel %vm13841_vm5, %v11916_v43, %v8232_v62  ;;  %v8744_v38 = vrot.slane %v8742_v27, 4  ;;  %v8550_v62 = vld [vmem:[#allocation3 + $0x7c] sm:$0xf] }
 0x4a1   : > { %v8745_v61 = vshll.u32 %v8546_v37, 16  ;;  %13121 = vmatpush3.bf16.msra.mxu1 %v13433_v5  ;;  %v18089_v32 = vcombine.low %v8730_v49, %v8740_v13  ;;  %v8751_v0 = vshll.u32 %v8547_v28, 16  ;;  %v8755_v54 = vshrl.u32 %v8547_v28, 16 }
 0x4a2   : > { %v18093_v53 = vsel %vm13841_vm5, %v8234_v17, %v8235_v19  ;;  %13122 = vmatprep.subr.bf16.mxu1 %v13436_v10  ;;  %v7761_v33 = vsel %vm13833_vm2, %v7756_v16, %v18072_v59  ;;  %v7766_v6 = vrot.slane %v7765_v51, 4  ;;  %v8761_v1 = vshll.u32 %v8548_v18, 16  ;;  %v8551_v19 = vld [vmem:[#allocation3 + $0x80] sm:$0x1]  ;;  %v13425_v17 = vld [vmem:[#allocation3 + $0x54] sm:$0xff]  }
 0x4a3   : > { %v8747_v2 = vrot.slane %v8745_v61, 5  ;;  %v11932_v63 = vcombine.low %v18087_v20, %v18093_v53  ;;  %v8753_v44 = vrot.slane %v8751_v0, 5  ;;  %v8757_v8 = vrot.slane %v8755_v54, 4  ;;  %v7602_v61 = vld [vmem:[#allocation3 + $0x64] sm:$0xf] }
 0x4a4   : > { %10431 = vmatmul.mubr.bf16.gmra.mrb[204].mxu1 %v18041_v39  ;;  %v7773_v55 = vshrl.u32 %v7598_v7, 16  ;;  %v7771_v5 = vsel %vm13833_vm2, %v7766_v6, %v7770_v31  ;;  %v8763_v57 = vrot.slane %v8761_v1, 5  ;;  %v7776_v21 = vshll.u32 %v7598_v7, 16  ;;  %v7601_v31 = vld [vmem:[#allocation3 + $0x60] sm:$0xf] }
 0x4a5   : > { %10438 = vmatprep.mubr.bf16.mxu1 %v11930_v50  ;;  %v8748_v42 = vor.u32 %v8747_v2, %v8744_v38  ;;  %13123 = vmatpush3.bf16.msra.mxu1 %v13436_v10  ;;  %v8758_v39 = vor.u32 %v8757_v8, %v8753_v44  ;;  %v7782_v23 = vshll.u32 %v7599_v36, 16  ;;  %v7786_v47 = vshrl.u32 %v7599_v36, 16  ;;  %v7603_v2 = vld [vmem:[#allocation3 + $0x68] sm:$0x1] }
 0x4a6   : > { %v7775_v4 = vrot.slane %v7773_v55, 4  ;;  %13124 = vmatprep.subr.bf16.mxu1 %v13439_v29  ;;  %v7778_v48 = vrot.slane %v7776_v21, 5  ;;  %v7792_v43 = vshll.u32 %v7600_v3, 16  ;;  %v11917_v37 = vrot.slane %v8113_v45, 9  ;;  %v8116_v45 = vld [vmem:[#allocation3 + $0x6c] sm:$0xe] }
 0x4a7   : > { %10600 = vmatmul.mubr.bf16.gmra.mrb[240].mxu0 %v13423_v41  ;;  %v8749_v26 = vrot.slane %v8748_v42, 4  ;;  %v8759_v34 = vrot.slane %v8758_v39, 4  ;;  %v18110_v60 = vrot.slane %v7782_v23, 5  ;;  %v7788_v50 = vrot.slane %v7786_v47, 4  ;;  %v8117_v41 = vld [vmem:[#allocation3 + $0x70] sm:$0xf] }
 0x4a8   : > { %10607 = vmatprep.mubr.bf16.mxu0 %v18043_v40  ;;  %v8239_v12 = vrot.slane %v8114_v25, 5  ;;  %v11899_v9 = vcombine.low %v7761_v33, %v7771_v5  ;;  %v7779_v30 = vor.u32 %v7778_v48, %v7775_v4  ;;  %v8242_v52 = vrot.slane %v8115_v35, 5  ;;  %v8118_v5 = vld [vmem:[#allocation3 + $0x74] sm:$0x1]  ;;  %v8552_v4 = vld [vmem:[#allocation3 + $0x84] sm:$0xf] }
 0x4a9   : > { %v8754_v59 = vsel %vm13833_vm2, %v8749_v26, %v8753_v44  ;;  %13125 = vmatpush3.bf16.msra.mxu1 %v13439_v29  ;;  %v8764_v10 = vsel %vm13833_vm2, %v8759_v34, %v8763_v57  ;;  %v7789_v49 = vor.u32 %v7788_v50, %v18110_v60  ;;  %v7794_v40 = vrot.slane %v7792_v43, 5  ;;  %v8553_v34 = vld [vmem:[#allocation3 + $0x88] sm:$0xf] }
 0x4aa   : > { %v8241_v15 = vrot.slane %v8239_v12, 4  ;;  %v7780_v28 = vrot.slane %v7779_v30, 4  ;;  %v18119_v27 = vsel %vm13841_vm5, %v11917_v37, %v8239_v12  ;;  %v8766_v13 = vshrl.u32 %v8549_v22, 16 }
 0x4ab   : > { %v8769_v51 = vshll.u32 %v8549_v22, 16  ;;  %v7790_v18 = vrot.slane %v7789_v49, 4  ;;  %v8775_v16 = vshll.u32 %v8550_v62, 16  ;;  %v8779_v38 = vshrl.u32 %v8550_v62, 16 }
 0x4ac   : > { %10439 = vmatmul.mubr.bf16.gmra.mrb[208].mxu1 %v18074_v14  ;;  %v18124_v7 = vsel %vm13841_vm5, %v8241_v15, %v8242_v52  ;;  %v11965_v36 = vcombine.low %v8754_v59, %v8764_v10  ;;  %v7785_v0 = vsel %vm13833_vm2, %v7780_v28, %v18110_v60  ;;  %v8768_v54 = vrot.slane %v8766_v13, 4  ;;  %v13426_v60 = vld [vmem:[#allocation3 + $0x60] sm:$0xff]   ;;  %v8554_v59 = vld [vmem:[#allocation3 + $0x8c] sm:$0x1] }
 0x4ad   : > { %10446 = vmatprep.mubr.bf16.mxu1 %v11931_v46  ;;  %v8771_v14 = vrot.slane %v8769_v51, 5  ;;  %v11933_v3 = vcombine.low %v18119_v27, %v18124_v7  ;;  %v8777_v29 = vrot.slane %v8775_v16, 5  ;;  %v8781_v33 = vrot.slane %v8779_v38, 4  ;;  %v7604_v28 = vld [vmem:[#allocation3 + $0x6c] sm:$0xf] }
 0x4ae   : > { %v8785_v6 = vshll.u32 %v8551_v19, 16  ;;  %v7795_v1 = vsel %vm13833_vm2, %v7790_v18, %v7794_v40  ;;  %v7797_v58 = vshrl.u32 %v7601_v31, 16  ;;  %v7800_v46 = vshll.u32 %v7601_v31, 16  ;;  %v7606_v38 = vld [vmem:[#allocation3 + $0x74] sm:$0x1] }
 0x4af   : > { %10608 = vmatmul.mubr.bf16.gmra.mrb[244].mxu0 %v13425_v17  ;;  %v8772_v56 = vor.u32 %v8771_v14, %v8768_v54  ;;  %v8782_v44 = vor.u32 %v8781_v33, %v8777_v29  ;;  %v7806_v55 = vshll.u32 %v7602_v61, 16  ;;  %v7810_v25 = vshrl.u32 %v7602_v61, 16  ;;  %v8119_v61 = vld [vmem:[#allocation3 + $0x78] sm:$0xe]  ;;  %v8120_v33 = vld [vmem:[#allocation3 + $0x7c] sm:$0xf] }
 0x4b0   : > { %10615 = vmatprep.mubr.bf16.mxu0 %v18089_v32  ;;  %v8787_v8 = vrot.slane %v8785_v6, 5  ;;  %v7799_v57 = vrot.slane %v7797_v58, 4  ;;  %v7802_v21 = vrot.slane %v7800_v46, 5  ;;  %v7816_v39 = vshll.u32 %v7603_v2, 16 }
 0x4b1   : > { %v8773_v42 = vrot.slane %v8772_v56, 4  ;;  %v8783_v23 = vrot.slane %v8782_v44, 4  ;;  %v7808_v47 = vrot.slane %v7806_v55, 5  ;;  %v7812_v35 = vrot.slane %v7810_v25, 4  ;;  %v8121_v56 = vld [vmem:[#allocation3 + $0x80] sm:$0x1] }
 0x4b2   : > { %v11918_v26 = vrot.slane %v8116_v45, 9  ;;  %v7803_v43 = vor.u32 %v7802_v21, %v7799_v57  ;;  %v7818_v37 = vrot.slane %v7816_v39, 5  ;;  %v8246_v32 = vrot.slane %v8117_v41, 5  ;;  %v8555_v44 = vld [vmem:[#allocation3 + $0x90] sm:$0xf] }
 0x4b3   : > { %v8778_v48 = vsel %vm13833_vm2, %v8773_v42, %v8777_v29  ;;  %v8788_v50 = vsel %vm13833_vm2, %v8783_v23, %v8787_v8  ;;  %v7813_v12 = vor.u32 %v7812_v35, %v7808_v47  ;;  %v8249_v22 = vrot.slane %v8118_v5, 5  ;;  %v13428_v42 = vld [vmem:[#allocation3 + $0x6c] sm:$0xff]  }
 0x4b4   : > { %10447 = vmatmul.mubr.bf16.gmra.mrb[212].mxu1 %v11899_v9  ;;  %v8790_v30 = vshrl.u32 %v8552_v4, 16  ;;  %v11900_v52 = vcombine.low %v7785_v0, %v7795_v1  ;;  %v11966_v62 = vcombine.low %v8778_v48, %v8788_v50  ;;  %v7804_v10 = vrot.slane %v7803_v43, 4 }
 0x4b5   : > { %10454 = vmatprep.mubr.bf16.mxu1 %v11932_v63  ;;  %v8248_v49 = vrot.slane %v8246_v32, 4  ;;  %v7814_v40 = vrot.slane %v7813_v12, 4  ;;  %v8793_v19 = vshll.u32 %v8552_v4, 16  ;;  %v8799_v9 = vshll.u32 %v8553_v34, 16  ;;  %v7605_v63 = vld [vmem:[#allocation3 + $0x70] sm:$0xf] }
 0x4b6   : > { %v8792_v15 = vrot.slane %v8790_v30, 4  ;;  %v18146_v13 = vsel %vm13841_vm5, %v11918_v26, %v8246_v32  ;;  %v8803_v20 = vshrl.u32 %v8553_v34, 16  ;;  %v8809_v53 = vshll.u32 %v8554_v59, 16  ;;  %v8556_v26 = vld [vmem:[#allocation3 + $0x94] sm:$0xf] }
 0x4b7   : > { %10616 = vmatmul.mubr.bf16.gmra.mrb[248].mxu0 %v13426_v60  ;;  %v18150_v51 = vsel %vm13841_vm5, %v8248_v49, %v8249_v22  ;;  %v7809_v31 = vsel %vm13833_vm2, %v7804_v10, %v7808_v47  ;;  %v7819_v17 = vsel %vm13833_vm2, %v7814_v40, %v7818_v37  ;;  %v8795_v18 = vrot.slane %v8793_v19, 5  ;;  %v7607_v12 = vld [vmem:[#allocation3 + $0x78] sm:$0xf]  ;;  %v7608_v10 = vld [vmem:[#allocation3 + $0x7c] sm:$0xf] }
 0x4b8   : > { %10623 = vmatprep.mubr.bf16.mxu0 %v11965_v36  ;;  %v8801_v16 = vrot.slane %v8799_v9, 5  ;;  %v11934_v0 = vcombine.low %v18146_v13, %v18150_v51  ;;  %v8805_v54 = vrot.slane %v8803_v20, 4  ;;  %v8811_v14 = vrot.slane %v8809_v53, 5  ;;  %v7609_v19 = vld [vmem:[#allocation3 + $0x80] sm:$0x1] }
 0x4b9   : > { %v7821_v29 = vshrl.u32 %v7604_v28, 16  ;;  %v8796_v6 = vor.u32 %v8795_v18, %v8792_v15  ;;  %v7824_v2 = vshll.u32 %v7604_v28, 16  ;;  %v7830_v36 = vshll.u32 %v7605_v63, 16  ;;  %v8122_v9 = vld [vmem:[#allocation3 + $0x84] sm:$0xe] }
 0x4ba   : > { %v7834_v1 = vshrl.u32 %v7605_v63, 16  ;;  %v8806_v58 = vor.u32 %v8805_v54, %v8801_v16  ;;  %v7840_v45 = vshll.u32 %v7606_v38, 16  ;;  %v11919_v41 = vrot.slane %v8119_v61, 9  ;;  %v13429_v54 = vld [vmem:[#allocation3 + $0x78] sm:$0xff]  }
 0x4bb   : > { %v7823_v46 = vrot.slane %v7821_v29, 4  ;;  %v8797_v8 = vrot.slane %v8796_v6, 4  ;;  %v7826_v55 = vrot.slane %v7824_v2, 5  ;;  %v18158_v25 = vrot.slane %v7830_v36, 5  ;;  %v8558_v2 = vld [vmem:[#allocation3 + $0x9c] sm:$0xf] }
 0x4bc   : > { %10455 = vmatmul.mubr.bf16.gmra.mrb[216].mxu1 %v11900_v52  ;;  %v7836_v5 = vrot.slane %v7834_v1, 4  ;;  %v11901_v57 = vcombine.low %v7809_v31, %v7819_v17  ;;  %v8807_v21 = vrot.slane %v8806_v58, 4  ;;  %v8253_v39 = vrot.slane %v8120_v33, 5  ;;  %v8123_v31 = vld [vmem:[#allocation3 + $0x88] sm:$0xf] }
 0x4bd   : > { %10462 = vmatprep.mubr.bf16.mxu1 %v11933_v3  ;;  %v8256_v4 = vrot.slane %v8121_v56, 5  ;;  %v7827_v23 = vor.u32 %v7826_v55, %v7823_v46  ;;  %v18164_v35 = vrot.slane %v7840_v45, 5  ;;  %v8814_v48 = vshrl.u32 %v8555_v44, 16  ;;  %v8557_v3 = vld [vmem:[#allocation3 + $0x98] sm:$0x1] }
 0x4be   : > { %v7837_v47 = vor.u32 %v7836_v5, %v18158_v25  ;;  %v8802_v43 = vsel %vm13833_vm2, %v8797_v8, %v8801_v16  ;;  %v8812_v27 = vsel %vm13833_vm2, %v8807_v21, %v8811_v14  ;;  %v8255_v7 = vrot.slane %v8253_v39, 4  ;;  %v8124_v17 = vld [vmem:[#allocation3 + $0x8c] sm:$0x1]  ;;  %v8559_v46 = vld [vmem:[#allocation3 + $0xa0] sm:$0xf] }
 0x4bf   : > { %10624 = vmatmul.mubr.bf16.gmra.mrb[252].mxu0 %v13428_v42  ;;  %v8817_v37 = vshll.u32 %v8555_v44, 16  ;;  %v7828_v32 = vrot.slane %v7827_v23, 4  ;;  %v18172_v60 = vsel %vm13841_vm5, %v11919_v41, %v8253_v39  ;;  %v8816_v50 = vrot.slane %v8814_v48, 4  ;;  %v8560_v42 = vld [vmem:[#allocation3 + $0xa4] sm:$0x1] }
 0x4c0   : > { %10631 = vmatprep.mubr.bf16.mxu0 %v11966_v62  ;;  %v7838_v34 = vrot.slane %v7837_v47, 4  ;;  %v18176_v22 = vsel %vm13841_vm5, %v8255_v7, %v8256_v4  ;;  %v8823_v30 = vshll.u32 %v8556_v26, 16  ;;  %v8827_v52 = vshrl.u32 %v8556_v26, 16 }
 0x4c1   : > { %v8819_v59 = vrot.slane %v8817_v37, 5  ;;  %v11967_v49 = vcombine.low %v8802_v43, %v8812_v27  ;;  %v7833_v62 = vsel %vm13833_vm2, %v7828_v32, %v18158_v25  ;;  %v8833_v15 = vshll.u32 %v8557_v3, 16 }
 0x4c2   : > { %v7843_v40 = vsel %vm13833_vm2, %v7838_v34, %v18164_v35  ;;  %v11935_v28 = vcombine.low %v18172_v60, %v18176_v22  ;;  %v8825_v53 = vrot.slane %v8823_v30, 5  ;;  %v8829_v63 = vrot.slane %v8827_v52, 4  ;;  %v7610_v35 = vld [vmem:[#allocation3 + $0x84] sm:$0xf]  ;;  %v7611_v34 = vld [vmem:[#allocation3 + $0x88] sm:$0xf] }
 0x4c3   : > { %v8820_v20 = vor.u32 %v8819_v59, %v8816_v50  ;;  %v8835_v18 = vrot.slane %v8833_v15, 5  ;;  %v7845_v16 = vshrl.u32 %v7607_v12, 16  ;;  %v7848_v38 = vshll.u32 %v7607_v12, 16  ;;  %v13431_v60 = vld [vmem:[#allocation3 + $0x84] sm:$0xff]   ;;  %v7612_v59 = vld [vmem:[#allocation3 + $0x8c] sm:$0x1] }
 0x4c4   : > { %10463 = vmatmul.mubr.bf16.gmra.mrb[220].mxu1 %v11901_v57  ;;  %v7854_v61 = vshll.u32 %v7608_v10, 16  ;;  %v8830_v29 = vor.u32 %v8829_v63, %v8825_v53  ;;  %v7858_v33 = vshrl.u32 %v7608_v10, 16  ;;  %v7864_v6 = vshll.u32 %v7609_v19, 16  ;;  %v8126_v15 = vld [vmem:[#allocation3 + $0x94] sm:$0xf] }
 0x4c5   : > { %10470 = vmatprep.mubr.bf16.mxu1 %v11934_v0  ;;  %v8821_v14 = vrot.slane %v8820_v20, 4  ;;  %v7847_v36 = vrot.slane %v7845_v16, 4  ;;  %v7850_v1 = vrot.slane %v7848_v38, 5  ;;  %v11920_v58 = vrot.slane %v8122_v9, 9  ;;  %v8561_v16 = vld [vmem:[#allocation3 + $0xa8] sm:$0xf] }
 0x4c6   : > { %v7856_v56 = vrot.slane %v7854_v61, 5  ;;  %v8831_v41 = vrot.slane %v8830_v29, 4  ;;  %v7860_v44 = vrot.slane %v7858_v33, 4  ;;  %v7866_v8 = vrot.slane %v7864_v6, 5  ;;  %v8562_v29 = vld [vmem:[#allocation3 + $0xac] sm:$0xf] }
 0x4c7   : > { %10632 = vmatmul.mubr.bf16.gmra.mrb[0].mxu0 %v13429_v54  ;;  %v8826_v45 = vsel %vm13833_vm2, %v8821_v14, %v8825_v53  ;;  %v7851_v13 = vor.u32 %v7850_v1, %v7847_v36  ;;  %v8260_v51 = vrot.slane %v8123_v31, 5  ;;  %v8263_v0 = vrot.slane %v8124_v17, 5  ;;  %v8127_v53 = vld [vmem:[#allocation3 + $0x98] sm:$0x1] }
 0x4c8   : > { %10639 = vmatprep.mubr.bf16.mxu0 %v11967_v49  ;;  %v8838_v55 = vshrl.u32 %v8558_v2, 16  ;;  %v8836_v25 = vsel %vm13833_vm2, %v8831_v41, %v8835_v18  ;;  %v7861_v5 = vor.u32 %v7860_v44, %v7856_v56  ;;  %v8841_v57 = vshll.u32 %v8558_v2, 16 }
 0x4c9   : > { %v8847_v21 = vshll.u32 %v8559_v46, 16  ;;  %v11902_v39 = vcombine.low %v7833_v62, %v7843_v40  ;;  %v11968_v4 = vcombine.low %v8826_v45, %v8836_v25  ;;  %v7852_v23 = vrot.slane %v7851_v13, 4  ;;  %v8125_v40 = vld [vmem:[#allocation3 + $0x90] sm:$0xe] }
 0x4ca   : > { %v8262_v47 = vrot.slane %v8260_v51, 4  ;;  %v7862_v26 = vrot.slane %v7861_v5, 4  ;;  %v8840_v48 = vrot.slane %v8838_v55, 4  ;;  %v8843_v43 = vrot.slane %v8841_v57, 5  ;;  %v7614_v57 = vld [vmem:[#allocation3 + $0x94] sm:$0xf] }
 0x4cb   : > { %v8849_v27 = vrot.slane %v8847_v21, 5  ;;  %v7857_v7 = vsel %vm13833_vm2, %v7852_v23, %v7856_v56  ;;  %v8851_v37 = vshrl.u32 %v8559_v46, 16  ;;  %v8857_v32 = vshll.u32 %v8560_v42, 16  ;;  %v8563_v46 = vld [vmem:[#allocation3 + $0xb0] sm:$0x1] }
 0x4cc   : > { %10471 = vmatmul.mubr.bf16.gmra.mrb[224].mxu1 %v11902_v39  ;;  %v8264_v3 = vsel %vm13841_vm5, %v8262_v47, %v8263_v0  ;;  %v7867_v50 = vsel %vm13833_vm2, %v7862_v26, %v7866_v8  ;;  %v8261_v12 = vsel %vm13841_vm5, %v11920_v58, %v8260_v51  ;;  %v8844_v22 = vor.u32 %v8843_v43, %v8840_v48  ;;  %v7613_v51 = vld [vmem:[#allocation3 + $0x90] sm:$0xf]  ;;  %v7615_v48 = vld [vmem:[#allocation3 + $0x98] sm:$0x1] }
 0x4cd   : > { %10478 = vmatprep.mubr.bf16.mxu1 %v11935_v28  ;;  %v7869_v30 = vshrl.u32 %v7610_v35, 16  ;;  %v11903_v52 = vcombine.low %v7857_v7, %v7867_v50  ;;  %v11936_v10 = vcombine.low %v8261_v12, %v8264_v3  ;;  %v8853_v49 = vrot.slane %v8851_v37, 4  ;;  %v13432_v0 = vld [vmem:[#allocation3 + $0x90] sm:$0xff]  }
 0x4ce   : > { %v7872_v62 = vshll.u32 %v7610_v35, 16  ;;  %v8845_v19 = vrot.slane %v8844_v22, 4  ;;  %v7878_v28 = vshll.u32 %v7611_v34, 16  ;;  %v7882_v20 = vshrl.u32 %v7611_v34, 16  ;;  %v8129_v34 = vld [vmem:[#allocation3 + $0xa0] sm:$0xf] }
 0x4cf   : > { %10640 = vmatmul.mubr.bf16.gmra.mrb[4].mxu0 %v13431_v60  ;;  %v7871_v9 = vrot.slane %v7869_v30, 4  ;;  %v8854_v63 = vor.u32 %v8853_v49, %v8849_v27  ;;  %v8859_v31 = vrot.slane %v8857_v32, 5  ;;  %v7888_v18 = vshll.u32 %v7612_v59, 16  ;;  %v8128_v32 = vld [vmem:[#allocation3 + $0x9c] sm:$0xe] }
 0x4d0   : > { %10647 = vmatprep.mubr.bf16.mxu0 %v11968_v4  ;;  %v7874_v17 = vrot.slane %v7872_v62, 5  ;;  %v7880_v38 = vrot.slane %v7878_v28, 5  ;;  %v7884_v61 = vrot.slane %v7882_v20, 4  ;;  %v11921_v54 = vrot.slane %v8125_v40, 9  ;;  %v8130_v59 = vld [vmem:[#allocation3 + $0xa4] sm:$0x1] }
 0x4d1   : > { %v8267_v14 = vrot.slane %v8126_v15, 5  ;;  %v8850_v33 = vsel %vm13833_vm2, %v8845_v19, %v8849_v27  ;;  %v8855_v6 = vrot.slane %v8854_v63, 4  ;;  %v8270_v36 = vrot.slane %v8127_v53, 5  ;;  %v8564_v20 = vld [vmem:[#allocation3 + $0xb4] sm:$0xf] }
 0x4d2   : > { %v7875_v2 = vor.u32 %v7874_v17, %v7871_v9  ;;  %v7885_v1 = vor.u32 %v7884_v61, %v7880_v38  ;;  %v7890_v56 = vrot.slane %v7888_v18, 5  ;;  %v8862_v45 = vshrl.u32 %v8561_v16, 16  ;;  %v13434_v61 = vld [vmem:[#allocation3 + $0x9c] sm:$0xff]  }
 0x4d3   : > { %v8269_v58 = vrot.slane %v8267_v14, 4  ;;  %v8860_v41 = vsel %vm13833_vm2, %v8855_v6, %v8859_v31  ;;  %v8865_v8 = vshll.u32 %v8561_v16, 16  ;;  %v8871_v13 = vshll.u32 %v8562_v29, 16  ;;  %v8565_v16 = vld [vmem:[#allocation3 + $0xb8] sm:$0xf] }
 0x4d4   : > { %10479 = vmatmul.mubr.bf16.gmra.mrb[228].mxu1 %v11903_v52  ;;  %v7876_v44 = vrot.slane %v7875_v2, 4  ;;  %v11969_v55 = vcombine.low %v8850_v33, %v8860_v41  ;;  %v8268_v25 = vsel %vm13841_vm5, %v11921_v54, %v8267_v14  ;;  %v8864_v42 = vrot.slane %v8862_v45, 4  ;;  %v8566_v45 = vld [vmem:[#allocation3 + $0xbc] sm:$0x1] }
 0x4d5   : > { %10486 = vmatprep.mubr.bf16.mxu1 %v11936_v10  ;;  %v8271_v5 = vsel %vm13841_vm5, %v8269_v58, %v8270_v36  ;;  %v7886_v39 = vrot.slane %v7885_v1, 4  ;;  %v8867_v23 = vrot.slane %v8865_v8, 5  ;;  %v8873_v47 = vrot.slane %v8871_v13, 5 }
 0x4d6   : > { %v7881_v21 = vsel %vm13833_vm2, %v7876_v44, %v7880_v38  ;;  %v11937_v4 = vcombine.low %v8268_v25, %v8271_v5  ;;  %v8875_v35 = vshrl.u32 %v8562_v29, 16  ;;  %v8881_v26 = vshll.u32 %v8563_v46, 16  ;;  %v7616_v25 = vld [vmem:[#allocation3 + $0x9c] sm:$0xf] }
 0x4d7   : > { %10648 = vmatmul.mubr.bf16.gmra.mrb[8].mxu0 %v13432_v0  ;;  %v7893_v43 = vshrl.u32 %v7613_v51, 16  ;;  %v7891_v27 = vsel %vm13833_vm2, %v7886_v39, %v7890_v56  ;;  %v8868_v7 = vor.u32 %v8867_v23, %v8864_v42  ;;  %v7896_v3 = vshll.u32 %v7613_v51, 16 }
 0x4d8   : > { %10655 = vmatprep.mubr.bf16.mxu0 %v11969_v55  ;;  %v7902_v37 = vshll.u32 %v7614_v57, 16  ;;  %v11904_v60 = vcombine.low %v7881_v21, %v7891_v27  ;;  %v8877_v50 = vrot.slane %v8875_v35, 4  ;;  %v7906_v22 = vshrl.u32 %v7614_v57, 16 }
 0x4d9   : > { %v7895_v12 = vrot.slane %v7893_v43, 4  ;;  %v12718_v30 = vpop.f32.mrb[160].mxu0  ;;  %v8869_v52 = vrot.slane %v8868_v7, 4  ;;  %v7898_v10 = vrot.slane %v7896_v3, 5  ;;  %v7912_v62 = vshll.u32 %v7615_v48, 16 }
 0x4da   : > { %v7904_v49 = vrot.slane %v7902_v37, 5  ;;  %v12719_v40 = vpop.f32.mrb[161].mxu0  ;;  %v8878_v15 = vor.u32 %v8877_v50, %v8873_v47  ;;  %v8883_v19 = vrot.slane %v8881_v26, 5  ;;  %v7908_v9 = vrot.slane %v7906_v22, 4 }
 0x4db   : > { %v8274_v28 = vrot.slane %v8129_v34, 5  ;;  %v18213_v53 = vadd.f32 %v12719_v40, %v12718_v30  ;;  %v12721_v63 = vpop.f32.mrb[162].mxu0  ;;  %v8874_v31 = vsel %vm13833_vm2, %v8869_v52, %v8873_v47  ;;  %v7899_v17 = vor.u32 %v7898_v10, %v7895_v12  ;;  %v8132_v30 = vld [vmem:[#allocation3 + $0xac] sm:$0xf] }
 0x4dc   : > { %10487 = vmatmul.mubr.bf16.gmra.mrb[232].mxu1 %v11904_v60  ;;  %v11922_v18 = vrot.slane %v8128_v32, 9  ;;  %v12722_v38 = vpop.f32.mrb[163].mxu0  ;;  %v8879_v54 = vrot.slane %v8878_v15, 4  ;;  %v7909_v14 = vor.u32 %v7908_v9, %v7904_v49  ;;  %v7914_v29 = vrot.slane %v7912_v62, 5  ;;  %v7618_v32 = vld [vmem:[#allocation3 + $0xa4] sm:$0x1] }
 0x4dd   : > { %10494 = vmatprep.mubr.bf16.mxu1 %v11937_v4  ;;  %v8276_v33 = vrot.slane %v8274_v28, 4  ;;  %v18217_v6 = vadd.f32 %v12722_v38, %v12721_v63  ;;  %v7900_v2 = vrot.slane %v7899_v17, 4  ;;  %v8277_v36 = vrot.slane %v8130_v59, 5  ;;  %v7617_v4 = vld [vmem:[#allocation3 + $0xa0] sm:$0xf]  ;;  %v13435_v10 = vld [vmem:[#allocation3 + $0xa8] sm:$0xff]  }
 0x4de   : > { %v8886_v1 = vshrl.u32 %v8564_v20, 16  ;;  %v8884_v56 = vsel %vm13833_vm2, %v8879_v54, %v8883_v19  ;;  %v7910_v46 = vrot.slane %v7909_v14, 4  ;;  %v8889_v41 = vshll.u32 %v8564_v20, 16  ;;  %v8131_v60 = vld [vmem:[#allocation3 + $0xa8] sm:$0xe] }
 0x4df   : > { %10656 = vmatmul.mubr.bf16.gmra.mrb[12].mxu0 %v13434_v61  ;;  %v12606_v58 = vpop.f32.mrb[128].mxu1  ;;  %v8895_v44 = vshll.u32 %v8565_v16, 16  ;;  %v11970_v8 = vcombine.low %v8874_v31, %v8884_v56  ;;  %v7905_v51 = vsel %vm13833_vm2, %v7900_v2, %v7904_v49  ;;  %v8278_v0 = vsel %vm13841_vm5, %v8276_v33, %v8277_v36  ;;  %v8133_v63 = vld [vmem:[#allocation3 + $0xb0] sm:$0x1]  ;;  %v8567_v31 = vld [vmem:[#allocation3 + $0xc0] sm:$0xf] }
 0x4e0   : > { %v12607_v13 = vpop.f32.mrb[129].mxu1  ;;  %v8888_v55 = vrot.slane %v8886_v1, 4  ;;  %v7915_v57 = vsel %vm13833_vm2, %v7910_v46, %v7914_v29  ;;  %v8275_v21 = vsel %vm13841_vm5, %v11922_v18, %v8274_v28  ;;  %v8891_v39 = vrot.slane %v8889_v41, 5 }
 0x4e1   : > { %v18225_v5 = vadd.f32 %v12607_v13, %v12606_v58  ;;  %v12609_v42 = vpop.f32.mrb[130].mxu1  ;;  %10663 = vmatprep.mubr.bf16.mxu0 %v11970_v8  ;;  %v11905_v35 = vcombine.low %v7905_v51, %v7915_v57  ;;  %v8897_v26 = vrot.slane %v8895_v44, 5  ;;  %v8899_v48 = vshrl.u32 %v8565_v16, 16  ;;  %v8568_v51 = vld [vmem:[#allocation3 + $0xc4] sm:$0xf]  ;;  %v13437_v57 = vld [vmem:[#allocation3 + $0xb4] sm:$0xff]  }
 0x4e2   : > { %v12724_v23 = vpop.f32.mrb[164].mxu0  ;;  %v12610_v47 = vpop.f32.mrb[131].mxu1  ;;  %v8905_v43 = vshll.u32 %v8566_v45, 16  ;;  %v11938_v3 = vcombine.low %v8275_v21, %v8278_v0  ;;  %v8892_v37 = vor.u32 %v8891_v39, %v8888_v55  ;;  %v7917_v34 = vshrl.u32 %v7616_v25, 16 }
 0x4e3   : > { %v12725_v27 = vpop.f32.mrb[165].mxu0  ;;  %v18231_v7 = vadd.f32 %v12610_v47, %v12609_v42  ;;  %v8901_v22 = vrot.slane %v8899_v48, 4  ;;  %v7920_v59 = vshll.u32 %v7616_v25, 16  ;;  %v7926_v15 = vshll.u32 %v7617_v4, 16 }
 0x4e4   : > { %v18233_v50 = vadd.f32 %v12725_v27, %v12724_v23  ;;  %v12727_v12 = vpop.f32.mrb[166].mxu0  ;;  %10495 = vmatmul.mubr.bf16.gmra.mrb[236].mxu1 %v11905_v35  ;;  %v8893_v49 = vrot.slane %v8892_v37, 4  ;;  %v8907_v62 = vrot.slane %v8905_v43, 5  ;;  %v7919_v40 = vrot.slane %v7917_v34, 4  ;;  %v8569_v35 = vld [vmem:[#allocation3 + $0xc8] sm:$0x1] }
 0x4e5   : > { %v12728_v52 = vpop.f32.mrb[167].mxu0  ;;  %10502 = vmatprep.mubr.bf16.mxu1 %v11938_v3  ;;  %v8902_v9 = vor.u32 %v8901_v22, %v8897_v26  ;;  %v7922_v28 = vrot.slane %v7920_v59, 5  ;;  %v7930_v20 = vshrl.u32 %v7617_v4, 16  ;;  %v7928_v16 = vrot.slane %v7926_v15, 5 }
 0x4e6   : > { %v18235_v19 = vadd.f32 %v12728_v52, %v12727_v12  ;;  %v8898_v17 = vsel %vm13833_vm2, %v8893_v49, %v8897_v26  ;;  %v7936_v38 = vshll.u32 %v7618_v32, 16  ;;  %v11923_v61 = vrot.slane %v8131_v60, 9  ;;  %v7619_v26 = vld [vmem:[#allocation3 + $0xa8] sm:$0xf]  ;;  %v7620_v32 = vld [vmem:[#allocation3 + $0xac] sm:$0xf] }
 0x4e7   : > { %10664 = vmatmul.mubr.bf16.gmra.mrb[16].mxu0 %v13435_v10  ;;  %v12612_v18 = vpop.f32.mrb[132].mxu1  ;;  %v8903_v54 = vrot.slane %v8902_v9, 4  ;;  %v7923_v29 = vor.u32 %v7922_v28, %v7919_v40  ;;  %v7932_v33 = vrot.slane %v7930_v20, 4  ;;  %v8281_v2 = vrot.slane %v8132_v30, 5 }
 0x4e8   : > { %v12613_v14 = vpop.f32.mrb[133].mxu1  ;;  %v8284_v56 = vrot.slane %v8133_v63, 5  ;;  %v8910_v58 = vshrl.u32 %v8567_v31, 16  ;;  %v7938_v13 = vrot.slane %v7936_v38, 5  ;;  %v8913_v3 = vshll.u32 %v8567_v31, 16 }
 0x4e9   : > { %v18239_v36 = vadd.f32 %v12613_v14, %v12612_v18  ;;  %v12615_v1 = vpop.f32.mrb[134].mxu1  ;;  %v8908_v46 = vsel %vm13833_vm2, %v8903_v54, %v8907_v62  ;;  %v7924_v44 = vrot.slane %v7923_v29, 4  ;;  %v7933_v8 = vor.u32 %v7932_v33, %v7928_v16  ;;  %v7621_v62 = vld [vmem:[#allocation3 + $0xb0] sm:$0x1]  ;;  %v8134_v38 = vld [vmem:[#allocation3 + $0xb4] sm:$0xe] }
 0x4ea   : > { %v12730_v45 = vpop.f32.mrb[168].mxu0  ;;  %v12616_v41 = vpop.f32.mrb[135].mxu1  ;;  %v11971_v0 = vcombine.low %v8898_v17, %v8908_v46  ;;  %v8283_v42 = vrot.slane %v8281_v2, 4  ;;  %v8282_v47 = vsel %vm13841_vm5, %v11923_v61, %v8281_v2  ;;  %v8912_v27 = vrot.slane %v8910_v58, 4 }
 0x4eb   : > { %v12731_v55 = vpop.f32.mrb[169].mxu0  ;;  %v18243_v25 = vadd.f32 %v12616_v41, %v12615_v1  ;;  %v7929_v4 = vsel %vm13833_vm2, %v7924_v44, %v7928_v16  ;;  %v7934_v23 = vrot.slane %v7933_v8, 4  ;;  %v8919_v37 = vshll.u32 %v8568_v51, 16 }
 0x4ec   : > { %v18245_v21 = vadd.f32 %v12731_v55, %v12730_v45  ;;  %v12733_v39 = vpop.f32.mrb[170].mxu0  ;;  %10671 = vmatprep.mubr.bf16.mxu0 %v11971_v0  ;;  %v8285_v43 = vsel %vm13841_vm5, %v8283_v42, %v8284_v56  ;;  %v8923_v22 = vshrl.u32 %v8568_v51, 16  ;;  %v8915_v30 = vrot.slane %v8913_v3, 5  ;;  %v8135_v45 = vld [vmem:[#allocation3 + $0xb8] sm:$0xf] }
 0x4ed   : > { %v12734_v48 = vpop.f32.mrb[171].mxu0  ;;  %v7939_v60 = vsel %vm13833_vm2, %v7934_v23, %v7938_v13  ;;  %v11939_v12 = vcombine.low %v8282_v47, %v8285_v43  ;;  %v8921_v52 = vrot.slane %v8919_v37, 5  ;;  %v8929_v10 = vshll.u32 %v8569_v35, 16  ;;  %v8136_v0 = vld [vmem:[#allocation3 + $0xbc] sm:$0x1] }
 0x4ee   : > { %v18253_v34 = vadd.f32 %v12734_v48, %v12733_v39  ;;  %v11906_v59 = vcombine.low %v7929_v4, %v7939_v60  ;;  %v8925_v40 = vrot.slane %v8923_v22, 4  ;;  %v7941_v9 = vshrl.u32 %v7619_v26, 16  ;;  %v8570_v4 = vld [vmem:[#allocation3 + $0xcc] sm:$0xf]  ;;  %v8571_v23 = vld [vmem:[#allocation3 + $0xd0] sm:$0xf] }
 0x4ef   : > { %10672 = vmatmul.mubr.bf16.gmra.mrb[20].mxu0 %v13437_v57  ;;  %v12618_v49 = vpop.f32.mrb[136].mxu1  ;;  %v7944_v28 = vshll.u32 %v7619_v26, 16  ;;  %v7950_v20 = vshll.u32 %v7620_v32, 16  ;;  %v8916_v63 = vor.u32 %v8915_v30, %v8912_v27  ;;  %v8931_v31 = vrot.slane %v8929_v10, 5  ;;  %v8572_v22 = vld [vmem:[#allocation3 + $0xd4] sm:$0x1] }
 0x4f0   : > { %v12619_v15 = vpop.f32.mrb[137].mxu1  ;;  %10503 = vmatmul.mubr.bf16.gmra.mrb[240].mxu1 %v11906_v59  ;;  %v7954_v16 = vshrl.u32 %v7620_v32, 16  ;;  %v8926_v61 = vor.u32 %v8925_v40, %v8921_v52  ;;  %v7943_v29 = vrot.slane %v7941_v9, 4  ;;  %v7960_v51 = vshll.u32 %v7621_v62, 16  ;;  %v13438_v32 = vld [vmem:[#allocation3 + $0xc0] sm:$0xff]  }
 0x4f1   : > { %v18257_v17 = vadd.f32 %v12619_v15, %v12618_v49  ;;  %v12621_v18 = vpop.f32.mrb[138].mxu1  ;;  %10510 = vmatprep.mubr.bf16.mxu1 %v11939_v12  ;;  %v7946_v33 = vrot.slane %v7944_v28, 5  ;;  %v7952_v2 = vrot.slane %v7950_v20, 5  ;;  %v8917_v1 = vrot.slane %v8916_v63, 4  ;;  %v7622_v28 = vld [vmem:[#allocation3 + $0xb4] sm:$0xf] }
 0x4f2   : > { %v12736_v54 = vpop.f32.mrb[172].mxu0  ;;  %v12622_v14 = vpop.f32.mrb[139].mxu1  ;;  %v7956_v46 = vrot.slane %v7954_v16, 4  ;;  %v8927_v41 = vrot.slane %v8926_v61, 4  ;;  %v11924_v39 = vrot.slane %v8134_v38, 9  ;;  %v7962_v48 = vrot.slane %v7960_v51, 5 }
 0x4f3   : > { %v12737_v56 = vpop.f32.mrb[173].mxu0  ;;  %v18259_v58 = vadd.f32 %v12622_v14, %v12621_v18  ;;  %v7947_v13 = vor.u32 %v7946_v33, %v7943_v29  ;;  %v8922_v55 = vsel %vm13833_vm2, %v8917_v1, %v8921_v52  ;;  %v8288_v3 = vrot.slane %v8135_v45, 5 }
 0x4f4   : > { %v18261_v44 = vadd.f32 %v12737_v56, %v12736_v54  ;;  %v12739_v8 = vpop.f32.mrb[174].mxu0  ;;  %v7957_v57 = vor.u32 %v7956_v46, %v7952_v2  ;;  %v8932_v47 = vsel %vm13833_vm2, %v8927_v41, %v8931_v31  ;;  %v8291_v37 = vrot.slane %v8136_v0, 5  ;;  %v7623_v41 = vld [vmem:[#allocation3 + $0xb8] sm:$0xf] }
 0x4f5   : > { %v12740_v42 = vpop.f32.mrb[175].mxu0  ;;  %v7948_v26 = vrot.slane %v7947_v13, 4  ;;  %v11972_v43 = vcombine.low %v8922_v55, %v8932_v47  ;;  %v8934_v59 = vshrl.u32 %v8570_v4, 16  ;;  %v8937_v30 = vshll.u32 %v8570_v4, 16  ;;  %v8139_v47 = vld [vmem:[#allocation3 + $0xc8] sm:$0x1] }
 0x4f6   : > { %v18267_v35 = vadd.f32 %v12740_v42, %v12739_v8  ;;  %v7958_v27 = vrot.slane %v7957_v57, 4  ;;  %v8943_v52 = vshll.u32 %v8571_v23, 16  ;;  %v8289_v62 = vsel %vm13841_vm5, %v11924_v39, %v8288_v3  ;;  %v7624_v8 = vld [vmem:[#allocation3 + $0xbc] sm:$0x1]  ;;  %v8137_v42 = vld [vmem:[#allocation3 + $0xc0] sm:$0xe] }
 0x4f7   : > { %v12624_v60 = vpop.f32.mrb[140].mxu1  ;;  %v7953_v12 = vsel %vm13833_vm2, %v7948_v26, %v7952_v2  ;;  %10679 = vmatprep.mubr.bf16.mxu0 %v11972_v43  ;;  %v8290_v40 = vrot.slane %v8288_v3, 4  ;;  %v8947_v15 = vshrl.u32 %v8571_v23, 16  ;;  %v8936_v63 = vrot.slane %v8934_v59, 4  ;;  %v8138_v23 = vld [vmem:[#allocation3 + $0xc4] sm:$0xf] }
 0x4f8   : > { %v12625_v10 = vpop.f32.mrb[141].mxu1  ;;  %v7963_v49 = vsel %vm13833_vm2, %v7958_v27, %v7962_v48  ;;  %10680 = vmatmul.mubr.bf16.gmra.mrb[24].mxu0 %v13438_v32  ;;  %v8939_v31 = vrot.slane %v8937_v30, 5  ;;  %v8945_v18 = vrot.slane %v8943_v52, 5  ;;  %v8953_v14 = vshll.u32 %v8572_v22, 16 }
 0x4f9   : > { %v12627_v9 = vpop.f32.mrb[142].mxu1  ;;  %v11907_v20 = vcombine.low %v7953_v12, %v7963_v49  ;;  %v8292_v61 = vsel %vm13841_vm5, %v8290_v40, %v8291_v37  ;;  %v8949_v54 = vrot.slane %v8947_v15, 4  ;;  %v18277_v29 = vadd.f32 %v12625_v10, %v12624_v60  ;;  %v7625_v49 = vld [vmem:[#allocation3 + $0xc0] sm:$0xf] }
 0x4fa   : > { %v12742_v16 = vpop.f32.mrb[176].mxu0  ;;  %v12628_v38 = vpop.f32.mrb[143].mxu1  ;;  %v11940_v2 = vcombine.low %v8289_v62, %v8292_v61  ;;  %v8940_v1 = vor.u32 %v8939_v31, %v8936_v63  ;;  %v8955_v51 = vrot.slane %v8953_v14, 5  ;;  %v7965_v55 = vshrl.u32 %v7622_v28, 16 }
 0x4fb   : > { %v12743_v33 = vpop.f32.mrb[177].mxu0  ;;  %10511 = vmatmul.mubr.bf16.gmra.mrb[244].mxu1 %v11907_v20  ;;  %v18281_v46 = vadd.f32 %v12628_v38, %v12627_v9  ;;  %v8950_v13 = vor.u32 %v8949_v54, %v8945_v18  ;;  %v7968_v4 = vshll.u32 %v7622_v28, 16  ;;  %v7974_v43 = vshll.u32 %v7623_v41, 16 }
 0x4fc   : > { %v18279_v56 = vadd.f32 %v12743_v33, %v12742_v16  ;;  %v12745_v45 = vpop.f32.mrb[178].mxu0  ;;  %10518 = vmatprep.mubr.bf16.mxu1 %v11940_v2  ;;  %v8941_v57 = vrot.slane %v8940_v1, 4  ;;  %v7967_v48 = vrot.slane %v7965_v55, 4  ;;  %v7978_v27 = vshrl.u32 %v7623_v41, 16  ;;  %v13440_v16 = vld [vmem:[#allocation3 + $0xcc] sm:$0xff]  }
 0x4fd   : > { %v12746_v0 = vpop.f32.mrb[179].mxu0  ;;  %v8951_v26 = vrot.slane %v8950_v13, 4  ;;  %v7970_v32 = vrot.slane %v7968_v4, 5  ;;  %v7984_v60 = vshll.u32 %v7624_v8, 16  ;;  %v7976_v59 = vrot.slane %v7974_v43, 5 }
 0x4fe   : > { %v18283_v39 = vadd.f32 %v12746_v0, %v12745_v45  ;;  %v8946_v37 = vsel %vm13833_vm2, %v8941_v57, %v8945_v18  ;;  %v7980_v30 = vrot.slane %v7978_v27, 4  ;;  %v8295_v52 = vrot.slane %v8138_v23, 5  ;;  %v7626_v1 = vld [vmem:[#allocation3 + $0xc4] sm:$0xf]  ;;  %v7627_v13 = vld [vmem:[#allocation3 + $0xc8] sm:$0x1] }
 0x4ff   : > { %v12630_v3 = vpop.f32.mrb[144].mxu1  ;;  %v8956_v22 = vsel %vm13833_vm2, %v8951_v26, %v8955_v51  ;;  %v7971_v40 = vor.u32 %v7970_v32, %v7967_v48  ;;  %v11925_v15 = vrot.slane %v8137_v42, 9  ;;  %v8298_v9 = vrot.slane %v8139_v47, 5  ;;  %v9038_v57 = vld [vmem:[#allocation3 + $0x1c] sm:$0xf] }
 0x500   : > { %v12631_v12 = vpop.f32.mrb[145].mxu1  ;;  %v11973_v62 = vcombine.low %v8946_v37, %v8956_v22  ;;  %v7981_v63 = vor.u32 %v7980_v30, %v7976_v59  ;;  %v7986_v31 = vrot.slane %v7984_v60, 5  ;;  %v8297_v18 = vrot.slane %v8295_v52, 4  ;;  %v9039_v32 = vld [vmem:[#allocation3 + $0x20] sm:$0x1] }
 0x501   : > { %v12633_v10 = vpop.f32.mrb[146].mxu1  ;;  %v18289_v38 = vadd.f32 %v12631_v12, %v12630_v3  ;;  %v7972_v54 = vrot.slane %v7971_v40, 4  ;;  %v7989_v45 = vshrl.u32 %v7625_v49, 16  ;;  %v7992_v51 = vshll.u32 %v7625_v49, 16 }
 0x502   : > { %v12748_v28 = vpop.f32.mrb[180].mxu0  ;;  %v12634_v20 = vpop.f32.mrb[147].mxu1  ;;  %10687 = vmatprep.mubr.bf16.mxu0 %v11973_v62  ;;  %v7982_v41 = vrot.slane %v7981_v63, 4  ;;  %v8299_v55 = vsel %vm13841_vm5, %v8297_v18, %v8298_v9  ;;  %v7998_v26 = vshll.u32 %v7626_v1, 16  ;;  %v8296_v27 = vsel %vm13841_vm5, %v11925_v15, %v8295_v52  ;;  %v9037_v62 = vld [vmem:[#allocation3 + $0x18] sm:$0xe] }
 0x503   : > { %v12749_v61 = vpop.f32.mrb[181].mxu0  ;;  %v18293_v33 = vadd.f32 %v12634_v20, %v12633_v10  ;;  %10688 = vmatmul.mubr.bf16.gmra.mrb[28].mxu0 %v13440_v16  ;;  %v7977_v0 = vsel %vm13833_vm2, %v7972_v54, %v7976_v59  ;;  %v7991_v23 = vrot.slane %v7989_v45, 4  ;;  %v7994_v47 = vrot.slane %v7992_v51, 5  ;;  %v9041_v45 = vld [vmem:[#allocation3 + $0x28] sm:$0xf] }
 0x504   : > { %v18291_v14 = vadd.f32 %v12749_v61, %v12748_v28  ;;  %v12751_v2 = vpop.f32.mrb[182].mxu0  ;;  %v7987_v4 = vsel %vm13833_vm2, %v7982_v41, %v7986_v31  ;;  %v8002_v3 = vshrl.u32 %v7626_v1, 16  ;;  %v8008_v37 = vshll.u32 %v7627_v13, 16  ;;  %v9044_v51 = vld [vmem:[#allocation3 + $0x34] sm:$0xf] }
 0x505   : > { %v12752_v8 = vpop.f32.mrb[183].mxu0  ;;  %v11908_v43 = vcombine.low %v7977_v0, %v7987_v4  ;;  %v11941_v12 = vcombine.low %v8296_v27, %v8299_v55  ;;  %v7995_v22 = vor.u32 %v7994_v47, %v7991_v23  ;;  %v8000_v59 = vrot.slane %v7998_v26, 5  ;;  %v9042_v55 = vld [vmem:[#allocation3 + $0x2c] sm:$0x1]  ;;  %v9045_v47 = vld [vmem:[#allocation3 + $0x38] sm:$0x1] }
 0x506   : > { %v18299_v42 = vadd.f32 %v12752_v8, %v12751_v2  ;;  %v9135_v30 = vrot.slane %v9038_v57, 5  ;;  %v8004_v49 = vrot.slane %v8002_v3, 4  ;;  %v9138_v63 = vrot.slane %v9039_v32, 5  ;;  %v9040_v27 = vld [vmem:[#allocation3 + $0x24] sm:$0xe] }
 0x507   : > { %v12636_v48 = vpop.f32.mrb[148].mxu1  ;;  %10519 = vmatmul.mubr.bf16.gmra.mrb[248].mxu1 %v11908_v43  ;;  %v7996_v20 = vrot.slane %v7995_v22, 4  ;;  %v8010_v18 = vrot.slane %v8008_v37, 5  ;;  %v11974_v54 = vrot.slane %v9037_v62, 9  ;;  %v9142_v23 = vrot.slane %v9041_v45, 5 }
 0x508   : > { %v12637_v60 = vpop.f32.mrb[149].mxu1  ;;  %10526 = vmatprep.mubr.bf16.mxu1 %v11941_v12  ;;  %v8005_v31 = vor.u32 %v8004_v49, %v8000_v59  ;;  %v9137_v2 = vrot.slane %v9135_v30, 4  ;;  %v9149_v3 = vrot.slane %v9044_v51, 5  ;;  %v9043_v12 = vld [vmem:[#allocation3 + $0x30] sm:$0xe]  ;;  %v9152_v24 = vrot.slane %v9045_v47, 5 }
 0x509   : > { %v12639_v10 = vpop.f32.mrb[150].mxu1  ;;  %v18305_v40 = vadd.f32 %v12637_v60, %v12636_v48  ;;  %v8001_v41 = vsel %vm13833_vm2, %v7996_v20, %v8000_v59  ;;  %v9136_v43 = vsel %vm13841_vm5, %v11974_v54, %v9135_v30  ;;  %v9145_v60 = vrot.slane %v9042_v55, 5  ;;  %v9048_v45 = vld [vmem:[#allocation3 + $0x44] sm:$0x1] }
 0x50a   : > { %v12754_v9 = vpop.f32.mrb[184].mxu0  ;;  %v12640_v28 = vpop.f32.mrb[151].mxu1  ;;  %v8006_v8 = vrot.slane %v8005_v31, 4  ;;  %v9139_v0 = vsel %vm13841_vm5, %v9137_v2, %v9138_v63  ;;  %v11976_v63 = vrot.slane %v9043_v12, 9  ;;  %v9050_v2 = vld [vmem:[#allocation3 + $0x4c] sm:$0xf] }
 0x50b   : > { %v12755_v52 = vpop.f32.mrb[185].mxu0  ;;  %v18307_v15 = vadd.f32 %v12640_v28, %v12639_v10  ;;  %v11990_v32 = vcombine.low %v9136_v43, %v9139_v0  ;;  %v9144_v28 = vrot.slane %v9142_v23, 4  ;;  %v9051_v0 = vld [vmem:[#allocation3 + $0x50] sm:$0x1] }
 0x50c   : > { %v18309_v16 = vadd.f32 %v12755_v52, %v12754_v9  ;;  %v12757_v61 = vpop.f32.mrb[186].mxu0  ;;  %v8011_v4 = vsel %vm13833_vm2, %v8006_v8, %v8010_v18  ;;  %v11975_v9 = vrot.slane %v9040_v27, 9  ;;  %v9151_v52 = vrot.slane %v9149_v3, 4  ;;  %v9047_v18 = vld [vmem:[#allocation3 + $0x40] sm:$0xf] }
 0x50d   : > { %v12758_v1 = vpop.f32.mrb[187].mxu0  ;;  %v11909_v48 = vcombine.low %v8001_v41, %v8011_v4  ;;  %v9156_v51 = vrot.slane %v9047_v18, 5  ;;  %v9150_v47 = vsel %vm13841_vm5, %v11976_v63, %v9149_v3  ;;  %v18352_v18 = vld [vmem:[#allocation3 + $0x58] sm:$0xf] }
 0x50e   : > { %v18313_v13 = vadd.f32 %v12758_v1, %v12757_v61  ;;  %v9146_v61 = vsel %vm13841_vm5, %v9144_v28, %v9145_v60  ;;  %v9153_v1 = vsel %vm13841_vm5, %v9151_v52, %v9152_v24  ;;  %v9143_v8 = vsel %vm13841_vm5, %v11975_v9, %v9142_v23  ;;  %v9049_v23 = vld [vmem:[#allocation3 + $0x48] sm:$0xe] }
 0x50f   : > { %v12642_v57 = vpop.f32.mrb[152].mxu1  ;;  %10527 = vmatmul.mubr.bf16.gmra.mrb[252].mxu1 %v11909_v48  ;;  %v11991_v4 = vcombine.low %v9143_v8, %v9146_v61  ;;  %v9163_v48 = vrot.slane %v9050_v2, 5  ;;  %v9158_v9 = vrot.slane %v9156_v51, 4  ;;  %v11978_v63 = vrot.slane %v9049_v23, 9 }
 0x510   : > { %v12643_v26 = vpop.f32.mrb[153].mxu1  ;;  %13126 = vmatprep.mubr.bf16.mxu1 %v11990_v32  ;;  %v9159_v32 = vrot.slane %v9048_v45, 5 }
 0x511   : > { %v12645_v37 = vpop.f32.mrb[154].mxu1  ;;  %v18321_v22 = vadd.f32 %v12643_v26, %v12642_v57  ;;  %v18338_v57 = vld [vmem:[%s19178_s5] ss:$0 sm:$0xff]  ;;  %v9046_v26 = vld [vmem:[#allocation3 + $0x3c] sm:$0xe]  ;;  %v9165_v52 = vrot.slane %v9163_v48, 4 }
 0x512   : > { %v12760_v59 = vpop.f32.mrb[188].mxu0  ;;  %v12646_v10 = vpop.f32.mrb[155].mxu1  ;;  %v18356_v61 = vadd.f32 %v18231_v7, %v18338_v57  ;;  %v18360_v2 = vadd.f32 %v18239_v36, %v18338_v57  ;;  %v18368_v8 = vadd.f32 %v18243_v25, %v18338_v57  ;;  %v18376_v7 = vadd.f32 %v18259_v58, %v18338_v57 }
 0x513   : > { %v12761_v49 = vpop.f32.mrb[189].mxu0  ;;  %v18323_v62 = vadd.f32 %v12646_v10, %v12645_v37  ;;  %v11992_v37 = vcombine.low %v9150_v47, %v9153_v1  ;;  %v9160_v1 = vsel %vm13841_vm5, %v9158_v9, %v9159_v32  ;;  %v18386_v25 = vadd.f32 %v18281_v46, %v18338_v57  ;;  %v9059_v32 = vld [vmem:[#allocation3 + $0x70] sm:$0xf]  ;;  %v18395_v9 = vld [vmem:[#allocation3 + $0x7c] sm:$0xf] }
 0x514   : > { %v18325_v20 = vadd.f32 %v12761_v49, %v12760_v59  ;;  %v12763_v30 = vpop.f32.mrb[190].mxu0  ;;  %v9166_v59 = vrot.slane %v9051_v0, 5  ;;  %v11977_v49 = vrot.slane %v9046_v26, 9  ;;  %v18372_v0 = vadd.f32 %v18257_v17, %v18338_v57 }
 0x515   : > { %v12764_v31 = vpop.f32.mrb[191].mxu0  ;;  %v18382_v26 = vadd.f32 %v18277_v29, %v18338_v57  ;;  %v9170_v58 = vrot.slane %v18352_v18, 5  ;;  %v18399_v46 = vadd.f32 %v18289_v38, %v18338_v57 }
 0x516   : > { %v18329_v54 = vadd.f32 %v12764_v31, %v12763_v30  ;;  %v18350_v30 = vadd.f32 %v18225_v5, %v18338_v57  ;;  %v9052_v5 = vld [vmem:[#allocation3 + $0x54] sm:$0xe]  ;;  %v9167_v36 = vsel %vm13841_vm5, %v9165_v52, %v9166_v59  ;;  %v9157_v17 = vsel %vm13841_vm5, %v11977_v49, %v9156_v51 }
 0x517   : > { %v12648_v41 = vpop.f32.mrb[156].mxu1  ;;  %13127 = vmatmul.mubr.bf16.vlgmr.msra.gmra.mrb[0].mxu1 %v11991_v4  ;;  %v9055_v4 = vld [vmem:[#allocation3 + $0x60] sm:$0xe]  ;;  %v11993_v23 = vcombine.low %v9157_v17, %v9160_v1  ;;  %v18403_v51 = vadd.f32 %v18293_v33, %v18338_v57  ;;  %v9063_v17 = vld [vmem:[#allocation3 + $0x80] sm:$0x1]  ;;  %v9191_v33 = vrot.slane %v18395_v9, 5  ;;  %v18422_v9 = vadd.f32 %v18321_v22, %v18338_v57 }
 0x518   : > { %v12649_v55 = vpop.f32.mrb[157].mxu1  ;;  %13130 = vmatprep.mubr.bf16.mxu1 %v11992_v37  ;;  %v11980_v38 = vrot.slane %v9055_v4, 9 }
 0x519   : > { %v18342_v43 = vadd.f32 %v12649_v55, %v12648_v41  ;;  %v12651_v27 = vpop.f32.mrb[158].mxu1  ;;  %v9056_v41 = vld [vmem:[#allocation3 + $0x64] sm:$0xf]  ;;  %v9054_v55 = vld [vmem:[#allocation3 + $0x5c] sm:$0x1] }
 0x51a   : > { %v12766_v60 = vpop.f32.mrb[192].mxu0  ;;  %v12652_v12 = vpop.f32.mrb[159].mxu1 }
 0x51b   : > { %v12767_v10 = vpop.f32.mrb[193].mxu0  ;;  %v18344_v24 = vadd.f32 %v12652_v12, %v12651_v27  ;;  %v9057_v27 = vld [vmem:[#allocation3 + $0x68] sm:$0x1]  ;;  %v9177_v12 = vrot.slane %v9056_v41, 5 }
 0x51c   : > { %v18346_v28 = vadd.f32 %v12767_v10, %v12766_v60  ;;  %v12769_v3 = vpop.f32.mrb[194].mxu0  ;;  %v9164_v60 = vsel %vm13841_vm5, %v11978_v63, %v9163_v48  ;;  %v9058_v10 = vld [vmem:[#allocation3 + $0x6c] sm:$0xe]  ;;  %v9060_v48 = vld [vmem:[#allocation3 + $0x74] sm:$0x1]  ;;  %v11979_v63 = vrot.slane %v9052_v5, 9  ;;  %v18414_v5 = vadd.f32 %v18307_v15, %v18338_v57 }
 0x51d   : > { %v12770_v31 = vpop.f32.mrb[195].mxu0  ;;  %v11994_v49 = vcombine.low %v9164_v60, %v9167_v36  ;;  %v9180_v18 = vrot.slane %v9057_v27, 5  ;;  %v18410_v36 = vadd.f32 %v18305_v40, %v18338_v57  ;;  %v18426_v40 = vadd.f32 %v18323_v62, %v18338_v57  ;;  %v18438_v62 = vld [vmem:[#allocation3 + $0x8c] sm:$0x1] }
 0x51e   : > { %19725 = vst [vmem:[#allocation104_spill] sm:$0xff] %v18346_v28  ;;  %v18364_v45 = vadd.f32 %v12770_v31, %v12769_v3  ;;  %v9173_v3 = vrot.slane %v9054_v55, 5  ;;  %v9179_v55 = vrot.slane %v9177_v12, 4  ;;  %v9178_v22 = vsel %vm13841_vm5, %v11980_v38, %v9177_v12 }
 0x51f   : > { %v12654_v47 = vpop.f32.mrb[160].mxu1  ;;  %13131 = vmatmul.mubr.bf16.gmra.mrb[4].mxu1 %v11993_v23  ;;  %v9061_v23 = vld [vmem:[#allocation3 + $0x78] sm:$0xe] }
 0x520   : > { %19726 = vst [vmem:[#allocation111_spill] sm:$0xff] %v18364_v45  ;;  %v12655_v37 = vpop.f32.mrb[161].mxu1  ;;  %13134 = vmatprep.mubr.bf16.mxu1 %v11994_v49  ;;  %v9194_v49 = vrot.slane %v9063_v17, 5  ;;  %v9181_v15 = vsel %vm13841_vm5, %v9179_v55, %v9180_v18  ;;  %v10143_v18 = vadd.f32 %v18342_v43, %v18338_v57 }
 0x521   : > { %v18393_v59 = vadd.f32 %v12655_v37, %v12654_v47  ;;  %v12657_v29 = vpop.f32.mrb[162].mxu1  ;;  %v9184_v47 = vrot.slane %v9059_v32, 5  ;;  %v9172_v37 = vrot.slane %v9170_v58, 4  ;;  %v9187_v32 = vrot.slane %v9060_v48, 5  ;;  %v18430_v48 = vld [vmem:[#allocation3 + $0x84] sm:$0xe] }
 0x522   : > { %v12772_v52 = vpop.f32.mrb[196].mxu0  ;;  %v12658_v31 = vpop.f32.mrb[163].mxu1  ;;  %v11996_v12 = vcombine.low %v9178_v22, %v9181_v15 }
 0x523   : > { %v12773_v1 = vpop.f32.mrb[197].mxu0  ;;  %v12659_v41 = vadd.f32 %v12658_v31, %v12657_v29  ;;  %v9174_v4 = vsel %vm13841_vm5, %v9172_v37, %v9173_v3  ;;  %v11981_v29 = vrot.slane %v9058_v10, 9  ;;  %v18432_v3 = vld [vmem:[#allocation3 + $0x88] sm:$0xf]  ;;  %v11982_v10 = vrot.slane %v9061_v23, 9 }
 0x524   : > { %v18405_v45 = vadd.f32 %v12773_v1, %v12772_v52  ;;  %v12775_v28 = vpop.f32.mrb[198].mxu0  ;;  %v9186_v52 = vrot.slane %v9184_v47, 4  ;;  %v9193_v1 = vrot.slane %v9191_v33, 4 }
 0x525   : > { %v12776_v27 = vpop.f32.mrb[199].mxu0 }
 0x526   : > { %19727 = vst [vmem:[#allocation113_spill] sm:$0xff] %v18405_v45  ;;  %v18418_v60 = vadd.f32 %v12776_v27, %v12775_v28  ;;  %v9171_v28 = vsel %vm13841_vm5, %v11979_v63, %v9170_v58  ;;  %v9188_v55 = vsel %vm13841_vm5, %v9186_v52, %v9187_v32  ;;  %v18444_v45 = vld [vmem:[#allocation3 + $0x94] sm:$0xf]  ;;  %v10146_v58 = vadd.f32 %v18344_v24, %v18338_v57 }
 0x527   : > { %v12660_v31 = vpop.f32.mrb[164].mxu1  ;;  %v11995_v37 = vcombine.low %v9171_v28, %v9174_v4  ;;  %v9185_v63 = vsel %vm13841_vm5, %v11981_v29, %v9184_v47  ;;  %v9195_v38 = vsel %vm13841_vm5, %v9193_v1, %v9194_v49  ;;  %v18452_v4 = vld [vmem:[#allocation3 + $0x98] sm:$0x1]  ;;  %v9198_v28 = vrot.slane %v18432_v3, 5 }
 0x528   : > { %19728 = vst [vmem:[#allocation114_spill] sm:$0xff] %v18418_v60  ;;  %v12661_v17 = vpop.f32.mrb[165].mxu1  ;;  %v9201_v24 = vrot.slane %v18438_v62, 5  ;;  %v11997_v15 = vcombine.low %v9185_v63, %v9188_v55  ;;  %v9192_v47 = vsel %vm13841_vm5, %v11982_v10, %v9191_v33  ;;  %v9205_v22 = vrot.slane %v18444_v45, 5 }
 0x529   : > { %v12662_v27 = vadd.f32 %v12661_v17, %v12660_v31  ;;  %v12663_v60 = vpop.f32.mrb[166].mxu1  ;;  %13135 = vmatmul.mubr.bf16.gmra.mrb[8].mxu1 %v11995_v37  ;;  %v10151_v1 = vadd.f32 %v18393_v59, %v18338_v57  ;;  %v11998_v17 = vcombine.low %v9192_v47, %v9195_v38  ;;  %v18466_v62 = vadd.f32 %v18213_v53, %v18350_v30  ;;  %v9074_v47 = vld [vmem:[#allocation3 + $0xac] sm:$0xf] }
 0x52a   : > { %v12778_v23 = vpop.f32.mrb[200].mxu0  ;;  %v12664_v43 = vpop.f32.mrb[167].mxu1  ;;  %13138 = vmatprep.mubr.bf16.mxu1 %v11996_v12  ;;  %v18470_v33 = vadd.f32 %v18217_v6, %v18356_v61  ;;  %v18474_v10 = vadd.f32 %v18233_v50, %v18360_v2  ;;  %v18479_v55 = vadd.f32 %v18235_v19, %v18368_v8  ;;  %v18483_v12 = vadd.f32 %v18245_v21, %v18372_v0 }
 0x52b   : > { %v12779_v32 = vpop.f32.mrb[201].mxu0  ;;  %v12665_v52 = vadd.f32 %v12664_v43, %v12663_v60  ;;  %v10154_v60 = vadd.f32 %v12659_v41, %v18338_v57  ;;  %v9208_v43 = vrot.slane %v18452_v4, 5  ;;  %v10159_v59 = vadd.f32 %v12662_v27, %v18338_v57  ;;  %v9071_v4 = vld [vmem:[#allocation3 + $0xa0] sm:$0xf] }
 0x52c   : > { %v12780_v29 = vadd.f32 %v12779_v32, %v12778_v23  ;;  %v12781_v49 = vpop.f32.mrb[202].mxu0  ;;  %v18487_v53 = vadd.f32 %v18253_v34, %v18376_v7  ;;  %v18492_v50 = vadd.f32 %v18261_v44, %v18382_v26  ;;  %v18496_v61 = vadd.f32 %v18267_v35, %v18386_v25  ;;  %v9067_v35 = vld [vmem:[#allocation3 + $0x90] sm:$0xe] }
 0x52d   : > { %v12782_v37 = vpop.f32.mrb[203].mxu0  ;;  %v10162_v6 = vadd.f32 %v12665_v52, %v18338_v57  ;;  %v18500_v19 = vadd.f32 %v18279_v56, %v18399_v46  ;;  %v18504_v34 = vadd.f32 %v18283_v39, %v18403_v51  ;;  %v18508_v8 = vadd.f32 %v18291_v14, %v18410_v36  ;;  %v19729_v51 = vld [vmem:[#allocation104_spill] sm:$0xff] }
 0x52e   : > { %v12783_v31 = vadd.f32 %v12782_v37, %v12781_v49  ;;  %v18512_v44 = vadd.f32 %v18299_v42, %v18414_v5  ;;  %v18516_v56 = vadd.f32 %v18309_v16, %v18422_v9  ;;  %v18520_v26 = vadd.f32 %v18313_v13, %v18426_v40  ;;  %v19730_v16 = vld [vmem:[#allocation111_spill] sm:$0xff]  ;;  %v19731_v40 = vld [vmem:[#allocation113_spill] sm:$0xff] }
 0x52f   : > { %v12666_v41 = vpop.f32.mrb[168].mxu1  ;;  %v18523_v39 = vadd.f32 %v18325_v20, %v10143_v18  ;;  %v18526_v14 = vadd.f32 %v18329_v54, %v10146_v58  ;;  %v18530_v36 = vadd.f32 %v19729_v51, %v10151_v1  ;;  %v18533_v5 = vadd.f32 %v19730_v16, %v10154_v60  ;;  %v19732_v18 = vld [vmem:[#allocation114_spill] sm:$0xff]  ;;  %v9072_v1 = vld [vmem:[#allocation3 + $0xa4] sm:$0x1] }
 0x530   : > { %v12667_v30 = vpop.f32.mrb[169].mxu1  ;;  %v9200_v13 = vrot.slane %v9198_v28, 4  ;;  %v18538_v54 = vadd.f32 %v19731_v40, %v10159_v59  ;;  %v18541_v27 = vadd.f32 %v19732_v18, %v10162_v6  ;;  %v11984_v58 = vrot.slane %v9067_v35, 9 }
 0x531   : > { %v12668_v21 = vadd.f32 %v12667_v30, %v12666_v41  ;;  %v12669_v2 = vpop.f32.mrb[170].mxu1  ;;  %13139 = vmatmul.mubr.bf16.gmra.mrb[12].mxu1 %v11997_v15  ;;  %v9207_v63 = vrot.slane %v9205_v22, 4  ;;  %v19733_v37 = vrot.slane %v18430_v48, 9  ;;  %v9212_v59 = vrot.slane %v9071_v4, 5  ;;  %v9075_v41 = vld [vmem:[#allocation3 + $0xb0] sm:$0x1] }
 0x532   : > { %v12784_v0 = vpop.f32.mrb[204].mxu0  ;;  %v12670_v7 = vpop.f32.mrb[171].mxu1  ;;  %13142 = vmatprep.mubr.bf16.mxu1 %v11998_v17  ;;  %v9202_v52 = vsel %vm13841_vm5, %v9200_v13, %v9201_v24  ;;  %v9070_v30 = vld [vmem:[#allocation3 + $0x9c] sm:$0xe]  ;;  %v9215_v3 = vrot.slane %v9072_v1, 5 }
 0x533   : > { %v10167_v42 = vadd.f32 %v12668_v21, %v18338_v57  ;;  %v12785_v25 = vpop.f32.mrb[205].mxu0  ;;  %v12671_v46 = vadd.f32 %v12670_v7, %v12669_v2  ;;  %v9209_v49 = vsel %vm13841_vm5, %v9207_v63, %v9208_v43  ;;  %v9206_v43 = vsel %vm13841_vm5, %v11984_v58, %v9205_v22  ;;  %v9077_v58 = vld [vmem:[#allocation3 + $0xb8] sm:$0xf]  ;;  %v9080_v4 = vld [vmem:[#allocation3 + $0xc4] sm:$0xf] }
 0x534   : > { %v12786_v20 = vadd.f32 %v12785_v25, %v12784_v0  ;;  %v12787_v9 = vpop.f32.mrb[206].mxu0  ;;  %v9219_v21 = vrot.slane %v9074_v47, 5  ;;  %v12000_v35 = vcombine.low %v9206_v43, %v9209_v49  ;;  %v9073_v0 = vld [vmem:[#allocation3 + $0xa8] sm:$0xe]  ;;  %v11985_v45 = vrot.slane %v9070_v30, 9 }
 0x535   : > { %v10170_v38 = vadd.f32 %v12671_v46, %v18338_v57  ;;  %v12788_v23 = vpop.f32.mrb[207].mxu0  ;;  %v18546_v32 = vadd.f32 %v12780_v29, %v10167_v42  ;;  %v9199_v29 = vsel %vm13841_vm5, %v19733_v37, %v9198_v28  ;;  %v9222_v28 = vrot.slane %v9075_v41, 5  ;;  %v9078_v47 = vld [vmem:[#allocation3 + $0xbc] sm:$0x1] }
 0x536   : > { %v12789_v15 = vadd.f32 %v12788_v23, %v12787_v9  ;;  %v11999_v24 = vcombine.low %v9199_v29, %v9202_v52  ;;  %v9214_v51 = vrot.slane %v9212_v59, 4  ;;  %v11986_v13 = vrot.slane %v9073_v0, 9  ;;  %v9081_v29 = vld [vmem:[#allocation3 + $0xc8] sm:$0x1] }
 0x537   : > { %v12672_v60 = vpop.f32.mrb[172].mxu1  ;;  %v18552_v17 = vadd.f32 %v12783_v31, %v10170_v38  ;;  %v9221_v9 = vrot.slane %v9219_v21, 4  ;;  %v9226_v37 = vrot.slane %v9077_v58, 5  ;;  %v9233_v43 = vrot.slane %v9080_v4, 5  ;;  %v9084_v4 = vld [vmem:[#allocation3 + $0xd4] sm:$0x1] }
 0x538   : > { %v12673_v6 = vpop.f32.mrb[173].mxu1  ;;  %v9216_v38 = vsel %vm13841_vm5, %v9214_v51, %v9215_v3  ;;  %v9079_v3 = vld [vmem:[#allocation3 + $0xc0] sm:$0xe] }
 0x539   : > { %v12674_v31 = vadd.f32 %v12673_v6, %v12672_v60  ;;  %v12675_v2 = vpop.f32.mrb[174].mxu1  ;;  %13143 = vmatmul.mubr.bf16.gmra.mrb[16].mxu1 %v11999_v24  ;;  %v9223_v52 = vsel %vm13841_vm5, %v9221_v9, %v9222_v28  ;;  %v9213_v60 = vsel %vm13841_vm5, %v11985_v45, %v9212_v59  ;;  %v9220_v6 = vsel %vm13841_vm5, %v11986_v13, %v9219_v21  ;;  %v9076_v24 = vld [vmem:[#allocation3 + $0xb4] sm:$0xe]  ;;  %v9083_v9 = vld [vmem:[#allocation3 + $0xd0] sm:$0xf] }
 0x53a   : > { %v12790_v48 = vpop.f32.mrb[208].mxu0  ;;  %v12676_v7 = vpop.f32.mrb[175].mxu1  ;;  %13146 = vmatprep.mubr.bf16.mxu1 %v12000_v35  ;;  %v9229_v35 = vrot.slane %v9078_v47, 5  ;;  %v11988_v45 = vrot.slane %v9079_v3, 9  ;;  %v9235_v51 = vrot.slane %v9233_v43, 4 }
 0x53b   : > { %v10175_v42 = vadd.f32 %v12674_v31, %v18338_v57  ;;  %v12791_v25 = vpop.f32.mrb[209].mxu0  ;;  %v12677_v46 = vadd.f32 %v12676_v7, %v12675_v2  ;;  %v12002_v2 = vcombine.low %v9220_v6, %v9223_v52 }
 0x53c   : > { %v12792_v16 = vadd.f32 %v12791_v25, %v12790_v48  ;;  %v12793_v22 = vpop.f32.mrb[210].mxu0  ;;  %v9236_v48 = vrot.slane %v9081_v29, 5  ;;  %v9228_v25 = vrot.slane %v9226_v37, 4 }
 0x53d   : > { %v10178_v40 = vadd.f32 %v12677_v46, %v18338_v57  ;;  %v12794_v18 = vpop.f32.mrb[211].mxu0  ;;  %v18566_v63 = vadd.f32 %v12786_v20, %v10175_v42  ;;  %v12001_v20 = vcombine.low %v9213_v60, %v9216_v38  ;;  %v11987_v42 = vrot.slane %v9076_v24, 9 }
 0x53e   : > { %v12795_v23 = vadd.f32 %v12794_v18, %v12793_v22  ;;  %v9230_v18 = vsel %vm13841_vm5, %v9228_v25, %v9229_v35  ;;  %v9237_v38 = vsel %vm13841_vm5, %v9235_v51, %v9236_v48 }
 0x53f   : > { %v12678_v49 = vpop.f32.mrb[176].mxu1  ;;  %v18572_v1 = vadd.f32 %v12789_v15, %v10178_v40  ;;  %v9227_v47 = vsel %vm13841_vm5, %v11987_v42, %v9226_v37 }
 0x540   : > { %v12679_v41 = vpop.f32.mrb[177].mxu1 }
 0x541   : > { %v12680_v30 = vadd.f32 %v12679_v41, %v12678_v49  ;;  %v12681_v31 = vpop.f32.mrb[178].mxu1  ;;  %13147 = vmatmul.mubr.bf16.gmra.mrb[20].mxu1 %v12001_v20  ;;  %v9240_v49 = vrot.slane %v9083_v9, 5  ;;  %v12003_v41 = vcombine.low %v9227_v47, %v9230_v18  ;;  %v9082_v20 = vld [vmem:[#allocation3 + $0xcc] sm:$0xe] }
 0x542   : > { %v12796_v0 = vpop.f32.mrb[212].mxu0  ;;  %v12682_v15 = vpop.f32.mrb[179].mxu1  ;;  %13150 = vmatprep.mubr.bf16.mxu1 %v12002_v2 }
 0x543   : > { %v10183_v59 = vadd.f32 %v12680_v30, %v18338_v57  ;;  %v12797_v7 = vpop.f32.mrb[213].mxu0  ;;  %v12683_v28 = vadd.f32 %v12682_v15, %v12681_v31  ;;  %v9243_v31 = vrot.slane %v9084_v4, 5  ;;  %v11989_v15 = vrot.slane %v9082_v20, 9 }
 0x544   : > { %v12798_v46 = vadd.f32 %v12797_v7, %v12796_v0  ;;  %v12799_v21 = vpop.f32.mrb[214].mxu0 }
 0x545   : > { %v10186_v22 = vadd.f32 %v12683_v28, %v18338_v57  ;;  %v12800_v13 = vpop.f32.mrb[215].mxu0  ;;  %v18580_v40 = vadd.f32 %v12792_v16, %v10183_v59  ;;  %v9234_v16 = vsel %vm13841_vm5, %v11988_v45, %v9233_v43  ;;  %v9241_v45 = vsel %vm13841_vm5, %v11989_v15, %v9240_v49 }
 0x546   : > { %v12801_v58 = vadd.f32 %v12800_v13, %v12799_v21  ;;  %v12004_v30 = vcombine.low %v9234_v16, %v9237_v38 }
 0x547   : > { %v12684_v52 = vpop.f32.mrb[180].mxu1  ;;  %v18588_v29 = vadd.f32 %v12795_v23, %v10186_v22  ;;  %v9242_v23 = vrot.slane %v9240_v49, 4 }
 0x548   : > { %v12685_v60 = vpop.f32.mrb[181].mxu1 }
 0x549   : > { %v12686_v6 = vadd.f32 %v12685_v60, %v12684_v52  ;;  %v12687_v24 = vpop.f32.mrb[182].mxu1  ;;  %13151 = vmatmul.mubr.bf16.gmra.mrb[24].mxu1 %v12003_v41  ;;  %v9244_v43 = vsel %vm13841_vm5, %v9242_v23, %v9243_v31 }
 0x54a   : > { %v12802_v2 = vpop.f32.mrb[216].mxu0  ;;  %v12688_v35 = vpop.f32.mrb[183].mxu1  ;;  %13154 = vmatprep.mubr.bf16.mxu1 %v12004_v30  ;;  %v12005_v22 = vcombine.low %v9241_v45, %v9244_v43 }
 0x54b   : > { %v10191_v3 = vadd.f32 %v12686_v6, %v18338_v57  ;;  %v12803_v0 = vpop.f32.mrb[217].mxu0  ;;  %v12689_v37 = vadd.f32 %v12688_v35, %v12687_v24 }
 0x54c   : > { %v12804_v48 = vadd.f32 %v12803_v0, %v12802_v2  ;;  %v12805_v59 = vpop.f32.mrb[218].mxu0 }
 0x54d   : > { %v12806_v7 = vpop.f32.mrb[219].mxu0  ;;  %v10194_v42 = vadd.f32 %v12689_v37, %v18338_v57  ;;  %v18596_v21 = vadd.f32 %v12798_v46, %v10191_v3 }
 0x54e   : > { %v12807_v28 = vadd.f32 %v12806_v7, %v12805_v59 }
 0x54f   : > { %v12690_v25 = vpop.f32.mrb[184].mxu1  ;;  %v18600_v47 = vadd.f32 %v12801_v58, %v10194_v42 }
 0x550   : > { %v12691_v51 = vpop.f32.mrb[185].mxu1 }
 0x551   : > { %v12692_v13 = vadd.f32 %v12691_v51, %v12690_v25  ;;  %v12693_v9 = vpop.f32.mrb[186].mxu1  ;;  %13155 = vmatmul.mubr.bf16.gmra.mrb[28].mxu1 %v12005_v22 }
 0x552   : > { %v12808_v18 = vpop.f32.mrb[220].mxu0  ;;  %v12694_v38 = vpop.f32.mrb[187].mxu1 }
 0x553   : > { %v12809_v4 = vpop.f32.mrb[221].mxu0  ;;  %v12695_v52 = vadd.f32 %v12694_v38, %v12693_v9  ;;  %v10199_v11 = vadd.f32 %v12692_v13, %v18338_v57 }
 0x554   : > { %v12810_v60 = vadd.f32 %v12809_v4, %v12808_v18  ;;  %v12811_v41 = vpop.f32.mrb[222].mxu0 }
 0x555   : > { %v12812_v16 = vpop.f32.mrb[223].mxu0  ;;  %v10202_v37 = vadd.f32 %v12695_v52, %v18338_v57  ;;  %v18604_v15 = vadd.f32 %v12804_v48, %v10199_v11 }
 0x556   : > { %v12813_v20 = vadd.f32 %v12812_v16, %v12811_v41 }
 0x557   : > { %v12696_v46 = vpop.f32.mrb[188].mxu1  ;;  %v18606_v25 = vadd.f32 %v12807_v28, %v10202_v37 }
 0x558   : > { %v12697_v6 = vpop.f32.mrb[189].mxu1 }
 0x559   : > { %v12698_v49 = vadd.f32 %v12697_v6, %v12696_v46  ;;  %v12699_v24 = vpop.f32.mrb[190].mxu1 }
 0x55a   : > { %v12942_v30 = vpop.f32.mrb[224].mxu0  ;;  %v12700_v31 = vpop.f32.mrb[191].mxu1 }
 0x55b   : > { %v12943_v2 = vpop.f32.mrb[225].mxu0  ;;  %v12701_v35 = vadd.f32 %v12700_v31, %v12699_v24  ;;  %v10207_v45 = vadd.f32 %v12698_v49, %v18338_v57 }
 0x55c   : > { %v12944_v3 = vadd.f32 %v12943_v2, %v12942_v30  ;;  %v12945_v0 = vpop.f32.mrb[226].mxu0 }
 0x55d   : > { %v12946_v58 = vpop.f32.mrb[227].mxu0  ;;  %v10210_v41 = vadd.f32 %v12701_v35, %v18338_v57  ;;  %v18612_v46 = vadd.f32 %v12810_v60, %v10207_v45 }
 0x55e   : > { %v12947_v23 = vadd.f32 %v12946_v58, %v12945_v0 }
 0x55f   : > { %v12830_v59 = vpop.f32.mrb[192].mxu1  ;;  %v18614_v31 = vadd.f32 %v12813_v20, %v10210_v41 }
 0x560   : > { %v12831_v7 = vpop.f32.mrb[193].mxu1 }
 0x561   : > { %v12832_v43 = vadd.f32 %v12831_v7, %v12830_v59  ;;  %v12833_v42 = vpop.f32.mrb[194].mxu1 }
 0x562   : > { %v12948_v51 = vpop.f32.mrb[228].mxu0  ;;  %v12834_v22 = vpop.f32.mrb[195].mxu1 }
 0x563   : > { %v10409_v13 = vadd.f32 %v12832_v43, %v18466_v62  ;;  %v12949_v9 = vpop.f32.mrb[229].mxu0  ;;  %v12835_v18 = vadd.f32 %v12834_v22, %v12833_v42 }
 0x564   : > { %v12950_v38 = vadd.f32 %v12949_v9, %v12948_v51  ;;  %v12951_v4 = vpop.f32.mrb[230].mxu0 }
 0x565   : > { %v10412_v48 = vadd.f32 %v12835_v18, %v18470_v33  ;;  %v12952_v52 = vpop.f32.mrb[231].mxu0  ;;  %v18620_v45 = vadd.f32 %v12944_v3, %v10409_v13 }
 0x566   : > { %v12953_v16 = vadd.f32 %v12952_v52, %v12951_v4 }
 0x567   : > { %v12836_v28 = vpop.f32.mrb[196].mxu1  ;;  %v18625_v4 = vadd.f32 %v12947_v23, %v10412_v48 }
 0x568   : > { %v12837_v6 = vpop.f32.mrb[197].mxu1 }
 0x569   : > { %v12838_v11 = vadd.f32 %v12837_v6, %v12836_v28  ;;  %v12839_v49 = vpop.f32.mrb[198].mxu1 }
 0x56a   : > { %v12954_v24 = vpop.f32.mrb[232].mxu0  ;;  %v12840_v30 = vpop.f32.mrb[199].mxu1 }
 0x56b   : > { %v10417_v62 = vadd.f32 %v12838_v11, %v18474_v10  ;;  %v12955_v2 = vpop.f32.mrb[233].mxu0  ;;  %v12841_v0 = vadd.f32 %v12840_v30, %v12839_v49 }
 0x56c   : > { %v12956_v37 = vadd.f32 %v12955_v2, %v12954_v24  ;;  %v12957_v33 = vpop.f32.mrb[234].mxu0 }
 0x56d   : > { %v10420_v58 = vadd.f32 %v12841_v0, %v18479_v55  ;;  %v12958_v57 = vpop.f32.mrb[235].mxu0  ;;  %v18618_v35 = vadd.f32 %v12950_v38, %v10417_v62 }
 0x56e   : > { %v12959_v60 = vadd.f32 %v12958_v57, %v12957_v33 }
 0x56f   : > { %v12842_v59 = vpop.f32.mrb[200].mxu1  ;;  %v18622_v22 = vadd.f32 %v12953_v16, %v10420_v58 }
 0x570   : > { %v12843_v7 = vpop.f32.mrb[201].mxu1 }
 0x571   : > { %v12844_v43 = vadd.f32 %v12843_v7, %v12842_v59  ;;  %v12845_v42 = vpop.f32.mrb[202].mxu1 }
 0x572   : > { %v12960_v20 = vpop.f32.mrb[236].mxu0  ;;  %v12846_v51 = vpop.f32.mrb[203].mxu1 }
 0x573   : > { %v10425_v10 = vadd.f32 %v12844_v43, %v18483_v12  ;;  %v12961_v9 = vpop.f32.mrb[237].mxu0  ;;  %v12847_v18 = vadd.f32 %v12846_v51, %v12845_v42 }
 0x574   : > { %v12962_v55 = vadd.f32 %v12961_v9, %v12960_v20  ;;  %v12963_v38 = vpop.f32.mrb[238].mxu0 }
 0x575   : > { %v10428_v52 = vadd.f32 %v12847_v18, %v18487_v53  ;;  %v12964_v41 = vpop.f32.mrb[239].mxu0  ;;  %v18628_v49 = vadd.f32 %v12956_v37, %v10425_v10 }
 0x576   : > { %v12965_v28 = vadd.f32 %v12964_v41, %v12963_v38 }
 0x577   : > { %v12848_v6 = vpop.f32.mrb[204].mxu1  ;;  %v18631_v2 = vadd.f32 %v12959_v60, %v10428_v52 }
 0x578   : > { %v12849_v11 = vpop.f32.mrb[205].mxu1 }
 0x579   : > { %v12850_v3 = vadd.f32 %v12849_v11, %v12848_v6  ;;  %v12851_v13 = vpop.f32.mrb[206].mxu1 }
 0x57a   : > { %v12966_v16 = vpop.f32.mrb[240].mxu0  ;;  %v12852_v24 = vpop.f32.mrb[207].mxu1 }
 0x57b   : > { %v10433_v12 = vadd.f32 %v12850_v3, %v18492_v50  ;;  %v12967_v30 = vpop.f32.mrb[241].mxu0  ;;  %v12853_v62 = vadd.f32 %v12852_v24, %v12851_v13 }
 0x57c   : > { %v12968_v23 = vadd.f32 %v12967_v30, %v12966_v16  ;;  %v12969_v48 = vpop.f32.mrb[242].mxu0 }
 0x57d   : > { %v10436_v53 = vadd.f32 %v12853_v62, %v18496_v61  ;;  %v12970_v0 = vpop.f32.mrb[243].mxu0  ;;  %v18634_v33 = vadd.f32 %v12962_v55, %v10433_v12 }
 0x57e   : > { %v12971_v58 = vadd.f32 %v12970_v0, %v12969_v48 }
 0x57f   : > { %v12854_v57 = vpop.f32.mrb[208].mxu1  ;;  %v18636_v59 = vadd.f32 %v12965_v28, %v10436_v53 }
 0x580   : > { %v12855_v37 = vpop.f32.mrb[209].mxu1 }
 0x581   : > { %v12856_v7 = vadd.f32 %v12855_v37, %v12854_v57  ;;  %v12857_v43 = vpop.f32.mrb[210].mxu1 }
 0x582   : > { %v12972_v42 = vpop.f32.mrb[244].mxu0  ;;  %v12858_v50 = vpop.f32.mrb[211].mxu1 }
 0x583   : > { %v10441_v20 = vadd.f32 %v12856_v7, %v18500_v19  ;;  %v12973_v51 = vpop.f32.mrb[245].mxu0  ;;  %v12859_v10 = vadd.f32 %v12858_v50, %v12857_v43 }
 0x584   : > { %v12974_v60 = vadd.f32 %v12973_v51, %v12972_v42  ;;  %v12975_v9 = vpop.f32.mrb[246].mxu0 }
 0x585   : > { %v10444_v61 = vadd.f32 %v12859_v10, %v18504_v34  ;;  %v12976_v18 = vpop.f32.mrb[247].mxu0  ;;  %v18640_v55 = vadd.f32 %v12968_v23, %v10441_v20 }
 0x586   : > { %v12977_v38 = vadd.f32 %v12976_v18, %v12975_v9 }
 0x587   : > { %v12860_v52 = vpop.f32.mrb[212].mxu1  ;;  %v18642_v41 = vadd.f32 %v12971_v58, %v10444_v61 }
 0x588   : > { %v12861_v28 = vpop.f32.mrb[213].mxu1 }
 0x589   : > { %v12862_v6 = vadd.f32 %v12861_v28, %v12860_v52  ;;  %v12863_v11 = vpop.f32.mrb[214].mxu1 }
 0x58a   : > { %v12978_v3 = vpop.f32.mrb[248].mxu0  ;;  %v12864_v13 = vpop.f32.mrb[215].mxu1 }
 0x58b   : > { %v10449_v19 = vadd.f32 %v12862_v6, %v18508_v8  ;;  %v12979_v16 = vpop.f32.mrb[249].mxu0  ;;  %v12865_v24 = vadd.f32 %v12864_v13, %v12863_v11 }
 0x58c   : > { %v12980_v12 = vadd.f32 %v12979_v16, %v12978_v3  ;;  %v12981_v30 = vpop.f32.mrb[250].mxu0 }
 0x58d   : > { %v10452_v34 = vadd.f32 %v12865_v24, %v18512_v44  ;;  %v12982_v62 = vpop.f32.mrb[251].mxu0  ;;  %v18646_v23 = vadd.f32 %v12974_v60, %v10449_v19 }
 0x58e   : > { %v12983_v48 = vadd.f32 %v12982_v62, %v12981_v30 }
 0x58f   : > { %v12866_v53 = vpop.f32.mrb[216].mxu1  ;;  %v18648_v0 = vadd.f32 %v12977_v38, %v10452_v34 }
 0x590   : > { %v12867_v58 = vpop.f32.mrb[217].mxu1 }
 0x591   : > { %v12868_v57 = vadd.f32 %v12867_v58, %v12866_v53  ;;  %v12869_v37 = vpop.f32.mrb[218].mxu1 }
 0x592   : > { %v12984_v7 = vpop.f32.mrb[252].mxu0  ;;  %v12870_v43 = vpop.f32.mrb[219].mxu1 }
 0x593   : > { %v10457_v8 = vadd.f32 %v12868_v57, %v18516_v56  ;;  %v12985_v42 = vpop.f32.mrb[253].mxu0  ;;  %v12871_v50 = vadd.f32 %v12870_v43, %v12869_v37 }
 0x594   : > { %v12986_v20 = vadd.f32 %v12985_v42, %v12984_v7  ;;  %v12987_v51 = vpop.f32.mrb[254].mxu0 }
 0x595   : > { %v10460_v44 = vadd.f32 %v12871_v50, %v18520_v26  ;;  %v12988_v10 = vpop.f32.mrb[255].mxu0  ;;  %v18652_v60 = vadd.f32 %v12980_v12, %v10457_v8 }
 0x596   : > { %v12989_v9 = vadd.f32 %v12988_v10, %v12987_v51 }
 0x597   : > { %v12872_v61 = vpop.f32.mrb[220].mxu1  ;;  %v18654_v18 = vadd.f32 %v12983_v48, %v10460_v44 }
 0x598   : > { %v12873_v38 = vpop.f32.mrb[221].mxu1 }
 0x599   : > { %v12874_v52 = vadd.f32 %v12873_v38, %v12872_v61  ;;  %v12875_v28 = vpop.f32.mrb[222].mxu1 }
 0x59a   : > { %v12990_v6 = vpop.f32.mrb[0].mxu0  ;;  %v12876_v11 = vpop.f32.mrb[223].mxu1 }
 0x59b   : > { %v10465_v56 = vadd.f32 %v12874_v52, %v18523_v39  ;;  %v12991_v3 = vpop.f32.mrb[1].mxu0  ;;  %v12877_v13 = vadd.f32 %v12876_v11, %v12875_v28 }
 0x59c   : > { %v12992_v19 = vadd.f32 %v12991_v3, %v12990_v6  ;;  %v12993_v16 = vpop.f32.mrb[2].mxu0 }
 0x59d   : > { %v10468_v26 = vadd.f32 %v12877_v13, %v18526_v14  ;;  %v12994_v24 = vpop.f32.mrb[3].mxu0  ;;  %v18658_v12 = vadd.f32 %v12986_v20, %v10465_v56 }
 0x59e   : > { %v12995_v30 = vadd.f32 %v12994_v24, %v12993_v16 }
 0x59f   : > { %v12878_v34 = vpop.f32.mrb[224].mxu1  ;;  %v18660_v62 = vadd.f32 %v12989_v9, %v10468_v26 }
 0x5a0   : > { %v12879_v48 = vpop.f32.mrb[225].mxu1 }
 0x5a1   : > { %v12880_v53 = vadd.f32 %v12879_v48, %v12878_v34  ;;  %v12881_v58 = vpop.f32.mrb[226].mxu1 }
 0x5a2   : > { %v12996_v57 = vpop.f32.mrb[4].mxu0  ;;  %v12882_v37 = vpop.f32.mrb[227].mxu1 }
 0x5a3   : > { %v10473_v39 = vadd.f32 %v12880_v53, %v18530_v36  ;;  %v12997_v7 = vpop.f32.mrb[5].mxu0  ;;  %v12883_v43 = vadd.f32 %v12882_v37, %v12881_v58 }
 0x5a4   : > { %v12998_v8 = vadd.f32 %v12997_v7, %v12996_v57  ;;  %v12999_v42 = vpop.f32.mrb[6].mxu0 }
 0x5a5   : > { %v10476_v14 = vadd.f32 %v12883_v43, %v18533_v5  ;;  %v13000_v50 = vpop.f32.mrb[7].mxu0  ;;  %v18664_v20 = vadd.f32 %v12992_v19, %v10473_v39 }
 0x5a6   : > { %v13001_v51 = vadd.f32 %v13000_v50, %v12999_v42 }
 0x5a7   : > { %v12884_v44 = vpop.f32.mrb[228].mxu1  ;;  %v18666_v10 = vadd.f32 %v12995_v30, %v10476_v14 }
 0x5a8   : > { %v12885_v9 = vpop.f32.mrb[229].mxu1 }
 0x5a9   : > { %v12886_v61 = vadd.f32 %v12885_v9, %v12884_v44  ;;  %v12887_v38 = vpop.f32.mrb[230].mxu1 }
 0x5aa   : > { %v13002_v52 = vpop.f32.mrb[8].mxu0  ;;  %v12888_v28 = vpop.f32.mrb[231].mxu1 }
 0x5ab   : > { %v10481_v36 = vadd.f32 %v12886_v61, %v18538_v54  ;;  %v13003_v6 = vpop.f32.mrb[9].mxu0  ;;  %v12889_v11 = vadd.f32 %v12888_v28, %v12887_v38 }
 0x5ac   : > { %v13004_v56 = vadd.f32 %v13003_v6, %v13002_v52  ;;  %v13005_v3 = vpop.f32.mrb[10].mxu0 }
 0x5ad   : > { %v10484_v5 = vadd.f32 %v12889_v11, %v18541_v27  ;;  %v13006_v13 = vpop.f32.mrb[11].mxu0  ;;  %v18670_v19 = vadd.f32 %v12998_v8, %v10481_v36 }
 0x5ae   : > { %v13007_v16 = vadd.f32 %v13006_v13, %v13005_v3 }
 0x5af   : > { %v12890_v26 = vpop.f32.mrb[232].mxu1  ;;  %v18672_v24 = vadd.f32 %v13001_v51, %v10484_v5 }
 0x5b0   : > { %v12891_v30 = vpop.f32.mrb[233].mxu1 }
 0x5b1   : > { %v12892_v34 = vadd.f32 %v12891_v30, %v12890_v26  ;;  %v12893_v48 = vpop.f32.mrb[234].mxu1 }
 0x5b2   : > { %v13008_v53 = vpop.f32.mrb[12].mxu0  ;;  %v12894_v58 = vpop.f32.mrb[235].mxu1 }
 0x5b3   : > { %v10489_v54 = vadd.f32 %v12892_v34, %v18546_v32  ;;  %v13009_v57 = vpop.f32.mrb[13].mxu0  ;;  %v12895_v37 = vadd.f32 %v12894_v58, %v12893_v48 }
 0x5b4   : > { %v13010_v39 = vadd.f32 %v13009_v57, %v13008_v53  ;;  %v13011_v7 = vpop.f32.mrb[14].mxu0 }
 0x5b5   : > { %v10492_v27 = vadd.f32 %v12895_v37, %v18552_v17  ;;  %v13012_v43 = vpop.f32.mrb[15].mxu0  ;;  %v18676_v8 = vadd.f32 %v13004_v56, %v10489_v54 }
 0x5b6   : > { %v13013_v42 = vadd.f32 %v13012_v43, %v13011_v7 }
 0x5b7   : > { %v12896_v14 = vpop.f32.mrb[236].mxu1  ;;  %v18678_v50 = vadd.f32 %v13007_v16, %v10492_v27 }
 0x5b8   : > { %v12897_v51 = vpop.f32.mrb[237].mxu1 }
 0x5b9   : > { %v12898_v44 = vadd.f32 %v12897_v51, %v12896_v14  ;;  %v12899_v9 = vpop.f32.mrb[238].mxu1 }
 0x5ba   : > { %v13014_v61 = vpop.f32.mrb[16].mxu0  ;;  %v12900_v38 = vpop.f32.mrb[239].mxu1 }
 0x5bb   : > { %v10497_v32 = vadd.f32 %v12898_v44, %v18566_v63  ;;  %v13015_v52 = vpop.f32.mrb[17].mxu0  ;;  %v12901_v28 = vadd.f32 %v12900_v38, %v12899_v9 }
 0x5bc   : > { %v13016_v36 = vadd.f32 %v13015_v52, %v13014_v61  ;;  %v13017_v6 = vpop.f32.mrb[18].mxu0 }
 0x5bd   : > { %v10500_v17 = vadd.f32 %v12901_v28, %v18572_v1  ;;  %v13018_v11 = vpop.f32.mrb[19].mxu0  ;;  %v18682_v56 = vadd.f32 %v13010_v39, %v10497_v32 }
 0x5be   : > { %v13019_v3 = vadd.f32 %v13018_v11, %v13017_v6 }
 0x5bf   : > { %v18684_v5 = vadd.f32 %v13013_v42, %v10500_v17 }
 0x5c2   : > { %v13020_v13 = vpop.f32.mrb[20].mxu0 }
 0x5c3   : > { %v13021_v16 = vpop.f32.mrb[21].mxu0  ;;  %v12902_v26 = vpop.f32.mrb[240].mxu1 }
 0x5c4   : > { %v13022_v30 = vadd.f32 %v13021_v16, %v13020_v13  ;;  %v13023_v34 = vpop.f32.mrb[22].mxu0  ;;  %v12903_v48 = vpop.f32.mrb[241].mxu1 }
 0x5c5   : > { %v13024_v53 = vpop.f32.mrb[23].mxu0  ;;  %v12904_v63 = vadd.f32 %v12903_v48, %v12902_v26  ;;  %v12905_v58 = vpop.f32.mrb[242].mxu1 }
 0x5c6   : > { %v13025_v54 = vadd.f32 %v13024_v53, %v13023_v34  ;;  %v12906_v57 = vpop.f32.mrb[243].mxu1 }
 0x5c7   : > { %v10505_v37 = vadd.f32 %v12904_v63, %v18580_v40  ;;  %v12907_v1 = vadd.f32 %v12906_v57, %v12905_v58 }
 0x5c9   : > { %v10508_v39 = vadd.f32 %v12907_v1, %v18588_v29  ;;  %v18688_v7 = vadd.f32 %v13016_v36, %v10505_v37 }
 0x5cb   : > { %v18690_v27 = vadd.f32 %v13019_v3, %v10508_v39  ;;  %v13026_v43 = vpop.f32.mrb[24].mxu0 }
 0x5cc   : > { %v13027_v42 = vpop.f32.mrb[25].mxu0 }
 0x5cd   : > { %v13028_v51 = vadd.f32 %v13027_v42, %v13026_v43  ;;  %v13029_v44 = vpop.f32.mrb[26].mxu0 }
 0x5ce   : > { %v12908_v14 = vpop.f32.mrb[244].mxu1  ;;  %v13030_v61 = vpop.f32.mrb[27].mxu0 }
 0x5cf   : > { %v12909_v9 = vpop.f32.mrb[245].mxu1  ;;  %v13031_v52 = vadd.f32 %v13030_v61, %v13029_v44 }
 0x5d0   : > { %v12910_v38 = vadd.f32 %v12909_v9, %v12908_v14  ;;  %v12911_v32 = vpop.f32.mrb[246].mxu1 }
 0x5d1   : > { %v12912_v28 = vpop.f32.mrb[247].mxu1 }
 0x5d2   : > { %v10513_v40 = vadd.f32 %v12910_v38, %v18596_v21  ;;  %v12913_v6 = vadd.f32 %v12912_v28, %v12911_v32 }
 0x5d4   : > { %v10516_v29 = vadd.f32 %v12913_v6, %v18600_v47  ;;  %v18694_v36 = vadd.f32 %v13022_v30, %v10513_v40 }
 0x5d6   : > { %v18696_v17 = vadd.f32 %v13025_v54, %v10516_v29  ;;  %v13032_v11 = vpop.f32.mrb[28].mxu0 }
 0x5d7   : > { %v13033_v3 = vpop.f32.mrb[29].mxu0 }
 0x5d8   : > { %v13034_v13 = vadd.f32 %v13033_v3, %v13032_v11  ;;  %v13035_v16 = vpop.f32.mrb[30].mxu0 }
 0x5d9   : > { %v13036_v26 = vpop.f32.mrb[31].mxu0 }
 0x5da   : > { %v13037_v34 = vadd.f32 %v13036_v26, %v13035_v16  ;;  %v12914_v48 = vpop.f32.mrb[248].mxu1 }
 0x5db   : > { %v12915_v53 = vpop.f32.mrb[249].mxu1 }
 0x5dc   : > { %v12916_v63 = vadd.f32 %v12915_v53, %v12914_v48  ;;  %v12917_v58 = vpop.f32.mrb[250].mxu1 }
 0x5dd   : > { %v12918_v57 = vpop.f32.mrb[251].mxu1 }
 0x5de   : > { %v10521_v21 = vadd.f32 %v12916_v63, %v18604_v15  ;;  %v12919_v37 = vadd.f32 %v12918_v57, %v12917_v58 }
 0x5e0   : > { %v10524_v47 = vadd.f32 %v12919_v37, %v18606_v25  ;;  %v18700_v30 = vadd.f32 %v13028_v51, %v10521_v21 }
 0x5e2   : > { %v18702_v54 = vadd.f32 %v13031_v52, %v10524_v47  ;;  %v12920_v1 = vpop.f32.mrb[252].mxu1 }
 0x5e3   : > { %v12921_v39 = vpop.f32.mrb[253].mxu1 }
 0x5e4   : > { %v12922_v43 = vadd.f32 %v12921_v39, %v12920_v1  ;;  %v12923_v42 = vpop.f32.mrb[254].mxu1 }
 0x5e5   : > { %v12924_v14 = vpop.f32.mrb[255].mxu1 }
 0x5e6   : > { %v10529_v44 = vadd.f32 %v12922_v43, %v18612_v46  ;;  %v12925_v9 = vadd.f32 %v12924_v14, %v12923_v42 }
 0x5e8   : > { %v10532_v61 = vadd.f32 %v12925_v9, %v18614_v31  ;;  %v18706_v38 = vadd.f32 %v13034_v13, %v10529_v44 }
 0x5ea   : > { %v13128_v15 = vpop.f32.mrb[0].mxu1  ;;  %v18708_v32 = vadd.f32 %v13037_v34, %v10532_v61 }
 0x5eb   : > { %v18711_v25 = vadd.f32 %v13128_v15, %v18618_v35  ;;  %v10730_v51 = vpop.f32.mrb[1].mxu1 }
 0x5ec   : > { %v18714_v52 = vadd.f32 %v10730_v51, %v18620_v45  ;;  %v13129_v28 = vpop.f32.mrb[2].mxu1 }
 0x5ed   : > { %v18717_v40 = vadd.f32 %v13129_v28, %v18622_v22  ;;  %v10733_v46 = vpop.f32.mrb[3].mxu1  ;;  %v10897_v45 = vmul.f32 %v18711_v25, %v18711_v25 }
 0x5ee   : > { %v18720_v6 = vadd.f32 %v10733_v46, %v18625_v4  ;;  %v10895_v31 = vmul.f32 %v18714_v52, %v18714_v52 }
 0x5ef   : > { %v10898_v16 = vmul.f32 %v18717_v40, %v18717_v40 }
 0x5f0   : > { %v10857_v29 = vadd.f32 %v18720_v6, %v18714_v52  ;;  %v10896_v35 = vmul.f32 %v18720_v6, %v18720_v6 }
 0x5f2   : > { %v10858_v11 = vadd.f32 %v10857_v29, %v18711_v25  ;;  %v10927_v22 = vadd.f32 %v10896_v35, %v10895_v31  ;;  %v13132_v3 = vpop.f32.mrb[4].mxu1 }
 0x5f3   : > { %v18732_v13 = vadd.f32 %v13132_v3, %v18634_v33  ;;  %v10746_v4 = vpop.f32.mrb[5].mxu1 }
 0x5f4   : > { %v10928_v26 = vadd.f32 %v10927_v22, %v10897_v45  ;;  %v18737_v34 = vadd.f32 %v10746_v4, %v18628_v49  ;;  %v10859_v48 = vadd.f32 %v10858_v11, %v18717_v40  ;;  %v13133_v53 = vpop.f32.mrb[6].mxu1 }
 0x5f5   : > { %v18741_v63 = vadd.f32 %v13133_v53, %v18636_v59  ;;  %v10749_v58 = vpop.f32.mrb[7].mxu1  ;;  %v10901_v59 = vmul.f32 %v18732_v13, %v18732_v13 }
 0x5f6   : > { %v10860_v57 = vadd.f32 %v10859_v48, %v18737_v34  ;;  %v10899_v33 = vmul.f32 %v18737_v34, %v18737_v34  ;;  %v10929_v21 = vadd.f32 %v10928_v26, %v10898_v16  ;;  %v18747_v37 = vadd.f32 %v10749_v58, %v18631_v2 }
 0x5f7   : > { %v10902_v2 = vmul.f32 %v18741_v63, %v18741_v63 }
 0x5f8   : > { %v10930_v47 = vadd.f32 %v10929_v21, %v10899_v33  ;;  %v10861_v49 = vadd.f32 %v10860_v57, %v18747_v37  ;;  %v10900_v1 = vmul.f32 %v18747_v37, %v18747_v37 }
 0x5fa   : > { %v10862_v39 = vadd.f32 %v10861_v49, %v18732_v13  ;;  %v10931_v43 = vadd.f32 %v10930_v47, %v10900_v1 }
 0x5fc   : > { %v13136_v42 = vpop.f32.mrb[8].mxu1  ;;  %v10932_v9 = vadd.f32 %v10931_v43, %v10901_v59  ;;  %v10863_v15 = vadd.f32 %v10862_v39, %v18741_v63 }
 0x5fd   : > { %v18756_v14 = vadd.f32 %v13136_v42, %v18646_v23  ;;  %v10762_v44 = vpop.f32.mrb[9].mxu1 }
 0x5fe   : > { %v18761_v61 = vadd.f32 %v10762_v44, %v18640_v55  ;;  %v13137_v51 = vpop.f32.mrb[10].mxu1  ;;  %v10933_v29 = vadd.f32 %v10932_v9, %v10902_v2 }
 0x5ff   : > { %v18765_v28 = vadd.f32 %v13137_v51, %v18648_v0  ;;  %v10765_v46 = vpop.f32.mrb[11].mxu1  ;;  %v10905_v0 = vmul.f32 %v18756_v14, %v18756_v14 }
 0x600   : > { %v10864_v31 = vadd.f32 %v10863_v15, %v18761_v61  ;;  %v10903_v23 = vmul.f32 %v18761_v61, %v18761_v61  ;;  %v18771_v35 = vadd.f32 %v10765_v46, %v18642_v41 }
 0x601   : > { %v10906_v41 = vmul.f32 %v18765_v28, %v18765_v28 }
 0x602   : > { %v10934_v45 = vadd.f32 %v10933_v29, %v10903_v23  ;;  %v10865_v55 = vadd.f32 %v10864_v31, %v18771_v35  ;;  %v10904_v11 = vmul.f32 %v18771_v35, %v18771_v35 }
 0x604   : > { %v10866_v22 = vadd.f32 %v10865_v55, %v18756_v14  ;;  %v10935_v3 = vadd.f32 %v10934_v45, %v10904_v11  ;;  %v13140_v4 = vpop.f32.mrb[12].mxu1 }
 0x605   : > { %v18780_v16 = vadd.f32 %v13140_v4, %v18658_v12  ;;  %v10778_v26 = vpop.f32.mrb[13].mxu1 }
 0x606   : > { %v10936_v48 = vadd.f32 %v10935_v3, %v10905_v0  ;;  %v18785_v53 = vadd.f32 %v10778_v26, %v18652_v60  ;;  %v10867_v58 = vadd.f32 %v10866_v22, %v18765_v28  ;;  %v13141_v57 = vpop.f32.mrb[14].mxu1 }
 0x607   : > { %v18789_v33 = vadd.f32 %v13141_v57, %v18660_v62  ;;  %v10781_v21 = vpop.f32.mrb[15].mxu1  ;;  %v10909_v62 = vmul.f32 %v18780_v16, %v18780_v16 }
 0x608   : > { %v10868_v47 = vadd.f32 %v10867_v58, %v18785_v53  ;;  %v10907_v12 = vmul.f32 %v18785_v53, %v18785_v53  ;;  %v10937_v49 = vadd.f32 %v10936_v48, %v10906_v41  ;;  %v18795_v1 = vadd.f32 %v10781_v21, %v18654_v18 }
 0x609   : > { %v10910_v18 = vmul.f32 %v18789_v33, %v18789_v33 }
 0x60a   : > { %v10938_v59 = vadd.f32 %v10937_v49, %v10907_v12  ;;  %v10869_v60 = vadd.f32 %v10868_v47, %v18795_v1  ;;  %v10908_v39 = vmul.f32 %v18795_v1, %v18795_v1 }
 0x60c   : > { %v10870_v43 = vadd.f32 %v10869_v60, %v18780_v16  ;;  %v10939_v42 = vadd.f32 %v10938_v59, %v10908_v39  ;;  %v13144_v44 = vpop.f32.mrb[16].mxu1 }
 0x60d   : > { %v18804_v2 = vadd.f32 %v13144_v44, %v18670_v19  ;;  %v10794_v9 = vpop.f32.mrb[17].mxu1 }
 0x60e   : > { %v10940_v15 = vadd.f32 %v10939_v42, %v10909_v62  ;;  %v18809_v51 = vadd.f32 %v10794_v9, %v18664_v20  ;;  %v10871_v46 = vadd.f32 %v10870_v43, %v18789_v33  ;;  %v13145_v31 = vpop.f32.mrb[18].mxu1 }
 0x60f   : > { %v18813_v23 = vadd.f32 %v13145_v31, %v18672_v24  ;;  %v10797_v29 = vpop.f32.mrb[19].mxu1  ;;  %v10913_v24 = vmul.f32 %v18804_v2, %v18804_v2 }
 0x610   : > { %v10872_v45 = vadd.f32 %v10871_v46, %v18809_v51  ;;  %v10911_v19 = vmul.f32 %v18809_v51, %v18809_v51  ;;  %v10941_v55 = vadd.f32 %v10940_v15, %v10910_v18  ;;  %v18819_v11 = vadd.f32 %v10797_v29, %v18666_v10 }
 0x611   : > { %v10914_v10 = vmul.f32 %v18813_v23, %v18813_v23 }
 0x612   : > { %v10942_v0 = vadd.f32 %v10941_v55, %v10911_v19  ;;  %v10873_v20 = vadd.f32 %v10872_v45, %v18819_v11  ;;  %v10912_v22 = vmul.f32 %v18819_v11, %v18819_v11 }
 0x614   : > { %v10874_v3 = vadd.f32 %v10873_v20, %v18804_v2  ;;  %v10943_v4 = vadd.f32 %v10942_v0, %v10912_v22  ;;  %v13148_v26 = vpop.f32.mrb[20].mxu1 }
 0x615   : > { %v18828_v41 = vadd.f32 %v13148_v26, %v18682_v56  ;;  %v10810_v48 = vpop.f32.mrb[21].mxu1 }
 0x616   : > { %v10944_v58 = vadd.f32 %v10943_v4, %v10913_v24  ;;  %v18833_v57 = vadd.f32 %v10810_v48, %v18676_v8  ;;  %v10875_v21 = vadd.f32 %v10874_v3, %v18813_v23  ;;  %v13149_v47 = vpop.f32.mrb[22].mxu1 }
 0x617   : > { %v18837_v12 = vadd.f32 %v13149_v47, %v18684_v5  ;;  %v10813_v49 = vpop.f32.mrb[23].mxu1  ;;  %v10917_v5 = vmul.f32 %v18828_v41, %v18828_v41 }
 0x618   : > { %v10876_v59 = vadd.f32 %v10875_v21, %v18833_v57  ;;  %v10915_v56 = vmul.f32 %v18833_v57, %v18833_v57  ;;  %v10945_v60 = vadd.f32 %v10944_v58, %v10914_v10  ;;  %v18843_v39 = vadd.f32 %v10813_v49, %v18678_v50 }
 0x619   : > { %v10918_v50 = vmul.f32 %v18837_v12, %v18837_v12 }
 0x61a   : > { %v10946_v62 = vadd.f32 %v10945_v60, %v10915_v56  ;;  %v10877_v8 = vadd.f32 %v10876_v59, %v18843_v39  ;;  %v10916_v43 = vmul.f32 %v18843_v39, %v18843_v39 }
 0x61c   : > { %v10878_v42 = vadd.f32 %v10877_v8, %v18828_v41  ;;  %v10947_v44 = vadd.f32 %v10946_v62, %v10916_v43  ;;  %v13152_v9 = vpop.f32.mrb[24].mxu1 }
 0x61d   : > { %v18852_v18 = vadd.f32 %v13152_v9, %v18694_v36  ;;  %v10826_v15 = vpop.f32.mrb[25].mxu1 }
 0x61e   : > { %v10948_v46 = vadd.f32 %v10947_v44, %v10917_v5  ;;  %v18857_v31 = vadd.f32 %v10826_v15, %v18688_v7  ;;  %v10879_v29 = vadd.f32 %v10878_v42, %v18837_v12  ;;  %v13153_v45 = vpop.f32.mrb[26].mxu1 }
 0x61f   : > { %v18861_v19 = vadd.f32 %v13153_v45, %v18696_v17  ;;  %v10829_v55 = vpop.f32.mrb[27].mxu1  ;;  %v10921_v17 = vmul.f32 %v18852_v18, %v18852_v18 }
 0x620   : > { %v10880_v0 = vadd.f32 %v10879_v29, %v18857_v31  ;;  %v10919_v36 = vmul.f32 %v18857_v31, %v18857_v31  ;;  %v10949_v20 = vadd.f32 %v10948_v46, %v10918_v50  ;;  %v18867_v22 = vadd.f32 %v10829_v55, %v18690_v27 }
 0x621   : > { %v10922_v27 = vmul.f32 %v18861_v19, %v18861_v19 }
 0x622   : > { %v10950_v24 = vadd.f32 %v10949_v20, %v10919_v36  ;;  %v10881_v7 = vadd.f32 %v10880_v0, %v18867_v22  ;;  %v10920_v3 = vmul.f32 %v18867_v22, %v18867_v22 }
 0x624   : > { %v10882_v4 = vadd.f32 %v10881_v7, %v18852_v18  ;;  %v10951_v26 = vadd.f32 %v10950_v24, %v10920_v3  ;;  %v13156_v48 = vpop.f32.mrb[28].mxu1 }
 0x625   : > { %v18876_v10 = vadd.f32 %v13156_v48, %v18706_v38  ;;  %v10842_v58 = vpop.f32.mrb[29].mxu1 }
 0x626   : > { %v10952_v21 = vadd.f32 %v10951_v26, %v10921_v17  ;;  %v18881_v47 = vadd.f32 %v10842_v58, %v18700_v30  ;;  %v10883_v49 = vadd.f32 %v10882_v4, %v18861_v19  ;;  %v13157_v59 = vpop.f32.mrb[30].mxu1 }
 0x627   : > { %v18885_v56 = vadd.f32 %v13157_v59, %v18708_v32  ;;  %v10845_v60 = vpop.f32.mrb[31].mxu1  ;;  %v10925_v32 = vmul.f32 %v18876_v10, %v18876_v10 }
 0x628   : > { %v10884_v62 = vadd.f32 %v10883_v49, %v18881_v47  ;;  %v10923_v38 = vmul.f32 %v18881_v47, %v18881_v47  ;;  %v10953_v8 = vadd.f32 %v10952_v21, %v10922_v27  ;;  %v18891_v43 = vadd.f32 %v10845_v60, %v18702_v54 }
 0x629   : > { %v10926_v15 = vmul.f32 %v18885_v56, %v18885_v56 }
 0x62a   : > { %v10954_v5 = vadd.f32 %v10953_v8, %v10923_v38  ;;  %v10885_v30 = vadd.f32 %v10884_v62, %v18891_v43  ;;  %v10924_v42 = vmul.f32 %v18891_v43, %v18891_v43 }
 0x62c   : > { %v10886_v44 = vadd.f32 %v10885_v30, %v18876_v10  ;;  %v10955_v9 = vadd.f32 %v10954_v5, %v10924_v42 }
 0x62e   : > { %v10887_v50 = vadd.f32 %v10886_v44, %v18885_v56  ;;  %v10956_v46 = vadd.f32 %v10955_v9, %v10925_v32 }
 0x630   : > { %v10888_v54 = vrot.slane %v10887_v50, 4  ;;  %v10957_v29 = vadd.f32 %v10956_v46, %v10926_v15 }
 0x632   : > { %v10889_v45 = vadd.f32 %v10888_v54, %v10887_v50  ;;  %v10958_v55 = vrot.slane %v10957_v29, 4 }
 0x634   : > { %v10890_v0 = vrot.slane %v10889_v45, 2  ;;  %v10959_v36 = vadd.f32 %v10958_v55, %v10957_v29 }
 0x636   : > { %v10891_v20 = vadd.f32 %v10890_v0, %v10889_v45  ;;  %v10960_v24 = vrot.slane %v10959_v36, 2 }
 0x638   : > { %v10892_v7 = vrot.slane %v10891_v20, 1  ;;  %v10961_v3 = vadd.f32 %v10960_v24, %v10959_v36 }
 0x63a   : > { %v10893_v17 = vadd.f32 %v10892_v7, %v10891_v20  ;;  %v10962_v4 = vrot.slane %v10961_v3, 1 }
 0x63c   : > { %v18902_v26 = vmul.f32 0.00390625, %v10893_v17  ;;  %v10963_v48 = vadd.f32 %v10962_v4, %v10961_v3  ;;  %v11035_v17 = vld [vmem:[%s18955_s19 + $0x10] sm:$0xff] }
 0x63e   : > { %v10964_v58 = vmul.f32 0.00390625, %v10963_v48  ;;  %v10965_v27 = vmul.f32 %v18902_v26, %v18902_v26  ;;  %v10996_v21 = vsub.f32 %v18891_v43, %v18902_v26  ;;  %v10976_v59 = vsub.f32 %v18771_v35, %v18902_v26 }
 0x63f   : > { %v10978_v60 = vsub.f32 %v18765_v28, %v18902_v26  ;;  %v10979_v38 = vsub.f32 %v18785_v53, %v18902_v26  ;;  %v10980_v8 = vsub.f32 %v18795_v1, %v18902_v26  ;;  %v10981_v5 = vsub.f32 %v18780_v16, %v18902_v26 }
 0x640   : > { %v10966_v49 = vsub.f32 %v10964_v58, %v10965_v27  ;;  %v10982_v43 = vsub.f32 %v18789_v33, %v18902_v26  ;;  %v10983_v30 = vsub.f32 %v18809_v51, %v18902_v26  ;;  %v10984_v28 = vsub.f32 %v18819_v11, %v18902_v26 }
 0x641   : > { %v10985_v35 = vsub.f32 %v18804_v2, %v18902_v26  ;;  %v10986_v53 = vsub.f32 %v18813_v23, %v18902_v26  ;;  %v10987_v16 = vsub.f32 %v18833_v57, %v18902_v26  ;;  %v10988_v33 = vsub.f32 %v18843_v39, %v18902_v26 }
 0x642   : > { %v10999_v62 = vadd.f32 1e-05, %v10966_v49  ;;  %v10989_v1 = vsub.f32 %v18828_v41, %v18902_v26  ;;  %v10990_v51 = vsub.f32 %v18837_v12, %v18902_v26  ;;  %v10991_v2 = vsub.f32 %v18857_v31, %v18902_v26  ;;  %v11034_v49 = vld [vmem:[%s18955_s19 + $0x8] sm:$0xff]  ;;  %v11048_v41 = vld [vmem:[%s18955_s19 + $0x78] sm:$0xff] }
 0x643   : > { %v10992_v11 = vsub.f32 %v18867_v22, %v18902_v26  ;;  %v10993_v23 = vsub.f32 %v18852_v18, %v18902_v26  ;;  %v10994_v57 = vsub.f32 %v18861_v19, %v18902_v26  ;;  %v10995_v39 = vsub.f32 %v18881_v47, %v18902_v26  ;;  %v11051_v18 = vld [vmem:[%s18955_s19 + $0x90] sm:$0xff] }
 0x644   : > { %13571 = vrsqrt.f32 %v10999_v62  ;;  %v10997_v42 = vsub.f32 %v18876_v10, %v18902_v26  ;;  %v10998_v32 = vsub.f32 %v18885_v56, %v18902_v26  ;;  %v10967_v44 = vsub.f32 %v18714_v52, %v18902_v26  ;;  %v11062_v52 = vld [vmem:[%s18955_s19 + $0xe8] sm:$0xff]  ;;  %v11039_v62 = vld [vmem:[%s18955_s19 + $0x30] sm:$0xff] }
 0x645   : > { %v10968_v9 = vsub.f32 %v18720_v6, %v18902_v26  ;;  %v10969_v15 = vsub.f32 %v18711_v25, %v18902_v26  ;;  %v10970_v50 = vsub.f32 %v18717_v40, %v18902_v26  ;;  %v10971_v46 = vsub.f32 %v18737_v34, %v18902_v26  ;;  %v11055_v10 = vld [vmem:[%s18955_s19 + $0xb0] sm:$0xff]  ;;  %v11054_v56 = vld [vmem:[%s18955_s19 + $0xa8] sm:$0xff] }
 0x646   : > { %v10972_v54 = vsub.f32 %v18747_v37, %v18902_v26  ;;  %v10973_v6 = vsub.f32 %v18732_v13, %v18902_v26  ;;  %v10974_v45 = vsub.f32 %v18741_v63, %v18902_v26  ;;  %v10975_v25 = vsub.f32 %v18761_v61, %v18902_v26 }
 0x647   : > { %v10977_v40 = vsub.f32 %v18756_v14, %v18902_v26  ;;  %v11033_v14 = vld [vmem:[%s18955_s19] sm:$0xff]  ;;  %v11059_v26 = vld [vmem:[%s18955_s19 + $0xd0] sm:$0xff] }
 0x64e   : > { %v13572_v29 = vpop.eup %13571 }
 0x64f   : > { %v11030_v34 = vmul.f32 %v13572_v29, %v10996_v21  ;;  %v11001_v55 = vmul.f32 %v13572_v29, %v10967_v44  ;;  %v11002_v0 = vmul.f32 %v13572_v29, %v10968_v9  ;;  %v11003_v37 = vmul.f32 %v13572_v29, %v10969_v15  ;;  %v11036_v21 = vld [vmem:[%s18955_s19 + $0x18] sm:$0xff]  ;;  %v11037_v44 = vld [vmem:[%s18955_s19 + $0x20] sm:$0xff] }
 0x650   : > { %v11004_v36 = vmul.f32 %v13572_v29, %v10970_v50  ;;  %v11005_v13 = vmul.f32 %v13572_v29, %v10971_v46  ;;  %v11006_v20 = vmul.f32 %v13572_v29, %v10972_v54  ;;  %v11007_v63 = vmul.f32 %v13572_v29, %v10973_v6  ;;  %v11043_v50 = vld [vmem:[%s18955_s19 + $0x50] sm:$0xff]  ;;  %v11041_v46 = vld [vmem:[%s18955_s19 + $0x40] sm:$0xff] }
 0x651   : > { %v11094_v24 = vadd.f32 %v11062_v52, %v11030_v34  ;;  %v11008_v7 = vmul.f32 %v13572_v29, %v10974_v45  ;;  %v11009_v3 = vmul.f32 %v13572_v29, %v10975_v25  ;;  %v11010_v61 = vmul.f32 %v13572_v29, %v10976_v59 }
 0x652   : > { %v11011_v4 = vmul.f32 %v13572_v29, %v10977_v40  ;;  %v11012_v48 = vmul.f32 %v13572_v29, %v10978_v60  ;;  %v11013_v58 = vmul.f32 %v13572_v29, %v10979_v38  ;;  %v11014_v27 = vmul.f32 %v13572_v29, %v10980_v8  ;;  %v11040_v38 = vld [vmem:[%s18955_s19 + $0x38] sm:$0xff]  ;;  %v11038_v8 = vld [vmem:[%s18955_s19 + $0x28] sm:$0xff] }
 0x653   : > { %11126 = vst [vmem:[%s18989_s26 + $0xe8] sm:$0xff] %v11094_v24  ;;  %v11015_v59 = vmul.f32 %v13572_v29, %v10981_v5  ;;  %v18992_v9 = vmul.f32 %v13572_v29, %v10982_v43  ;;  %v18994_v15 = vmul.f32 %v13572_v29, %v10983_v30  ;;  %v18996_v60 = vmul.f32 %v13572_v29, %v10984_v28  ;;  %v11044_v43 = vld [vmem:[%s18955_s19 + $0x58] sm:$0xff]  ;;  %v11042_v30 = vld [vmem:[%s18955_s19 + $0x48] sm:$0xff]  ;;  %v11047_v28 = vld [vmem:[%s18955_s19 + $0x70] sm:$0xff] }
 0x654   : > { %v11019_v54 = vmul.f32 %v13572_v29, %v10985_v35  ;;  %v19002_v52 = vmul.f32 %v13572_v29, %v10986_v53  ;;  %v19004_v6 = vmul.f32 %v13572_v29, %v10987_v16  ;;  %v19006_v5 = vmul.f32 %v13572_v29, %v10988_v33  ;;  %v11045_v33 = vld [vmem:[%s18955_s19 + $0x60] sm:$0xff] }
 0x655   : > { %v11023_v45 = vmul.f32 %v13572_v29, %v10989_v1  ;;  %v19017_v35 = vmul.f32 %v13572_v29, %v10990_v51  ;;  %v19022_v53 = vmul.f32 %v13572_v29, %v10991_v2  ;;  %v19027_v16 = vmul.f32 %v13572_v29, %v10992_v11  ;;  %v11046_v1 = vld [vmem:[%s18955_s19 + $0x68] sm:$0xff]  ;;  %v11049_v2 = vld [vmem:[%s18955_s19 + $0x80] sm:$0xff]  ;;  %v11052_v11 = vld [vmem:[%s18955_s19 + $0x98] sm:$0xff] }
 0x656   : > { %v19035_v12 = vmul.f32 %v13572_v29, %v10993_v23  ;;  %v19040_v31 = vmul.f32 %v13572_v29, %v10994_v57  ;;  %v19045_v22 = vmul.f32 %v13572_v29, %v10995_v39  ;;  %v19050_v51 = vmul.f32 %v13572_v29, %v10997_v42  ;;  %v11050_v39 = vld [vmem:[%s18955_s19 + $0x88] sm:$0xff]  ;;  %v11053_v42 = vld [vmem:[%s18955_s19 + $0xa0] sm:$0xff] }
 0x657   : > { %v19058_v19 = vmul.f32 %v13572_v29, %v10998_v32  ;;  %v11065_v23 = vadd.f32 %v11033_v14, %v11001_v55  ;;  %v11066_v47 = vadd.f32 %v11034_v49, %v11002_v0  ;;  %v11067_v57 = vadd.f32 %v11035_v17, %v11003_v37  ;;  %v11057_v37 = vld [vmem:[%s18955_s19 + $0xc0] sm:$0xff]  ;;  %v11064_v14 = vld [vmem:[%s18955_s19 + $0xf8] sm:$0xff] }
 0x658   : > { %19734 = vst [vmem:[#allocation125_spill] sm:$0xff] %v19050_v51  ;;  %v11068_v25 = vadd.f32 %v11036_v21, %v11004_v36  ;;  %v11069_v40 = vadd.f32 %v11037_v44, %v11005_v13  ;;  %v11070_v34 = vadd.f32 %v11038_v8, %v11006_v20  ;;  %v11071_v24 = vadd.f32 %v11039_v62, %v11007_v63  ;;  %v11056_v51 = vld [vmem:[%s18955_s19 + $0xb8] sm:$0xff]  ;;  %v11058_v13 = vld [vmem:[%s18955_s19 + $0xc8] sm:$0xff]  ;;  %v11061_v17 = vld [vmem:[%s18955_s19 + $0xe0] sm:$0xff] }
 0x659   : > { %v11072_v32 = vadd.f32 %v11040_v38, %v11008_v7  ;;  %v11073_v29 = vadd.f32 %v11041_v46, %v11009_v3  ;;  %v11074_v55 = vadd.f32 %v11042_v30, %v11010_v61  ;;  %v11075_v0 = vadd.f32 %v11043_v50, %v11011_v4  ;;  %11097 = vst [vmem:[%s18989_s26] sm:$0xff] %v11065_v23  ;;  %v11060_v36 = vld [vmem:[%s18955_s19 + $0xd8] sm:$0xff]  ;;  %v11063_v61 = vld [vmem:[%s18955_s19 + $0xf0] sm:$0xff] }
 0x65a   : > { %11098 = vst [vmem:[%s18989_s26 + $0x8] sm:$0xff] %v11066_v47  ;;  %11099 = vst [vmem:[%s18989_s26 + $0x10] sm:$0xff] %v11067_v57  ;;  %v11076_v20 = vadd.f32 %v11044_v43, %v11012_v48  ;;  %v11077_v63 = vadd.f32 %v11045_v33, %v11013_v58  ;;  %v11078_v7 = vadd.f32 %v11046_v1, %v11014_v27 }
 0x65b   : > { %v11079_v3 = vadd.f32 %v11047_v28, %v11015_v59  ;;  %11100 = vst [vmem:[%s18989_s26 + $0x18] sm:$0xff] %v11068_v25  ;;  %11101 = vst [vmem:[%s18989_s26 + $0x20] sm:$0xff] %v11069_v40  ;;  %v11080_v4 = vadd.f32 %v11048_v41, %v18992_v9  ;;  %v11081_v48 = vadd.f32 %v11049_v2, %v18994_v15 }
 0x65c   : > { %11102 = vst [vmem:[%s18989_s26 + $0x28] sm:$0xff] %v11070_v34  ;;  %11103 = vst [vmem:[%s18989_s26 + $0x30] sm:$0xff] %v11071_v24  ;;  %v11082_v58 = vadd.f32 %v11050_v39, %v18996_v60  ;;  %v11083_v27 = vadd.f32 %v11051_v18, %v11019_v54  ;;  %v11084_v21 = vadd.f32 %v11052_v11, %v19002_v52 }
 0x65d   : > { %11104 = vst [vmem:[%s18989_s26 + $0x38] sm:$0xff] %v11072_v32  ;;  %11105 = vst [vmem:[%s18989_s26 + $0x40] sm:$0xff] %v11073_v29  ;;  %v11085_v49 = vadd.f32 %v11053_v42, %v19004_v6  ;;  %v11086_v62 = vadd.f32 %v11054_v56, %v19006_v5  ;;  %v11087_v44 = vadd.f32 %v11055_v10, %v11023_v45 }
 0x65e   : > { %11106 = vst [vmem:[%s18989_s26 + $0x48] sm:$0xff] %v11074_v55  ;;  %11107 = vst [vmem:[%s18989_s26 + $0x50] sm:$0xff] %v11075_v0  ;;  %v11088_v59 = vadd.f32 %v11056_v51, %v19017_v35  ;;  %v11089_v9 = vadd.f32 %v11057_v37, %v19022_v53  ;;  %v11090_v15 = vadd.f32 %v11058_v13, %v19027_v16 }
 0x65f   : > { %11108 = vst [vmem:[%s18989_s26 + $0x58] sm:$0xff] %v11076_v20  ;;  %11109 = vst [vmem:[%s18989_s26 + $0x60] sm:$0xff] %v11077_v63  ;;  %v11091_v60 = vadd.f32 %v11059_v26, %v19035_v12  ;;  %v11092_v38 = vadd.f32 %v11060_v36, %v19040_v31  ;;  %v11093_v8 = vadd.f32 %v11061_v17, %v19045_v22  ;;  %v19735_v50 = vld [vmem:[#allocation125_spill] sm:$0xff] }
 0x660   : > { %11110 = vst [vmem:[%s18989_s26 + $0x68] sm:$0xff] %v11078_v7  ;;  %11111 = vst [vmem:[%s18989_s26 + $0x70] sm:$0xff] %v11079_v3  ;;  %v11095_v46 = vadd.f32 %v11063_v61, %v19735_v50  ;;  %v11096_v54 = vadd.f32 %v11064_v14, %v19058_v19 }
 0x661   : > { %11112 = vst [vmem:[%s18989_s26 + $0x78] sm:$0xff] %v11080_v4  ;;  %11113 = vst [vmem:[%s18989_s26 + $0x80] sm:$0xff] %v11081_v48 }
 0x662   : > { %11114 = vst [vmem:[%s18989_s26 + $0x88] sm:$0xff] %v11082_v58  ;;  %11115 = vst [vmem:[%s18989_s26 + $0x90] sm:$0xff] %v11083_v27 }
 0x663   : > { %11116 = vst [vmem:[%s18989_s26 + $0x98] sm:$0xff] %v11084_v21  ;;  %11117 = vst [vmem:[%s18989_s26 + $0xa0] sm:$0xff] %v11085_v49 }
 0x664   : > { %11118 = vst [vmem:[%s18989_s26 + $0xa8] sm:$0xff] %v11086_v62  ;;  %11119 = vst [vmem:[%s18989_s26 + $0xb0] sm:$0xff] %v11087_v44 }
 0x665   : > { %11120 = vst [vmem:[%s18989_s26 + $0xb8] sm:$0xff] %v11088_v59  ;;  %11121 = vst [vmem:[%s18989_s26 + $0xc0] sm:$0xff] %v11089_v9 }
 0x666   : > { %11122 = vst [vmem:[%s18989_s26 + $0xc8] sm:$0xff] %v11090_v15  ;;  %11123 = vst [vmem:[%s18989_s26 + $0xd0] sm:$0xff] %v11091_v60 }
 0x667   : > { %11124 = vst [vmem:[%s18989_s26 + $0xd8] sm:$0xff] %v11092_v38  ;;  %11125 = vst [vmem:[%s18989_s26 + $0xe0] sm:$0xff] %v11093_v8 }
 0x668   : > { %11127 = vst [vmem:[%s18989_s26 + $0xf0] sm:$0xff] %v11095_v46  ;;  %11128 = vst [vmem:[%s18989_s26 + $0xf8] sm:$0xff] %v11096_v54 }
 0x669   : > { %13586 = shalt.err (!%p13583_p3)
}
 0x66a   : > { %s13587_s17 = scalar_lea.hbm %s19108_s10, 4096  ;;  %s13591_s19 = scalar_lea.hbm %s19179_s6, 8192 }
 0x66b   : > { %p13588_p4 = scmp.ne.s32.totalorder %s19108_s10, %s13587_s17  ;;  %p13592_p9 = scmp.lt.u32.totalorder %s19108_s10, %s19179_s6 }
 0x66c   : > { %p13593_p10 = scmp.lt.u32.totalorder %s13591_s19, %s13587_s17  ;;  %p13595_p12 = scmp.lt.u32.totalorder %s13587_s17, %s19108_s10 }
 0x66d   : > { %p13589_p7 = pnand %p13588_p4, %p13714_p5 }
 0x66e   : > { %p13594_p11 = por %p13593_p10, %p13592_p9 }
 0x66f   : > { %p13590_p8 = pneg %p13589_p7 }
 0x670   : > { %p13596_p13 = por %p13595_p12, %p13594_p11 }
 0x672   : > { %p13597_p0 = pnand %p13596_p13, %p13590_p8 }
 0x674   : > { %13600 = shalt.err (!%p13597_p0)
}
 0x675   : > { %s13639_s28 = smov 128   ;;  %s13640_s12 = smov 8  }
 0x676   : > { %13159 = dma.vmem_to_hbm [thread:$0]  (%p13714_p5), %s19112_s29, 4096, %s19108_s10, %s19132_s25, %s13639_s28, %s13639_s28, %s13640_s12  }
 0x677 PF: > { %p13165_p1 = scmp.ge.s32.totalorder %s13635_s24, 2  ;;  %s11158_s9 = sand.u32 1, %s13623_s21  }
 0x678   : > { %s11159_s11 = scalar_lea.sflag [#allocation5], %s11158_s9 }
 0x679   : > { %p13162_p2 = pnand %p13165_p1, %p13718_p6 }
 0x67b   : > { %13618 = dma.done.wait (!%p13162_p2), %s11159_s11, 4096  }
 0x67c   : > { %13620 = vsyncadd (!%p13162_p2), %s11159_s11, 4294963200  ;;  %p16_p3 = scmp.ge.s32.totalorder %s13701_s27, 4   ;;  %s19736_s21 = smov %s13627_s22 }
 0x67d   : > { %s19737_s22 = smov %s13631_s23  ;;  %s19738_s23 = smov %s13712_s30 }
 0x67e   : > { %s19739_s24 = smov %s13701_s27  ;;  %18 = sbr.rel (!%p16_p3) target bundleno = 3 (0x3), region = 87 }
 0x685   :  { %11164 = vsyncpa [#allocation5], 1 }
 0x686   :  { %11166 = vsyncpa [#allocation5 + $0x1], 1 }

</bundles_post_ra>
